<compile_context>
chip_gen: v6e
topology: v6e:2x2x1
jax: 0.10.0
libtpu: 0.0.40
codegen_flags: <defaults>
</compile_context>

<pallas_src>
import jax
import jax.numpy as jnp
from jax import lax
from jax.experimental import pallas as pl
from jax.experimental.pallas import tpu as pltpu


# --------------------------- Pallas kernels -------------------------------- #

def _conv_mm_relu_kernel(w_ref, cols_ref, bias_ref, o_ref):
    """o = relu(W @ colsT + bias); full contraction in a single block; bf16 out."""
    acc = jnp.dot(w_ref[...], cols_ref[...], preferred_element_type=jnp.float32)
    acc = jnp.maximum(acc + bias_ref[...], 0.0)
    o_ref[...] = acc.astype(o_ref.dtype)


def conv_matmul_relu(w2, colsT, bias_col):
    """relu(w2 @ colsT + bias_col) -> bf16.

    w2: (Cout, K) bf16, colsT: (K, N) bf16 with N a multiple of 128,
    bias_col: (Cout, 1) f32.  K (192 / 512 / 576) always fits one VMEM block,
    so there is no K grid, no accumulator scratch and no pl.when phases.
    """
    M, K = w2.shape
    K2, N = colsT.shape
    assert K == K2 and N % 128 == 0 and M % 8 == 0
    return pl.pallas_call(
        _conv_mm_relu_kernel,
        out_shape=jax.ShapeDtypeStruct((M, N), jnp.bfloat16),
        grid_spec=pltpu.PrefetchScalarGridSpec(
            num_scalar_prefetch=0,
            grid=(1,),
            in_specs=[
                pl.BlockSpec((M, K), lambda n: (0, 0)),
                pl.BlockSpec((K, N), lambda n: (0, 0)),
                pl.BlockSpec((M, 1), lambda n: (0, 0)),
            ],
            out_specs=pl.BlockSpec((M, N), lambda n: (0, 0)),
        ),
        compiler_params=pltpu.CompilerParams(
            dimension_semantics=("arbitrary",)),
    )(w2, colsT, bias_col)


def _fc1_int8_kernel(a_ref, wq_ref, scale_ref, bias_ref, o_ref):
    """o = leaky_relu((A @ bf16(Wq)) * col_scale + bias); f32 accumulation."""
    w = wq_ref[...].astype(jnp.bfloat16)           # exact: |q| <= 127 fits bf16
    acc = jnp.dot(a_ref[...], w, preferred_element_type=jnp.float32)
    acc = acc * scale_ref[...] + bias_ref[...]
    o_ref[...] = jnp.where(acc >= 0.0, acc, 0.01 * acc)   # PyTorch default slope


def _fc1_dimension_semantics():
    # Real 2-TensorCore split of the weight stream on v7x; PARALLEL elsewhere.
    try:
        kind = jax.devices()[0].device_kind.lower()
    except Exception:
        kind = ""
    return (pltpu.CORE_PARALLEL,) if "7" in kind else (pltpu.PARALLEL,)


def fc1_leaky_relu(a_pad8, wq, scale_row, bias_row, *, n_block=256):
    """leaky_relu(A @ dequant(Wq) + b): A (8, K) bf16, Wq (K, N) int8.

    Grid of N // n_block output blocks; the int8 weight stream is the only
    large operand and is pipelined block-by-block (core-split on v7x).
    """
    Mp, K = a_pad8.shape
    K2, N = wq.shape
    assert K == K2 and N % n_block == 0
    return pl.pallas_call(
        _fc1_int8_kernel,
        out_shape=jax.ShapeDtypeStruct((Mp, N), jnp.float32),
        grid_spec=pltpu.PrefetchScalarGridSpec(
            num_scalar_prefetch=0,
            grid=(N // n_block,),
            in_specs=[
                pl.BlockSpec((Mp, K), lambda n: (0, 0)),
                pl.BlockSpec((K, n_block), lambda n: (0, n)),
                pl.BlockSpec((1, n_block), lambda n: (0, n)),
                pl.BlockSpec((1, n_block), lambda n: (0, n)),
            ],
            out_specs=pl.BlockSpec((Mp, n_block), lambda n: (0, n)),
        ),
        compiler_params=pltpu.CompilerParams(
            dimension_semantics=_fc1_dimension_semantics()),
    )(a_pad8, wq, scale_row, bias_row)


# ------------------------------ conv via im2col ---------------------------- #

def _im2col_T(x, kh, kw, sh, sw):
    """x: (C, H, W) -> (C*kh*kw, OH*OW); rows ordered (c, i, j) with c slowest,
    matching torch weight.reshape(Cout, Cin*kh*kw).

    For strided convs, a one-time space-to-depth along W makes every patch a
    contiguous minor-dim slice (no lane-strided gathers in the XLA glue).
    """
    C, H, W = x.shape
    OH = (H - kh) // sh + 1
    OW = (W - kw) // sw + 1
    if sw > 1 and W % sw == 0:
        xs = x.reshape(C, H, W // sw, sw).transpose(0, 3, 1, 2)   # (C, sw, H, W//sw)
        patches = [
            xs[:, j % sw, i:i + sh * (OH - 1) + 1:sh, (j // sw):(j // sw) + OW]
            for i in range(kh) for j in range(kw)
        ]
    else:
        patches = [
            x[:, i:i + sh * (OH - 1) + 1:sh, j:j + sw * (OW - 1) + 1:sw]
            for i in range(kh) for j in range(kw)
        ]
    p = jnp.stack(patches, axis=1)                                # (C, kh*kw, OH, OW)
    return p.reshape(C * kh * kw, OH * OW), OH, OW


def conv2d_relu(x, w2, bias_col, kh, kw, stride):
    """x: (Cin, H, W); w2: (Cout, Cin*kh*kw) bf16; bias_col: (Cout, 1) f32.
    Returns (Cout, OH, OW) bf16."""
    x = x.astype(jnp.bfloat16)
    colsT, OH, OW = _im2col_T(x, kh, kw, stride, stride)
    n = OH * OW
    n_pad = (-n) % 128
    if n_pad:                                    # lane-dense, unmasked output stores
        colsT = jnp.pad(colsT, ((0, 0), (0, n_pad)))
    y = conv_matmul_relu(w2, colsT, bias_col)    # (Cout, n + n_pad) bf16
    return y[:, :n].reshape(w2.shape[0], OH, OW)


# ------------------------------ params ------------------------------------- #

def init_params(key, action_dim):
    ks = jax.random.split(key, 10)

    def u(k, shape, fan_in):
        bound = 1.0 / jnp.sqrt(jnp.float32(fan_in))
        return jax.random.uniform(k, shape, jnp.float32, -bound, bound)

    return {
        "conv1_w": u(ks[0], (32, 3, 8, 8), 3 * 8 * 8),
        "conv1_b": u(ks[1], (32,), 3 * 8 * 8),
        "conv2_w": u(ks[2], (64, 32, 4, 4), 32 * 4 * 4),
        "conv2_b": u(ks[3], (64,), 32 * 4 * 4),
        "conv3_w": u(ks[4], (64, 64, 3, 3), 64 * 3 * 3),
        "conv3_b": u(ks[5], (64,), 64 * 3 * 3),
        "fc1_w": u(ks[6], (512, 8960), 8960),
        "fc1_b": u(ks[7], (512,), 8960),
        "fc2_w": u(ks[8], (action_dim, 512), 512),
        "fc2_b": u(ks[9], (action_dim,), 512),
    }


def prepare_params(p):
    """One-time weight relayout outside the forward:
      * conv weights -> (Cout, Cin*kh*kw) bf16, biases -> (Cout, 1) f32
      * fc1 weight transposed to (8960, 512) and symmetrically quantized to
        int8 with per-output-column f32 scales (halves the dominant HBM
        stream; in-kernel dequant is an exact int8->bf16 cast + column scale)
    """
    def w2(w):
        return w.reshape(w.shape[0], -1).astype(jnp.bfloat16)

    def bcol(b):
        return b.reshape(-1, 1).astype(jnp.float32)

    wT = p["fc1_w"].T.astype(jnp.float32)                        # (8960, 512)
    amax = jnp.max(jnp.abs(wT), axis=0, keepdims=True)           # (1, 512)
    scale = jnp.maximum(amax, 1e-30) / 127.0
    wq = jnp.clip(jnp.round(wT / scale), -127.0, 127.0).astype(jnp.int8)

    return {
        "conv1_w2": w2(p["conv1_w"]), "conv1_b": bcol(p["conv1_b"]),
        "conv2_w2": w2(p["conv2_w"]), "conv2_b": bcol(p["conv2_b"]),
        "conv3_w2": w2(p["conv3_w"]), "conv3_b": bcol(p["conv3_b"]),
        "fc1_wq": wq,                                            # (8960, 512) int8
        "fc1_scale": scale.astype(jnp.float32),                  # (1, 512) f32
        "fc1_b": p["fc1_b"].reshape(1, -1).astype(jnp.float32),  # (1, 512) f32
        "fc2_w": p["fc2_w"].astype(jnp.float32),
        "fc2_b": p["fc2_b"].astype(jnp.float32),
    }


# ------------------------------ model forward ------------------------------ #

def qnetwork_cnn_forward(prep, inp):
    # inp.view((1, 3, 210, 160)) semantics: any input with 100800 elements.
    x = inp.reshape(3, 210, 160)
    x = conv2d_relu(x, prep["conv1_w2"], prep["conv1_b"], 8, 8, 4)   # (32, 51, 39)
    x = conv2d_relu(x, prep["conv2_w2"], prep["conv2_b"], 4, 4, 3)   # (64, 16, 12)
    x = conv2d_relu(x, prep["conv3_w2"], prep["conv3_b"], 3, 3, 1)   # (64, 14, 10)
    a = x.reshape(1, -1)                                  # (1, 8960) == torch.flatten(., 1)
    a = jnp.pad(a, ((0, 7), (0, 0)))                      # sublane pad 1 -> 8 (rows 1..7 garbage, sliced off)
    h = fc1_leaky_relu(a, prep["fc1_wq"], prep["fc1_scale"], prep["fc1_b"],
                       n_block=256)[0:1]                  # (1, 512) f32
    # fc2: 512 x action_dim matvec -- fused XLA under jit (per perf review,
    # a dedicated padded pallas_call here is pure launch overhead).
    return h @ prep["fc2_w"].T + prep["fc2_b"]            # (1, action_dim)


def reference_forward(params, inp):
    """True float32 reference (Precision.HIGHEST) for the correctness check."""
    x = inp.reshape(1, 3, 210, 160).astype(jnp.float32)

    def conv(x, w, b, s):
        y = lax.conv_general_dilated(
            x, w, (s, s), "VALID",
            dimension_numbers=("NCHW", "OIHW", "NCHW"),
            precision=lax.Precision.HIGHEST)
        return jax.nn.relu(y + b[None, :, None, None])

    x = conv(x, params["conv1_w"], params["conv1_b"], 4)
    x = conv(x, params["conv2_w"], params["conv2_b"], 3)
    x = conv(x, params["conv3_w"], params["conv3_b"], 1)
    x = x.reshape(1, -1)
    h = jnp.dot(x, params["fc1_w"].T, precision=lax.Precision.HIGHEST) + params["fc1_b"]
    h = jnp.where(h >= 0.0, h, 0.01 * h)
    return jnp.dot(h, params["fc2_w"].T, precision=lax.Precision.HIGHEST) + params["fc2_b"]


if __name__ == "__main__":
    key = jax.random.PRNGKey(0)
    k_params, k_x = jax.random.split(key)

    action_dim = 4
    params = init_params(k_params, action_dim)
    prep = prepare_params(params)      # one-time relayout / bf16 cast / int8 quant
    # The module's forward hardcodes (1, 3, 210, 160); spatial size cannot shrink.
    x = jax.random.uniform(k_x, (1, 3, 210, 160), jnp.float32)

    fwd = jax.jit(qnetwork_cnn_forward)
    out = jax.block_until_ready(fwd(prep, x))
    assert out.shape == (1, action_dim), out.shape

    ref = reference_forward(params, x)
    err = float(jnp.max(jnp.abs(out - ref)))
    if not bool(jnp.allclose(out, ref, rtol=5e-2, atol=5e-3)):
        raise AssertionError(f"mismatch vs f32 reference: max abs err = {err}")

    print("KERNEL_OK")
</pallas_src>

<mosaic_0001>
module attributes {stable_mosaic.version = 11 : i64} {
  func.func @_conv_mm_relu_kernel(%arg0: i32, %arg1: memref<32x192xbf16, #tpu.memory_space<vmem>>, %arg2: memref<192x2048xbf16, #tpu.memory_space<vmem>>, %arg3: memref<32x1xf32, #tpu.memory_space<vmem>>, %arg4: memref<32x2048xbf16, #tpu.memory_space<vmem>>) attributes {dimension_semantics = [#tpu.dimension_semantics<arbitrary>], iteration_bounds = array<i64: 1>, scalar_prefetch = 0 : i64, scratch_operands = 0 : i64, tpu.core_type = #tpu.core_type<tc>, window_params = [{pipeline_mode = #tpu.pipeline_mode<synchronous>, transform_indices = @transform_0, window_bounds = array<i64: 32, 192>}, {pipeline_mode = #tpu.pipeline_mode<synchronous>, transform_indices = @transform_1, window_bounds = array<i64: 192, 2048>}, {pipeline_mode = #tpu.pipeline_mode<synchronous>, transform_indices = @transform_2, window_bounds = array<i64: 32, 1>}, {pipeline_mode = #tpu.pipeline_mode<synchronous>, transform_indices = @transform_3, window_bounds = array<i64: 32, 2048>}]} {
    %c0 = arith.constant 0 : index
    %c0_0 = arith.constant 0 : index
    %0 = vector.load %arg1[%c0, %c0_0] : memref<32x192xbf16, #tpu.memory_space<vmem>>, vector<32x192xbf16>
    %c0_1 = arith.constant 0 : index
    %c0_2 = arith.constant 0 : index
    %1 = vector.load %arg2[%c0_1, %c0_2] : memref<192x2048xbf16, #tpu.memory_space<vmem>>, vector<192x2048xbf16>
    %cst = arith.constant dense<0.000000e+00> : vector<32x2048xf32>
    %2 = tpu.matmul %0, %1, %cst {dimension_numbers = #tpu.dot_dimension_numbers<[1], [0], [0], [1], [0, 0, 1, 1], [], []>} : vector<32x192xbf16>, vector<192x2048xbf16>, vector<32x2048xf32> -> vector<32x2048xf32>
    %c0_3 = arith.constant 0 : index
    %c0_4 = arith.constant 0 : index
    %3 = vector.load %arg3[%c0_3, %c0_4] : memref<32x1xf32, #tpu.memory_space<vmem>>, vector<32x1xf32>
    %4 = vector.broadcast %3 : vector<32x1xf32> to vector<32x2048xf32>
    %5 = arith.addf %2, %4 : vector<32x2048xf32>
    %cst_5 = arith.constant 0.000000e+00 : f32
    %6 = vector.broadcast %cst_5 : f32 to vector<32x2048xf32>
    %7 = arith.maximumf %5, %6 : vector<32x2048xf32>
    %8 = arith.truncf %7 : vector<32x2048xf32> to vector<32x2048xbf16>
    %c0_6 = arith.constant 0 : index
    %c0_7 = arith.constant 0 : index
    %9 = vector.load %arg4[%c0_6, %c0_7] : memref<32x2048xbf16, #tpu.memory_space<vmem>>, vector<32x2048xbf16>
    tpu.vector_store %arg4[%c0_6, %c0_7], %8 {strides = array<i32>} : memref<32x2048xbf16, #tpu.memory_space<vmem>>, vector<32x2048xbf16>,
    return
  }
  func.func @transform_0(%arg0: i32) -> (i32, i32) {
    %c0_i32 = arith.constant 0 : i32
    %c0_i32_0 = arith.constant 0 : i32
    %c0_i32_1 = arith.constant 0 : i32
    return %c0_i32, %c0_i32_0 : i32, i32
  }
  func.func @transform_1(%arg0: i32) -> (i32, i32) {
    %c0_i32 = arith.constant 0 : i32
    %c0_i32_0 = arith.constant 0 : i32
    %c0_i32_1 = arith.constant 0 : i32
    return %c0_i32, %c0_i32_0 : i32, i32
  }
  func.func @transform_2(%arg0: i32) -> (i32, i32) {
    %c0_i32 = arith.constant 0 : i32
    %c0_i32_0 = arith.constant 0 : i32
    %c0_i32_1 = arith.constant 0 : i32
    return %c0_i32, %c0_i32_0 : i32, i32
  }
  func.func @transform_3(%arg0: i32) -> (i32, i32) {
    %c0_i32 = arith.constant 0 : i32
    %c0_i32_0 = arith.constant 0 : i32
    %c0_i32_1 = arith.constant 0 : i32
    return %c0_i32, %c0_i32_0 : i32, i32
  }
}

module attributes {stable_mosaic.version = 11 : i64} {
  func.func @_conv_mm_relu_kernel(%arg0: i32, %arg1: memref<64x512xbf16, #tpu.memory_space<vmem>>, %arg2: memref<512x256xbf16, #tpu.memory_space<vmem>>, %arg3: memref<64x1xf32, #tpu.memory_space<vmem>>, %arg4: memref<64x256xbf16, #tpu.memory_space<vmem>>) attributes {dimension_semantics = [#tpu.dimension_semantics<arbitrary>], iteration_bounds = array<i64: 1>, scalar_prefetch = 0 : i64, scratch_operands = 0 : i64, tpu.core_type = #tpu.core_type<tc>, window_params = [{pipeline_mode = #tpu.pipeline_mode<synchronous>, transform_indices = @transform_0, window_bounds = array<i64: 64, 512>}, {pipeline_mode = #tpu.pipeline_mode<synchronous>, transform_indices = @transform_1, window_bounds = array<i64: 512, 256>}, {pipeline_mode = #tpu.pipeline_mode<synchronous>, transform_indices = @transform_2, window_bounds = array<i64: 64, 1>}, {pipeline_mode = #tpu.pipeline_mode<synchronous>, transform_indices = @transform_3, window_bounds = array<i64: 64, 256>}]} {
    %c0 = arith.constant 0 : index
    %c0_0 = arith.constant 0 : index
    %0 = vector.load %arg1[%c0, %c0_0] : memref<64x512xbf16, #tpu.memory_space<vmem>>, vector<64x512xbf16>
    %c0_1 = arith.constant 0 : index
    %c0_2 = arith.constant 0 : index
    %1 = vector.load %arg2[%c0_1, %c0_2] : memref<512x256xbf16, #tpu.memory_space<vmem>>, vector<512x256xbf16>
    %cst = arith.constant dense<0.000000e+00> : vector<64x256xf32>
    %2 = tpu.matmul %0, %1, %cst {dimension_numbers = #tpu.dot_dimension_numbers<[1], [0], [0], [1], [0, 0, 1, 1], [], []>} : vector<64x512xbf16>, vector<512x256xbf16>, vector<64x256xf32> -> vector<64x256xf32>
    %c0_3 = arith.constant 0 : index
    %c0_4 = arith.constant 0 : index
    %3 = vector.load %arg3[%c0_3, %c0_4] : memref<64x1xf32, #tpu.memory_space<vmem>>, vector<64x1xf32>
    %4 = vector.broadcast %3 : vector<64x1xf32> to vector<64x256xf32>
    %5 = arith.addf %2, %4 : vector<64x256xf32>
    %cst_5 = arith.constant 0.000000e+00 : f32
    %6 = vector.broadcast %cst_5 : f32 to vector<64x256xf32>
    %7 = arith.maximumf %5, %6 : vector<64x256xf32>
    %8 = arith.truncf %7 : vector<64x256xf32> to vector<64x256xbf16>
    %c0_6 = arith.constant 0 : index
    %c0_7 = arith.constant 0 : index
    %9 = vector.load %arg4[%c0_6, %c0_7] : memref<64x256xbf16, #tpu.memory_space<vmem>>, vector<64x256xbf16>
    tpu.vector_store %arg4[%c0_6, %c0_7], %8 {strides = array<i32>} : memref<64x256xbf16, #tpu.memory_space<vmem>>, vector<64x256xbf16>,
    return
  }
  func.func @transform_0(%arg0: i32) -> (i32, i32) {
    %c0_i32 = arith.constant 0 : i32
    %c0_i32_0 = arith.constant 0 : i32
    %c0_i32_1 = arith.constant 0 : i32
    return %c0_i32, %c0_i32_0 : i32, i32
  }
  func.func @transform_1(%arg0: i32) -> (i32, i32) {
    %c0_i32 = arith.constant 0 : i32
    %c0_i32_0 = arith.constant 0 : i32
    %c0_i32_1 = arith.constant 0 : i32
    return %c0_i32, %c0_i32_0 : i32, i32
  }
  func.func @transform_2(%arg0: i32) -> (i32, i32) {
    %c0_i32 = arith.constant 0 : i32
    %c0_i32_0 = arith.constant 0 : i32
    %c0_i32_1 = arith.constant 0 : i32
    return %c0_i32, %c0_i32_0 : i32, i32
  }
  func.func @transform_3(%arg0: i32) -> (i32, i32) {
    %c0_i32 = arith.constant 0 : i32
    %c0_i32_0 = arith.constant 0 : i32
    %c0_i32_1 = arith.constant 0 : i32
    return %c0_i32, %c0_i32_0 : i32, i32
  }
}

module attributes {stable_mosaic.version = 11 : i64} {
  func.func @_conv_mm_relu_kernel(%arg0: i32, %arg1: memref<64x576xbf16, #tpu.memory_space<vmem>>, %arg2: memref<576x256xbf16, #tpu.memory_space<vmem>>, %arg3: memref<64x1xf32, #tpu.memory_space<vmem>>, %arg4: memref<64x256xbf16, #tpu.memory_space<vmem>>) attributes {dimension_semantics = [#tpu.dimension_semantics<arbitrary>], iteration_bounds = array<i64: 1>, scalar_prefetch = 0 : i64, scratch_operands = 0 : i64, tpu.core_type = #tpu.core_type<tc>, window_params = [{pipeline_mode = #tpu.pipeline_mode<synchronous>, transform_indices = @transform_0, window_bounds = array<i64: 64, 576>}, {pipeline_mode = #tpu.pipeline_mode<synchronous>, transform_indices = @transform_1, window_bounds = array<i64: 576, 256>}, {pipeline_mode = #tpu.pipeline_mode<synchronous>, transform_indices = @transform_2, window_bounds = array<i64: 64, 1>}, {pipeline_mode = #tpu.pipeline_mode<synchronous>, transform_indices = @transform_3, window_bounds = array<i64: 64, 256>}]} {
    %c0 = arith.constant 0 : index
    %c0_0 = arith.constant 0 : index
    %0 = vector.load %arg1[%c0, %c0_0] : memref<64x576xbf16, #tpu.memory_space<vmem>>, vector<64x576xbf16>
    %c0_1 = arith.constant 0 : index
    %c0_2 = arith.constant 0 : index
    %1 = vector.load %arg2[%c0_1, %c0_2] : memref<576x256xbf16, #tpu.memory_space<vmem>>, vector<576x256xbf16>
    %cst = arith.constant dense<0.000000e+00> : vector<64x256xf32>
    %2 = tpu.matmul %0, %1, %cst {dimension_numbers = #tpu.dot_dimension_numbers<[1], [0], [0], [1], [0, 0, 1, 1], [], []>} : vector<64x576xbf16>, vector<576x256xbf16>, vector<64x256xf32> -> vector<64x256xf32>
    %c0_3 = arith.constant 0 : index
    %c0_4 = arith.constant 0 : index
    %3 = vector.load %arg3[%c0_3, %c0_4] : memref<64x1xf32, #tpu.memory_space<vmem>>, vector<64x1xf32>
    %4 = vector.broadcast %3 : vector<64x1xf32> to vector<64x256xf32>
    %5 = arith.addf %2, %4 : vector<64x256xf32>
    %cst_5 = arith.constant 0.000000e+00 : f32
    %6 = vector.broadcast %cst_5 : f32 to vector<64x256xf32>
    %7 = arith.maximumf %5, %6 : vector<64x256xf32>
    %8 = arith.truncf %7 : vector<64x256xf32> to vector<64x256xbf16>
    %c0_6 = arith.constant 0 : index
    %c0_7 = arith.constant 0 : index
    %9 = vector.load %arg4[%c0_6, %c0_7] : memref<64x256xbf16, #tpu.memory_space<vmem>>, vector<64x256xbf16>
    tpu.vector_store %arg4[%c0_6, %c0_7], %8 {strides = array<i32>} : memref<64x256xbf16, #tpu.memory_space<vmem>>, vector<64x256xbf16>,
    return
  }
  func.func @transform_0(%arg0: i32) -> (i32, i32) {
    %c0_i32 = arith.constant 0 : i32
    %c0_i32_0 = arith.constant 0 : i32
    %c0_i32_1 = arith.constant 0 : i32
    return %c0_i32, %c0_i32_0 : i32, i32
  }
  func.func @transform_1(%arg0: i32) -> (i32, i32) {
    %c0_i32 = arith.constant 0 : i32
    %c0_i32_0 = arith.constant 0 : i32
    %c0_i32_1 = arith.constant 0 : i32
    return %c0_i32, %c0_i32_0 : i32, i32
  }
  func.func @transform_2(%arg0: i32) -> (i32, i32) {
    %c0_i32 = arith.constant 0 : i32
    %c0_i32_0 = arith.constant 0 : i32
    %c0_i32_1 = arith.constant 0 : i32
    return %c0_i32, %c0_i32_0 : i32, i32
  }
  func.func @transform_3(%arg0: i32) -> (i32, i32) {
    %c0_i32 = arith.constant 0 : i32
    %c0_i32_0 = arith.constant 0 : i32
    %c0_i32_1 = arith.constant 0 : i32
    return %c0_i32, %c0_i32_0 : i32, i32
  }
}

module attributes {stable_mosaic.version = 11 : i64} {
  func.func @_fc1_int8_kernel(%arg0: i32, %arg1: memref<8x8960xbf16, #tpu.memory_space<vmem>>, %arg2: memref<8960x256xi8, #tpu.memory_space<vmem>>, %arg3: memref<1x256xf32, #tpu.memory_space<vmem>>, %arg4: memref<1x256xf32, #tpu.memory_space<vmem>>, %arg5: memref<8x256xf32, #tpu.memory_space<vmem>>) attributes {dimension_semantics = [#tpu.dimension_semantics<parallel>], iteration_bounds = array<i64: 2>, scalar_prefetch = 0 : i64, scratch_operands = 0 : i64, tpu.core_type = #tpu.core_type<tc>, window_params = [{pipeline_mode = #tpu.pipeline_mode<synchronous>, transform_indices = @transform_0, window_bounds = array<i64: 8, 8960>}, {transform_indices = @transform_1, window_bounds = array<i64: 8960, 256>}, {transform_indices = @transform_2, window_bounds = array<i64: 1, 256>}, {transform_indices = @transform_3, window_bounds = array<i64: 1, 256>}, {transform_indices = @transform_4, window_bounds = array<i64: 8, 256>}]} {
    %c0 = arith.constant 0 : index
    %c0_0 = arith.constant 0 : index
    %0 = vector.load %arg2[%c0, %c0_0] : memref<8960x256xi8, #tpu.memory_space<vmem>>, vector<8960x256xi8>
    %1 = arith.sitofp %0 : vector<8960x256xi8> to vector<8960x256xbf16>
    %c0_1 = arith.constant 0 : index
    %c0_2 = arith.constant 0 : index
    %2 = vector.load %arg1[%c0_1, %c0_2] : memref<8x8960xbf16, #tpu.memory_space<vmem>>, vector<8x8960xbf16>
    %cst = arith.constant dense<0.000000e+00> : vector<8x256xf32>
    %3 = tpu.matmul %2, %1, %cst {dimension_numbers = #tpu.dot_dimension_numbers<[1], [0], [0], [1], [0, 0, 1, 1], [], []>} : vector<8x8960xbf16>, vector<8960x256xbf16>, vector<8x256xf32> -> vector<8x256xf32>
    %c0_3 = arith.constant 0 : index
    %c0_4 = arith.constant 0 : index
    %4 = vector.load %arg3[%c0_3, %c0_4] : memref<1x256xf32, #tpu.memory_space<vmem>>, vector<1x256xf32>
    %5 = vector.broadcast %4 : vector<1x256xf32> to vector<8x256xf32>
    %6 = arith.mulf %3, %5 : vector<8x256xf32>
    %c0_5 = arith.constant 0 : index
    %c0_6 = arith.constant 0 : index
    %7 = vector.load %arg4[%c0_5, %c0_6] : memref<1x256xf32, #tpu.memory_space<vmem>>, vector<1x256xf32>
    %8 = vector.broadcast %7 : vector<1x256xf32> to vector<8x256xf32>
    %9 = arith.addf %6, %8 : vector<8x256xf32>
    %cst_7 = arith.constant 0.000000e+00 : f32
    %10 = vector.broadcast %cst_7 : f32 to vector<8x256xf32>
    %11 = arith.cmpf oge, %9, %10 : vector<8x256xf32>
    %cst_8 = arith.constant 0.00999999977 : f32
    %12 = vector.broadcast %cst_8 : f32 to vector<8x256xf32>
    %13 = arith.mulf %12, %9 : vector<8x256xf32>
    %14 = arith.select %11, %9, %13 : vector<8x256xi1>, vector<8x256xf32>
    %c0_9 = arith.constant 0 : index
    %c0_10 = arith.constant 0 : index
    %15 = vector.load %arg5[%c0_9, %c0_10] : memref<8x256xf32, #tpu.memory_space<vmem>>, vector<8x256xf32>
    tpu.vector_store %arg5[%c0_9, %c0_10], %14 {strides = array<i32>} : memref<8x256xf32, #tpu.memory_space<vmem>>, vector<8x256xf32>,
    return
  }
  func.func @transform_0(%arg0: i32) -> (i32, i32) {
    %c0_i32 = arith.constant 0 : i32
    %c0_i32_0 = arith.constant 0 : i32
    %c0_i32_1 = arith.constant 0 : i32
    return %c0_i32, %c0_i32_0 : i32, i32
  }
  func.func @transform_1(%arg0: i32) -> (i32, i32) {
    %c0_i32 = arith.constant 0 : i32
    %c0_i32_0 = arith.constant 0 : i32
    return %c0_i32, %arg0 : i32, i32
  }
  func.func @transform_2(%arg0: i32) -> (i32, i32) {
    %c0_i32 = arith.constant 0 : i32
    %c0_i32_0 = arith.constant 0 : i32
    return %c0_i32, %arg0 : i32, i32
  }
  func.func @transform_3(%arg0: i32) -> (i32, i32) {
    %c0_i32 = arith.constant 0 : i32
    %c0_i32_0 = arith.constant 0 : i32
    return %c0_i32, %arg0 : i32, i32
  }
  func.func @transform_4(%arg0: i32) -> (i32, i32) {
    %c0_i32 = arith.constant 0 : i32
    %c0_i32_0 = arith.constant 0 : i32
    return %c0_i32, %arg0 : i32, i32
  }
}

</mosaic_0001>

<bundles_post_ra>
// kernel: qnetwork_cnn_forward.4
= control target key start
LH: loop header
LB: loop body
LE: loop exit
PB: predicated region body
PF: predicated region fallthrough
CT: control target
= control target key end

     0   :  { %v2221_v3 = vmov 0   ;;  %vm1213_vm0 = vcmask 523264   ;;  %s3066_s1 = inlined_call_operand.vmem [shape: bf16[192,2048], index: 1, kind: input, shape index: {}]   ;;  %s3067_s0 = inlined_call_operand.vmem [shape: bf16[32,192], index: 0, kind: input, shape index: {}]   ;;  %s3068_s2 = inlined_call_operand.vmem [shape: f32[32,1], index: 2, kind: input, shape index: {}]   ;;  %s3069_s3 = inlined_call_operand.vmem [shape: bf16[32,2048], index: 3, kind: output, shape index: {}]  }
   0x1   :  { %v131_v0 = vld [vmem:[%s3066_s1 + $0x380] sm:$0xff]  ;;  %v132_v2 = vld [vmem:[%s3066_s1 + $0x388] sm:$0xff]  ;;  %2213 = vset.pattern.permute.xlu0 %v2221_v3  ;;  %2214 = vset.pattern.permute.xlu1 %v2221_v3 }
   0x2   :  { %v139_v1 = vld [vmem:[%s3066_s1 + $0x3c0] sm:$0xff]  ;;  %v140_v5 = vld [vmem:[%s3066_s1 + $0x3c8] sm:$0xff] }
   0x3   :  { %v2053_v4 = vcombine.high %v131_v0, %v139_v1  ;;  %v2052_v6 = vcombine.low %v131_v0, %v139_v1  ;;  %v115_v7 = vld [vmem:[%s3066_s1 + $0x300] sm:$0xff]  ;;  %v2055_v9 = vcombine.high %v132_v2, %v140_v5  ;;  %v2054_v10 = vcombine.low %v132_v2, %v140_v5  ;;  %v116_v12 = vld [vmem:[%s3066_s1 + $0x308] sm:$0xff] }
   0x4   :  { %v123_v8 = vld [vmem:[%s3066_s1 + $0x340] sm:$0xff]  ;;  %v124_v13 = vld [vmem:[%s3066_s1 + $0x348] sm:$0xff] }
   0x5   :  { %v2037_v11 = vcombine.high %v115_v7, %v123_v8  ;;  %v99_v14 = vld [vmem:[%s3066_s1 + $0x280] sm:$0xff]  ;;  %1220 = vmatprep.subr.bf16.mxu0 %v2053_v4  ;;  %v2039_v15 = vcombine.high %v116_v12, %v124_v13  ;;  %v100_v17 = vld [vmem:[%s3066_s1 + $0x288] sm:$0xff]  ;;  %1273 = vmatprep.subr.bf16.mxu1 %v2055_v9  ;;  %v2036_v19 = vcombine.low %v115_v7, %v123_v8 }
   0x6   :  { %v107_v16 = vld [vmem:[%s3066_s1 + $0x2c0] sm:$0xff]  ;;  %v108_v18 = vld [vmem:[%s3066_s1 + $0x2c8] sm:$0xff]  ;;  %1221 = vmatpush1.bf16.msra.mxu0 %v2052_v6  ;;  %1274 = vmatpush1.bf16.msra.mxu1 %v2054_v10  ;;  %v2038_v20 = vcombine.low %v116_v12, %v124_v13 }
   0x7   :  { %1222 = vmatprep.subr.bf16.mxu0 %v2037_v11  ;;  %v2021_v21 = vcombine.high %v99_v14, %v107_v16  ;;  %1275 = vmatprep.subr.bf16.mxu1 %v2039_v15  ;;  %v2023_v22 = vcombine.high %v100_v17, %v108_v18  ;;  %v83_v23 = vld [vmem:[%s3066_s1 + $0x200] sm:$0xff]  ;;  %v84_v25 = vld [vmem:[%s3066_s1 + $0x208] sm:$0xff]  ;;  %v2020_v27 = vcombine.low %v99_v14, %v107_v16 }
   0x8   :  { %v91_v24 = vld [vmem:[%s3066_s1 + $0x240] sm:$0xff]  ;;  %v92_v26 = vld [vmem:[%s3066_s1 + $0x248] sm:$0xff]  ;;  %v2022_v28 = vcombine.low %v100_v17, %v108_v18 }
   0x9   :  { %v2005_v29 = vcombine.high %v83_v23, %v91_v24  ;;  %v2007_v30 = vcombine.high %v84_v25, %v92_v26  ;;  %v67_v31 = vld [vmem:[%s3066_s1 + $0x180] sm:$0xff]  ;;  %v68_v33 = vld [vmem:[%s3066_s1 + $0x188] sm:$0xff]  ;;  %v2004_v35 = vcombine.low %v83_v23, %v91_v24  ;;  %v2006_v36 = vcombine.low %v84_v25, %v92_v26 }
   0xa   :  { %1223 = vmatpush1.bf16.msra.mxu0 %v2036_v19  ;;  %1276 = vmatpush1.bf16.msra.mxu1 %v2038_v20  ;;  %v75_v32 = vld [vmem:[%s3066_s1 + $0x1c0] sm:$0xff]  ;;  %v76_v34 = vld [vmem:[%s3066_s1 + $0x1c8] sm:$0xff] }
   0xb   :  { %1224 = vmatprep.subr.bf16.mxu0 %v2021_v21  ;;  %1277 = vmatprep.subr.bf16.mxu1 %v2023_v22  ;;  %v1989_v37 = vcombine.high %v67_v31, %v75_v32  ;;  %v1991_v38 = vcombine.high %v68_v33, %v76_v34  ;;  %v51_v39 = vld [vmem:[%s3066_s1 + $0x100] sm:$0xff]  ;;  %v52_v41 = vld [vmem:[%s3066_s1 + $0x108] sm:$0xff]  ;;  %v1988_v43 = vcombine.low %v67_v31, %v75_v32  ;;  %v133_v32 = vld [vmem:[%s3066_s1 + $0x390] sm:$0xff] }
   0xc   :  { %v59_v40 = vld [vmem:[%s3066_s1 + $0x140] sm:$0xff]  ;;  %v60_v42 = vld [vmem:[%s3066_s1 + $0x148] sm:$0xff]  ;;  %v1990_v45 = vcombine.low %v68_v33, %v76_v34  ;;  %v141_v33 = vld [vmem:[%s3066_s1 + $0x3d0] sm:$0xff] }
   0xd   :  { %v2317_v44 = vld [vmem:[%s3067_s0 + $0x4] ss:$8 sps:$4 sm:$0xff]   ;;  %v1973_v46 = vcombine.high %v51_v39, %v59_v40  ;;  %v1975_v47 = vcombine.high %v52_v41, %v60_v42  ;;  %v1972_v52 = vcombine.low %v51_v39, %v59_v40  ;;  %v1974_v53 = vcombine.low %v52_v41, %v60_v42  ;;  %v117_v42 = vld [vmem:[%s3066_s1 + $0x310] sm:$0xff] }
   0xe   :  { %1225 = vmatpush1.bf16.msra.mxu0 %v2020_v27  ;;  %1278 = vmatpush1.bf16.msra.mxu1 %v2022_v28  ;;  %v35_v48 = vld [vmem:[%s3066_s1 + $0x80] sm:$0xff]  ;;  %v36_v50 = vld [vmem:[%s3066_s1 + $0x88] sm:$0xff]  ;;  %v2057_v40 = vcombine.high %v133_v32, %v141_v33 }
   0xf   :  { %1226 = vmatprep.subr.bf16.mxu0 %v2005_v29  ;;  %1279 = vmatprep.subr.bf16.mxu1 %v2007_v30  ;;  %v43_v49 = vld [vmem:[%s3066_s1 + $0xc0] sm:$0xff]  ;;  %v44_v51 = vld [vmem:[%s3066_s1 + $0xc8] sm:$0xff] }
  0x10   :  { %2132 = vmatprep.mubr.msk.bf16.mxu0 %vm1213_vm0, %v2317_v44  ;;  %2134 = vmatprep.mubr.msk.bf16.mxu1 %vm1213_vm0, %v2317_v44  ;;  %v1957_v54 = vcombine.high %v35_v48, %v43_v49  ;;  %v1959_v55 = vcombine.high %v36_v50, %v44_v51  ;;  %v19_v56 = vld [vmem:[%s3066_s1] sm:$0xff]  ;;  %v20_v58 = vld [vmem:[%s3066_s1 + $0x8] sm:$0xff]  ;;  %v1956_v60 = vcombine.low %v35_v48, %v43_v49 }
  0x11   :  { %v27_v57 = vld [vmem:[%s3066_s1 + $0x40] sm:$0xff]  ;;  %v28_v59 = vld [vmem:[%s3066_s1 + $0x48] sm:$0xff]  ;;  %v1958_v61 = vcombine.low %v36_v50, %v44_v51  ;;  %v2056_v48 = vcombine.low %v133_v32, %v141_v33  ;;  %v21_v32 = vld [vmem:[%s3066_s1 + $0x10] sm:$0xff] }
  0x12   :  { %1227 = vmatpush1.bf16.msra.mxu0 %v2004_v35  ;;  %1280 = vmatpush1.bf16.msra.mxu1 %v2006_v36  ;;  %v1941_v62 = vcombine.high %v19_v56, %v27_v57  ;;  %v1943_v63 = vcombine.high %v20_v58, %v28_v59  ;;  %v195_v0 = vld [vmem:[%s3066_s1 + $0x580] sm:$0xff]  ;;  %v196_v2 = vld [vmem:[%s3066_s1 + $0x588] sm:$0xff]  ;;  %v1940_v4 = vcombine.low %v19_v56, %v27_v57  ;;  %v134_v35 = vld [vmem:[%s3066_s1 + $0x398] sm:$0xff] }
  0x13   :  { %1228 = vmatprep.subr.bf16.mxu0 %v1989_v37  ;;  %1281 = vmatprep.subr.bf16.mxu1 %v1991_v38  ;;  %v203_v1 = vld [vmem:[%s3066_s1 + $0x5c0] sm:$0xff]  ;;  %v204_v3 = vld [vmem:[%s3066_s1 + $0x5c8] sm:$0xff]  ;;  %v1942_v5 = vcombine.low %v20_v58, %v28_v59  ;;  %v142_v36 = vld [vmem:[%s3066_s1 + $0x3d8] sm:$0xff] }
  0x14   :  { %v2117_v6 = vcombine.high %v195_v0, %v203_v1  ;;  %v2119_v7 = vcombine.high %v196_v2, %v204_v3  ;;  %v179_v8 = vld [vmem:[%s3066_s1 + $0x500] sm:$0xff]  ;;  %v180_v10 = vld [vmem:[%s3066_s1 + $0x508] sm:$0xff]  ;;  %v2116_v12 = vcombine.low %v195_v0, %v203_v1  ;;  %v2118_v13 = vcombine.low %v196_v2, %v204_v3  ;;  %v110_v56 = vld [vmem:[%s3066_s1 + $0x2d8] sm:$0xff] }
  0x15   :  { %v187_v9 = vld [vmem:[%s3066_s1 + $0x540] sm:$0xff]  ;;  %v188_v11 = vld [vmem:[%s3066_s1 + $0x548] sm:$0xff]  ;;  %v2059_v41 = vcombine.high %v134_v35, %v142_v36  ;;  %v2058_v49 = vcombine.low %v134_v35, %v142_v36  ;;  %v94_v0 = vld [vmem:[%s3066_s1 + $0x258] sm:$0xff] }
  0x16   :  { %1229 = vmatpush1.bf16.msra.mxu0 %v1988_v43  ;;  %1282 = vmatpush1.bf16.msra.mxu1 %v1990_v45  ;;  %v2101_v14 = vcombine.high %v179_v8, %v187_v9  ;;  %v2103_v15 = vcombine.high %v180_v10, %v188_v11  ;;  %v163_v16 = vld [vmem:[%s3066_s1 + $0x480] sm:$0xff]  ;;  %v164_v18 = vld [vmem:[%s3066_s1 + $0x488] sm:$0xff]  ;;  %v2100_v20 = vcombine.low %v179_v8, %v187_v9  ;;  %v125_v43 = vld [vmem:[%s3066_s1 + $0x350] sm:$0xff] }
  0x17   :  { %1230 = vmatprep.subr.bf16.mxu0 %v1973_v46  ;;  %1283 = vmatprep.subr.bf16.mxu1 %v1975_v47  ;;  %v171_v17 = vld [vmem:[%s3066_s1 + $0x4c0] sm:$0xff]  ;;  %v172_v19 = vld [vmem:[%s3066_s1 + $0x4c8] sm:$0xff]  ;;  %v2102_v21 = vcombine.low %v180_v10, %v188_v11  ;;  %v118_v46 = vld [vmem:[%s3066_s1 + $0x318] sm:$0xff]  ;;  %v2041_v50 = vcombine.high %v117_v42, %v125_v43  ;;  %v2040_v57 = vcombine.low %v117_v42, %v125_v43 }
  0x18   :  { %v2085_v22 = vcombine.high %v163_v16, %v171_v17  ;;  %v2087_v23 = vcombine.high %v164_v18, %v172_v19  ;;  %v147_v24 = vld [vmem:[%s3066_s1 + $0x400] sm:$0xff]  ;;  %v148_v26 = vld [vmem:[%s3066_s1 + $0x408] sm:$0xff]  ;;  %v2084_v28 = vcombine.low %v163_v16, %v171_v17  ;;  %v2086_v29 = vcombine.low %v164_v18, %v172_v19  ;;  %v126_v47 = vld [vmem:[%s3066_s1 + $0x358] sm:$0xff] }
  0x19   :  { %v155_v25 = vld [vmem:[%s3066_s1 + $0x440] sm:$0xff]  ;;  %v156_v27 = vld [vmem:[%s3066_s1 + $0x448] sm:$0xff]  ;;  %v2043_v51 = vcombine.high %v118_v46, %v126_v47  ;;  %v2042_v58 = vcombine.low %v118_v46, %v126_v47  ;;  %v2468_v1 = vld [vmem:[%s3067_s0 + $0x10] ss:$8 sps:$4 sm:$0xff]  }
  0x1a   :  { %1231 = vmatpush1.bf16.msra.mxu0 %v1972_v52  ;;  %1284 = vmatpush1.bf16.msra.mxu1 %v1974_v53  ;;  %v2069_v30 = vcombine.high %v147_v24, %v155_v25  ;;  %v2071_v31 = vcombine.high %v148_v26, %v156_v27  ;;  %v211_v34 = vld [vmem:[%s3068_s2] sm:$0xff]  ;;  %v2068_v37 = vcombine.low %v147_v24, %v155_v25  ;;  %v212_v38 = vld [vmem:[%s3068_s2 + $0x8] sm:$0xff]  ;;  %v101_v52 = vld [vmem:[%s3066_s1 + $0x290] sm:$0xff] }
  0x1b   :  { %1232 = vmatprep.subr.bf16.mxu0 %v1957_v54  ;;  %1285 = vmatprep.subr.bf16.mxu1 %v1959_v55  ;;  %v2070_v39 = vcombine.low %v148_v26, %v156_v27  ;;  %v2422_v45 = vld [vmem:[%s3067_s0] ss:$8 sps:$4 sm:$0xff]   ;;  %v109_v53 = vld [vmem:[%s3066_s1 + $0x2d0] sm:$0xff]  ;;  %v102_v55 = vld [vmem:[%s3066_s1 + $0x298] sm:$0xff] }
  0x1c   :  { %217 = vperm.xlu0 %2213, %v211_v34   ;;  %v2439_v54 = vld [vmem:[%s3067_s0 + $0x14] ss:$8 sps:$4 sm:$0xff]   ;;  %v2025_v59 = vcombine.high %v101_v52, %v109_v53  ;;  %v2024_v3 = vcombine.low %v101_v52, %v109_v53 }
  0x1d   :  { %v213_v2 = vld [vmem:[%s3068_s2 + $0x10] sm:$0xff]  ;;  %v70_v9 = vld [vmem:[%s3066_s1 + $0x198] sm:$0xff] }
  0x1e   :  { %1233 = vmatpush1.bf16.msra.mxu0 %v1956_v60  ;;  %1286 = vmatpush1.bf16.msra.mxu1 %v1958_v61  ;;  %v2027_v60 = vcombine.high %v102_v55, %v110_v56  ;;  %v85_v61 = vld [vmem:[%s3066_s1 + $0x210] sm:$0xff]  ;;  %v78_v10 = vld [vmem:[%s3066_s1 + $0x1d8] sm:$0xff] }
  0x1f   :  { %1234 = vmatprep.subr.bf16.mxu0 %v1941_v62  ;;  %1287 = vmatprep.subr.bf16.mxu1 %v1943_v63  ;;  %v93_v62 = vld [vmem:[%s3066_s1 + $0x250] sm:$0xff]  ;;  %v86_v63 = vld [vmem:[%s3066_s1 + $0x218] sm:$0xff] }
  0x20   :  { %222 = vperm.xlu0 %2213, %v212_v38   ;;  %227 = vperm.xlu1 %2214, %v213_v2   ;;  %v77_v8 = vld [vmem:[%s3066_s1 + $0x1d0] sm:$0xff]  ;;  %v2008_v11 = vcombine.low %v85_v61, %v93_v62  ;;  %v54_v18 = vld [vmem:[%s3066_s1 + $0x118] sm:$0xff] }
  0x21   :  { %v53_v16 = vld [vmem:[%s3066_s1 + $0x110] sm:$0xff]  ;;  %v62_v19 = vld [vmem:[%s3066_s1 + $0x158] sm:$0xff] }
  0x22   :  { %1235 = vmatpush1.bf16.msra.mxu0 %v1940_v4  ;;  %1288 = vmatpush1.bf16.msra.mxu1 %v1942_v5  ;;  %v2026_v4 = vcombine.low %v102_v55, %v110_v56  ;;  %v2009_v5 = vcombine.high %v85_v61, %v93_v62  ;;  %v61_v17 = vld [vmem:[%s3066_s1 + $0x150] sm:$0xff]  ;;  %v38_v26 = vld [vmem:[%s3066_s1 + $0x98] sm:$0xff] }
  0x23   :  { %1244 = vmatprep.subr.bf16.mxu0 %v2117_v6  ;;  %1297 = vmatprep.subr.bf16.mxu1 %v2119_v7  ;;  %v2011_v6 = vcombine.high %v86_v63, %v94_v0  ;;  %v69_v7 = vld [vmem:[%s3066_s1 + $0x190] sm:$0xff]  ;;  %v46_v27 = vld [vmem:[%s3066_s1 + $0xd8] sm:$0xff] }
  0x24   :  { %v37_v24 = vld [vmem:[%s3066_s1 + $0x90] sm:$0xff]  ;;  %v22_v34 = vld [vmem:[%s3066_s1 + $0x18] sm:$0xff] }
  0x25   :  { %v45_v25 = vld [vmem:[%s3066_s1 + $0xd0] sm:$0xff]  ;;  %v30_v35 = vld [vmem:[%s3066_s1 + $0x58] sm:$0xff] }
  0x26   :  { %1245 = vmatpush2.bf16.msra.mxu0 %v2116_v12  ;;  %1298 = vmatpush2.bf16.msra.mxu1 %v2118_v13  ;;  %v214_v12 = vld [vmem:[%s3068_s2 + $0x18] sm:$0xff]  ;;  %v2010_v13 = vcombine.low %v86_v63, %v94_v0  ;;  %v29_v33 = vld [vmem:[%s3066_s1 + $0x50] sm:$0xff]  ;;  %v1960_v36 = vcombine.low %v37_v24, %v45_v25  ;;  %v1946_v47 = vcombine.low %v22_v34, %v30_v35 }
  0x27   :  { %1246 = vmatprep.subr.bf16.mxu0 %v2101_v14  ;;  %1299 = vmatprep.subr.bf16.mxu1 %v2103_v15  ;;  %v1993_v14 = vcombine.high %v69_v7, %v77_v8  ;;  %v1995_v15 = vcombine.high %v70_v9, %v78_v10  ;;  %v1945_v38 = vcombine.high %v21_v32, %v29_v33  ;;  %v198_v42 = vld [vmem:[%s3066_s1 + $0x598] sm:$0xff] }
  0x28   :  { %232 = vperm.xlu1 %2214, %v214_v12   ;;  %v206_v43 = vld [vmem:[%s3066_s1 + $0x5d8] sm:$0xff]  ;;  %v1944_v46 = vcombine.low %v21_v32, %v29_v33  ;;  %v135_v12 = vld [vmem:[%s3066_s1 + $0x3a0] sm:$0xff] }
  0x29   :  { %v182_v52 = vld [vmem:[%s3066_s1 + $0x518] sm:$0xff]  ;;  %v2122_v56 = vcombine.low %v198_v42, %v206_v43 }
  0x2a   :  { %1247 = vmatpush2.bf16.msra.mxu0 %v2100_v20  ;;  %1300 = vmatpush2.bf16.msra.mxu1 %v2102_v21  ;;  %v1992_v20 = vcombine.low %v69_v7, %v77_v8  ;;  %v1994_v21 = vcombine.low %v70_v9, %v78_v10  ;;  %v190_v53 = vld [vmem:[%s3066_s1 + $0x558] sm:$0xff] }
  0x2b   :  { %1248 = vmatprep.subr.bf16.mxu0 %v2085_v22  ;;  %1301 = vmatprep.subr.bf16.mxu1 %v2087_v23  ;;  %v1977_v22 = vcombine.high %v53_v16, %v61_v17  ;;  %v1979_v23 = vcombine.high %v54_v18, %v62_v19  ;;  %v166_v61 = vld [vmem:[%s3066_s1 + $0x498] sm:$0xff]  ;;  %v2106_v0 = vcombine.low %v182_v52, %v190_v53 }
  0x2c   :  { %v174_v62 = vld [vmem:[%s3066_s1 + $0x4d8] sm:$0xff] }
  0x2d   :  { %v158_v7 = vld [vmem:[%s3066_s1 + $0x458] sm:$0xff]  ;;  %v2090_v9 = vcombine.low %v166_v61, %v174_v62 }
  0x2e   :  { %1249 = vmatpush2.bf16.msra.mxu0 %v2084_v28  ;;  %1302 = vmatpush2.bf16.msra.mxu1 %v2086_v29  ;;  %v1976_v28 = vcombine.low %v53_v16, %v61_v17  ;;  %v1978_v29 = vcombine.low %v54_v18, %v62_v19 }
  0x2f   :  { %1250 = vmatprep.subr.bf16.mxu0 %v2069_v30  ;;  %1303 = vmatprep.subr.bf16.mxu1 %v2071_v31  ;;  %v1961_v30 = vcombine.high %v37_v24, %v45_v25  ;;  %v1963_v31 = vcombine.high %v38_v26, %v46_v27 }
  0x32   :  { %1251 = vmatpush2.bf16.msra.mxu0 %v2068_v37  ;;  %1304 = vmatpush2.bf16.msra.mxu1 %v2070_v39  ;;  %v1962_v37 = vcombine.low %v38_v26, %v46_v27  ;;  %v1947_v39 = vcombine.high %v22_v34, %v30_v35 }
  0x33   :  { %1326 = vmatprep.subr.bf16.mxu0 %v2057_v40  ;;  %1379 = vmatprep.subr.bf16.mxu1 %v2059_v41  ;;  %v197_v40 = vld [vmem:[%s3066_s1 + $0x590] sm:$0xff] }
  0x34   :  { %v205_v41 = vld [vmem:[%s3066_s1 + $0x5d0] sm:$0xff] }
  0x35   :  { %1253 = vmatmul.mubr.bf16.vlgmr.msra.gmra.mxu0 %v2422_v45  ;;  %1306 = vmatmul.mubr.bf16.vlgmr.msra.gmra.mxu1 %v2422_v45  ;;  %v2120_v55 = vcombine.low %v197_v40, %v205_v41 }
  0x36   :  { %1327 = vmatpush1.bf16.msra.mxu0 %v2056_v48  ;;  %1380 = vmatpush1.bf16.msra.mxu1 %v2058_v49  ;;  %v2121_v48 = vcombine.high %v197_v40, %v205_v41  ;;  %v2123_v49 = vcombine.high %v198_v42, %v206_v43 }
  0x37   :  { %1328 = vmatprep.subr.bf16.mxu0 %v2041_v50  ;;  %1381 = vmatprep.subr.bf16.mxu1 %v2043_v51  ;;  %v181_v50 = vld [vmem:[%s3066_s1 + $0x510] sm:$0xff] }
  0x38   :  { %2133 = vmatprep.mubr.msk.bf16.mxu0 %vm1213_vm0, %v2439_v54  ;;  %2135 = vmatprep.mubr.msk.bf16.mxu1 %vm1213_vm0, %v2439_v54  ;;  %v189_v51 = vld [vmem:[%s3066_s1 + $0x550] sm:$0xff] }
  0x39   :  { %v2104_v63 = vcombine.low %v181_v50, %v189_v51 }
  0x3a   :  { %1329 = vmatpush1.bf16.msra.mxu0 %v2040_v57  ;;  %1382 = vmatpush1.bf16.msra.mxu1 %v2042_v58  ;;  %v2105_v57 = vcombine.high %v181_v50, %v189_v51  ;;  %v2107_v58 = vcombine.high %v182_v52, %v190_v53 }
  0x3b   :  { %1330 = vmatprep.subr.bf16.mxu0 %v2025_v59  ;;  %1383 = vmatprep.subr.bf16.mxu1 %v2027_v60  ;;  %v165_v59 = vld [vmem:[%s3066_s1 + $0x490] sm:$0xff] }
  0x3c   :  { %v173_v60 = vld [vmem:[%s3066_s1 + $0x4d0] sm:$0xff] }
  0x3d   :  { %1263 = vmatmul.mubr.bf16.gmra.mxu0 %v2468_v1  ;;  %1316 = vmatmul.mubr.bf16.gmra.mxu1 %v2468_v1  ;;  %v2089_v2 = vcombine.high %v165_v59, %v173_v60  ;;  %v2088_v8 = vcombine.low %v165_v59, %v173_v60 }
  0x3e   :  { %1331 = vmatpush1.bf16.msra.mxu0 %v2024_v3  ;;  %1384 = vmatpush1.bf16.msra.mxu1 %v2026_v4  ;;  %v2091_v3 = vcombine.high %v166_v61, %v174_v62  ;;  %v149_v4 = vld [vmem:[%s3066_s1 + $0x410] sm:$0xff] }
  0x3f   :  { %1332 = vmatprep.subr.bf16.mxu0 %v2009_v5  ;;  %1385 = vmatprep.subr.bf16.mxu1 %v2011_v6  ;;  %v157_v5 = vld [vmem:[%s3066_s1 + $0x450] sm:$0xff]  ;;  %v150_v6 = vld [vmem:[%s3066_s1 + $0x418] sm:$0xff] }
  0x40   :  { %2136 = vmatprep.mubr.msk.bf16.mxu0 %vm1213_vm0, %v2317_v44  ;;  %2138 = vmatprep.mubr.msk.bf16.mxu1 %vm1213_vm0, %v2317_v44  ;;  %v2073_v10 = vcombine.high %v149_v4, %v157_v5  ;;  %v2072_v16 = vcombine.low %v149_v4, %v157_v5  ;;  %v2074_v17 = vcombine.low %v150_v6, %v158_v7 }
  0x42   :  { %1333 = vmatpush1.bf16.msra.mxu0 %v2008_v11  ;;  %1386 = vmatpush1.bf16.msra.mxu1 %v2010_v13  ;;  %v2075_v11 = vcombine.high %v150_v6, %v158_v7  ;;  %v143_v13 = vld [vmem:[%s3066_s1 + $0x3e0] sm:$0xff] }
  0x43   :  { %1334 = vmatprep.subr.bf16.mxu0 %v1993_v14  ;;  %1387 = vmatprep.subr.bf16.mxu1 %v1995_v15  ;;  %v136_v14 = vld [vmem:[%s3066_s1 + $0x3a8] sm:$0xff]  ;;  %v2061_v18 = vcombine.high %v135_v12, %v143_v13  ;;  %v2060_v24 = vcombine.low %v135_v12, %v143_v13 }
  0x44   :  { %v144_v15 = vld [vmem:[%s3066_s1 + $0x3e8] sm:$0xff] }
  0x45   :  { %v2063_v19 = vcombine.high %v136_v14, %v144_v15  ;;  %v2062_v25 = vcombine.low %v136_v14, %v144_v15 }
  0x46   :  { %1335 = vmatpush1.bf16.msra.mxu0 %v1992_v20  ;;  %1388 = vmatpush1.bf16.msra.mxu1 %v1994_v21  ;;  %v119_v20 = vld [vmem:[%s3066_s1 + $0x320] sm:$0xff] }
  0x47   :  { %1336 = vmatprep.subr.bf16.mxu0 %v1977_v22  ;;  %1389 = vmatprep.subr.bf16.mxu1 %v1979_v23  ;;  %v127_v21 = vld [vmem:[%s3066_s1 + $0x360] sm:$0xff]  ;;  %v120_v22 = vld [vmem:[%s3066_s1 + $0x328] sm:$0xff] }
  0x48   :  { %v128_v23 = vld [vmem:[%s3066_s1 + $0x368] sm:$0xff]  ;;  %v2045_v26 = vcombine.high %v119_v20, %v127_v21  ;;  %v2044_v32 = vcombine.low %v119_v20, %v127_v21 }
  0x49   :  { %v2047_v27 = vcombine.high %v120_v22, %v128_v23  ;;  %v2046_v33 = vcombine.low %v120_v22, %v128_v23 }
  0x4a   :  { %1337 = vmatpush1.bf16.msra.mxu0 %v1976_v28  ;;  %1390 = vmatpush1.bf16.msra.mxu1 %v1978_v29  ;;  %v103_v28 = vld [vmem:[%s3066_s1 + $0x2a0] sm:$0xff] }
  0x4b   :  { %1338 = vmatprep.subr.bf16.mxu0 %v1961_v30  ;;  %1391 = vmatprep.subr.bf16.mxu1 %v1963_v31  ;;  %v111_v29 = vld [vmem:[%s3066_s1 + $0x2e0] sm:$0xff]  ;;  %v104_v30 = vld [vmem:[%s3066_s1 + $0x2a8] sm:$0xff] }
  0x4c   :  { %v112_v31 = vld [vmem:[%s3066_s1 + $0x2e8] sm:$0xff]  ;;  %v2029_v34 = vcombine.high %v103_v28, %v111_v29  ;;  %v2028_v40 = vcombine.low %v103_v28, %v111_v29 }
  0x4d   :  { %v2031_v35 = vcombine.high %v104_v30, %v112_v31  ;;  %v2030_v41 = vcombine.low %v104_v30, %v112_v31 }
  0x4e   :  { %1339 = vmatpush1.bf16.msra.mxu0 %v1960_v36  ;;  %1392 = vmatpush1.bf16.msra.mxu1 %v1962_v37  ;;  %v87_v36 = vld [vmem:[%s3066_s1 + $0x220] sm:$0xff] }
  0x4f   :  { %1340 = vmatprep.subr.bf16.mxu0 %v1945_v38  ;;  %1393 = vmatprep.subr.bf16.mxu1 %v1947_v39  ;;  %v95_v37 = vld [vmem:[%s3066_s1 + $0x260] sm:$0xff]  ;;  %v88_v38 = vld [vmem:[%s3066_s1 + $0x228] sm:$0xff] }
  0x50   :  { %v96_v39 = vld [vmem:[%s3066_s1 + $0x268] sm:$0xff]  ;;  %v2013_v42 = vcombine.high %v87_v36, %v95_v37  ;;  %v2012_v50 = vcombine.low %v87_v36, %v95_v37 }
  0x51   :  { %v2015_v43 = vcombine.high %v88_v38, %v96_v39  ;;  %v2014_v51 = vcombine.low %v88_v38, %v96_v39 }
  0x52   :  { %1341 = vmatpush1.bf16.msra.mxu0 %v1944_v46  ;;  %1394 = vmatpush1.bf16.msra.mxu1 %v1946_v47  ;;  %v71_v46 = vld [vmem:[%s3066_s1 + $0x1a0] sm:$0xff] }
  0x53   :  { %1350 = vmatprep.subr.bf16.mxu0 %v2121_v48  ;;  %1403 = vmatprep.subr.bf16.mxu1 %v2123_v49  ;;  %v79_v47 = vld [vmem:[%s3066_s1 + $0x1e0] sm:$0xff]  ;;  %v72_v48 = vld [vmem:[%s3066_s1 + $0x1a8] sm:$0xff] }
  0x54   :  { %v80_v49 = vld [vmem:[%s3066_s1 + $0x1e8] sm:$0xff]  ;;  %v1997_v52 = vcombine.high %v71_v46, %v79_v47  ;;  %v1996_v59 = vcombine.low %v71_v46, %v79_v47 }
  0x55   :  { %v1999_v53 = vcombine.high %v72_v48, %v80_v49  ;;  %v1998_v60 = vcombine.low %v72_v48, %v80_v49 }
  0x56   :  { %1351 = vmatpush2.bf16.msra.mxu0 %v2120_v55  ;;  %1404 = vmatpush2.bf16.msra.mxu1 %v2122_v56  ;;  %v55_v55 = vld [vmem:[%s3066_s1 + $0x120] sm:$0xff] }
  0x57   :  { %1352 = vmatprep.subr.bf16.mxu0 %v2105_v57  ;;  %1405 = vmatprep.subr.bf16.mxu1 %v2107_v58  ;;  %v63_v56 = vld [vmem:[%s3066_s1 + $0x160] sm:$0xff]  ;;  %v56_v57 = vld [vmem:[%s3066_s1 + $0x128] sm:$0xff] }
  0x58   :  { %v64_v58 = vld [vmem:[%s3066_s1 + $0x168] sm:$0xff]  ;;  %v1981_v61 = vcombine.high %v55_v55, %v63_v56  ;;  %v1980_v4 = vcombine.low %v55_v55, %v63_v56 }
  0x59   :  { %v1983_v62 = vcombine.high %v56_v57, %v64_v58  ;;  %v1982_v5 = vcombine.low %v56_v57, %v64_v58 }
  0x5a   :  { %1353 = vmatpush2.bf16.msra.mxu0 %v2104_v63  ;;  %1406 = vmatpush2.bf16.msra.mxu1 %v2106_v0  ;;  %v39_v63 = vld [vmem:[%s3066_s1 + $0xa0] sm:$0xff] }
  0x5b   :  { %1354 = vmatprep.subr.bf16.mxu0 %v2089_v2  ;;  %1407 = vmatprep.subr.bf16.mxu1 %v2091_v3  ;;  %v47_v0 = vld [vmem:[%s3066_s1 + $0xe0] sm:$0xff]  ;;  %v40_v2 = vld [vmem:[%s3066_s1 + $0xa8] sm:$0xff] }
  0x5c   :  { %v48_v3 = vld [vmem:[%s3066_s1 + $0xe8] sm:$0xff]  ;;  %v1965_v6 = vcombine.high %v39_v63, %v47_v0  ;;  %v1964_v12 = vcombine.low %v39_v63, %v47_v0 }
  0x5d   :  { %v1967_v7 = vcombine.high %v40_v2, %v48_v3  ;;  %v1966_v13 = vcombine.low %v40_v2, %v48_v3 }
  0x5e   :  { %1355 = vmatpush2.bf16.msra.mxu0 %v2088_v8  ;;  %1408 = vmatpush2.bf16.msra.mxu1 %v2090_v9  ;;  %v23_v8 = vld [vmem:[%s3066_s1 + $0x20] sm:$0xff] }
  0x5f   :  { %1356 = vmatprep.subr.bf16.mxu0 %v2073_v10  ;;  %1409 = vmatprep.subr.bf16.mxu1 %v2075_v11  ;;  %v31_v9 = vld [vmem:[%s3066_s1 + $0x60] sm:$0xff]  ;;  %v24_v10 = vld [vmem:[%s3066_s1 + $0x28] sm:$0xff] }
  0x60   :  { %v32_v11 = vld [vmem:[%s3066_s1 + $0x68] sm:$0xff]  ;;  %v1949_v14 = vcombine.high %v23_v8, %v31_v9  ;;  %v1948_v20 = vcombine.low %v23_v8, %v31_v9 }
  0x61   :  { %v1951_v15 = vcombine.high %v24_v10, %v32_v11  ;;  %v1950_v21 = vcombine.low %v24_v10, %v32_v11 }
  0x62   :  { %1357 = vmatpush2.bf16.msra.mxu0 %v2072_v16  ;;  %1410 = vmatpush2.bf16.msra.mxu1 %v2074_v17  ;;  %v199_v16 = vld [vmem:[%s3066_s1 + $0x5a0] sm:$0xff] }
  0x63   :  { %1432 = vmatprep.subr.bf16.mxu0 %v2061_v18  ;;  %1485 = vmatprep.subr.bf16.mxu1 %v2063_v19  ;;  %v207_v17 = vld [vmem:[%s3066_s1 + $0x5e0] sm:$0xff]  ;;  %v200_v18 = vld [vmem:[%s3066_s1 + $0x5a8] sm:$0xff] }
  0x64   :  { %v208_v19 = vld [vmem:[%s3066_s1 + $0x5e8] sm:$0xff]  ;;  %v2125_v22 = vcombine.high %v199_v16, %v207_v17  ;;  %v2124_v28 = vcombine.low %v199_v16, %v207_v17 }
  0x65   :  { %1359 = vmatmul.mubr.bf16.vlgmr.msra.gmra.mxu0 %v2422_v45  ;;  %1412 = vmatmul.mubr.bf16.vlgmr.msra.gmra.mxu1 %v2422_v45  ;;  %v2127_v23 = vcombine.high %v200_v18, %v208_v19  ;;  %v2126_v29 = vcombine.low %v200_v18, %v208_v19 }
  0x66   :  { %1433 = vmatpush1.bf16.msra.mxu0 %v2060_v24  ;;  %1486 = vmatpush1.bf16.msra.mxu1 %v2062_v25  ;;  %v183_v24 = vld [vmem:[%s3066_s1 + $0x520] sm:$0xff] }
  0x67   :  { %1434 = vmatprep.subr.bf16.mxu0 %v2045_v26  ;;  %1487 = vmatprep.subr.bf16.mxu1 %v2047_v27  ;;  %v191_v25 = vld [vmem:[%s3066_s1 + $0x560] sm:$0xff]  ;;  %v184_v26 = vld [vmem:[%s3066_s1 + $0x528] sm:$0xff] }
  0x68   :  { %2137 = vmatprep.mubr.msk.bf16.mxu0 %vm1213_vm0, %v2439_v54  ;;  %2139 = vmatprep.mubr.msk.bf16.mxu1 %vm1213_vm0, %v2439_v54  ;;  %v192_v27 = vld [vmem:[%s3066_s1 + $0x568] sm:$0xff]  ;;  %v2109_v30 = vcombine.high %v183_v24, %v191_v25  ;;  %v2108_v36 = vcombine.low %v183_v24, %v191_v25 }
  0x69   :  { %v2111_v31 = vcombine.high %v184_v26, %v192_v27  ;;  %v2110_v37 = vcombine.low %v184_v26, %v192_v27 }
  0x6a   :  { %1435 = vmatpush1.bf16.msra.mxu0 %v2044_v32  ;;  %1488 = vmatpush1.bf16.msra.mxu1 %v2046_v33  ;;  %v167_v32 = vld [vmem:[%s3066_s1 + $0x4a0] sm:$0xff] }
  0x6b   :  { %1436 = vmatprep.subr.bf16.mxu0 %v2029_v34  ;;  %1489 = vmatprep.subr.bf16.mxu1 %v2031_v35  ;;  %v175_v33 = vld [vmem:[%s3066_s1 + $0x4e0] sm:$0xff]  ;;  %v168_v34 = vld [vmem:[%s3066_s1 + $0x4a8] sm:$0xff] }
  0x6c   :  { %v176_v35 = vld [vmem:[%s3066_s1 + $0x4e8] sm:$0xff]  ;;  %v2093_v38 = vcombine.high %v167_v32, %v175_v33  ;;  %v2092_v46 = vcombine.low %v167_v32, %v175_v33 }
  0x6d   :  { %1369 = vmatmul.mubr.bf16.gmra.mxu0 %v2468_v1  ;;  %1422 = vmatmul.mubr.bf16.gmra.mxu1 %v2468_v1  ;;  %v2095_v39 = vcombine.high %v168_v34, %v176_v35  ;;  %v2094_v47 = vcombine.low %v168_v34, %v176_v35 }
  0x6e   :  { %1437 = vmatpush1.bf16.msra.mxu0 %v2028_v40  ;;  %1490 = vmatpush1.bf16.msra.mxu1 %v2030_v41  ;;  %v151_v40 = vld [vmem:[%s3066_s1 + $0x420] sm:$0xff] }
  0x6f   :  { %1438 = vmatprep.subr.bf16.mxu0 %v2013_v42  ;;  %1491 = vmatprep.subr.bf16.mxu1 %v2015_v43  ;;  %v159_v41 = vld [vmem:[%s3066_s1 + $0x460] sm:$0xff]  ;;  %v152_v42 = vld [vmem:[%s3066_s1 + $0x428] sm:$0xff] }
  0x70   :  { %2140 = vmatprep.mubr.msk.bf16.mxu0 %vm1213_vm0, %v2317_v44  ;;  %2142 = vmatprep.mubr.msk.bf16.mxu1 %vm1213_vm0, %v2317_v44  ;;  %v160_v43 = vld [vmem:[%s3066_s1 + $0x468] sm:$0xff]  ;;  %v2077_v48 = vcombine.high %v151_v40, %v159_v41  ;;  %v2076_v55 = vcombine.low %v151_v40, %v159_v41 }
  0x71   :  { %v2079_v49 = vcombine.high %v152_v42, %v160_v43  ;;  %v2078_v56 = vcombine.low %v152_v42, %v160_v43  ;;  %v25_v43 = vld [vmem:[%s3066_s1 + $0x30] sm:$0xff] }
  0x72   :  { %1439 = vmatpush1.bf16.msra.mxu0 %v2012_v50  ;;  %1492 = vmatpush1.bf16.msra.mxu1 %v2014_v51  ;;  %v137_v50 = vld [vmem:[%s3066_s1 + $0x3b0] sm:$0xff] }
  0x73   :  { %1440 = vmatprep.subr.bf16.mxu0 %v1997_v52  ;;  %1493 = vmatprep.subr.bf16.mxu1 %v1999_v53  ;;  %v145_v51 = vld [vmem:[%s3066_s1 + $0x3f0] sm:$0xff]  ;;  %v138_v52 = vld [vmem:[%s3066_s1 + $0x3b8] sm:$0xff] }
  0x74   :  { %v146_v53 = vld [vmem:[%s3066_s1 + $0x3f8] sm:$0xff]  ;;  %v2065_v57 = vcombine.high %v137_v50, %v145_v51  ;;  %v2064_v63 = vcombine.low %v137_v50, %v145_v51 }
  0x75   :  { %v2067_v58 = vcombine.high %v138_v52, %v146_v53  ;;  %v2066_v0 = vcombine.low %v138_v52, %v146_v53  ;;  %v201_v53 = vld [vmem:[%s3066_s1 + $0x5b0] sm:$0xff] }
  0x76   :  { %1441 = vmatpush1.bf16.msra.mxu0 %v1996_v59  ;;  %1494 = vmatpush1.bf16.msra.mxu1 %v1998_v60  ;;  %v121_v59 = vld [vmem:[%s3066_s1 + $0x330] sm:$0xff] }
  0x77   :  { %1442 = vmatprep.subr.bf16.mxu0 %v1981_v61  ;;  %1495 = vmatprep.subr.bf16.mxu1 %v1983_v62  ;;  %v129_v60 = vld [vmem:[%s3066_s1 + $0x370] sm:$0xff]  ;;  %v122_v61 = vld [vmem:[%s3066_s1 + $0x338] sm:$0xff] }
  0x78   :  { %v130_v62 = vld [vmem:[%s3066_s1 + $0x378] sm:$0xff]  ;;  %v2049_v2 = vcombine.high %v121_v59, %v129_v60  ;;  %v2048_v8 = vcombine.low %v121_v59, %v129_v60 }
  0x79   :  { %v2051_v3 = vcombine.high %v122_v61, %v130_v62  ;;  %v2050_v9 = vcombine.low %v122_v61, %v130_v62  ;;  %v185_v62 = vld [vmem:[%s3066_s1 + $0x530] sm:$0xff] }
  0x7a   :  { %1443 = vmatpush1.bf16.msra.mxu0 %v1980_v4  ;;  %1496 = vmatpush1.bf16.msra.mxu1 %v1982_v5  ;;  %v105_v4 = vld [vmem:[%s3066_s1 + $0x2b0] sm:$0xff] }
  0x7b   :  { %1444 = vmatprep.subr.bf16.mxu0 %v1965_v6  ;;  %1497 = vmatprep.subr.bf16.mxu1 %v1967_v7  ;;  %v113_v5 = vld [vmem:[%s3066_s1 + $0x2f0] sm:$0xff]  ;;  %v106_v6 = vld [vmem:[%s3066_s1 + $0x2b8] sm:$0xff] }
  0x7c   :  { %v114_v7 = vld [vmem:[%s3066_s1 + $0x2f8] sm:$0xff]  ;;  %v2033_v10 = vcombine.high %v105_v4, %v113_v5  ;;  %v2032_v16 = vcombine.low %v105_v4, %v113_v5 }
  0x7d   :  { %v2035_v11 = vcombine.high %v106_v6, %v114_v7  ;;  %v2034_v17 = vcombine.low %v106_v6, %v114_v7  ;;  %v169_v7 = vld [vmem:[%s3066_s1 + $0x4b0] sm:$0xff] }
  0x7e   :  { %1445 = vmatpush1.bf16.msra.mxu0 %v1964_v12  ;;  %1498 = vmatpush1.bf16.msra.mxu1 %v1966_v13  ;;  %v89_v12 = vld [vmem:[%s3066_s1 + $0x230] sm:$0xff] }
  0x7f   :  { %1446 = vmatprep.subr.bf16.mxu0 %v1949_v14  ;;  %1499 = vmatprep.subr.bf16.mxu1 %v1951_v15  ;;  %v97_v13 = vld [vmem:[%s3066_s1 + $0x270] sm:$0xff]  ;;  %v90_v14 = vld [vmem:[%s3066_s1 + $0x238] sm:$0xff] }
  0x80   :  { %v98_v15 = vld [vmem:[%s3066_s1 + $0x278] sm:$0xff]  ;;  %v2017_v18 = vcombine.high %v89_v12, %v97_v13  ;;  %v2016_v24 = vcombine.low %v89_v12, %v97_v13 }
  0x81   :  { %v2019_v19 = vcombine.high %v90_v14, %v98_v15  ;;  %v2018_v25 = vcombine.low %v90_v14, %v98_v15  ;;  %v153_v15 = vld [vmem:[%s3066_s1 + $0x430] sm:$0xff] }
  0x82   :  { %1447 = vmatpush1.bf16.msra.mxu0 %v1948_v20  ;;  %1500 = vmatpush1.bf16.msra.mxu1 %v1950_v21  ;;  %v73_v20 = vld [vmem:[%s3066_s1 + $0x1b0] sm:$0xff] }
  0x83   :  { %1456 = vmatprep.subr.bf16.mxu0 %v2125_v22  ;;  %1509 = vmatprep.subr.bf16.mxu1 %v2127_v23  ;;  %v81_v21 = vld [vmem:[%s3066_s1 + $0x1f0] sm:$0xff]  ;;  %v74_v22 = vld [vmem:[%s3066_s1 + $0x1b8] sm:$0xff] }
  0x84   :  { %v82_v23 = vld [vmem:[%s3066_s1 + $0x1f8] sm:$0xff]  ;;  %v2001_v26 = vcombine.high %v73_v20, %v81_v21  ;;  %v2000_v32 = vcombine.low %v73_v20, %v81_v21 }
  0x85   :  { %v2003_v27 = vcombine.high %v74_v22, %v82_v23  ;;  %v2002_v33 = vcombine.low %v74_v22, %v82_v23 }
  0x86   :  { %1457 = vmatpush2.bf16.msra.mxu0 %v2124_v28  ;;  %1510 = vmatpush2.bf16.msra.mxu1 %v2126_v29  ;;  %v57_v28 = vld [vmem:[%s3066_s1 + $0x130] sm:$0xff] }
  0x87   :  { %1458 = vmatprep.subr.bf16.mxu0 %v2109_v30  ;;  %1511 = vmatprep.subr.bf16.mxu1 %v2111_v31  ;;  %v65_v29 = vld [vmem:[%s3066_s1 + $0x170] sm:$0xff]  ;;  %v58_v30 = vld [vmem:[%s3066_s1 + $0x138] sm:$0xff] }
  0x88   :  { %v66_v31 = vld [vmem:[%s3066_s1 + $0x178] sm:$0xff]  ;;  %v1985_v34 = vcombine.high %v57_v28, %v65_v29 }
  0x89   :  { %v1987_v35 = vcombine.high %v58_v30, %v66_v31  ;;  %v1986_v40 = vcombine.low %v58_v30, %v66_v31 }
  0x8a   :  { %1459 = vmatpush2.bf16.msra.mxu0 %v2108_v36  ;;  %1512 = vmatpush2.bf16.msra.mxu1 %v2110_v37  ;;  %v41_v36 = vld [vmem:[%s3066_s1 + $0xb0] sm:$0xff] }
  0x8b   :  { %1460 = vmatprep.subr.bf16.mxu0 %v2093_v38  ;;  %1513 = vmatprep.subr.bf16.mxu1 %v2095_v39  ;;  %v49_v37 = vld [vmem:[%s3066_s1 + $0xf0] sm:$0xff]  ;;  %v50_v38 = vld [vmem:[%s3066_s1 + $0xf8] sm:$0xff]  ;;  %v1984_v39 = vcombine.low %v57_v28, %v65_v29 }
  0x8c   :  { %v1969_v41 = vcombine.high %v41_v36, %v49_v37 }
  0x8e   :  { %1461 = vmatpush2.bf16.msra.mxu0 %v2092_v46  ;;  %1514 = vmatpush2.bf16.msra.mxu1 %v2094_v47  ;;  %v33_v46 = vld [vmem:[%s3066_s1 + $0x70] sm:$0xff]  ;;  %v26_v47 = vld [vmem:[%s3066_s1 + $0x38] sm:$0xff] }
  0x8f   :  { %1462 = vmatprep.subr.bf16.mxu0 %v2077_v48  ;;  %1515 = vmatprep.subr.bf16.mxu1 %v2079_v49  ;;  %v34_v48 = vld [vmem:[%s3066_s1 + $0x78] sm:$0xff]  ;;  %v1968_v49 = vcombine.low %v41_v36, %v49_v37  ;;  %v1953_v51 = vcombine.high %v25_v43, %v33_v46 }
  0x90   :  { %v1955_v52 = vcombine.high %v26_v47, %v34_v48  ;;  %v1954_v59 = vcombine.low %v26_v47, %v34_v48 }
  0x92   :  { %1463 = vmatpush2.bf16.msra.mxu0 %v2076_v55  ;;  %1516 = vmatpush2.bf16.msra.mxu1 %v2078_v56  ;;  %v209_v55 = vld [vmem:[%s3066_s1 + $0x5f0] sm:$0xff]  ;;  %v202_v56 = vld [vmem:[%s3066_s1 + $0x5b8] sm:$0xff] }
  0x93   :  { %1538 = vmatprep.subr.bf16.mxu0 %v2065_v57  ;;  %1591 = vmatprep.subr.bf16.mxu1 %v2067_v58  ;;  %v210_v57 = vld [vmem:[%s3066_s1 + $0x5f8] sm:$0xff]  ;;  %v1952_v58 = vcombine.low %v25_v43, %v33_v46  ;;  %v2129_v60 = vcombine.high %v201_v53, %v209_v55 }
  0x94   :  { %v2131_v61 = vcombine.high %v202_v56, %v210_v57  ;;  %v2130_v4 = vcombine.low %v202_v56, %v210_v57 }
  0x95   :  { %1465 = vmatmul.mubr.bf16.vlgmr.msra.gmra.mxu0 %v2422_v45  ;;  %1518 = vmatmul.mubr.bf16.vlgmr.msra.gmra.mxu1 %v2422_v45 }
  0x96   :  { %1539 = vmatpush1.bf16.msra.mxu0 %v2064_v63  ;;  %1592 = vmatpush1.bf16.msra.mxu1 %v2066_v0  ;;  %v193_v63 = vld [vmem:[%s3066_s1 + $0x570] sm:$0xff]  ;;  %v186_v0 = vld [vmem:[%s3066_s1 + $0x538] sm:$0xff] }
  0x97   :  { %1540 = vmatprep.subr.bf16.mxu0 %v2049_v2  ;;  %1593 = vmatprep.subr.bf16.mxu1 %v2051_v3  ;;  %v194_v2 = vld [vmem:[%s3066_s1 + $0x578] sm:$0xff]  ;;  %v2128_v3 = vcombine.low %v201_v53, %v209_v55  ;;  %v2113_v5 = vcombine.high %v185_v62, %v193_v63 }
  0x98   :  { %2141 = vmatprep.mubr.msk.bf16.mxu0 %vm1213_vm0, %v2439_v54  ;;  %2143 = vmatprep.mubr.msk.bf16.mxu1 %vm1213_vm0, %v2439_v54  ;;  %v2115_v6 = vcombine.high %v186_v0, %v194_v2  ;;  %v2114_v12 = vcombine.low %v186_v0, %v194_v2 }
  0x9a   :  { %1541 = vmatpush1.bf16.msra.mxu0 %v2048_v8  ;;  %1594 = vmatpush1.bf16.msra.mxu1 %v2050_v9  ;;  %v177_v8 = vld [vmem:[%s3066_s1 + $0x4f0] sm:$0xff]  ;;  %v170_v9 = vld [vmem:[%s3066_s1 + $0x4b8] sm:$0xff] }
  0x9b   :  { %1542 = vmatprep.subr.bf16.mxu0 %v2033_v10  ;;  %1595 = vmatprep.subr.bf16.mxu1 %v2035_v11  ;;  %v178_v10 = vld [vmem:[%s3066_s1 + $0x4f8] sm:$0xff]  ;;  %v2112_v11 = vcombine.low %v185_v62, %v193_v63  ;;  %v2097_v13 = vcombine.high %v169_v7, %v177_v8 }
  0x9c   :  { %v2099_v14 = vcombine.high %v170_v9, %v178_v10  ;;  %v2098_v20 = vcombine.low %v170_v9, %v178_v10 }
  0x9d   :  { %1475 = vmatmul.mubr.bf16.gmra.mxu0 %v2468_v1  ;;  %1528 = vmatmul.mubr.bf16.gmra.mxu1 %v2468_v1 }
  0x9e   :  { %1543 = vmatpush1.bf16.msra.mxu0 %v2032_v16  ;;  %1596 = vmatpush1.bf16.msra.mxu1 %v2034_v17  ;;  %v161_v16 = vld [vmem:[%s3066_s1 + $0x470] sm:$0xff]  ;;  %v154_v17 = vld [vmem:[%s3066_s1 + $0x438] sm:$0xff] }
  0x9f   :  { %1544 = vmatprep.subr.bf16.mxu0 %v2017_v18  ;;  %1597 = vmatprep.subr.bf16.mxu1 %v2019_v19  ;;  %v162_v18 = vld [vmem:[%s3066_s1 + $0x478] sm:$0xff]  ;;  %v2096_v19 = vcombine.low %v169_v7, %v177_v8  ;;  %v2081_v21 = vcombine.high %v153_v15, %v161_v16  ;;  %v2080_v23 = vcombine.low %v153_v15, %v161_v16 }
  0xa0   :  { %2144 = vmatprep.mubr.msk.bf16.mxu0 %vm1213_vm0, %v2317_v44  ;;  %2146 = vmatprep.mubr.msk.bf16.mxu1 %vm1213_vm0, %v2317_v44  ;;  %v42_v44 = vld [vmem:[%s3066_s1 + $0xb8] sm:$0xff]  ;;  %v2083_v22 = vcombine.high %v154_v17, %v162_v18 }
  0xa1   :  { %v1971_v42 = vcombine.high %v42_v44, %v50_v38  ;;  %v1970_v50 = vcombine.low %v42_v44, %v50_v38 }
  0xa2   :  { %1545 = vmatpush1.bf16.msra.mxu0 %v2016_v24  ;;  %1598 = vmatpush1.bf16.msra.mxu1 %v2018_v25  ;;  %v2082_v24 = vcombine.low %v154_v17, %v162_v18  ;;  %v2898_v25 = vpop.permute.xlu0 %217 }
  0xa3   :  { %1546 = vmatprep.subr.bf16.mxu0 %v2001_v26  ;;  %1599 = vmatprep.subr.bf16.mxu1 %v2003_v27 }
  0xa6   :  { %1547 = vmatpush1.bf16.msra.mxu0 %v2000_v32  ;;  %1600 = vmatpush1.bf16.msra.mxu1 %v2002_v33 }
  0xa7   :  { %1548 = vmatprep.subr.bf16.mxu0 %v1985_v34  ;;  %1601 = vmatprep.subr.bf16.mxu1 %v1987_v35 }
  0xaa   :  { %1549 = vmatpush1.bf16.msra.mxu0 %v1984_v39  ;;  %1602 = vmatpush1.bf16.msra.mxu1 %v1986_v40 }
  0xab   :  { %1550 = vmatprep.subr.bf16.mxu0 %v1969_v41  ;;  %1603 = vmatprep.subr.bf16.mxu1 %v1971_v42 }
  0xae   :  { %1551 = vmatpush1.bf16.msra.mxu0 %v1968_v49  ;;  %1604 = vmatpush1.bf16.msra.mxu1 %v1970_v50 }
  0xaf   :  { %1552 = vmatprep.subr.bf16.mxu0 %v1953_v51  ;;  %1605 = vmatprep.subr.bf16.mxu1 %v1955_v52 }
  0xb2   :  { %1553 = vmatpush1.bf16.msra.mxu0 %v1952_v58  ;;  %1606 = vmatpush1.bf16.msra.mxu1 %v1954_v59 }
  0xb3   :  { %1562 = vmatprep.subr.bf16.mxu0 %v2129_v60  ;;  %1615 = vmatprep.subr.bf16.mxu1 %v2131_v61 }
  0xb6   :  { %1563 = vmatpush2.bf16.msra.mxu0 %v2128_v3  ;;  %1616 = vmatpush2.bf16.msra.mxu1 %v2130_v4 }
  0xb7   :  { %1564 = vmatprep.subr.bf16.mxu0 %v2113_v5  ;;  %1617 = vmatprep.subr.bf16.mxu1 %v2115_v6 }
  0xba   :  { %1565 = vmatpush2.bf16.msra.mxu0 %v2112_v11  ;;  %1618 = vmatpush2.bf16.msra.mxu1 %v2114_v12 }
  0xbb   :  { %1566 = vmatprep.subr.bf16.mxu0 %v2097_v13  ;;  %1619 = vmatprep.subr.bf16.mxu1 %v2099_v14 }
  0xbe   :  { %1567 = vmatpush2.bf16.msra.mxu0 %v2096_v19  ;;  %1620 = vmatpush2.bf16.msra.mxu1 %v2098_v20 }
  0xbf   :  { %1568 = vmatprep.subr.bf16.mxu0 %v2081_v21  ;;  %1621 = vmatprep.subr.bf16.mxu1 %v2083_v22 }
  0xc2   :  { %1569 = vmatpush2.bf16.msra.mxu0 %v2080_v23  ;;  %1622 = vmatpush2.bf16.msra.mxu1 %v2082_v24 }
  0xc5   :  { %1571 = vmatmul.mubr.bf16.vlgmr.msra.gmra.mxu0 %v2422_v45  ;;  %1624 = vmatmul.mubr.bf16.vlgmr.msra.gmra.mxu1 %v2422_v45  ;;  %v2902_v45 = vpop.permute.xlu0 %222 }
  0xc6   :  { %2145 = vmatprep.mubr.msk.bf16.mxu0 %vm1213_vm0, %v2439_v54  ;;  %2147 = vmatprep.mubr.msk.bf16.mxu1 %vm1213_vm0, %v2439_v54 }
  0xcd   :  { %1581 = vmatmul.mubr.bf16.gmra.mxu0 %v2468_v1  ;;  %1634 = vmatmul.mubr.bf16.gmra.mxu1 %v2468_v1  ;;  %v2906_v1 = vpop.permute.xlu1 %227 }
  0xd1   :  { %v2920_v58 = vpop.permute.xlu1 %232 }
  0xf5   :  { %v1254_v26 = vpop.f32.mrf.mxu0  ;;  %v1307_v28 = vpop.f32.mrf.mxu1 }
  0xf6   :  { %v1255_v27 = vadd.f32 %v1254_v26, %v2898_v25  ;;  %v1308_v29 = vadd.f32 %v1307_v28, %v2898_v25 }
  0xf7   :  { %v1256_v30 = vpop.f32.mrf.mxu0  ;;  %v1309_v33 = vpop.f32.mrf.mxu1 }
  0xf8   :  { %v1644_v31 = vmax.f32 %v1255_v27, 0.0  ;;  %v1257_v32 = vadd.f32 %v1256_v30, %v2898_v25  ;;  %v1646_v54 = vmax.f32 %v1308_v29, 0.0  ;;  %v1310_v34 = vadd.f32 %v1309_v33, %v2898_v25 }
  0xf9   :  { %v1258_v35 = vpop.f32.mrf.mxu0  ;;  %v1311_v44 = vpop.f32.mrf.mxu1 }
  0xfa   :  { %v1645_v36 = vmax.f32 %v1257_v32, 0.0  ;;  %v1259_v37 = vadd.f32 %v1258_v35, %v2902_v45  ;;  %v1647_v38 = vmax.f32 %v1310_v34, 0.0  ;;  %v1312_v39 = vadd.f32 %v1311_v44, %v2902_v45 }
  0xfb   :  { %v1260_v40 = vpop.f32.mrf.mxu0  ;;  %v1313_v43 = vpop.f32.mrf.mxu1 }
  0xfc   :  { %v2180_v41 = vpack.c.bf16 %v1645_v36, %v1644_v31  ;;  %v1261_v42 = vadd.f32 %v1260_v40, %v2902_v45  ;;  %v2181_v46 = vpack.c.bf16 %v1647_v38, %v1646_v54  ;;  %v1314_v47 = vadd.f32 %v1313_v43, %v2902_v45 }
  0xfd   :  { %v1264_v48 = vpop.f32.mrf.mxu0  ;;  %v1660_v49 = vmax.f32 %v1259_v37, 0.0  ;;  %v1317_v51 = vpop.f32.mrf.mxu1  ;;  %v1662_v53 = vmax.f32 %v1312_v39, 0.0 }
  0xfe   :  { %1900 = vst [vmem:[%s3069_s3] sm:$0xff] %v2180_v41  ;;  %v1661_v50 = vmax.f32 %v1261_v42, 0.0  ;;  %v1265_v52 = vadd.f32 %v1264_v48, %v2906_v1  ;;  %1901 = vst [vmem:[%s3069_s3 + $0x8] sm:$0xff] %v2181_v46  ;;  %v1663_v55 = vmax.f32 %v1314_v47, 0.0  ;;  %v1318_v57 = vadd.f32 %v1317_v51, %v2906_v1 }
  0xff   :  { %v1266_v56 = vpop.f32.mrf.mxu0  ;;  %v1319_v62 = vpop.f32.mrf.mxu1 }
 0x100   :  { %v2188_v59 = vpack.c.bf16 %v1661_v50, %v1660_v49  ;;  %v1267_v60 = vadd.f32 %v1266_v56, %v2906_v1  ;;  %v1676_v61 = vmax.f32 %v1265_v52, 0.0  ;;  %v2189_v63 = vpack.c.bf16 %v1663_v55, %v1662_v53 }
 0x101   :  { %v1320_v0 = vadd.f32 %v1319_v62, %v2906_v1  ;;  %v1678_v2 = vmax.f32 %v1318_v57, 0.0  ;;  %v1268_v3 = vpop.f32.mrf.mxu0  ;;  %v1321_v5 = vpop.f32.mrf.mxu1 }
 0x102   :  { %1908 = vst [vmem:[%s3069_s3 + $0x40] sm:$0xff] %v2188_v59  ;;  %v1677_v4 = vmax.f32 %v1267_v60, 0.0  ;;  %v1269_v6 = vadd.f32 %v1268_v3, %v2920_v58  ;;  %1909 = vst [vmem:[%s3069_s3 + $0x48] sm:$0xff] %v2189_v63  ;;  %v1322_v9 = vadd.f32 %v1321_v5, %v2920_v58 }
 0x103   :  { %v1679_v7 = vmax.f32 %v1320_v0, 0.0  ;;  %v1270_v8 = vpop.f32.mrf.mxu0  ;;  %v1323_v13 = vpop.f32.mrf.mxu1 }
 0x104   :  { %v2196_v10 = vpack.c.bf16 %v1677_v4, %v1676_v61  ;;  %v1271_v11 = vadd.f32 %v1270_v8, %v2920_v58  ;;  %v1692_v12 = vmax.f32 %v1269_v6, 0.0  ;;  %v1324_v15 = vadd.f32 %v1323_v13, %v2920_v58 }
 0x105   :  { %v2197_v14 = vpack.c.bf16 %v1679_v7, %v1678_v2  ;;  %v1694_v16 = vmax.f32 %v1322_v9, 0.0 }
 0x106   :  { %1916 = vst [vmem:[%s3069_s3 + $0x80] sm:$0xff] %v2196_v10  ;;  %v1693_v17 = vmax.f32 %v1271_v11, 0.0  ;;  %v1695_v18 = vmax.f32 %v1324_v15, 0.0 }
 0x107   :  { %1917 = vst [vmem:[%s3069_s3 + $0x88] sm:$0xff] %v2197_v14 }
 0x108   :  { %v2204_v19 = vpack.c.bf16 %v1693_v17, %v1692_v12  ;;  %v2205_v20 = vpack.c.bf16 %v1695_v18, %v1694_v16 }
 0x10a   :  { %1924 = vst [vmem:[%s3069_s3 + $0xc0] sm:$0xff] %v2204_v19  ;;  %1925 = vst [vmem:[%s3069_s3 + $0xc8] sm:$0xff] %v2205_v20 }
 0x125   :  { %v1360_v21 = vpop.f32.mrf.mxu0  ;;  %v1413_v23 = vpop.f32.mrf.mxu1 }
 0x126   :  { %v1361_v22 = vadd.f32 %v1360_v21, %v2898_v25  ;;  %v1414_v24 = vadd.f32 %v1413_v23, %v2898_v25 }
 0x127   :  { %v1362_v26 = vpop.f32.mrf.mxu0  ;;  %v1415_v29 = vpop.f32.mrf.mxu1 }
 0x128   :  { %v1648_v27 = vmax.f32 %v1361_v22, 0.0  ;;  %v1363_v28 = vadd.f32 %v1362_v26, %v2898_v25  ;;  %v1650_v30 = vmax.f32 %v1414_v24, 0.0  ;;  %v1416_v31 = vadd.f32 %v1415_v29, %v2898_v25 }
 0x129   :  { %v1364_v32 = vpop.f32.mrf.mxu0  ;;  %v1417_v34 = vpop.f32.mrf.mxu1 }
 0x12a   :  { %v1649_v33 = vmax.f32 %v1363_v28, 0.0  ;;  %v1365_v54 = vadd.f32 %v1364_v32, %v2902_v45  ;;  %v1651_v35 = vmax.f32 %v1416_v31, 0.0  ;;  %v1418_v36 = vadd.f32 %v1417_v34, %v2902_v45 }
 0x12b   :  { %v1366_v37 = vpop.f32.mrf.mxu0  ;;  %v1419_v39 = vpop.f32.mrf.mxu1 }
 0x12c   :  { %v2182_v44 = vpack.c.bf16 %v1649_v33, %v1648_v27  ;;  %v1367_v38 = vadd.f32 %v1366_v37, %v2902_v45  ;;  %v2183_v40 = vpack.c.bf16 %v1651_v35, %v1650_v30  ;;  %v1420_v41 = vadd.f32 %v1419_v39, %v2902_v45 }
 0x12d   :  { %v1370_v42 = vpop.f32.mrf.mxu0  ;;  %v1664_v43 = vmax.f32 %v1365_v54, 0.0  ;;  %v1423_v48 = vpop.f32.mrf.mxu1  ;;  %v1666_v49 = vmax.f32 %v1418_v36, 0.0 }
 0x12e   :  { %1902 = vst [vmem:[%s3069_s3 + $0x10] sm:$0xff] %v2182_v44  ;;  %v1665_v46 = vmax.f32 %v1367_v38, 0.0  ;;  %v1371_v47 = vadd.f32 %v1370_v42, %v2906_v1  ;;  %1903 = vst [vmem:[%s3069_s3 + $0x18] sm:$0xff] %v2183_v40  ;;  %v1667_v50 = vmax.f32 %v1420_v41, 0.0  ;;  %v1424_v51 = vadd.f32 %v1423_v48, %v2906_v1 }
 0x12f   :  { %v1372_v52 = vpop.f32.mrf.mxu0  ;;  %v1425_v57 = vpop.f32.mrf.mxu1 }
 0x130   :  { %v2190_v53 = vpack.c.bf16 %v1665_v46, %v1664_v43  ;;  %v1680_v55 = vmax.f32 %v1371_v47, 0.0  ;;  %v1373_v56 = vadd.f32 %v1372_v52, %v2906_v1  ;;  %v2191_v59 = vpack.c.bf16 %v1667_v50, %v1666_v49 }
 0x131   :  { %v1682_v60 = vmax.f32 %v1424_v51, 0.0  ;;  %v1426_v61 = vadd.f32 %v1425_v57, %v2906_v1  ;;  %v1374_v62 = vpop.f32.mrf.mxu0  ;;  %v1427_v2 = vpop.f32.mrf.mxu1 }
 0x132   :  { %1910 = vst [vmem:[%s3069_s3 + $0x50] sm:$0xff] %v2190_v53  ;;  %v1681_v63 = vmax.f32 %v1373_v56, 0.0  ;;  %v1375_v0 = vadd.f32 %v1374_v62, %v2920_v58  ;;  %1911 = vst [vmem:[%s3069_s3 + $0x58] sm:$0xff] %v2191_v59  ;;  %v1428_v4 = vadd.f32 %v1427_v2, %v2920_v58 }
 0x133   :  { %v1683_v3 = vmax.f32 %v1426_v61, 0.0  ;;  %v1376_v5 = vpop.f32.mrf.mxu0  ;;  %v1429_v9 = vpop.f32.mrf.mxu1 }
 0x134   :  { %v2198_v6 = vpack.c.bf16 %v1681_v63, %v1680_v55  ;;  %v1696_v7 = vmax.f32 %v1375_v0, 0.0  ;;  %v1377_v8 = vadd.f32 %v1376_v5, %v2920_v58  ;;  %v1698_v11 = vmax.f32 %v1428_v4, 0.0 }
 0x135   :  { %v2199_v10 = vpack.c.bf16 %v1683_v3, %v1682_v60  ;;  %v1430_v12 = vadd.f32 %v1429_v9, %v2920_v58 }
 0x136   :  { %1918 = vst [vmem:[%s3069_s3 + $0x90] sm:$0xff] %v2198_v6  ;;  %v1697_v13 = vmax.f32 %v1377_v8, 0.0 }
 0x137   :  { %1919 = vst [vmem:[%s3069_s3 + $0x98] sm:$0xff] %v2199_v10  ;;  %v1699_v14 = vmax.f32 %v1430_v12, 0.0 }
 0x138   :  { %v2206_v15 = vpack.c.bf16 %v1697_v13, %v1696_v7 }
 0x139   :  { %v2207_v16 = vpack.c.bf16 %v1699_v14, %v1698_v11 }
 0x13a   :  { %1926 = vst [vmem:[%s3069_s3 + $0xd0] sm:$0xff] %v2206_v15 }
 0x13b   :  { %1927 = vst [vmem:[%s3069_s3 + $0xd8] sm:$0xff] %v2207_v16 }
 0x155   :  { %v1466_v17 = vpop.f32.mrf.mxu0  ;;  %v1519_v19 = vpop.f32.mrf.mxu1 }
 0x156   :  { %v1467_v18 = vadd.f32 %v1466_v17, %v2898_v25  ;;  %v1520_v20 = vadd.f32 %v1519_v19, %v2898_v25 }
 0x157   :  { %v1468_v21 = vpop.f32.mrf.mxu0  ;;  %v1521_v24 = vpop.f32.mrf.mxu1 }
 0x158   :  { %v1652_v22 = vmax.f32 %v1467_v18, 0.0  ;;  %v1469_v23 = vadd.f32 %v1468_v21, %v2898_v25  ;;  %v1654_v26 = vmax.f32 %v1520_v20, 0.0  ;;  %v1522_v27 = vadd.f32 %v1521_v24, %v2898_v25 }
 0x159   :  { %v1470_v28 = vpop.f32.mrf.mxu0  ;;  %v1523_v31 = vpop.f32.mrf.mxu1 }
 0x15a   :  { %v1653_v29 = vmax.f32 %v1469_v23, 0.0  ;;  %v1471_v30 = vadd.f32 %v1470_v28, %v2902_v45  ;;  %v1655_v32 = vmax.f32 %v1522_v27, 0.0  ;;  %v1524_v33 = vadd.f32 %v1523_v31, %v2902_v45 }
 0x15b   :  { %v1472_v54 = vpop.f32.mrf.mxu0  ;;  %v1525_v36 = vpop.f32.mrf.mxu1 }
 0x15c   :  { %v2184_v34 = vpack.c.bf16 %v1653_v29, %v1652_v22  ;;  %v1473_v35 = vadd.f32 %v1472_v54, %v2902_v45  ;;  %v2185_v37 = vpack.c.bf16 %v1655_v32, %v1654_v26  ;;  %v1526_v44 = vadd.f32 %v1525_v36, %v2902_v45 }
 0x15d   :  { %v1476_v38 = vpop.f32.mrf.mxu0  ;;  %v1668_v39 = vmax.f32 %v1471_v30, 0.0  ;;  %v1529_v42 = vpop.f32.mrf.mxu1  ;;  %v1670_v43 = vmax.f32 %v1524_v33, 0.0 }
 0x15e   :  { %1904 = vst [vmem:[%s3069_s3 + $0x20] sm:$0xff] %v2184_v34  ;;  %v1669_v40 = vmax.f32 %v1473_v35, 0.0  ;;  %v1477_v41 = vadd.f32 %v1476_v38, %v2906_v1  ;;  %1905 = vst [vmem:[%s3069_s3 + $0x28] sm:$0xff] %v2185_v37  ;;  %v1671_v46 = vmax.f32 %v1526_v44, 0.0  ;;  %v1530_v47 = vadd.f32 %v1529_v42, %v2906_v1 }
 0x15f   :  { %v1478_v48 = vpop.f32.mrf.mxu0  ;;  %v1531_v52 = vpop.f32.mrf.mxu1 }
 0x160   :  { %v2192_v49 = vpack.c.bf16 %v1669_v40, %v1668_v39  ;;  %v1684_v50 = vmax.f32 %v1477_v41, 0.0  ;;  %v1479_v51 = vadd.f32 %v1478_v48, %v2906_v1  ;;  %v2193_v53 = vpack.c.bf16 %v1671_v46, %v1670_v43 }
 0x161   :  { %v1686_v55 = vmax.f32 %v1530_v47, 0.0  ;;  %v1532_v56 = vadd.f32 %v1531_v52, %v2906_v1  ;;  %v1480_v57 = vpop.f32.mrf.mxu0  ;;  %v1533_v61 = vpop.f32.mrf.mxu1 }
 0x162   :  { %1912 = vst [vmem:[%s3069_s3 + $0x60] sm:$0xff] %v2192_v49  ;;  %v1685_v59 = vmax.f32 %v1479_v51, 0.0  ;;  %v1481_v60 = vadd.f32 %v1480_v57, %v2920_v58  ;;  %1913 = vst [vmem:[%s3069_s3 + $0x68] sm:$0xff] %v2193_v53  ;;  %v1534_v63 = vadd.f32 %v1533_v61, %v2920_v58 }
 0x163   :  { %v1687_v62 = vmax.f32 %v1532_v56, 0.0  ;;  %v1482_v0 = vpop.f32.mrf.mxu0  ;;  %v1535_v5 = vpop.f32.mrf.mxu1 }
 0x164   :  { %v2200_v2 = vpack.c.bf16 %v1685_v59, %v1684_v50  ;;  %v1700_v3 = vmax.f32 %v1481_v60, 0.0  ;;  %v1483_v4 = vadd.f32 %v1482_v0, %v2920_v58  ;;  %v1702_v7 = vmax.f32 %v1534_v63, 0.0 }
 0x165   :  { %v2201_v6 = vpack.c.bf16 %v1687_v62, %v1686_v55  ;;  %v1536_v8 = vadd.f32 %v1535_v5, %v2920_v58 }
 0x166   :  { %1920 = vst [vmem:[%s3069_s3 + $0xa0] sm:$0xff] %v2200_v2  ;;  %v1701_v9 = vmax.f32 %v1483_v4, 0.0 }
 0x167   :  { %1921 = vst [vmem:[%s3069_s3 + $0xa8] sm:$0xff] %v2201_v6  ;;  %v1703_v10 = vmax.f32 %v1536_v8, 0.0 }
 0x168   :  { %v2208_v11 = vpack.c.bf16 %v1701_v9, %v1700_v3 }
 0x169   :  { %v2209_v12 = vpack.c.bf16 %v1703_v10, %v1702_v7 }
 0x16a   :  { %1928 = vst [vmem:[%s3069_s3 + $0xe0] sm:$0xff] %v2208_v11 }
 0x16b   :  { %1929 = vst [vmem:[%s3069_s3 + $0xe8] sm:$0xff] %v2209_v12 }
 0x185   :  { %v1572_v13 = vpop.f32.mrf.mxu0  ;;  %v1625_v15 = vpop.f32.mrf.mxu1 }
 0x186   :  { %v1573_v14 = vadd.f32 %v1572_v13, %v2898_v25  ;;  %v1626_v16 = vadd.f32 %v1625_v15, %v2898_v25 }
 0x187   :  { %v1574_v17 = vpop.f32.mrf.mxu0  ;;  %v1627_v19 = vpop.f32.mrf.mxu1 }
 0x188   :  { %v1575_v18 = vadd.f32 %v1574_v17, %v2898_v25  ;;  %v1628_v20 = vadd.f32 %v1627_v19, %v2898_v25  ;;  %v1656_v22 = vmax.f32 %v1573_v14, 0.0  ;;  %v1658_v27 = vmax.f32 %v1626_v16, 0.0 }
 0x189   :  { %v1576_v21 = vpop.f32.mrf.mxu0  ;;  %v1629_v26 = vpop.f32.mrf.mxu1 }
 0x18a   :  { %v1657_v23 = vmax.f32 %v1575_v18, 0.0  ;;  %v1577_v24 = vadd.f32 %v1576_v21, %v2902_v45  ;;  %v1659_v28 = vmax.f32 %v1628_v20, 0.0  ;;  %v1630_v29 = vadd.f32 %v1629_v26, %v2902_v45 }
 0x18b   :  { %v1578_v30 = vpop.f32.mrf.mxu0  ;;  %v1631_v33 = vpop.f32.mrf.mxu1 }
 0x18c   :  { %v2186_v31 = vpack.c.bf16 %v1657_v23, %v1656_v22  ;;  %v1579_v32 = vadd.f32 %v1578_v30, %v2902_v45  ;;  %v2187_v54 = vpack.c.bf16 %v1659_v28, %v1658_v27  ;;  %v1632_v34 = vadd.f32 %v1631_v33, %v2902_v45 }
 0x18d   :  { %v1582_v35 = vpop.f32.mrf.mxu0  ;;  %v1672_v25 = vmax.f32 %v1577_v24, 0.0  ;;  %v1635_v44 = vpop.f32.mrf.mxu1  ;;  %v1674_v38 = vmax.f32 %v1630_v29, 0.0 }
 0x18e   :  { %1906 = vst [vmem:[%s3069_s3 + $0x30] sm:$0xff] %v2186_v31  ;;  %v1673_v36 = vmax.f32 %v1579_v32, 0.0  ;;  %v1583_v37 = vadd.f32 %v1582_v35, %v2906_v1  ;;  %1907 = vst [vmem:[%s3069_s3 + $0x38] sm:$0xff] %v2187_v54  ;;  %v1675_v39 = vmax.f32 %v1632_v34, 0.0  ;;  %v1636_v40 = vadd.f32 %v1635_v44, %v2906_v1 }
 0x18f   :  { %v1584_v41 = vpop.f32.mrf.mxu0  ;;  %v1637_v43 = vpop.f32.mrf.mxu1 }
 0x190   :  { %v2194_v45 = vpack.c.bf16 %v1673_v36, %v1672_v25  ;;  %v1585_v42 = vadd.f32 %v1584_v41, %v2906_v1  ;;  %v2195_v46 = vpack.c.bf16 %v1675_v39, %v1674_v38  ;;  %v1638_v47 = vadd.f32 %v1637_v43, %v2906_v1 }
 0x191   :  { %v1586_v48 = vpop.f32.mrf.mxu0  ;;  %v1688_v49 = vmax.f32 %v1583_v37, 0.0  ;;  %v1639_v52 = vpop.f32.mrf.mxu1  ;;  %v1690_v53 = vmax.f32 %v1636_v40, 0.0 }
 0x192   :  { %1914 = vst [vmem:[%s3069_s3 + $0x70] sm:$0xff] %v2194_v45  ;;  %v1689_v50 = vmax.f32 %v1585_v42, 0.0  ;;  %v1587_v51 = vadd.f32 %v1586_v48, %v2920_v58  ;;  %1915 = vst [vmem:[%s3069_s3 + $0x78] sm:$0xff] %v2195_v46  ;;  %v1691_v55 = vmax.f32 %v1638_v47, 0.0  ;;  %v1640_v56 = vadd.f32 %v1639_v52, %v2920_v58 }
 0x193   :  { %v1588_v57 = vpop.f32.mrf.mxu0  ;;  %v1641_v60 = vpop.f32.mrf.mxu1 }
 0x194   :  { %v2202_v1 = vpack.c.bf16 %v1689_v50, %v1688_v49  ;;  %v1589_v59 = vadd.f32 %v1588_v57, %v2920_v58  ;;  %v2203_v61 = vpack.c.bf16 %v1691_v55, %v1690_v53  ;;  %v1642_v62 = vadd.f32 %v1641_v60, %v2920_v58 }
 0x195   :  { %v1704_v63 = vmax.f32 %v1587_v51, 0.0  ;;  %v1706_v2 = vmax.f32 %v1640_v56, 0.0 }
 0x196   :  { %1922 = vst [vmem:[%s3069_s3 + $0xb0] sm:$0xff] %v2202_v1  ;;  %v1705_v0 = vmax.f32 %v1589_v59, 0.0  ;;  %1923 = vst [vmem:[%s3069_s3 + $0xb8] sm:$0xff] %v2203_v61  ;;  %v1707_v3 = vmax.f32 %v1642_v62, 0.0 }
 0x198   :  { %v2210_v4 = vpack.c.bf16 %v1705_v0, %v1704_v63  ;;  %v2211_v5 = vpack.c.bf16 %v1707_v3, %v1706_v2 }
 0x19a   :  { %1930 = vst [vmem:[%s3069_s3 + $0xf0] sm:$0xff] %v2210_v4  ;;  %1931 = vst [vmem:[%s3069_s3 + $0xf8] sm:$0xff] %v2211_v5 }

// kernel: qnetwork_cnn_forward.5
= control target key start
LH: loop header
LB: loop body
LE: loop exit
PB: predicated region body
PF: predicated region fallthrough
CT: control target
= control target key end

     0   :  { %v983_v1 = vmov 0   ;;  %s1292_s1 = inlined_call_operand.vmem [shape: bf16[512,256], index: 1, kind: input, shape index: {}]   ;;  %s1293_s0 = inlined_call_operand.vmem [shape: bf16[64,512], index: 0, kind: input, shape index: {}]   ;;  %s1294_s2 = inlined_call_operand.vmem [shape: f32[64,1], index: 2, kind: input, shape index: {}]   ;;  %s1295_s3 = inlined_call_operand.vmem [shape: bf16[64,256], index: 3, kind: output, shape index: {}]  }
   0x1   :  { %v863_v0 = vld [vmem:[%s1292_s1 + $0x74] ss:$8 sps:$4 sm:$0xff]   ;;  %861 = vset.pattern.permute.xlu0 %v983_v1  ;;  %862 = vset.pattern.permute.xlu1 %v983_v1  ;;  %v867_v3 = vld [vmem:[%s1292_s1 + $0x70] ss:$8 sps:$4 sm:$0xff]   ;;  %v869_v5 = vld [vmem:[%s1292_s1 + $0x64] ss:$8 sps:$4 sm:$0xff]  }
   0x2   :  { %v865_v2 = vld [vmem:[%s1292_s1 + $0x174] ss:$8 sps:$4 sm:$0xff]   ;;  %542 = vmatprep.subr.bf16.mxu0 %v863_v0  ;;  %v868_v4 = vld [vmem:[%s1292_s1 + $0x170] ss:$8 sps:$4 sm:$0xff]   ;;  %v871_v6 = vld [vmem:[%s1292_s1 + $0x164] ss:$8 sps:$4 sm:$0xff]  }
   0x3   :  { %615 = vmatprep.subr.bf16.mxu1 %v865_v2  ;;  %543 = vmatpush1.bf16.msra.mxu0 %v867_v3  ;;  %v873_v7 = vld [vmem:[%s1292_s1 + $0x60] ss:$8 sps:$4 sm:$0xff]   ;;  %v875_v9 = vld [vmem:[%s1292_s1 + $0x54] ss:$8 sps:$4 sm:$0xff]   ;;  %v879_v11 = vld [vmem:[%s1292_s1 + $0x50] ss:$8 sps:$4 sm:$0xff]  }
   0x4   :  { %616 = vmatpush1.bf16.msra.mxu1 %v868_v4  ;;  %544 = vmatprep.subr.bf16.mxu0 %v869_v5  ;;  %v874_v8 = vld [vmem:[%s1292_s1 + $0x160] ss:$8 sps:$4 sm:$0xff]   ;;  %v877_v10 = vld [vmem:[%s1292_s1 + $0x154] ss:$8 sps:$4 sm:$0xff]   ;;  %v880_v12 = vld [vmem:[%s1292_s1 + $0x150] ss:$8 sps:$4 sm:$0xff]  }
   0x5   :  { %617 = vmatprep.subr.bf16.mxu1 %v871_v6  ;;  %v881_v13 = vld [vmem:[%s1292_s1 + $0x44] ss:$8 sps:$4 sm:$0xff]   ;;  %v885_v15 = vld [vmem:[%s1292_s1 + $0x40] ss:$8 sps:$4 sm:$0xff]   ;;  %v887_v17 = vld [vmem:[%s1292_s1 + $0x34] ss:$8 sps:$4 sm:$0xff]  }
   0x6   :  { %v883_v14 = vld [vmem:[%s1292_s1 + $0x144] ss:$8 sps:$4 sm:$0xff]   ;;  %v886_v16 = vld [vmem:[%s1292_s1 + $0x140] ss:$8 sps:$4 sm:$0xff]   ;;  %v889_v18 = vld [vmem:[%s1292_s1 + $0x134] ss:$8 sps:$4 sm:$0xff]  }
   0x7   :  { %545 = vmatpush1.bf16.msra.mxu0 %v873_v7  ;;  %v891_v19 = vld [vmem:[%s1292_s1 + $0x30] ss:$8 sps:$4 sm:$0xff]   ;;  %v893_v21 = vld [vmem:[%s1292_s1 + $0x24] ss:$8 sps:$4 sm:$0xff]   ;;  %v897_v23 = vld [vmem:[%s1292_s1 + $0x20] ss:$8 sps:$4 sm:$0xff]  }
   0x8   :  { %618 = vmatpush1.bf16.msra.mxu1 %v874_v8  ;;  %546 = vmatprep.subr.bf16.mxu0 %v875_v9  ;;  %v892_v20 = vld [vmem:[%s1292_s1 + $0x130] ss:$8 sps:$4 sm:$0xff]   ;;  %v895_v22 = vld [vmem:[%s1292_s1 + $0x124] ss:$8 sps:$4 sm:$0xff]   ;;  %v898_v24 = vld [vmem:[%s1292_s1 + $0x120] ss:$8 sps:$4 sm:$0xff]  }
   0x9   :  { %619 = vmatprep.subr.bf16.mxu1 %v877_v10  ;;  %v899_v25 = vld [vmem:[%s1292_s1 + $0x14] ss:$8 sps:$4 sm:$0xff]   ;;  %v903_v27 = vld [vmem:[%s1292_s1 + $0x10] ss:$8 sps:$4 sm:$0xff]   ;;  %v905_v29 = vld [vmem:[%s1292_s1 + $0x4] ss:$8 sps:$4 sm:$0xff]  }
   0xa   :  { %v901_v26 = vld [vmem:[%s1292_s1 + $0x114] ss:$8 sps:$4 sm:$0xff]   ;;  %v904_v28 = vld [vmem:[%s1292_s1 + $0x110] ss:$8 sps:$4 sm:$0xff]   ;;  %v907_v30 = vld [vmem:[%s1292_s1 + $0x104] ss:$8 sps:$4 sm:$0xff]  }
   0xb   :  { %547 = vmatpush1.bf16.msra.mxu0 %v879_v11  ;;  %v909_v31 = vld [vmem:[%s1292_s1] ss:$8 sps:$4 sm:$0xff]   ;;  %v911_v33 = vld [vmem:[%s1292_s1 + $0xf4] ss:$8 sps:$4 sm:$0xff]   ;;  %v915_v35 = vld [vmem:[%s1292_s1 + $0xf0] ss:$8 sps:$4 sm:$0xff]  }
   0xc   :  { %620 = vmatpush1.bf16.msra.mxu1 %v880_v12  ;;  %548 = vmatprep.subr.bf16.mxu0 %v881_v13  ;;  %v910_v32 = vld [vmem:[%s1292_s1 + $0x100] ss:$8 sps:$4 sm:$0xff]   ;;  %v913_v34 = vld [vmem:[%s1292_s1 + $0x1f4] ss:$8 sps:$4 sm:$0xff]   ;;  %v916_v36 = vld [vmem:[%s1292_s1 + $0x1f0] ss:$8 sps:$4 sm:$0xff]  }
   0xd   :  { %621 = vmatprep.subr.bf16.mxu1 %v883_v14  ;;  %v917_v37 = vld [vmem:[%s1292_s1 + $0xe4] ss:$8 sps:$4 sm:$0xff]   ;;  %v921_v39 = vld [vmem:[%s1292_s1 + $0xe0] ss:$8 sps:$4 sm:$0xff]   ;;  %v923_v41 = vld [vmem:[%s1292_s1 + $0xd4] ss:$8 sps:$4 sm:$0xff]  }
   0xe   :  { %v919_v38 = vld [vmem:[%s1292_s1 + $0x1e4] ss:$8 sps:$4 sm:$0xff]   ;;  %v922_v40 = vld [vmem:[%s1292_s1 + $0x1e0] ss:$8 sps:$4 sm:$0xff]   ;;  %v925_v42 = vld [vmem:[%s1292_s1 + $0x1d4] ss:$8 sps:$4 sm:$0xff]  }
   0xf   :  { %549 = vmatpush1.bf16.msra.mxu0 %v885_v15  ;;  %v927_v43 = vld [vmem:[%s1292_s1 + $0xd0] ss:$8 sps:$4 sm:$0xff]   ;;  %v929_v45 = vld [vmem:[%s1292_s1 + $0xc4] ss:$8 sps:$4 sm:$0xff]   ;;  %v933_v47 = vld [vmem:[%s1292_s1 + $0xc0] ss:$8 sps:$4 sm:$0xff]  }
  0x10   :  { %622 = vmatpush1.bf16.msra.mxu1 %v886_v16  ;;  %550 = vmatprep.subr.bf16.mxu0 %v887_v17  ;;  %v928_v44 = vld [vmem:[%s1292_s1 + $0x1d0] ss:$8 sps:$4 sm:$0xff]   ;;  %v931_v46 = vld [vmem:[%s1292_s1 + $0x1c4] ss:$8 sps:$4 sm:$0xff]   ;;  %v934_v48 = vld [vmem:[%s1292_s1 + $0x1c0] ss:$8 sps:$4 sm:$0xff]  }
  0x11   :  { %623 = vmatprep.subr.bf16.mxu1 %v889_v18  ;;  %v935_v49 = vld [vmem:[%s1292_s1 + $0xb4] ss:$8 sps:$4 sm:$0xff]   ;;  %v939_v53 = vld [vmem:[%s1292_s1 + $0xb0] ss:$8 sps:$4 sm:$0xff]   ;;  %v941_v55 = vld [vmem:[%s1292_s1 + $0xa4] ss:$8 sps:$4 sm:$0xff]  }
  0x12   :  { %v961_v50 = vld [vmem:[%s1293_s0 + $0x4] ss:$16 sps:$4 sm:$0xff]   ;;  %v964_v52 = vld [vmem:[%s1293_s0 + $0xc] ss:$16 sps:$4 sm:$0xff]   ;;  %v940_v54 = vld [vmem:[%s1292_s1 + $0x1b0] ss:$8 sps:$4 sm:$0xff]  }
  0x13   :  { %551 = vmatpush1.bf16.msra.mxu0 %v891_v19  ;;  %v937_v51 = vld [vmem:[%s1292_s1 + $0x1b4] ss:$8 sps:$4 sm:$0xff]   ;;  %574 = vmatprep.mubr.bf16.mxu0 %v961_v50  ;;  %v943_v56 = vld [vmem:[%s1292_s1 + $0x1a4] ss:$8 sps:$4 sm:$0xff]   ;;  %v945_v57 = vld [vmem:[%s1292_s1 + $0xa0] ss:$8 sps:$4 sm:$0xff]  }
  0x14   :  { %624 = vmatpush1.bf16.msra.mxu1 %v892_v20  ;;  %552 = vmatprep.subr.bf16.mxu0 %v893_v21  ;;  %v946_v58 = vld [vmem:[%s1292_s1 + $0x1a0] ss:$8 sps:$4 sm:$0xff]   ;;  %v947_v59 = vld [vmem:[%s1292_s1 + $0x94] ss:$8 sps:$4 sm:$0xff]   ;;  %v951_v0 = vld [vmem:[%s1292_s1 + $0x90] ss:$8 sps:$4 sm:$0xff]  }
  0x15   :  { %625 = vmatprep.subr.bf16.mxu1 %v895_v22  ;;  %647 = vmatprep.mubr.bf16.mxu1 %v964_v52  ;;  %v949_v60 = vld [vmem:[%s1292_s1 + $0x194] ss:$8 sps:$4 sm:$0xff]   ;;  %v94_v61 = vld [vmem:[%s1294_s2] sm:$0xff]  ;;  %v95_v63 = vld [vmem:[%s1294_s2 + $0x8] sm:$0xff] }
  0x16   :  { %104 = vperm.xlu0 %861, %v94_v61   ;;  %v96_v62 = vld [vmem:[%s1294_s2 + $0x10] sm:$0xff]  ;;  %v97_v2 = vld [vmem:[%s1294_s2 + $0x18] sm:$0xff]  ;;  %v953_v3 = vld [vmem:[%s1292_s1 + $0x84] ss:$8 sps:$4 sm:$0xff]  }
  0x17   :  { %553 = vmatpush1.bf16.msra.mxu0 %v897_v23  ;;  %114 = vperm.xlu1 %862, %v96_v62   ;;  %v952_v1 = vld [vmem:[%s1292_s1 + $0x190] ss:$8 sps:$4 sm:$0xff]   ;;  %v955_v4 = vld [vmem:[%s1292_s1 + $0x184] ss:$8 sps:$4 sm:$0xff]   ;;  %v957_v6 = vld [vmem:[%s1292_s1 + $0x80] ss:$8 sps:$4 sm:$0xff]  }
  0x18   :  { %626 = vmatpush1.bf16.msra.mxu1 %v898_v24  ;;  %554 = vmatprep.subr.bf16.mxu0 %v899_v25  ;;  %v98_v5 = vld [vmem:[%s1294_s2 + $0x20] sm:$0xff]  ;;  %v99_v8 = vld [vmem:[%s1294_s2 + $0x28] sm:$0xff]  ;;  %v100_v11 = vld [vmem:[%s1294_s2 + $0x30] sm:$0xff] }
  0x19   :  { %627 = vmatprep.subr.bf16.mxu1 %v901_v26  ;;  %v958_v7 = vld [vmem:[%s1292_s1 + $0x180] ss:$8 sps:$4 sm:$0xff]   ;;  %v965_v12 = vld [vmem:[%s1293_s0 + $0x24] ss:$16 sps:$4 sm:$0xff]   ;;  %v967_v13 = vld [vmem:[%s1293_s0 + $0x2c] ss:$16 sps:$4 sm:$0xff]  }
  0x1a   :  { %109 = vperm.xlu0 %861, %v95_v63   ;;  %v959_v9 = vld [vmem:[%s1293_s0] ss:$16 sps:$4 sm:$0xff]   ;;  %v962_v10 = vld [vmem:[%s1293_s0 + $0x8] ss:$16 sps:$4 sm:$0xff]   ;;  %v971_v17 = vld [vmem:[%s1293_s0 + $0x44] ss:$16 sps:$4 sm:$0xff]  }
  0x1b   :  { %555 = vmatpush1.bf16.msra.mxu0 %v903_v27  ;;  %119 = vperm.xlu1 %862, %v97_v2   ;;  %v101_v14 = vld [vmem:[%s1294_s2 + $0x38] sm:$0xff]  ;;  %v969_v15 = vld [vmem:[%s1293_s0 + $0x20] ss:$16 sps:$4 sm:$0xff]   ;;  %v977_v21 = vld [vmem:[%s1293_s0 + $0x64] ss:$16 sps:$4 sm:$0xff]  }
  0x1c   :  { %628 = vmatpush1.bf16.msra.mxu1 %v904_v28  ;;  %556 = vmatprep.subr.bf16.mxu0 %v905_v29  ;;  %v970_v16 = vld [vmem:[%s1293_s0 + $0x28] ss:$16 sps:$4 sm:$0xff]   ;;  %v973_v18 = vld [vmem:[%s1293_s0 + $0x4c] ss:$16 sps:$4 sm:$0xff]   ;;  %v975_v19 = vld [vmem:[%s1293_s0 + $0x40] ss:$16 sps:$4 sm:$0xff]  }
  0x1d   :  { %629 = vmatprep.subr.bf16.mxu1 %v907_v30  ;;  %v976_v20 = vld [vmem:[%s1293_s0 + $0x48] ss:$16 sps:$4 sm:$0xff]   ;;  %v979_v22 = vld [vmem:[%s1293_s0 + $0x6c] ss:$16 sps:$4 sm:$0xff]   ;;  %v981_v23 = vld [vmem:[%s1293_s0 + $0x60] ss:$16 sps:$4 sm:$0xff]  }
  0x1e   :  { %124 = vperm.xlu0 %861, %v98_v5   ;;  %v982_v24 = vld [vmem:[%s1293_s0 + $0x68] ss:$16 sps:$4 sm:$0xff]  }
  0x1f   :  { %557 = vmatpush1.bf16.msra.mxu0 %v909_v31  ;;  %129 = vperm.xlu1 %862, %v99_v8  }
  0x20   :  { %630 = vmatpush1.bf16.msra.mxu1 %v910_v32  ;;  %558 = vmatprep.subr.bf16.mxu0 %v911_v33 }
  0x21   :  { %631 = vmatprep.subr.bf16.mxu1 %v913_v34 }
  0x22   :  { %134 = vperm.xlu0 %861, %v100_v11  }
  0x23   :  { %559 = vmatpush2.bf16.msra.mxu0 %v915_v35  ;;  %139 = vperm.xlu1 %862, %v101_v14  }
  0x24   :  { %632 = vmatpush2.bf16.msra.mxu1 %v916_v36  ;;  %560 = vmatprep.subr.bf16.mxu0 %v917_v37 }
  0x25   :  { %633 = vmatprep.subr.bf16.mxu1 %v919_v38 }
  0x27   :  { %561 = vmatpush2.bf16.msra.mxu0 %v921_v39 }
  0x28   :  { %634 = vmatpush2.bf16.msra.mxu1 %v922_v40  ;;  %562 = vmatprep.subr.bf16.mxu0 %v923_v41 }
  0x29   :  { %635 = vmatprep.subr.bf16.mxu1 %v925_v42 }
  0x2b   :  { %563 = vmatpush2.bf16.msra.mxu0 %v927_v43 }
  0x2c   :  { %636 = vmatpush2.bf16.msra.mxu1 %v928_v44  ;;  %564 = vmatprep.subr.bf16.mxu0 %v929_v45 }
  0x2d   :  { %637 = vmatprep.subr.bf16.mxu1 %v931_v46 }
  0x2f   :  { %565 = vmatpush2.bf16.msra.mxu0 %v933_v47 }
  0x30   :  { %638 = vmatpush2.bf16.msra.mxu1 %v934_v48  ;;  %566 = vmatprep.subr.bf16.mxu0 %v935_v49 }
  0x31   :  { %639 = vmatprep.subr.bf16.mxu1 %v937_v51 }
  0x33   :  { %567 = vmatpush2.bf16.msra.mxu0 %v939_v53 }
  0x34   :  { %640 = vmatpush2.bf16.msra.mxu1 %v940_v54  ;;  %568 = vmatprep.subr.bf16.mxu0 %v941_v55 }
  0x35   :  { %641 = vmatprep.subr.bf16.mxu1 %v943_v56 }
  0x37   :  { %569 = vmatpush2.bf16.msra.mxu0 %v945_v57 }
  0x38   :  { %642 = vmatpush2.bf16.msra.mxu1 %v946_v58  ;;  %570 = vmatprep.subr.bf16.mxu0 %v947_v59 }
  0x39   :  { %643 = vmatprep.subr.bf16.mxu1 %v949_v60 }
  0x3b   :  { %571 = vmatpush2.bf16.msra.mxu0 %v951_v0 }
  0x3c   :  { %644 = vmatpush2.bf16.msra.mxu1 %v952_v1  ;;  %572 = vmatprep.subr.bf16.mxu0 %v953_v3 }
  0x3d   :  { %645 = vmatprep.subr.bf16.mxu1 %v955_v4 }
  0x3f   :  { %573 = vmatpush2.bf16.msra.mxu0 %v957_v6 }
  0x40   :  { %646 = vmatpush2.bf16.msra.mxu1 %v958_v7 }
  0x42   :  { %575 = vmatmul.mubr.bf16.vlgmr.msra.gmra.mxu0 %v959_v9 }
  0x43   :  { %648 = vmatmul.mubr.bf16.vlgmr.msra.gmra.mxu1 %v962_v10  ;;  %584 = vmatprep.mubr.bf16.mxu0 %v965_v12 }
  0x44   :  { %657 = vmatprep.mubr.bf16.mxu1 %v967_v13 }
  0x4a   :  { %585 = vmatmul.mubr.bf16.gmra.mxu0 %v969_v15 }
  0x4b   :  { %658 = vmatmul.mubr.bf16.gmra.mxu1 %v970_v16  ;;  %594 = vmatprep.mubr.bf16.mxu0 %v971_v17 }
  0x4c   :  { %667 = vmatprep.mubr.bf16.mxu1 %v973_v18 }
  0x52   :  { %595 = vmatmul.mubr.bf16.gmra.mxu0 %v975_v19 }
  0x53   :  { %668 = vmatmul.mubr.bf16.gmra.mxu1 %v976_v20  ;;  %604 = vmatprep.mubr.bf16.mxu0 %v977_v21 }
  0x54   :  { %677 = vmatprep.mubr.bf16.mxu1 %v979_v22 }
  0x5a   :  { %605 = vmatmul.mubr.bf16.gmra.mxu0 %v981_v23 }
  0x5b   :  { %678 = vmatmul.mubr.bf16.gmra.mxu1 %v982_v24 }
  0x91   :  { %v105_v25 = vpop.permute.xlu0 %104 }
  0x92   :  { %v115_v38 = vpop.permute.xlu1 %114 }
  0x95   :  { %v110_v29 = vpop.permute.xlu0 %109 }
  0x96   :  { %v120_v55 = vpop.permute.xlu1 %119 }
  0x99   :  { %v125_v3 = vpop.permute.xlu0 %124 }
  0x9a   :  { %v130_v13 = vpop.permute.xlu1 %129 }
 0x102   :  { %v576_v26 = vpop.f32.mrf.mxu0 }
 0x103   :  { %v649_v27 = vpop.f32.mrf.mxu1  ;;  %v577_v28 = vadd.f32 %v576_v26, %v105_v25 }
 0x104   :  { %v578_v30 = vpop.f32.mrf.mxu0 }
 0x105   :  { %v651_v31 = vpop.f32.mrf.mxu1  ;;  %v650_v32 = vadd.f32 %v649_v27, %v577_v28  ;;  %v579_v33 = vadd.f32 %v578_v30, %v105_v25  ;;  %v135_v25 = vpop.permute.xlu0 %134 }
 0x106   :  { %v580_v34 = vpop.f32.mrf.mxu0 }
 0x107   :  { %v653_v35 = vpop.f32.mrf.mxu1  ;;  %v652_v36 = vadd.f32 %v651_v31, %v579_v33  ;;  %v581_v37 = vadd.f32 %v580_v34, %v110_v29  ;;  %v688_v41 = vmax.f32 %v650_v32, 0.0 }
 0x108   :  { %v582_v39 = vpop.f32.mrf.mxu0 }
 0x109   :  { %v655_v40 = vpop.f32.mrf.mxu1  ;;  %v689_v42 = vmax.f32 %v652_v36, 0.0  ;;  %v654_v43 = vadd.f32 %v653_v35, %v581_v37  ;;  %v583_v44 = vadd.f32 %v582_v39, %v110_v29  ;;  %v140_v36 = vpop.permute.xlu1 %139 }
 0x10a   :  { %v586_v45 = vpop.f32.mrf.mxu0 }
 0x10b   :  { %v659_v46 = vpop.f32.mrf.mxu1  ;;  %v852_v47 = vpack.c.bf16 %v689_v42, %v688_v41  ;;  %v656_v48 = vadd.f32 %v655_v40, %v583_v44  ;;  %v587_v49 = vadd.f32 %v586_v45, %v115_v38  ;;  %v690_v52 = vmax.f32 %v654_v43, 0.0 }
 0x10c   :  { %v588_v50 = vpop.f32.mrf.mxu0 }
 0x10d   :  { %v661_v51 = vpop.f32.mrf.mxu1  ;;  %752 = vst [vmem:[%s1295_s3] sm:$0xff] %v852_v47  ;;  %v691_v53 = vmax.f32 %v656_v48, 0.0  ;;  %v660_v54 = vadd.f32 %v659_v46, %v587_v49  ;;  %v589_v56 = vadd.f32 %v588_v50, %v115_v38 }
 0x10e   :  { %v590_v57 = vpop.f32.mrf.mxu0 }
 0x10f   :  { %v663_v58 = vpop.f32.mrf.mxu1  ;;  %v853_v59 = vpack.c.bf16 %v691_v53, %v690_v52  ;;  %v662_v60 = vadd.f32 %v661_v51, %v589_v56  ;;  %v591_v61 = vadd.f32 %v590_v57, %v120_v55  ;;  %v692_v0 = vmax.f32 %v660_v54, 0.0 }
 0x110   :  { %v592_v62 = vpop.f32.mrf.mxu0 }
 0x111   :  { %v665_v63 = vpop.f32.mrf.mxu1  ;;  %753 = vst [vmem:[%s1295_s3 + $0x8] sm:$0xff] %v853_v59  ;;  %v693_v1 = vmax.f32 %v662_v60, 0.0  ;;  %v664_v2 = vadd.f32 %v663_v58, %v591_v61  ;;  %v593_v4 = vadd.f32 %v592_v62, %v120_v55 }
 0x112   :  { %v596_v5 = vpop.f32.mrf.mxu0 }
 0x113   :  { %v669_v6 = vpop.f32.mrf.mxu1  ;;  %v854_v7 = vpack.c.bf16 %v693_v1, %v692_v0  ;;  %v666_v8 = vadd.f32 %v665_v63, %v593_v4  ;;  %v597_v9 = vadd.f32 %v596_v5, %v125_v3  ;;  %v694_v12 = vmax.f32 %v664_v2, 0.0 }
 0x114   :  { %v598_v10 = vpop.f32.mrf.mxu0 }
 0x115   :  { %v671_v11 = vpop.f32.mrf.mxu1  ;;  %754 = vst [vmem:[%s1295_s3 + $0x10] sm:$0xff] %v854_v7  ;;  %v695_v14 = vmax.f32 %v666_v8, 0.0  ;;  %v670_v15 = vadd.f32 %v669_v6, %v597_v9  ;;  %v599_v16 = vadd.f32 %v598_v10, %v125_v3 }
 0x116   :  { %v600_v17 = vpop.f32.mrf.mxu0 }
 0x117   :  { %v673_v18 = vpop.f32.mrf.mxu1  ;;  %v855_v19 = vpack.c.bf16 %v695_v14, %v694_v12  ;;  %v672_v20 = vadd.f32 %v671_v11, %v599_v16  ;;  %v601_v21 = vadd.f32 %v600_v17, %v130_v13  ;;  %v696_v24 = vmax.f32 %v670_v15, 0.0 }
 0x118   :  { %v602_v22 = vpop.f32.mrf.mxu0 }
 0x119   :  { %v675_v23 = vpop.f32.mrf.mxu1  ;;  %755 = vst [vmem:[%s1295_s3 + $0x18] sm:$0xff] %v855_v19  ;;  %v697_v26 = vmax.f32 %v672_v20, 0.0  ;;  %v674_v27 = vadd.f32 %v673_v18, %v601_v21  ;;  %v603_v28 = vadd.f32 %v602_v22, %v130_v13 }
 0x11a   :  { %v606_v29 = vpop.f32.mrf.mxu0 }
 0x11b   :  { %v679_v30 = vpop.f32.mrf.mxu1  ;;  %v856_v31 = vpack.c.bf16 %v697_v26, %v696_v24  ;;  %v676_v32 = vadd.f32 %v675_v23, %v603_v28  ;;  %v607_v33 = vadd.f32 %v606_v29, %v135_v25  ;;  %v698_v37 = vmax.f32 %v674_v27, 0.0 }
 0x11c   :  { %v608_v34 = vpop.f32.mrf.mxu0 }
 0x11d   :  { %v681_v35 = vpop.f32.mrf.mxu1  ;;  %756 = vst [vmem:[%s1295_s3 + $0x20] sm:$0xff] %v856_v31  ;;  %v699_v38 = vmax.f32 %v676_v32, 0.0  ;;  %v680_v39 = vadd.f32 %v679_v30, %v607_v33  ;;  %v609_v40 = vadd.f32 %v608_v34, %v135_v25 }
 0x11e   :  { %v610_v41 = vpop.f32.mrf.mxu0 }
 0x11f   :  { %v683_v42 = vpop.f32.mrf.mxu1  ;;  %v857_v43 = vpack.c.bf16 %v699_v38, %v698_v37  ;;  %v682_v44 = vadd.f32 %v681_v35, %v609_v40  ;;  %v611_v45 = vadd.f32 %v610_v41, %v140_v36  ;;  %v700_v47 = vmax.f32 %v680_v39, 0.0 }
 0x120   :  { %v612_v46 = vpop.f32.mrf.mxu0 }
 0x121   :  { %757 = vst [vmem:[%s1295_s3 + $0x28] sm:$0xff] %v857_v43  ;;  %v701_v48 = vmax.f32 %v682_v44, 0.0  ;;  %v684_v49 = vadd.f32 %v683_v42, %v611_v45  ;;  %v613_v50 = vadd.f32 %v612_v46, %v140_v36  ;;  %v685_v51 = vpop.f32.mrf.mxu1 }
 0x123   :  { %v858_v52 = vpack.c.bf16 %v701_v48, %v700_v47  ;;  %v686_v53 = vadd.f32 %v685_v51, %v613_v50  ;;  %v702_v54 = vmax.f32 %v684_v49, 0.0 }
 0x125   :  { %758 = vst [vmem:[%s1295_s3 + $0x30] sm:$0xff] %v858_v52  ;;  %v703_v55 = vmax.f32 %v686_v53, 0.0 }
 0x127   :  { %v859_v56 = vpack.c.bf16 %v703_v55, %v702_v54 }
 0x129   :  { %759 = vst [vmem:[%s1295_s3 + $0x38] sm:$0xff] %v859_v56 }

// kernel: qnetwork_cnn_forward.6
= control target key start
LH: loop header
LB: loop body
LE: loop exit
PB: predicated region body
PF: predicated region fallthrough
CT: control target
= control target key end

     0   :  { %v1186_v1 = vmov 0   ;;  %vm619_vm0 = vcmask 523264   ;;  %s1558_s1 = inlined_call_operand.vmem [shape: bf16[576,256], index: 1, kind: input, shape index: {}]   ;;  %s1559_s0 = inlined_call_operand.vmem [shape: bf16[64,576], index: 0, kind: input, shape index: {}]   ;;  %s1560_s2 = inlined_call_operand.vmem [shape: f32[64,1], index: 2, kind: input, shape index: {}]   ;;  %s1561_s3 = inlined_call_operand.vmem [shape: bf16[64,256], index: 3, kind: output, shape index: {}]  }
   0x1   :  { %v1050_v0 = vld [vmem:[%s1558_s1 + $0x74] ss:$8 sps:$4 sm:$0xff]   ;;  %1048 = vset.pattern.permute.xlu0 %v1186_v1  ;;  %1049 = vset.pattern.permute.xlu1 %v1186_v1  ;;  %v1054_v3 = vld [vmem:[%s1558_s1 + $0x70] ss:$8 sps:$4 sm:$0xff]   ;;  %v1056_v5 = vld [vmem:[%s1558_s1 + $0x64] ss:$8 sps:$4 sm:$0xff]  }
   0x2   :  { %v1052_v2 = vld [vmem:[%s1558_s1 + $0x174] ss:$8 sps:$4 sm:$0xff]   ;;  %632 = vmatprep.subr.bf16.mxu0 %v1050_v0  ;;  %v1055_v4 = vld [vmem:[%s1558_s1 + $0x170] ss:$8 sps:$4 sm:$0xff]   ;;  %v1058_v6 = vld [vmem:[%s1558_s1 + $0x164] ss:$8 sps:$4 sm:$0xff]  }
   0x3   :  { %705 = vmatprep.subr.bf16.mxu1 %v1052_v2  ;;  %633 = vmatpush1.bf16.msra.mxu0 %v1054_v3  ;;  %v1060_v7 = vld [vmem:[%s1558_s1 + $0x60] ss:$8 sps:$4 sm:$0xff]   ;;  %v1062_v9 = vld [vmem:[%s1558_s1 + $0x54] ss:$8 sps:$4 sm:$0xff]   ;;  %v1066_v11 = vld [vmem:[%s1558_s1 + $0x50] ss:$8 sps:$4 sm:$0xff]  }
   0x4   :  { %706 = vmatpush1.bf16.msra.mxu1 %v1055_v4  ;;  %634 = vmatprep.subr.bf16.mxu0 %v1056_v5  ;;  %v1061_v8 = vld [vmem:[%s1558_s1 + $0x160] ss:$8 sps:$4 sm:$0xff]   ;;  %v1064_v10 = vld [vmem:[%s1558_s1 + $0x154] ss:$8 sps:$4 sm:$0xff]   ;;  %v1067_v12 = vld [vmem:[%s1558_s1 + $0x150] ss:$8 sps:$4 sm:$0xff]  }
   0x5   :  { %707 = vmatprep.subr.bf16.mxu1 %v1058_v6  ;;  %v1068_v13 = vld [vmem:[%s1558_s1 + $0x44] ss:$8 sps:$4 sm:$0xff]   ;;  %v1072_v15 = vld [vmem:[%s1558_s1 + $0x40] ss:$8 sps:$4 sm:$0xff]   ;;  %v1074_v17 = vld [vmem:[%s1558_s1 + $0x34] ss:$8 sps:$4 sm:$0xff]  }
   0x6   :  { %v1070_v14 = vld [vmem:[%s1558_s1 + $0x144] ss:$8 sps:$4 sm:$0xff]   ;;  %v1073_v16 = vld [vmem:[%s1558_s1 + $0x140] ss:$8 sps:$4 sm:$0xff]   ;;  %v1076_v18 = vld [vmem:[%s1558_s1 + $0x134] ss:$8 sps:$4 sm:$0xff]  }
   0x7   :  { %635 = vmatpush1.bf16.msra.mxu0 %v1060_v7  ;;  %v1078_v19 = vld [vmem:[%s1558_s1 + $0x30] ss:$8 sps:$4 sm:$0xff]   ;;  %v1080_v21 = vld [vmem:[%s1558_s1 + $0x24] ss:$8 sps:$4 sm:$0xff]   ;;  %v1084_v23 = vld [vmem:[%s1558_s1 + $0x20] ss:$8 sps:$4 sm:$0xff]  }
   0x8   :  { %708 = vmatpush1.bf16.msra.mxu1 %v1061_v8  ;;  %636 = vmatprep.subr.bf16.mxu0 %v1062_v9  ;;  %v1079_v20 = vld [vmem:[%s1558_s1 + $0x130] ss:$8 sps:$4 sm:$0xff]   ;;  %v1082_v22 = vld [vmem:[%s1558_s1 + $0x124] ss:$8 sps:$4 sm:$0xff]   ;;  %v1085_v24 = vld [vmem:[%s1558_s1 + $0x120] ss:$8 sps:$4 sm:$0xff]  }
   0x9   :  { %709 = vmatprep.subr.bf16.mxu1 %v1064_v10  ;;  %v1086_v25 = vld [vmem:[%s1558_s1 + $0x14] ss:$8 sps:$4 sm:$0xff]   ;;  %v1090_v27 = vld [vmem:[%s1558_s1 + $0x10] ss:$8 sps:$4 sm:$0xff]   ;;  %v1092_v29 = vld [vmem:[%s1558_s1 + $0x4] ss:$8 sps:$4 sm:$0xff]  }
   0xa   :  { %v1088_v26 = vld [vmem:[%s1558_s1 + $0x114] ss:$8 sps:$4 sm:$0xff]   ;;  %v1091_v28 = vld [vmem:[%s1558_s1 + $0x110] ss:$8 sps:$4 sm:$0xff]   ;;  %v1094_v30 = vld [vmem:[%s1558_s1 + $0x104] ss:$8 sps:$4 sm:$0xff]  }
   0xb   :  { %637 = vmatpush1.bf16.msra.mxu0 %v1066_v11  ;;  %v1096_v31 = vld [vmem:[%s1558_s1] ss:$8 sps:$4 sm:$0xff]   ;;  %v1098_v33 = vld [vmem:[%s1558_s1 + $0xf4] ss:$8 sps:$4 sm:$0xff]   ;;  %v1102_v35 = vld [vmem:[%s1558_s1 + $0xf0] ss:$8 sps:$4 sm:$0xff]  }
   0xc   :  { %710 = vmatpush1.bf16.msra.mxu1 %v1067_v12  ;;  %638 = vmatprep.subr.bf16.mxu0 %v1068_v13  ;;  %v1097_v32 = vld [vmem:[%s1558_s1 + $0x100] ss:$8 sps:$4 sm:$0xff]   ;;  %v1100_v34 = vld [vmem:[%s1558_s1 + $0x1f4] ss:$8 sps:$4 sm:$0xff]   ;;  %v1103_v36 = vld [vmem:[%s1558_s1 + $0x1f0] ss:$8 sps:$4 sm:$0xff]  }
   0xd   :  { %711 = vmatprep.subr.bf16.mxu1 %v1070_v14  ;;  %v1104_v37 = vld [vmem:[%s1558_s1 + $0xe4] ss:$8 sps:$4 sm:$0xff]   ;;  %v1108_v39 = vld [vmem:[%s1558_s1 + $0xe0] ss:$8 sps:$4 sm:$0xff]   ;;  %v1110_v41 = vld [vmem:[%s1558_s1 + $0xd4] ss:$8 sps:$4 sm:$0xff]  }
   0xe   :  { %v1106_v38 = vld [vmem:[%s1558_s1 + $0x1e4] ss:$8 sps:$4 sm:$0xff]   ;;  %v1109_v40 = vld [vmem:[%s1558_s1 + $0x1e0] ss:$8 sps:$4 sm:$0xff]   ;;  %v1112_v42 = vld [vmem:[%s1558_s1 + $0x1d4] ss:$8 sps:$4 sm:$0xff]  }
   0xf   :  { %639 = vmatpush1.bf16.msra.mxu0 %v1072_v15  ;;  %v1114_v43 = vld [vmem:[%s1558_s1 + $0xd0] ss:$8 sps:$4 sm:$0xff]   ;;  %v1116_v45 = vld [vmem:[%s1558_s1 + $0xc4] ss:$8 sps:$4 sm:$0xff]   ;;  %v1120_v47 = vld [vmem:[%s1558_s1 + $0xc0] ss:$8 sps:$4 sm:$0xff]  }
  0x10   :  { %712 = vmatpush1.bf16.msra.mxu1 %v1073_v16  ;;  %640 = vmatprep.subr.bf16.mxu0 %v1074_v17  ;;  %v1115_v44 = vld [vmem:[%s1558_s1 + $0x1d0] ss:$8 sps:$4 sm:$0xff]   ;;  %v1118_v46 = vld [vmem:[%s1558_s1 + $0x1c4] ss:$8 sps:$4 sm:$0xff]   ;;  %v1121_v48 = vld [vmem:[%s1558_s1 + $0x1c0] ss:$8 sps:$4 sm:$0xff]  }
  0x11   :  { %713 = vmatprep.subr.bf16.mxu1 %v1076_v18  ;;  %v1122_v49 = vld [vmem:[%s1558_s1 + $0xb4] ss:$8 sps:$4 sm:$0xff]   ;;  %v1148_v50 = vld [vmem:[%s1559_s0 + $0x4] ss:$20 sps:$4 sm:$0xff]   ;;  %v1151_v52 = vld [vmem:[%s1559_s0 + $0xc] ss:$20 sps:$4 sm:$0xff]  }
  0x12   :  { %v1124_v51 = vld [vmem:[%s1558_s1 + $0x1b4] ss:$8 sps:$4 sm:$0xff]   ;;  %664 = vmatprep.mubr.bf16.mxu0 %v1148_v50  ;;  %v1126_v53 = vld [vmem:[%s1558_s1 + $0xb0] ss:$8 sps:$4 sm:$0xff]   ;;  %737 = vmatprep.mubr.bf16.mxu1 %v1151_v52  ;;  %v1128_v55 = vld [vmem:[%s1558_s1 + $0xa4] ss:$8 sps:$4 sm:$0xff]  }
  0x13   :  { %641 = vmatpush1.bf16.msra.mxu0 %v1078_v19  ;;  %v1127_v54 = vld [vmem:[%s1558_s1 + $0x1b0] ss:$8 sps:$4 sm:$0xff]   ;;  %v1130_v56 = vld [vmem:[%s1558_s1 + $0x1a4] ss:$8 sps:$4 sm:$0xff]   ;;  %v1132_v57 = vld [vmem:[%s1558_s1 + $0xa0] ss:$8 sps:$4 sm:$0xff]  }
  0x14   :  { %714 = vmatpush1.bf16.msra.mxu1 %v1079_v20  ;;  %642 = vmatprep.subr.bf16.mxu0 %v1080_v21  ;;  %v1133_v58 = vld [vmem:[%s1558_s1 + $0x1a0] ss:$8 sps:$4 sm:$0xff]   ;;  %v1134_v59 = vld [vmem:[%s1558_s1 + $0x94] ss:$8 sps:$4 sm:$0xff]   ;;  %v1138_v61 = vld [vmem:[%s1558_s1 + $0x90] ss:$8 sps:$4 sm:$0xff]  }
  0x15   :  { %715 = vmatprep.subr.bf16.mxu1 %v1082_v22  ;;  %v1136_v60 = vld [vmem:[%s1558_s1 + $0x194] ss:$8 sps:$4 sm:$0xff]   ;;  %v1139_v62 = vld [vmem:[%s1558_s1 + $0x190] ss:$8 sps:$4 sm:$0xff]   ;;  %v1140_v63 = vld [vmem:[%s1558_s1 + $0x84] ss:$8 sps:$4 sm:$0xff]  }
  0x16   :  { %v1142_v0 = vld [vmem:[%s1558_s1 + $0x184] ss:$8 sps:$4 sm:$0xff]   ;;  %v1144_v2 = vld [vmem:[%s1558_s1 + $0x80] ss:$8 sps:$4 sm:$0xff]   ;;  %v1154_v4 = vld [vmem:[%s1558_s1 + $0x234] ss:$8 sps:$4 sm:$0xff]  }
  0x17   :  { %643 = vmatpush1.bf16.msra.mxu0 %v1084_v23  ;;  %v1145_v3 = vld [vmem:[%s1558_s1 + $0x180] ss:$8 sps:$4 sm:$0xff]   ;;  %v113_v8 = vld [vmem:[%s1560_s2 + $0x10] sm:$0xff]  ;;  %v1163_v12 = vld [vmem:[%s1558_s1 + $0x224] ss:$8 sps:$4 sm:$0xff]  }
  0x18   :  { %716 = vmatpush1.bf16.msra.mxu1 %v1085_v24  ;;  %644 = vmatprep.subr.bf16.mxu0 %v1086_v25  ;;  %v111_v5 = vld [vmem:[%s1560_s2] sm:$0xff]  ;;  %v1149_v7 = vld [vmem:[%s1559_s0 + $0x8] ss:$20 sps:$4 sm:$0xff]   ;;  %v1152_v9 = vld [vmem:[%s1558_s1 + $0x230] ss:$8 sps:$4 sm:$0xff]  }
  0x19   :  { %717 = vmatprep.subr.bf16.mxu1 %v1088_v26  ;;  %v1146_v6 = vld [vmem:[%s1559_s0] ss:$20 sps:$4 sm:$0xff]   ;;  %121 = vperm.xlu0 %1048, %v111_v5   ;;  %v112_v14 = vld [vmem:[%s1560_s2 + $0x8] sm:$0xff]  ;;  %v114_v15 = vld [vmem:[%s1560_s2 + $0x18] sm:$0xff] }
  0x1a   :  { %v1155_v10 = vld [vmem:[%s1559_s0 + $0x2c] ss:$20 sps:$4 sm:$0xff]   ;;  %v1157_v11 = vld [vmem:[%s1559_s0 + $0x34] ss:$20 sps:$4 sm:$0xff]   ;;  %131 = vperm.xlu1 %1049, %v113_v8   ;;  %v1160_v18 = vld [vmem:[%s1559_s0 + $0x30] ss:$20 sps:$4 sm:$0xff]  }
  0x1b   :  { %645 = vmatpush1.bf16.msra.mxu0 %v1090_v27  ;;  %v1161_v13 = vld [vmem:[%s1558_s1 + $0x220] ss:$8 sps:$4 sm:$0xff]   ;;  %v1172_v16 = vld [vmem:[%s1558_s1 + $0x214] ss:$8 sps:$4 sm:$0xff]   ;;  %v1170_v21 = vld [vmem:[%s1558_s1 + $0x210] ss:$8 sps:$4 sm:$0xff]  }
  0x1c   :  { %718 = vmatpush1.bf16.msra.mxu1 %v1091_v28  ;;  %646 = vmatprep.subr.bf16.mxu0 %v1092_v29  ;;  %v1159_v17 = vld [vmem:[%s1559_s0 + $0x28] ss:$20 sps:$4 sm:$0xff]   ;;  %v1181_v22 = vld [vmem:[%s1558_s1 + $0x204] ss:$8 sps:$4 sm:$0xff]  }
  0x1d   :  { %719 = vmatprep.subr.bf16.mxu1 %v1094_v30  ;;  %126 = vperm.xlu0 %1048, %v112_v14   ;;  %v1164_v19 = vld [vmem:[%s1559_s0 + $0x54] ss:$20 sps:$4 sm:$0xff]   ;;  %v1166_v20 = vld [vmem:[%s1559_s0 + $0x5c] ss:$20 sps:$4 sm:$0xff]   ;;  %v115_v23 = vld [vmem:[%s1560_s2 + $0x20] sm:$0xff] }
  0x1e   :  { %136 = vperm.xlu1 %1049, %v114_v15   ;;  %v116_v24 = vld [vmem:[%s1560_s2 + $0x28] sm:$0xff]  ;;  %v1168_v26 = vld [vmem:[%s1559_s0 + $0x50] ss:$20 sps:$4 sm:$0xff]  }
  0x1f   :  { %647 = vmatpush1.bf16.msra.mxu0 %v1096_v31  ;;  %v1179_v25 = vld [vmem:[%s1558_s1 + $0x200] ss:$8 sps:$4 sm:$0xff]   ;;  %v1169_v27 = vld [vmem:[%s1559_s0 + $0x58] ss:$20 sps:$4 sm:$0xff]   ;;  %v1173_v28 = vld [vmem:[%s1559_s0 + $0x7c] ss:$20 sps:$4 sm:$0xff]  }
  0x20   :  { %720 = vmatpush1.bf16.msra.mxu1 %v1097_v32  ;;  %648 = vmatprep.subr.bf16.mxu0 %v1098_v33  ;;  %v1175_v29 = vld [vmem:[%s1559_s0 + $0x84] ss:$20 sps:$4 sm:$0xff]   ;;  %v117_v30 = vld [vmem:[%s1560_s2 + $0x30] sm:$0xff] }
  0x21   :  { %721 = vmatprep.subr.bf16.mxu1 %v1100_v34  ;;  %141 = vperm.xlu0 %1048, %v115_v23   ;;  %v118_v31 = vld [vmem:[%s1560_s2 + $0x38] sm:$0xff]  ;;  %v1178_v33 = vld [vmem:[%s1559_s0 + $0x80] ss:$20 sps:$4 sm:$0xff]   ;;  %v1182_v34 = vld [vmem:[%s1559_s0 + $0x10] ss:$20 sps:$4 sm:$0xff]  }
  0x22   :  { %146 = vperm.xlu1 %1049, %v116_v24   ;;  %v1177_v32 = vld [vmem:[%s1559_s0 + $0x78] ss:$20 sps:$4 sm:$0xff]  }
  0x23   :  { %649 = vmatpush2.bf16.msra.mxu0 %v1102_v35  ;;  %v1183_v35 = vld [vmem:[%s1559_s0 + $0x60] ss:$20 sps:$4 sm:$0xff]  }
  0x24   :  { %722 = vmatpush2.bf16.msra.mxu1 %v1103_v36  ;;  %650 = vmatprep.subr.bf16.mxu0 %v1104_v37  ;;  %v1184_v36 = vld [vmem:[%s1559_s0 + $0x38] ss:$20 sps:$4 sm:$0xff]   ;;  %v1185_v37 = vld [vmem:[%s1559_s0 + $0x88] ss:$20 sps:$4 sm:$0xff]  }
  0x25   :  { %723 = vmatprep.subr.bf16.mxu1 %v1106_v38  ;;  %151 = vperm.xlu0 %1048, %v117_v30  }
  0x26   :  { %156 = vperm.xlu1 %1049, %v118_v31  }
  0x27   :  { %651 = vmatpush2.bf16.msra.mxu0 %v1108_v39 }
  0x28   :  { %724 = vmatpush2.bf16.msra.mxu1 %v1109_v40  ;;  %652 = vmatprep.subr.bf16.mxu0 %v1110_v41 }
  0x29   :  { %725 = vmatprep.subr.bf16.mxu1 %v1112_v42 }
  0x2b   :  { %653 = vmatpush2.bf16.msra.mxu0 %v1114_v43 }
  0x2c   :  { %726 = vmatpush2.bf16.msra.mxu1 %v1115_v44  ;;  %654 = vmatprep.subr.bf16.mxu0 %v1116_v45 }
  0x2d   :  { %727 = vmatprep.subr.bf16.mxu1 %v1118_v46 }
  0x2f   :  { %655 = vmatpush2.bf16.msra.mxu0 %v1120_v47 }
  0x30   :  { %728 = vmatpush2.bf16.msra.mxu1 %v1121_v48  ;;  %656 = vmatprep.subr.bf16.mxu0 %v1122_v49 }
  0x31   :  { %729 = vmatprep.subr.bf16.mxu1 %v1124_v51 }
  0x33   :  { %657 = vmatpush2.bf16.msra.mxu0 %v1126_v53 }
  0x34   :  { %730 = vmatpush2.bf16.msra.mxu1 %v1127_v54  ;;  %658 = vmatprep.subr.bf16.mxu0 %v1128_v55 }
  0x35   :  { %731 = vmatprep.subr.bf16.mxu1 %v1130_v56 }
  0x37   :  { %659 = vmatpush2.bf16.msra.mxu0 %v1132_v57 }
  0x38   :  { %732 = vmatpush2.bf16.msra.mxu1 %v1133_v58  ;;  %660 = vmatprep.subr.bf16.mxu0 %v1134_v59 }
  0x39   :  { %733 = vmatprep.subr.bf16.mxu1 %v1136_v60 }
  0x3b   :  { %661 = vmatpush2.bf16.msra.mxu0 %v1138_v61 }
  0x3c   :  { %734 = vmatpush2.bf16.msra.mxu1 %v1139_v62  ;;  %662 = vmatprep.subr.bf16.mxu0 %v1140_v63 }
  0x3d   :  { %735 = vmatprep.subr.bf16.mxu1 %v1142_v0 }
  0x3f   :  { %663 = vmatpush2.bf16.msra.mxu0 %v1144_v2 }
  0x40   :  { %736 = vmatpush2.bf16.msra.mxu1 %v1145_v3  ;;  %786 = vmatprep.subr.bf16.mxu0 %v1154_v4 }
  0x41   :  { %1039 = vmatprep.subr.bf16.mxu1 %v1154_v4 }
  0x42   :  { %665 = vmatmul.mubr.bf16.vlgmr.msra.gmra.mxu0 %v1146_v6 }
  0x43   :  { %738 = vmatmul.mubr.bf16.vlgmr.msra.gmra.mxu1 %v1149_v7  ;;  %787 = vmatpush1.bf16.msra.mxu0 %v1152_v9 }
  0x44   :  { %1043 = vmatpush1.bf16.msra.mxu1 %v1152_v9  ;;  %674 = vmatprep.mubr.bf16.mxu0 %v1155_v10 }
  0x45   :  { %747 = vmatprep.mubr.bf16.mxu1 %v1157_v11  ;;  %788 = vmatprep.subr.bf16.mxu0 %v1163_v12 }
  0x46   :  { %1040 = vmatprep.subr.bf16.mxu1 %v1163_v12 }
  0x47   :  { %789 = vmatpush1.bf16.msra.mxu0 %v1161_v13 }
  0x48   :  { %1044 = vmatpush1.bf16.msra.mxu1 %v1161_v13  ;;  %790 = vmatprep.subr.bf16.mxu0 %v1172_v16 }
  0x49   :  { %1041 = vmatprep.subr.bf16.mxu1 %v1172_v16 }
  0x4a   :  { %675 = vmatmul.mubr.bf16.gmra.mxu0 %v1159_v17 }
  0x4b   :  { %748 = vmatmul.mubr.bf16.gmra.mxu1 %v1160_v18  ;;  %684 = vmatprep.mubr.bf16.mxu0 %v1164_v19 }
  0x4c   :  { %757 = vmatprep.mubr.bf16.mxu1 %v1166_v20  ;;  %791 = vmatpush1.bf16.msra.mxu0 %v1170_v21 }
  0x4d   :  { %1045 = vmatpush1.bf16.msra.mxu1 %v1170_v21  ;;  %792 = vmatprep.subr.bf16.mxu0 %v1181_v22 }
  0x4e   :  { %1042 = vmatprep.subr.bf16.mxu1 %v1181_v22 }
  0x50   :  { %793 = vmatpush1.bf16.msra.mxu0 %v1179_v25 }
  0x51   :  { %1046 = vmatpush1.bf16.msra.mxu1 %v1179_v25 }
  0x52   :  { %685 = vmatmul.mubr.bf16.gmra.mxu0 %v1168_v26 }
  0x53   :  { %758 = vmatmul.mubr.bf16.gmra.mxu1 %v1169_v27  ;;  %694 = vmatprep.mubr.bf16.mxu0 %v1173_v28 }
  0x54   :  { %767 = vmatprep.mubr.bf16.mxu1 %v1175_v29 }
  0x5a   :  { %695 = vmatmul.mubr.bf16.gmra.mxu0 %v1177_v32 }
  0x5b   :  { %768 = vmatmul.mubr.bf16.gmra.mxu1 %v1178_v33  ;;  %810 = vmatprep.mubr.bf16.mxu0 %v1186_v1 }
  0x5c   :  { %830 = vmatprep.mubr.bf16.mxu1 %v1186_v1 }
  0x62   :  { %1019 = vmatmul.mubr.msk.bf16.vlgmr.msra.gmra.mxu0 %vm619_vm0, %v1182_v34 }
  0x63   :  { %1021 = vmatmul.mubr.msk.bf16.vlgmr.msra.gmra.mxu1 %vm619_vm0, %v1183_v35  ;;  %820 = vmatprep.mubr.bf16.mxu0 %v1186_v1 }
  0x64   :  { %840 = vmatprep.mubr.bf16.mxu1 %v1186_v1 }
  0x6a   :  { %1020 = vmatmul.mubr.msk.bf16.gmra.mxu0 %vm619_vm0, %v1184_v36 }
  0x6b   :  { %1022 = vmatmul.mubr.msk.bf16.gmra.mxu1 %vm619_vm0, %v1185_v37 }
  0x94   :  { %v122_v51 = vpop.permute.xlu0 %121 }
  0x95   :  { %v132_v59 = vpop.permute.xlu1 %131 }
  0x98   :  { %v127_v58 = vpop.permute.xlu0 %126 }
  0x99   :  { %v137_v4 = vpop.permute.xlu1 %136 }
  0x9c   :  { %v142_v0 = vpop.permute.xlu0 %141 }
  0x9d   :  { %v147_v13 = vpop.permute.xlu1 %146 }
  0xa0   :  { %v152_v19 = vpop.permute.xlu0 %151 }
 0x102   :  { %v666_v38 = vpop.f32.mrf.mxu0 }
 0x103   :  { %v739_v39 = vpop.f32.mrf.mxu1  ;;  %v667_v7 = vadd.f32 %v666_v38, %v122_v51 }
 0x104   :  { %v668_v40 = vpop.f32.mrf.mxu0 }
 0x105   :  { %v741_v41 = vpop.f32.mrf.mxu1  ;;  %v669_v11 = vadd.f32 %v668_v40, %v122_v51  ;;  %v740_v16 = vadd.f32 %v739_v39, %v667_v7 }
 0x106   :  { %v670_v42 = vpop.f32.mrf.mxu0 }
 0x107   :  { %v743_v43 = vpop.f32.mrf.mxu1  ;;  %v671_v17 = vadd.f32 %v670_v42, %v127_v58  ;;  %v742_v25 = vadd.f32 %v741_v41, %v669_v11 }
 0x108   :  { %v672_v44 = vpop.f32.mrf.mxu0 }
 0x109   :  { %v745_v45 = vpop.f32.mrf.mxu1  ;;  %v673_v20 = vadd.f32 %v672_v44, %v127_v58  ;;  %v744_v33 = vadd.f32 %v743_v43, %v671_v17 }
 0x10a   :  { %v676_v46 = vpop.f32.mrf.mxu0 }
 0x10b   :  { %v749_v1 = vpop.f32.mrf.mxu1  ;;  %v677_v21 = vadd.f32 %v676_v46, %v132_v59  ;;  %v746_v37 = vadd.f32 %v745_v45, %v673_v20  ;;  %v157_v46 = vpop.permute.xlu1 %156 }
 0x10c   :  { %v678_v47 = vpop.f32.mrf.mxu0 }
 0x10d   :  { %v1513_v48 = vpop.f32.mrf.mxu1  ;;  %v679_v29 = vadd.f32 %v678_v47, %v132_v59  ;;  %v750_v38 = vadd.f32 %v749_v1, %v677_v21 }
 0x10e   :  { %v1515_v49 = vpop.f32.mrf.mxu0 }
 0x10f   :  { %v1517_v50 = vpop.f32.mrf.mxu1  ;;  %v752_v47 = vadd.f32 %v1513_v48, %v679_v29 }
 0x110   :  { %v1519_v52 = vpop.f32.mrf.mxu0 }
 0x111   :  { %v1521_v53 = vpop.f32.mrf.mxu1 }
 0x112   :  { %v686_v54 = vpop.f32.mrf.mxu0 }
 0x113   :  { %v759_v55 = vpop.f32.mrf.mxu1  ;;  %v687_v8 = vadd.f32 %v686_v54, %v142_v0 }
 0x114   :  { %v688_v56 = vpop.f32.mrf.mxu0 }
 0x115   :  { %v761_v57 = vpop.f32.mrf.mxu1  ;;  %v689_v12 = vadd.f32 %v688_v56, %v142_v0  ;;  %v760_v18 = vadd.f32 %v759_v55, %v687_v8 }
 0x116   :  { %v690_v60 = vpop.f32.mrf.mxu0 }
 0x117   :  { %v763_v61 = vpop.f32.mrf.mxu1  ;;  %v691_v22 = vadd.f32 %v690_v60, %v147_v13  ;;  %v762_v26 = vadd.f32 %v761_v57, %v689_v12  ;;  %v681_v60 = vadd.f32 %v1515_v49, %v137_v4 }
 0x118   :  { %v692_v62 = vpop.f32.mrf.mxu0 }
 0x119   :  { %v765_v63 = vpop.f32.mrf.mxu1  ;;  %v693_v30 = vadd.f32 %v692_v62, %v147_v13  ;;  %v764_v39 = vadd.f32 %v763_v61, %v691_v22  ;;  %v683_v62 = vadd.f32 %v1519_v52, %v137_v4 }
 0x11a   :  { %v696_v2 = vpop.f32.mrf.mxu0 }
 0x11b   :  { %v769_v3 = vpop.f32.mrf.mxu1  ;;  %v697_v34 = vadd.f32 %v696_v2, %v152_v19  ;;  %v766_v56 = vadd.f32 %v765_v63, %v693_v30 }
 0x11c   :  { %v698_v5 = vpop.f32.mrf.mxu0 }
 0x11d   :  { %v771_v6 = vpop.f32.mrf.mxu1  ;;  %v699_v40 = vadd.f32 %v698_v5, %v152_v19  ;;  %v770_v45 = vadd.f32 %v769_v3, %v697_v34 }
 0x11e   :  { %v700_v9 = vpop.f32.mrf.mxu0 }
 0x11f   :  { %v1523_v10 = vpop.f32.mrf.mxu1  ;;  %v701_v0 = vadd.f32 %v700_v9, %v157_v46  ;;  %v772_v11 = vadd.f32 %v771_v6, %v699_v40  ;;  %v754_v6 = vadd.f32 %v1517_v50, %v681_v60 }
 0x120   :  { %v702_v14 = vpop.f32.mrf.mxu0 }
 0x121   :  { %v1525_v15 = vpop.f32.mrf.mxu1  ;;  %v703_v12 = vadd.f32 %v702_v14, %v157_v46  ;;  %v774_v14 = vadd.f32 %v1523_v10, %v701_v0 }
 0x122   :  { %v812_v23 = vpop.f32.mrf.mxu0 }
 0x123   :  { %v832_v24 = vpop.f32.mrf.mxu1  ;;  %v813_v27 = vadd.f32 %v812_v23, %v740_v16 }
 0x124   :  { %v833_v28 = vadd.f32 %v832_v24, %v760_v18  ;;  %v814_v31 = vpop.f32.mrf.mxu0 }
 0x125   :  { %v834_v32 = vpop.f32.mrf.mxu1  ;;  %v815_v35 = vadd.f32 %v814_v31, %v742_v25  ;;  %v851_v51 = vmax.f32 %v813_v27, 0.0  ;;  %v776_v27 = vadd.f32 %v1525_v15, %v703_v12 }
 0x126   :  { %v835_v36 = vadd.f32 %v834_v32, %v762_v26  ;;  %v816_v42 = vpop.f32.mrf.mxu0  ;;  %v859_v41 = vmax.f32 %v833_v28, 0.0  ;;  %v756_v26 = vadd.f32 %v1521_v53, %v683_v62 }
 0x127   :  { %v836_v44 = vpop.f32.mrf.mxu1  ;;  %v852_v54 = vmax.f32 %v815_v35, 0.0  ;;  %v817_v57 = vadd.f32 %v816_v42, %v744_v33 }
 0x128   :  { %v860_v55 = vmax.f32 %v835_v36, 0.0  ;;  %v837_v58 = vadd.f32 %v836_v44, %v764_v39  ;;  %v818_v43 = vpop.f32.mrf.mxu0 }
 0x129   :  { %v838_v59 = vpop.f32.mrf.mxu1  ;;  %v1031_v1 = vpack.c.bf16 %v852_v54, %v851_v51  ;;  %v819_v2 = vadd.f32 %v818_v43, %v746_v37  ;;  %v853_v63 = vmax.f32 %v817_v57, 0.0 }
 0x12a   :  { %v1035_v61 = vpack.c.bf16 %v860_v55, %v859_v41  ;;  %v839_v5 = vadd.f32 %v838_v59, %v766_v56  ;;  %v822_v7 = vpop.f32.mrf.mxu0  ;;  %v861_v3 = vmax.f32 %v837_v58, 0.0 }
 0x12b   :  { %v842_v8 = vpop.f32.mrf.mxu1  ;;  %915 = vst [vmem:[%s1561_s3] sm:$0xff] %v1031_v1  ;;  %v823_v48 = vadd.f32 %v822_v7, %v750_v38  ;;  %v854_v52 = vmax.f32 %v819_v2, 0.0 }
 0x12c   :  { %919 = vst [vmem:[%s1561_s3 + $0x20] sm:$0xff] %v1035_v61  ;;  %v843_v49 = vadd.f32 %v842_v8, %v770_v45  ;;  %v862_v4 = vmax.f32 %v839_v5, 0.0  ;;  %v824_v9 = vpop.f32.mrf.mxu0 }
 0x12d   :  { %v844_v13 = vpop.f32.mrf.mxu1  ;;  %v825_v16 = vadd.f32 %v824_v9, %v752_v47  ;;  %v1032_v18 = vpack.c.bf16 %v854_v52, %v853_v63  ;;  %v855_v22 = vmax.f32 %v823_v48, 0.0 }
 0x12e   :  { %v845_v17 = vadd.f32 %v844_v13, %v772_v11  ;;  %v1036_v19 = vpack.c.bf16 %v862_v4, %v861_v3  ;;  %v826_v20 = vpop.f32.mrf.mxu0  ;;  %v863_v23 = vmax.f32 %v843_v49, 0.0 }
 0x12f   :  { %v846_v21 = vpop.f32.mrf.mxu1  ;;  %v856_v24 = vmax.f32 %v825_v16, 0.0  ;;  %916 = vst [vmem:[%s1561_s3 + $0x8] sm:$0xff] %v1032_v18  ;;  %v827_v50 = vadd.f32 %v826_v20, %v754_v6 }
 0x130   :  { %v864_v25 = vmax.f32 %v845_v17, 0.0  ;;  %920 = vst [vmem:[%s1561_s3 + $0x28] sm:$0xff] %v1036_v19  ;;  %v847_v10 = vadd.f32 %v846_v21, %v774_v14  ;;  %v828_v28 = vpop.f32.mrf.mxu0 }
 0x131   :  { %v848_v29 = vpop.f32.mrf.mxu1  ;;  %v1033_v30 = vpack.c.bf16 %v856_v24, %v855_v22  ;;  %v829_v32 = vadd.f32 %v828_v28, %v756_v26  ;;  %v857_v53 = vmax.f32 %v827_v50, 0.0 }
 0x132   :  { %v1037_v31 = vpack.c.bf16 %v864_v25, %v863_v23  ;;  %v849_v33 = vadd.f32 %v848_v29, %v776_v27  ;;  %v865_v15 = vmax.f32 %v847_v10, 0.0 }
 0x133   :  { %917 = vst [vmem:[%s1561_s3 + $0x10] sm:$0xff] %v1033_v30  ;;  %v858_v34 = vmax.f32 %v829_v32, 0.0 }
 0x134   :  { %921 = vst [vmem:[%s1561_s3 + $0x30] sm:$0xff] %v1037_v31  ;;  %v866_v35 = vmax.f32 %v849_v33, 0.0 }
 0x135   :  { %v1034_v36 = vpack.c.bf16 %v858_v34, %v857_v53 }
 0x136   :  { %v1038_v37 = vpack.c.bf16 %v866_v35, %v865_v15 }
 0x137   :  { %918 = vst [vmem:[%s1561_s3 + $0x18] sm:$0xff] %v1034_v36 }
 0x138   :  { %922 = vst [vmem:[%s1561_s3 + $0x38] sm:$0xff] %v1038_v37 }

// kernel: qnetwork_cnn_forward.7
= control target key start
LH: loop header
LB: loop body
LE: loop exit
PB: predicated region body
PF: predicated region fallthrough
CT: control target
= control target key end

     0   :  { %s5116_s15 = smov 0   ;;  %s5118_s16 = smov 0   ;;  %s7259_s0 = inlined_call_operand.vmem [shape: bf16[8,8960], index: 0, kind: input, shape index: {}]   ;;  %s7260_s1 = inlined_call_operand.vmem [shape: s8[8960,512], index: 1, kind: input, shape index: {}]   ;;  %s7261_s2 = inlined_call_operand.vmem [shape: f32[1,512], index: 2, kind: input, shape index: {}]   ;;  %s7262_s3 = inlined_call_operand.vmem [shape: f32[1,512], index: 3, kind: input, shape index: {}]   ;;  %s7263_s4 = inlined_call_operand.vmem [shape: f32[8,512], index: 4, kind: output, shape index: {}]  }
   0x1   :  { %s5120_s17 = smov 0  }
   0x2 LB: > { %s4887_s18 = sadd.s32 4294967295, %s5089_s17   ;;  %s5133_s19 = sadd.s32 1, %s5089_s17   ;;  %s5089_s17 = sphi %s5120_s17, %s7266_s17   ;;  %s5085_s16 = sphi %s5118_s16, %s7265_s16   ;;  %s5081_s15 = sphi %s5116_s15, %s7264_s15  }
   0x3   : > { %s39_s20 = ssub.s32 %s5089_s17, %s5133_s19  ;;  %s42_s21 = sadd.s32 1, %s5085_s16 }
   0x4   : > { %p40_p0 = scmp.eq.s32.totalorder %s39_s20, 0  ;;  %p49_p1 = scmp.ne.s32.totalorder %s5085_s16, %s5081_s15 }
   0x5   : > { %p50_p2 = scmp.eq.s32.totalorder %s5089_s17, 0  ;;  %p4890_p4 = scmp.ge.s32.totalorder %s5089_s17, 2 }
   0x6   : > { %s5142_s22 = scalar_select %p40_p0, %s5085_s16, %s42_s21  }
   0x7   : > { %p51_p3 = por %p50_p2, %p49_p1  ;;  %156 = sbr.rel (%p4890_p4) target bundleno = 296 (0x128), region = 20 }
   0xc   : > { %159 = sbr.rel (!%p51_p3) target bundleno = 296 (0x128), region = 24  ;;  %s161_s23 = sand.u32 (%p51_p3), 1, %s5085_s16  }
   0xd   : > { %s4970_s24 = sshll.u32 (%p51_p3), %s5089_s17, 4  ;;  %s4971_s25 = smul.u32 (%p51_p3), 4480, %s161_s23 }
   0xe   : > { %s5150_s28 = scalar_lea.vmem (%p51_p3), %s7260_s1, %s4970_s24 }
   0xf   : > { %v179_v0 = vld [vmem:[%s5150_s28] sm:$0xff] (%p51_p3)  ;;  %v181_v1 = vld [vmem:[%s5150_s28 + $0x8] sm:$0xff] (%p51_p3)  ;;  %s5158_s29 = scalar_lea.vmem (%p51_p3), [#allocation2], %s4971_s25 }
  0x10   : > { %v183_v2 = vld [vmem:[%s5150_s28 + $0x20] sm:$0xff] (%p51_p3)  ;;  %v185_v3 = vld [vmem:[%s5150_s28 + $0x28] sm:$0xff] (%p51_p3)  ;;  %180 = vst [vmem:[%s5158_s29] sm:$0xff] (%p51_p3), %v179_v0  ;;  %182 = vst [vmem:[%s5158_s29 + $0x8] sm:$0xff] (%p51_p3), %v181_v1 }
  0x11   : > { %v187_v4 = vld [vmem:[%s5150_s28 + $0x40] sm:$0xff]  ;;  %v189_v5 = vld [vmem:[%s5150_s28 + $0x48] sm:$0xff]  ;;  %184 = vst [vmem:[%s5158_s29 + $0x10] sm:$0xff] %v183_v2  ;;  %186 = vst [vmem:[%s5158_s29 + $0x18] sm:$0xff] %v185_v3 }
  0x12   : > { %188 = vst [vmem:[%s5158_s29 + $0x20] sm:$0xff] %v187_v4  ;;  %190 = vst [vmem:[%s5158_s29 + $0x28] sm:$0xff] %v189_v5  ;;  %v191_v6 = vld [vmem:[%s5150_s28 + $0x60] sm:$0xff]  ;;  %v193_v7 = vld [vmem:[%s5150_s28 + $0x68] sm:$0xff] }
  0x13   : > { %v195_v8 = vld [vmem:[%s5150_s28 + $0x80] sm:$0xff]  ;;  %192 = vst [vmem:[%s5158_s29 + $0x30] sm:$0xff] %v191_v6  ;;  %194 = vst [vmem:[%s5158_s29 + $0x38] sm:$0xff] %v193_v7  ;;  %v197_v9 = vld [vmem:[%s5150_s28 + $0x88] sm:$0xff] }
  0x14   : > { %196 = vst [vmem:[%s5158_s29 + $0x40] sm:$0xff] %v195_v8  ;;  %v199_v10 = vld [vmem:[%s5150_s28 + $0xa0] sm:$0xff]  ;;  %v201_v11 = vld [vmem:[%s5150_s28 + $0xa8] sm:$0xff]  ;;  %198 = vst [vmem:[%s5158_s29 + $0x48] sm:$0xff] %v197_v9 }
  0x15   : > { %200 = vst [vmem:[%s5158_s29 + $0x50] sm:$0xff] %v199_v10  ;;  %202 = vst [vmem:[%s5158_s29 + $0x58] sm:$0xff] %v201_v11  ;;  %v203_v12 = vld [vmem:[%s5150_s28 + $0xc0] sm:$0xff]  ;;  %v205_v13 = vld [vmem:[%s5150_s28 + $0xc8] sm:$0xff] }
  0x16   : > { %v207_v14 = vld [vmem:[%s5150_s28 + $0xe0] sm:$0xff]  ;;  %204 = vst [vmem:[%s5158_s29 + $0x60] sm:$0xff] %v203_v12  ;;  %206 = vst [vmem:[%s5158_s29 + $0x68] sm:$0xff] %v205_v13  ;;  %v209_v15 = vld [vmem:[%s5150_s28 + $0xe8] sm:$0xff] }
  0x17   : > { %208 = vst [vmem:[%s5158_s29 + $0x70] sm:$0xff] %v207_v14  ;;  %v211_v16 = vld [vmem:[%s5150_s28 + $0x100] sm:$0xff]  ;;  %v213_v17 = vld [vmem:[%s5150_s28 + $0x108] sm:$0xff]  ;;  %210 = vst [vmem:[%s5158_s29 + $0x78] sm:$0xff] %v209_v15 }
  0x18   : > { %212 = vst [vmem:[%s5158_s29 + $0x80] sm:$0xff] %v211_v16  ;;  %214 = vst [vmem:[%s5158_s29 + $0x88] sm:$0xff] %v213_v17  ;;  %v215_v18 = vld [vmem:[%s5150_s28 + $0x120] sm:$0xff]  ;;  %v217_v19 = vld [vmem:[%s5150_s28 + $0x128] sm:$0xff] }
  0x19   : > { %v219_v20 = vld [vmem:[%s5150_s28 + $0x140] sm:$0xff]  ;;  %216 = vst [vmem:[%s5158_s29 + $0x90] sm:$0xff] %v215_v18  ;;  %218 = vst [vmem:[%s5158_s29 + $0x98] sm:$0xff] %v217_v19  ;;  %v221_v21 = vld [vmem:[%s5150_s28 + $0x148] sm:$0xff] }
  0x1a   : > { %220 = vst [vmem:[%s5158_s29 + $0xa0] sm:$0xff] %v219_v20  ;;  %v223_v22 = vld [vmem:[%s5150_s28 + $0x160] sm:$0xff]  ;;  %v225_v23 = vld [vmem:[%s5150_s28 + $0x168] sm:$0xff]  ;;  %222 = vst [vmem:[%s5158_s29 + $0xa8] sm:$0xff] %v221_v21 }
  0x1b   : > { %224 = vst [vmem:[%s5158_s29 + $0xb0] sm:$0xff] %v223_v22  ;;  %226 = vst [vmem:[%s5158_s29 + $0xb8] sm:$0xff] %v225_v23  ;;  %v227_v24 = vld [vmem:[%s5150_s28 + $0x180] sm:$0xff]  ;;  %v229_v25 = vld [vmem:[%s5150_s28 + $0x188] sm:$0xff] }
  0x1c   : > { %v231_v26 = vld [vmem:[%s5150_s28 + $0x1a0] sm:$0xff]  ;;  %228 = vst [vmem:[%s5158_s29 + $0xc0] sm:$0xff] %v227_v24  ;;  %230 = vst [vmem:[%s5158_s29 + $0xc8] sm:$0xff] %v229_v25  ;;  %v233_v27 = vld [vmem:[%s5150_s28 + $0x1a8] sm:$0xff] }
  0x1d   : > { %232 = vst [vmem:[%s5158_s29 + $0xd0] sm:$0xff] %v231_v26  ;;  %v235_v28 = vld [vmem:[%s5150_s28 + $0x1c0] sm:$0xff]  ;;  %v237_v29 = vld [vmem:[%s5150_s28 + $0x1c8] sm:$0xff]  ;;  %234 = vst [vmem:[%s5158_s29 + $0xd8] sm:$0xff] %v233_v27 }
  0x1e   : > { %236 = vst [vmem:[%s5158_s29 + $0xe0] sm:$0xff] %v235_v28  ;;  %238 = vst [vmem:[%s5158_s29 + $0xe8] sm:$0xff] %v237_v29  ;;  %v239_v30 = vld [vmem:[%s5150_s28 + $0x1e0] sm:$0xff]  ;;  %v241_v31 = vld [vmem:[%s5150_s28 + $0x1e8] sm:$0xff] }
  0x1f   : > { %v243_v32 = vld [vmem:[%s5150_s28 + $0x200] sm:$0xff]  ;;  %240 = vst [vmem:[%s5158_s29 + $0xf0] sm:$0xff] %v239_v30  ;;  %242 = vst [vmem:[%s5158_s29 + $0xf8] sm:$0xff] %v241_v31  ;;  %v245_v33 = vld [vmem:[%s5150_s28 + $0x208] sm:$0xff] }
  0x20   : > { %244 = vst [vmem:[%s5158_s29 + $0x100] sm:$0xff] %v243_v32  ;;  %v247_v34 = vld [vmem:[%s5150_s28 + $0x220] sm:$0xff]  ;;  %v249_v35 = vld [vmem:[%s5150_s28 + $0x228] sm:$0xff]  ;;  %246 = vst [vmem:[%s5158_s29 + $0x108] sm:$0xff] %v245_v33 }
  0x21   : > { %248 = vst [vmem:[%s5158_s29 + $0x110] sm:$0xff] %v247_v34  ;;  %250 = vst [vmem:[%s5158_s29 + $0x118] sm:$0xff] %v249_v35  ;;  %v251_v36 = vld [vmem:[%s5150_s28 + $0x240] sm:$0xff]  ;;  %v253_v37 = vld [vmem:[%s5150_s28 + $0x248] sm:$0xff] }
  0x22   : > { %v255_v38 = vld [vmem:[%s5150_s28 + $0x260] sm:$0xff]  ;;  %252 = vst [vmem:[%s5158_s29 + $0x120] sm:$0xff] %v251_v36  ;;  %254 = vst [vmem:[%s5158_s29 + $0x128] sm:$0xff] %v253_v37  ;;  %v257_v39 = vld [vmem:[%s5150_s28 + $0x268] sm:$0xff] }
  0x23   : > { %256 = vst [vmem:[%s5158_s29 + $0x130] sm:$0xff] %v255_v38  ;;  %v259_v40 = vld [vmem:[%s5150_s28 + $0x280] sm:$0xff]  ;;  %v261_v41 = vld [vmem:[%s5150_s28 + $0x288] sm:$0xff]  ;;  %258 = vst [vmem:[%s5158_s29 + $0x138] sm:$0xff] %v257_v39 }
  0x24   : > { %260 = vst [vmem:[%s5158_s29 + $0x140] sm:$0xff] %v259_v40  ;;  %262 = vst [vmem:[%s5158_s29 + $0x148] sm:$0xff] %v261_v41  ;;  %v263_v42 = vld [vmem:[%s5150_s28 + $0x2a0] sm:$0xff]  ;;  %v265_v43 = vld [vmem:[%s5150_s28 + $0x2a8] sm:$0xff] }
  0x25   : > { %v267_v44 = vld [vmem:[%s5150_s28 + $0x2c0] sm:$0xff]  ;;  %264 = vst [vmem:[%s5158_s29 + $0x150] sm:$0xff] %v263_v42  ;;  %266 = vst [vmem:[%s5158_s29 + $0x158] sm:$0xff] %v265_v43  ;;  %v269_v45 = vld [vmem:[%s5150_s28 + $0x2c8] sm:$0xff] }
  0x26   : > { %268 = vst [vmem:[%s5158_s29 + $0x160] sm:$0xff] %v267_v44  ;;  %v271_v46 = vld [vmem:[%s5150_s28 + $0x2e0] sm:$0xff]  ;;  %v273_v47 = vld [vmem:[%s5150_s28 + $0x2e8] sm:$0xff]  ;;  %270 = vst [vmem:[%s5158_s29 + $0x168] sm:$0xff] %v269_v45 }
  0x27   : > { %272 = vst [vmem:[%s5158_s29 + $0x170] sm:$0xff] %v271_v46  ;;  %274 = vst [vmem:[%s5158_s29 + $0x178] sm:$0xff] %v273_v47  ;;  %v275_v48 = vld [vmem:[%s5150_s28 + $0x300] sm:$0xff]  ;;  %v277_v49 = vld [vmem:[%s5150_s28 + $0x308] sm:$0xff] }
  0x28   : > { %v279_v50 = vld [vmem:[%s5150_s28 + $0x320] sm:$0xff]  ;;  %276 = vst [vmem:[%s5158_s29 + $0x180] sm:$0xff] %v275_v48  ;;  %278 = vst [vmem:[%s5158_s29 + $0x188] sm:$0xff] %v277_v49  ;;  %v281_v51 = vld [vmem:[%s5150_s28 + $0x328] sm:$0xff] }
  0x29   : > { %280 = vst [vmem:[%s5158_s29 + $0x190] sm:$0xff] %v279_v50  ;;  %v283_v52 = vld [vmem:[%s5150_s28 + $0x340] sm:$0xff]  ;;  %v285_v53 = vld [vmem:[%s5150_s28 + $0x348] sm:$0xff]  ;;  %282 = vst [vmem:[%s5158_s29 + $0x198] sm:$0xff] %v281_v51 }
  0x2a   : > { %284 = vst [vmem:[%s5158_s29 + $0x1a0] sm:$0xff] %v283_v52  ;;  %286 = vst [vmem:[%s5158_s29 + $0x1a8] sm:$0xff] %v285_v53  ;;  %v287_v54 = vld [vmem:[%s5150_s28 + $0x360] sm:$0xff]  ;;  %v289_v55 = vld [vmem:[%s5150_s28 + $0x368] sm:$0xff] }
  0x2b   : > { %v291_v56 = vld [vmem:[%s5150_s28 + $0x380] sm:$0xff]  ;;  %288 = vst [vmem:[%s5158_s29 + $0x1b0] sm:$0xff] %v287_v54  ;;  %290 = vst [vmem:[%s5158_s29 + $0x1b8] sm:$0xff] %v289_v55  ;;  %v293_v57 = vld [vmem:[%s5150_s28 + $0x388] sm:$0xff] }
  0x2c   : > { %292 = vst [vmem:[%s5158_s29 + $0x1c0] sm:$0xff] %v291_v56  ;;  %v295_v58 = vld [vmem:[%s5150_s28 + $0x3a0] sm:$0xff]  ;;  %v297_v59 = vld [vmem:[%s5150_s28 + $0x3a8] sm:$0xff]  ;;  %294 = vst [vmem:[%s5158_s29 + $0x1c8] sm:$0xff] %v293_v57 }
  0x2d   : > { %296 = vst [vmem:[%s5158_s29 + $0x1d0] sm:$0xff] %v295_v58  ;;  %298 = vst [vmem:[%s5158_s29 + $0x1d8] sm:$0xff] %v297_v59  ;;  %v299_v60 = vld [vmem:[%s5150_s28 + $0x3c0] sm:$0xff]  ;;  %v301_v61 = vld [vmem:[%s5150_s28 + $0x3c8] sm:$0xff] }
  0x2e   : > { %v303_v62 = vld [vmem:[%s5150_s28 + $0x3e0] sm:$0xff]  ;;  %300 = vst [vmem:[%s5158_s29 + $0x1e0] sm:$0xff] %v299_v60  ;;  %302 = vst [vmem:[%s5158_s29 + $0x1e8] sm:$0xff] %v301_v61  ;;  %v305_v63 = vld [vmem:[%s5150_s28 + $0x3e8] sm:$0xff] }
  0x2f   : > { %304 = vst [vmem:[%s5158_s29 + $0x1f0] sm:$0xff] %v303_v62  ;;  %v307_v0 = vld [vmem:[%s5150_s28 + $0x400] sm:$0xff]  ;;  %v309_v1 = vld [vmem:[%s5150_s28 + $0x408] sm:$0xff]  ;;  %306 = vst [vmem:[%s5158_s29 + $0x1f8] sm:$0xff] %v305_v63 }
  0x30   : > { %308 = vst [vmem:[%s5158_s29 + $0x200] sm:$0xff] %v307_v0  ;;  %310 = vst [vmem:[%s5158_s29 + $0x208] sm:$0xff] %v309_v1  ;;  %v311_v2 = vld [vmem:[%s5150_s28 + $0x420] sm:$0xff]  ;;  %v313_v3 = vld [vmem:[%s5150_s28 + $0x428] sm:$0xff] }
  0x31   : > { %v315_v4 = vld [vmem:[%s5150_s28 + $0x440] sm:$0xff]  ;;  %312 = vst [vmem:[%s5158_s29 + $0x210] sm:$0xff] %v311_v2  ;;  %314 = vst [vmem:[%s5158_s29 + $0x218] sm:$0xff] %v313_v3  ;;  %v317_v5 = vld [vmem:[%s5150_s28 + $0x448] sm:$0xff] }
  0x32   : > { %316 = vst [vmem:[%s5158_s29 + $0x220] sm:$0xff] %v315_v4  ;;  %v319_v6 = vld [vmem:[%s5150_s28 + $0x460] sm:$0xff]  ;;  %v321_v7 = vld [vmem:[%s5150_s28 + $0x468] sm:$0xff]  ;;  %318 = vst [vmem:[%s5158_s29 + $0x228] sm:$0xff] %v317_v5 }
  0x33   : > { %320 = vst [vmem:[%s5158_s29 + $0x230] sm:$0xff] %v319_v6  ;;  %322 = vst [vmem:[%s5158_s29 + $0x238] sm:$0xff] %v321_v7  ;;  %v323_v8 = vld [vmem:[%s5150_s28 + $0x480] sm:$0xff]  ;;  %v325_v9 = vld [vmem:[%s5150_s28 + $0x488] sm:$0xff] }
  0x34   : > { %v327_v10 = vld [vmem:[%s5150_s28 + $0x4a0] sm:$0xff]  ;;  %324 = vst [vmem:[%s5158_s29 + $0x240] sm:$0xff] %v323_v8  ;;  %326 = vst [vmem:[%s5158_s29 + $0x248] sm:$0xff] %v325_v9  ;;  %v329_v11 = vld [vmem:[%s5150_s28 + $0x4a8] sm:$0xff] }
  0x35   : > { %328 = vst [vmem:[%s5158_s29 + $0x250] sm:$0xff] %v327_v10  ;;  %v331_v12 = vld [vmem:[%s5150_s28 + $0x4c0] sm:$0xff]  ;;  %v333_v13 = vld [vmem:[%s5150_s28 + $0x4c8] sm:$0xff]  ;;  %330 = vst [vmem:[%s5158_s29 + $0x258] sm:$0xff] %v329_v11 }
  0x36   : > { %332 = vst [vmem:[%s5158_s29 + $0x260] sm:$0xff] %v331_v12  ;;  %334 = vst [vmem:[%s5158_s29 + $0x268] sm:$0xff] %v333_v13  ;;  %v335_v14 = vld [vmem:[%s5150_s28 + $0x4e0] sm:$0xff]  ;;  %v337_v15 = vld [vmem:[%s5150_s28 + $0x4e8] sm:$0xff] }
  0x37   : > { %v339_v16 = vld [vmem:[%s5150_s28 + $0x500] sm:$0xff]  ;;  %336 = vst [vmem:[%s5158_s29 + $0x270] sm:$0xff] %v335_v14  ;;  %338 = vst [vmem:[%s5158_s29 + $0x278] sm:$0xff] %v337_v15  ;;  %v341_v17 = vld [vmem:[%s5150_s28 + $0x508] sm:$0xff] }
  0x38   : > { %340 = vst [vmem:[%s5158_s29 + $0x280] sm:$0xff] %v339_v16  ;;  %v343_v18 = vld [vmem:[%s5150_s28 + $0x520] sm:$0xff]  ;;  %v345_v19 = vld [vmem:[%s5150_s28 + $0x528] sm:$0xff]  ;;  %342 = vst [vmem:[%s5158_s29 + $0x288] sm:$0xff] %v341_v17 }
  0x39   : > { %344 = vst [vmem:[%s5158_s29 + $0x290] sm:$0xff] %v343_v18  ;;  %346 = vst [vmem:[%s5158_s29 + $0x298] sm:$0xff] %v345_v19  ;;  %v347_v20 = vld [vmem:[%s5150_s28 + $0x540] sm:$0xff]  ;;  %v349_v21 = vld [vmem:[%s5150_s28 + $0x548] sm:$0xff] }
  0x3a   : > { %v351_v22 = vld [vmem:[%s5150_s28 + $0x560] sm:$0xff]  ;;  %348 = vst [vmem:[%s5158_s29 + $0x2a0] sm:$0xff] %v347_v20  ;;  %350 = vst [vmem:[%s5158_s29 + $0x2a8] sm:$0xff] %v349_v21  ;;  %v353_v23 = vld [vmem:[%s5150_s28 + $0x568] sm:$0xff] }
  0x3b   : > { %352 = vst [vmem:[%s5158_s29 + $0x2b0] sm:$0xff] %v351_v22  ;;  %v355_v24 = vld [vmem:[%s5150_s28 + $0x580] sm:$0xff]  ;;  %v357_v25 = vld [vmem:[%s5150_s28 + $0x588] sm:$0xff]  ;;  %354 = vst [vmem:[%s5158_s29 + $0x2b8] sm:$0xff] %v353_v23 }
  0x3c   : > { %356 = vst [vmem:[%s5158_s29 + $0x2c0] sm:$0xff] %v355_v24  ;;  %358 = vst [vmem:[%s5158_s29 + $0x2c8] sm:$0xff] %v357_v25  ;;  %v359_v26 = vld [vmem:[%s5150_s28 + $0x5a0] sm:$0xff]  ;;  %v361_v27 = vld [vmem:[%s5150_s28 + $0x5a8] sm:$0xff] }
  0x3d   : > { %v363_v28 = vld [vmem:[%s5150_s28 + $0x5c0] sm:$0xff]  ;;  %360 = vst [vmem:[%s5158_s29 + $0x2d0] sm:$0xff] %v359_v26  ;;  %362 = vst [vmem:[%s5158_s29 + $0x2d8] sm:$0xff] %v361_v27  ;;  %v365_v29 = vld [vmem:[%s5150_s28 + $0x5c8] sm:$0xff] }
  0x3e   : > { %364 = vst [vmem:[%s5158_s29 + $0x2e0] sm:$0xff] %v363_v28  ;;  %v367_v30 = vld [vmem:[%s5150_s28 + $0x5e0] sm:$0xff]  ;;  %v369_v31 = vld [vmem:[%s5150_s28 + $0x5e8] sm:$0xff]  ;;  %366 = vst [vmem:[%s5158_s29 + $0x2e8] sm:$0xff] %v365_v29 }
  0x3f   : > { %368 = vst [vmem:[%s5158_s29 + $0x2f0] sm:$0xff] %v367_v30  ;;  %370 = vst [vmem:[%s5158_s29 + $0x2f8] sm:$0xff] %v369_v31  ;;  %v371_v32 = vld [vmem:[%s5150_s28 + $0x600] sm:$0xff]  ;;  %v373_v33 = vld [vmem:[%s5150_s28 + $0x608] sm:$0xff] }
  0x40   : > { %v375_v34 = vld [vmem:[%s5150_s28 + $0x620] sm:$0xff]  ;;  %372 = vst [vmem:[%s5158_s29 + $0x300] sm:$0xff] %v371_v32  ;;  %374 = vst [vmem:[%s5158_s29 + $0x308] sm:$0xff] %v373_v33  ;;  %v377_v35 = vld [vmem:[%s5150_s28 + $0x628] sm:$0xff] }
  0x41   : > { %376 = vst [vmem:[%s5158_s29 + $0x310] sm:$0xff] %v375_v34  ;;  %v379_v36 = vld [vmem:[%s5150_s28 + $0x640] sm:$0xff]  ;;  %v381_v37 = vld [vmem:[%s5150_s28 + $0x648] sm:$0xff]  ;;  %378 = vst [vmem:[%s5158_s29 + $0x318] sm:$0xff] %v377_v35 }
  0x42   : > { %380 = vst [vmem:[%s5158_s29 + $0x320] sm:$0xff] %v379_v36  ;;  %382 = vst [vmem:[%s5158_s29 + $0x328] sm:$0xff] %v381_v37  ;;  %v383_v38 = vld [vmem:[%s5150_s28 + $0x660] sm:$0xff]  ;;  %v385_v39 = vld [vmem:[%s5150_s28 + $0x668] sm:$0xff] }
  0x43   : > { %v387_v40 = vld [vmem:[%s5150_s28 + $0x680] sm:$0xff]  ;;  %384 = vst [vmem:[%s5158_s29 + $0x330] sm:$0xff] %v383_v38  ;;  %386 = vst [vmem:[%s5158_s29 + $0x338] sm:$0xff] %v385_v39  ;;  %v389_v41 = vld [vmem:[%s5150_s28 + $0x688] sm:$0xff] }
  0x44   : > { %388 = vst [vmem:[%s5158_s29 + $0x340] sm:$0xff] %v387_v40  ;;  %v391_v42 = vld [vmem:[%s5150_s28 + $0x6a0] sm:$0xff]  ;;  %v393_v43 = vld [vmem:[%s5150_s28 + $0x6a8] sm:$0xff]  ;;  %390 = vst [vmem:[%s5158_s29 + $0x348] sm:$0xff] %v389_v41 }
  0x45   : > { %392 = vst [vmem:[%s5158_s29 + $0x350] sm:$0xff] %v391_v42  ;;  %394 = vst [vmem:[%s5158_s29 + $0x358] sm:$0xff] %v393_v43  ;;  %v395_v44 = vld [vmem:[%s5150_s28 + $0x6c0] sm:$0xff]  ;;  %v397_v45 = vld [vmem:[%s5150_s28 + $0x6c8] sm:$0xff] }
  0x46   : > { %v399_v46 = vld [vmem:[%s5150_s28 + $0x6e0] sm:$0xff]  ;;  %396 = vst [vmem:[%s5158_s29 + $0x360] sm:$0xff] %v395_v44  ;;  %398 = vst [vmem:[%s5158_s29 + $0x368] sm:$0xff] %v397_v45  ;;  %v401_v47 = vld [vmem:[%s5150_s28 + $0x6e8] sm:$0xff] }
  0x47   : > { %400 = vst [vmem:[%s5158_s29 + $0x370] sm:$0xff] %v399_v46  ;;  %v403_v48 = vld [vmem:[%s5150_s28 + $0x700] sm:$0xff]  ;;  %v405_v49 = vld [vmem:[%s5150_s28 + $0x708] sm:$0xff]  ;;  %402 = vst [vmem:[%s5158_s29 + $0x378] sm:$0xff] %v401_v47 }
  0x48   : > { %404 = vst [vmem:[%s5158_s29 + $0x380] sm:$0xff] %v403_v48  ;;  %406 = vst [vmem:[%s5158_s29 + $0x388] sm:$0xff] %v405_v49  ;;  %v407_v50 = vld [vmem:[%s5150_s28 + $0x720] sm:$0xff]  ;;  %v409_v51 = vld [vmem:[%s5150_s28 + $0x728] sm:$0xff] }
  0x49   : > { %v411_v52 = vld [vmem:[%s5150_s28 + $0x740] sm:$0xff]  ;;  %408 = vst [vmem:[%s5158_s29 + $0x390] sm:$0xff] %v407_v50  ;;  %410 = vst [vmem:[%s5158_s29 + $0x398] sm:$0xff] %v409_v51  ;;  %v413_v53 = vld [vmem:[%s5150_s28 + $0x748] sm:$0xff] }
  0x4a   : > { %412 = vst [vmem:[%s5158_s29 + $0x3a0] sm:$0xff] %v411_v52  ;;  %v415_v54 = vld [vmem:[%s5150_s28 + $0x760] sm:$0xff]  ;;  %v417_v55 = vld [vmem:[%s5150_s28 + $0x768] sm:$0xff]  ;;  %414 = vst [vmem:[%s5158_s29 + $0x3a8] sm:$0xff] %v413_v53 }
  0x4b   : > { %416 = vst [vmem:[%s5158_s29 + $0x3b0] sm:$0xff] %v415_v54  ;;  %418 = vst [vmem:[%s5158_s29 + $0x3b8] sm:$0xff] %v417_v55  ;;  %v419_v56 = vld [vmem:[%s5150_s28 + $0x780] sm:$0xff]  ;;  %v421_v57 = vld [vmem:[%s5150_s28 + $0x788] sm:$0xff] }
  0x4c   : > { %v423_v58 = vld [vmem:[%s5150_s28 + $0x7a0] sm:$0xff]  ;;  %420 = vst [vmem:[%s5158_s29 + $0x3c0] sm:$0xff] %v419_v56  ;;  %422 = vst [vmem:[%s5158_s29 + $0x3c8] sm:$0xff] %v421_v57  ;;  %v425_v59 = vld [vmem:[%s5150_s28 + $0x7a8] sm:$0xff] }
  0x4d   : > { %424 = vst [vmem:[%s5158_s29 + $0x3d0] sm:$0xff] %v423_v58  ;;  %v427_v60 = vld [vmem:[%s5150_s28 + $0x7c0] sm:$0xff]  ;;  %v429_v61 = vld [vmem:[%s5150_s28 + $0x7c8] sm:$0xff]  ;;  %426 = vst [vmem:[%s5158_s29 + $0x3d8] sm:$0xff] %v425_v59 }
  0x4e   : > { %428 = vst [vmem:[%s5158_s29 + $0x3e0] sm:$0xff] %v427_v60  ;;  %430 = vst [vmem:[%s5158_s29 + $0x3e8] sm:$0xff] %v429_v61  ;;  %v431_v62 = vld [vmem:[%s5150_s28 + $0x7e0] sm:$0xff]  ;;  %v433_v63 = vld [vmem:[%s5150_s28 + $0x7e8] sm:$0xff] }
  0x4f   : > { %v435_v0 = vld [vmem:[%s5150_s28 + $0x800] sm:$0xff]  ;;  %432 = vst [vmem:[%s5158_s29 + $0x3f0] sm:$0xff] %v431_v62  ;;  %434 = vst [vmem:[%s5158_s29 + $0x3f8] sm:$0xff] %v433_v63  ;;  %v437_v1 = vld [vmem:[%s5150_s28 + $0x808] sm:$0xff] }
  0x50   : > { %436 = vst [vmem:[%s5158_s29 + $0x400] sm:$0xff] %v435_v0  ;;  %v439_v2 = vld [vmem:[%s5150_s28 + $0x820] sm:$0xff]  ;;  %v441_v3 = vld [vmem:[%s5150_s28 + $0x828] sm:$0xff]  ;;  %438 = vst [vmem:[%s5158_s29 + $0x408] sm:$0xff] %v437_v1 }
  0x51   : > { %440 = vst [vmem:[%s5158_s29 + $0x410] sm:$0xff] %v439_v2  ;;  %442 = vst [vmem:[%s5158_s29 + $0x418] sm:$0xff] %v441_v3  ;;  %v443_v4 = vld [vmem:[%s5150_s28 + $0x840] sm:$0xff]  ;;  %v445_v5 = vld [vmem:[%s5150_s28 + $0x848] sm:$0xff] }
  0x52   : > { %v447_v6 = vld [vmem:[%s5150_s28 + $0x860] sm:$0xff]  ;;  %444 = vst [vmem:[%s5158_s29 + $0x420] sm:$0xff] %v443_v4  ;;  %446 = vst [vmem:[%s5158_s29 + $0x428] sm:$0xff] %v445_v5  ;;  %v449_v7 = vld [vmem:[%s5150_s28 + $0x868] sm:$0xff] }
  0x53   : > { %448 = vst [vmem:[%s5158_s29 + $0x430] sm:$0xff] %v447_v6  ;;  %v451_v8 = vld [vmem:[%s5150_s28 + $0x880] sm:$0xff]  ;;  %v453_v9 = vld [vmem:[%s5150_s28 + $0x888] sm:$0xff]  ;;  %450 = vst [vmem:[%s5158_s29 + $0x438] sm:$0xff] %v449_v7 }
  0x54   : > { %452 = vst [vmem:[%s5158_s29 + $0x440] sm:$0xff] %v451_v8  ;;  %454 = vst [vmem:[%s5158_s29 + $0x448] sm:$0xff] %v453_v9  ;;  %v455_v10 = vld [vmem:[%s5150_s28 + $0x8a0] sm:$0xff]  ;;  %v457_v11 = vld [vmem:[%s5150_s28 + $0x8a8] sm:$0xff] }
  0x55   : > { %v459_v12 = vld [vmem:[%s5150_s28 + $0x8c0] sm:$0xff]  ;;  %456 = vst [vmem:[%s5158_s29 + $0x450] sm:$0xff] %v455_v10  ;;  %458 = vst [vmem:[%s5158_s29 + $0x458] sm:$0xff] %v457_v11  ;;  %v461_v13 = vld [vmem:[%s5150_s28 + $0x8c8] sm:$0xff] }
  0x56   : > { %460 = vst [vmem:[%s5158_s29 + $0x460] sm:$0xff] %v459_v12  ;;  %v463_v14 = vld [vmem:[%s5150_s28 + $0x8e0] sm:$0xff]  ;;  %v465_v15 = vld [vmem:[%s5150_s28 + $0x8e8] sm:$0xff]  ;;  %462 = vst [vmem:[%s5158_s29 + $0x468] sm:$0xff] %v461_v13 }
  0x57   : > { %464 = vst [vmem:[%s5158_s29 + $0x470] sm:$0xff] %v463_v14  ;;  %466 = vst [vmem:[%s5158_s29 + $0x478] sm:$0xff] %v465_v15  ;;  %v467_v16 = vld [vmem:[%s5150_s28 + $0x900] sm:$0xff]  ;;  %v469_v17 = vld [vmem:[%s5150_s28 + $0x908] sm:$0xff] }
  0x58   : > { %v471_v18 = vld [vmem:[%s5150_s28 + $0x920] sm:$0xff]  ;;  %468 = vst [vmem:[%s5158_s29 + $0x480] sm:$0xff] %v467_v16  ;;  %470 = vst [vmem:[%s5158_s29 + $0x488] sm:$0xff] %v469_v17  ;;  %v473_v19 = vld [vmem:[%s5150_s28 + $0x928] sm:$0xff] }
  0x59   : > { %472 = vst [vmem:[%s5158_s29 + $0x490] sm:$0xff] %v471_v18  ;;  %v475_v20 = vld [vmem:[%s5150_s28 + $0x940] sm:$0xff]  ;;  %v477_v21 = vld [vmem:[%s5150_s28 + $0x948] sm:$0xff]  ;;  %474 = vst [vmem:[%s5158_s29 + $0x498] sm:$0xff] %v473_v19 }
  0x5a   : > { %476 = vst [vmem:[%s5158_s29 + $0x4a0] sm:$0xff] %v475_v20  ;;  %478 = vst [vmem:[%s5158_s29 + $0x4a8] sm:$0xff] %v477_v21  ;;  %v479_v22 = vld [vmem:[%s5150_s28 + $0x960] sm:$0xff]  ;;  %v481_v23 = vld [vmem:[%s5150_s28 + $0x968] sm:$0xff] }
  0x5b   : > { %v483_v24 = vld [vmem:[%s5150_s28 + $0x980] sm:$0xff]  ;;  %480 = vst [vmem:[%s5158_s29 + $0x4b0] sm:$0xff] %v479_v22  ;;  %482 = vst [vmem:[%s5158_s29 + $0x4b8] sm:$0xff] %v481_v23  ;;  %v485_v25 = vld [vmem:[%s5150_s28 + $0x988] sm:$0xff] }
  0x5c   : > { %484 = vst [vmem:[%s5158_s29 + $0x4c0] sm:$0xff] %v483_v24  ;;  %v487_v26 = vld [vmem:[%s5150_s28 + $0x9a0] sm:$0xff]  ;;  %v489_v27 = vld [vmem:[%s5150_s28 + $0x9a8] sm:$0xff]  ;;  %486 = vst [vmem:[%s5158_s29 + $0x4c8] sm:$0xff] %v485_v25 }
  0x5d   : > { %488 = vst [vmem:[%s5158_s29 + $0x4d0] sm:$0xff] %v487_v26  ;;  %490 = vst [vmem:[%s5158_s29 + $0x4d8] sm:$0xff] %v489_v27  ;;  %v491_v28 = vld [vmem:[%s5150_s28 + $0x9c0] sm:$0xff]  ;;  %v493_v29 = vld [vmem:[%s5150_s28 + $0x9c8] sm:$0xff] }
  0x5e   : > { %v495_v30 = vld [vmem:[%s5150_s28 + $0x9e0] sm:$0xff]  ;;  %492 = vst [vmem:[%s5158_s29 + $0x4e0] sm:$0xff] %v491_v28  ;;  %494 = vst [vmem:[%s5158_s29 + $0x4e8] sm:$0xff] %v493_v29  ;;  %v497_v31 = vld [vmem:[%s5150_s28 + $0x9e8] sm:$0xff] }
  0x5f   : > { %496 = vst [vmem:[%s5158_s29 + $0x4f0] sm:$0xff] %v495_v30  ;;  %v499_v32 = vld [vmem:[%s5150_s28 + $0xa00] sm:$0xff]  ;;  %v501_v33 = vld [vmem:[%s5150_s28 + $0xa08] sm:$0xff]  ;;  %498 = vst [vmem:[%s5158_s29 + $0x4f8] sm:$0xff] %v497_v31 }
  0x60   : > { %500 = vst [vmem:[%s5158_s29 + $0x500] sm:$0xff] %v499_v32  ;;  %502 = vst [vmem:[%s5158_s29 + $0x508] sm:$0xff] %v501_v33  ;;  %v503_v34 = vld [vmem:[%s5150_s28 + $0xa20] sm:$0xff]  ;;  %v505_v35 = vld [vmem:[%s5150_s28 + $0xa28] sm:$0xff] }
  0x61   : > { %v507_v36 = vld [vmem:[%s5150_s28 + $0xa40] sm:$0xff]  ;;  %504 = vst [vmem:[%s5158_s29 + $0x510] sm:$0xff] %v503_v34  ;;  %506 = vst [vmem:[%s5158_s29 + $0x518] sm:$0xff] %v505_v35  ;;  %v509_v37 = vld [vmem:[%s5150_s28 + $0xa48] sm:$0xff] }
  0x62   : > { %508 = vst [vmem:[%s5158_s29 + $0x520] sm:$0xff] %v507_v36  ;;  %v511_v38 = vld [vmem:[%s5150_s28 + $0xa60] sm:$0xff]  ;;  %v513_v39 = vld [vmem:[%s5150_s28 + $0xa68] sm:$0xff]  ;;  %510 = vst [vmem:[%s5158_s29 + $0x528] sm:$0xff] %v509_v37 }
  0x63   : > { %512 = vst [vmem:[%s5158_s29 + $0x530] sm:$0xff] %v511_v38  ;;  %514 = vst [vmem:[%s5158_s29 + $0x538] sm:$0xff] %v513_v39  ;;  %v515_v40 = vld [vmem:[%s5150_s28 + $0xa80] sm:$0xff]  ;;  %v517_v41 = vld [vmem:[%s5150_s28 + $0xa88] sm:$0xff] }
  0x64   : > { %v519_v42 = vld [vmem:[%s5150_s28 + $0xaa0] sm:$0xff]  ;;  %516 = vst [vmem:[%s5158_s29 + $0x540] sm:$0xff] %v515_v40  ;;  %518 = vst [vmem:[%s5158_s29 + $0x548] sm:$0xff] %v517_v41  ;;  %v521_v43 = vld [vmem:[%s5150_s28 + $0xaa8] sm:$0xff] }
  0x65   : > { %520 = vst [vmem:[%s5158_s29 + $0x550] sm:$0xff] %v519_v42  ;;  %v523_v44 = vld [vmem:[%s5150_s28 + $0xac0] sm:$0xff]  ;;  %v525_v45 = vld [vmem:[%s5150_s28 + $0xac8] sm:$0xff]  ;;  %522 = vst [vmem:[%s5158_s29 + $0x558] sm:$0xff] %v521_v43 }
  0x66   : > { %524 = vst [vmem:[%s5158_s29 + $0x560] sm:$0xff] %v523_v44  ;;  %526 = vst [vmem:[%s5158_s29 + $0x568] sm:$0xff] %v525_v45  ;;  %v527_v46 = vld [vmem:[%s5150_s28 + $0xae0] sm:$0xff]  ;;  %v529_v47 = vld [vmem:[%s5150_s28 + $0xae8] sm:$0xff] }
  0x67   : > { %v531_v48 = vld [vmem:[%s5150_s28 + $0xb00] sm:$0xff]  ;;  %528 = vst [vmem:[%s5158_s29 + $0x570] sm:$0xff] %v527_v46  ;;  %530 = vst [vmem:[%s5158_s29 + $0x578] sm:$0xff] %v529_v47  ;;  %v533_v49 = vld [vmem:[%s5150_s28 + $0xb08] sm:$0xff] }
  0x68   : > { %532 = vst [vmem:[%s5158_s29 + $0x580] sm:$0xff] %v531_v48  ;;  %v535_v50 = vld [vmem:[%s5150_s28 + $0xb20] sm:$0xff]  ;;  %v537_v51 = vld [vmem:[%s5150_s28 + $0xb28] sm:$0xff]  ;;  %534 = vst [vmem:[%s5158_s29 + $0x588] sm:$0xff] %v533_v49 }
  0x69   : > { %536 = vst [vmem:[%s5158_s29 + $0x590] sm:$0xff] %v535_v50  ;;  %538 = vst [vmem:[%s5158_s29 + $0x598] sm:$0xff] %v537_v51  ;;  %v539_v52 = vld [vmem:[%s5150_s28 + $0xb40] sm:$0xff]  ;;  %v541_v53 = vld [vmem:[%s5150_s28 + $0xb48] sm:$0xff] }
  0x6a   : > { %v543_v54 = vld [vmem:[%s5150_s28 + $0xb60] sm:$0xff]  ;;  %540 = vst [vmem:[%s5158_s29 + $0x5a0] sm:$0xff] %v539_v52  ;;  %542 = vst [vmem:[%s5158_s29 + $0x5a8] sm:$0xff] %v541_v53  ;;  %v545_v55 = vld [vmem:[%s5150_s28 + $0xb68] sm:$0xff] }
  0x6b   : > { %544 = vst [vmem:[%s5158_s29 + $0x5b0] sm:$0xff] %v543_v54  ;;  %v547_v56 = vld [vmem:[%s5150_s28 + $0xb80] sm:$0xff]  ;;  %v549_v57 = vld [vmem:[%s5150_s28 + $0xb88] sm:$0xff]  ;;  %546 = vst [vmem:[%s5158_s29 + $0x5b8] sm:$0xff] %v545_v55 }
  0x6c   : > { %548 = vst [vmem:[%s5158_s29 + $0x5c0] sm:$0xff] %v547_v56  ;;  %550 = vst [vmem:[%s5158_s29 + $0x5c8] sm:$0xff] %v549_v57  ;;  %v551_v58 = vld [vmem:[%s5150_s28 + $0xba0] sm:$0xff]  ;;  %v553_v59 = vld [vmem:[%s5150_s28 + $0xba8] sm:$0xff] }
  0x6d   : > { %v555_v60 = vld [vmem:[%s5150_s28 + $0xbc0] sm:$0xff]  ;;  %552 = vst [vmem:[%s5158_s29 + $0x5d0] sm:$0xff] %v551_v58  ;;  %554 = vst [vmem:[%s5158_s29 + $0x5d8] sm:$0xff] %v553_v59  ;;  %v557_v61 = vld [vmem:[%s5150_s28 + $0xbc8] sm:$0xff] }
  0x6e   : > { %556 = vst [vmem:[%s5158_s29 + $0x5e0] sm:$0xff] %v555_v60  ;;  %v559_v62 = vld [vmem:[%s5150_s28 + $0xbe0] sm:$0xff]  ;;  %v561_v63 = vld [vmem:[%s5150_s28 + $0xbe8] sm:$0xff]  ;;  %558 = vst [vmem:[%s5158_s29 + $0x5e8] sm:$0xff] %v557_v61 }
  0x6f   : > { %560 = vst [vmem:[%s5158_s29 + $0x5f0] sm:$0xff] %v559_v62  ;;  %562 = vst [vmem:[%s5158_s29 + $0x5f8] sm:$0xff] %v561_v63  ;;  %v563_v0 = vld [vmem:[%s5150_s28 + $0xc00] sm:$0xff]  ;;  %v565_v1 = vld [vmem:[%s5150_s28 + $0xc08] sm:$0xff] }
  0x70   : > { %v567_v2 = vld [vmem:[%s5150_s28 + $0xc20] sm:$0xff]  ;;  %564 = vst [vmem:[%s5158_s29 + $0x600] sm:$0xff] %v563_v0  ;;  %566 = vst [vmem:[%s5158_s29 + $0x608] sm:$0xff] %v565_v1  ;;  %v569_v3 = vld [vmem:[%s5150_s28 + $0xc28] sm:$0xff] }
  0x71   : > { %568 = vst [vmem:[%s5158_s29 + $0x610] sm:$0xff] %v567_v2  ;;  %v571_v4 = vld [vmem:[%s5150_s28 + $0xc40] sm:$0xff]  ;;  %v573_v5 = vld [vmem:[%s5150_s28 + $0xc48] sm:$0xff]  ;;  %570 = vst [vmem:[%s5158_s29 + $0x618] sm:$0xff] %v569_v3 }
  0x72   : > { %572 = vst [vmem:[%s5158_s29 + $0x620] sm:$0xff] %v571_v4  ;;  %574 = vst [vmem:[%s5158_s29 + $0x628] sm:$0xff] %v573_v5  ;;  %v575_v6 = vld [vmem:[%s5150_s28 + $0xc60] sm:$0xff]  ;;  %v577_v7 = vld [vmem:[%s5150_s28 + $0xc68] sm:$0xff] }
  0x73   : > { %v579_v8 = vld [vmem:[%s5150_s28 + $0xc80] sm:$0xff]  ;;  %576 = vst [vmem:[%s5158_s29 + $0x630] sm:$0xff] %v575_v6  ;;  %578 = vst [vmem:[%s5158_s29 + $0x638] sm:$0xff] %v577_v7  ;;  %v581_v9 = vld [vmem:[%s5150_s28 + $0xc88] sm:$0xff] }
  0x74   : > { %580 = vst [vmem:[%s5158_s29 + $0x640] sm:$0xff] %v579_v8  ;;  %v583_v10 = vld [vmem:[%s5150_s28 + $0xca0] sm:$0xff]  ;;  %v585_v11 = vld [vmem:[%s5150_s28 + $0xca8] sm:$0xff]  ;;  %582 = vst [vmem:[%s5158_s29 + $0x648] sm:$0xff] %v581_v9 }
  0x75   : > { %584 = vst [vmem:[%s5158_s29 + $0x650] sm:$0xff] %v583_v10  ;;  %586 = vst [vmem:[%s5158_s29 + $0x658] sm:$0xff] %v585_v11  ;;  %v587_v12 = vld [vmem:[%s5150_s28 + $0xcc0] sm:$0xff]  ;;  %v589_v13 = vld [vmem:[%s5150_s28 + $0xcc8] sm:$0xff] }
  0x76   : > { %v591_v14 = vld [vmem:[%s5150_s28 + $0xce0] sm:$0xff]  ;;  %588 = vst [vmem:[%s5158_s29 + $0x660] sm:$0xff] %v587_v12  ;;  %590 = vst [vmem:[%s5158_s29 + $0x668] sm:$0xff] %v589_v13  ;;  %v593_v15 = vld [vmem:[%s5150_s28 + $0xce8] sm:$0xff] }
  0x77   : > { %592 = vst [vmem:[%s5158_s29 + $0x670] sm:$0xff] %v591_v14  ;;  %v595_v16 = vld [vmem:[%s5150_s28 + $0xd00] sm:$0xff]  ;;  %v597_v17 = vld [vmem:[%s5150_s28 + $0xd08] sm:$0xff]  ;;  %594 = vst [vmem:[%s5158_s29 + $0x678] sm:$0xff] %v593_v15 }
  0x78   : > { %596 = vst [vmem:[%s5158_s29 + $0x680] sm:$0xff] %v595_v16  ;;  %598 = vst [vmem:[%s5158_s29 + $0x688] sm:$0xff] %v597_v17  ;;  %v599_v18 = vld [vmem:[%s5150_s28 + $0xd20] sm:$0xff]  ;;  %v601_v19 = vld [vmem:[%s5150_s28 + $0xd28] sm:$0xff] }
  0x79   : > { %v603_v20 = vld [vmem:[%s5150_s28 + $0xd40] sm:$0xff]  ;;  %600 = vst [vmem:[%s5158_s29 + $0x690] sm:$0xff] %v599_v18  ;;  %602 = vst [vmem:[%s5158_s29 + $0x698] sm:$0xff] %v601_v19  ;;  %v605_v21 = vld [vmem:[%s5150_s28 + $0xd48] sm:$0xff] }
  0x7a   : > { %604 = vst [vmem:[%s5158_s29 + $0x6a0] sm:$0xff] %v603_v20  ;;  %v607_v22 = vld [vmem:[%s5150_s28 + $0xd60] sm:$0xff]  ;;  %v609_v23 = vld [vmem:[%s5150_s28 + $0xd68] sm:$0xff]  ;;  %606 = vst [vmem:[%s5158_s29 + $0x6a8] sm:$0xff] %v605_v21 }
  0x7b   : > { %608 = vst [vmem:[%s5158_s29 + $0x6b0] sm:$0xff] %v607_v22  ;;  %610 = vst [vmem:[%s5158_s29 + $0x6b8] sm:$0xff] %v609_v23  ;;  %v611_v24 = vld [vmem:[%s5150_s28 + $0xd80] sm:$0xff]  ;;  %v613_v25 = vld [vmem:[%s5150_s28 + $0xd88] sm:$0xff] }
  0x7c   : > { %v615_v26 = vld [vmem:[%s5150_s28 + $0xda0] sm:$0xff]  ;;  %612 = vst [vmem:[%s5158_s29 + $0x6c0] sm:$0xff] %v611_v24  ;;  %614 = vst [vmem:[%s5158_s29 + $0x6c8] sm:$0xff] %v613_v25  ;;  %v617_v27 = vld [vmem:[%s5150_s28 + $0xda8] sm:$0xff] }
  0x7d   : > { %616 = vst [vmem:[%s5158_s29 + $0x6d0] sm:$0xff] %v615_v26  ;;  %v619_v28 = vld [vmem:[%s5150_s28 + $0xdc0] sm:$0xff]  ;;  %v621_v29 = vld [vmem:[%s5150_s28 + $0xdc8] sm:$0xff]  ;;  %618 = vst [vmem:[%s5158_s29 + $0x6d8] sm:$0xff] %v617_v27 }
  0x7e   : > { %620 = vst [vmem:[%s5158_s29 + $0x6e0] sm:$0xff] %v619_v28  ;;  %622 = vst [vmem:[%s5158_s29 + $0x6e8] sm:$0xff] %v621_v29  ;;  %v623_v30 = vld [vmem:[%s5150_s28 + $0xde0] sm:$0xff]  ;;  %v625_v31 = vld [vmem:[%s5150_s28 + $0xde8] sm:$0xff] }
  0x7f   : > { %v627_v32 = vld [vmem:[%s5150_s28 + $0xe00] sm:$0xff]  ;;  %624 = vst [vmem:[%s5158_s29 + $0x6f0] sm:$0xff] %v623_v30  ;;  %626 = vst [vmem:[%s5158_s29 + $0x6f8] sm:$0xff] %v625_v31  ;;  %v629_v33 = vld [vmem:[%s5150_s28 + $0xe08] sm:$0xff] }
  0x80   : > { %628 = vst [vmem:[%s5158_s29 + $0x700] sm:$0xff] %v627_v32  ;;  %v631_v34 = vld [vmem:[%s5150_s28 + $0xe20] sm:$0xff]  ;;  %v633_v35 = vld [vmem:[%s5150_s28 + $0xe28] sm:$0xff]  ;;  %630 = vst [vmem:[%s5158_s29 + $0x708] sm:$0xff] %v629_v33 }
  0x81   : > { %632 = vst [vmem:[%s5158_s29 + $0x710] sm:$0xff] %v631_v34  ;;  %634 = vst [vmem:[%s5158_s29 + $0x718] sm:$0xff] %v633_v35  ;;  %v635_v36 = vld [vmem:[%s5150_s28 + $0xe40] sm:$0xff]  ;;  %v637_v37 = vld [vmem:[%s5150_s28 + $0xe48] sm:$0xff] }
  0x82   : > { %v639_v38 = vld [vmem:[%s5150_s28 + $0xe60] sm:$0xff]  ;;  %636 = vst [vmem:[%s5158_s29 + $0x720] sm:$0xff] %v635_v36  ;;  %638 = vst [vmem:[%s5158_s29 + $0x728] sm:$0xff] %v637_v37  ;;  %v641_v39 = vld [vmem:[%s5150_s28 + $0xe68] sm:$0xff] }
  0x83   : > { %640 = vst [vmem:[%s5158_s29 + $0x730] sm:$0xff] %v639_v38  ;;  %v643_v40 = vld [vmem:[%s5150_s28 + $0xe80] sm:$0xff]  ;;  %v645_v41 = vld [vmem:[%s5150_s28 + $0xe88] sm:$0xff]  ;;  %642 = vst [vmem:[%s5158_s29 + $0x738] sm:$0xff] %v641_v39 }
  0x84   : > { %644 = vst [vmem:[%s5158_s29 + $0x740] sm:$0xff] %v643_v40  ;;  %646 = vst [vmem:[%s5158_s29 + $0x748] sm:$0xff] %v645_v41  ;;  %v647_v42 = vld [vmem:[%s5150_s28 + $0xea0] sm:$0xff]  ;;  %v649_v43 = vld [vmem:[%s5150_s28 + $0xea8] sm:$0xff] }
  0x85   : > { %v651_v44 = vld [vmem:[%s5150_s28 + $0xec0] sm:$0xff]  ;;  %648 = vst [vmem:[%s5158_s29 + $0x750] sm:$0xff] %v647_v42  ;;  %650 = vst [vmem:[%s5158_s29 + $0x758] sm:$0xff] %v649_v43  ;;  %v653_v45 = vld [vmem:[%s5150_s28 + $0xec8] sm:$0xff] }
  0x86   : > { %652 = vst [vmem:[%s5158_s29 + $0x760] sm:$0xff] %v651_v44  ;;  %v655_v46 = vld [vmem:[%s5150_s28 + $0xee0] sm:$0xff]  ;;  %v657_v47 = vld [vmem:[%s5150_s28 + $0xee8] sm:$0xff]  ;;  %654 = vst [vmem:[%s5158_s29 + $0x768] sm:$0xff] %v653_v45 }
  0x87   : > { %656 = vst [vmem:[%s5158_s29 + $0x770] sm:$0xff] %v655_v46  ;;  %658 = vst [vmem:[%s5158_s29 + $0x778] sm:$0xff] %v657_v47  ;;  %v659_v48 = vld [vmem:[%s5150_s28 + $0xf00] sm:$0xff]  ;;  %v661_v49 = vld [vmem:[%s5150_s28 + $0xf08] sm:$0xff] }
  0x88   : > { %v663_v50 = vld [vmem:[%s5150_s28 + $0xf20] sm:$0xff]  ;;  %660 = vst [vmem:[%s5158_s29 + $0x780] sm:$0xff] %v659_v48  ;;  %662 = vst [vmem:[%s5158_s29 + $0x788] sm:$0xff] %v661_v49  ;;  %v665_v51 = vld [vmem:[%s5150_s28 + $0xf28] sm:$0xff] }
  0x89   : > { %664 = vst [vmem:[%s5158_s29 + $0x790] sm:$0xff] %v663_v50  ;;  %v667_v52 = vld [vmem:[%s5150_s28 + $0xf40] sm:$0xff]  ;;  %v669_v53 = vld [vmem:[%s5150_s28 + $0xf48] sm:$0xff]  ;;  %666 = vst [vmem:[%s5158_s29 + $0x798] sm:$0xff] %v665_v51 }
  0x8a   : > { %668 = vst [vmem:[%s5158_s29 + $0x7a0] sm:$0xff] %v667_v52  ;;  %670 = vst [vmem:[%s5158_s29 + $0x7a8] sm:$0xff] %v669_v53  ;;  %v671_v54 = vld [vmem:[%s5150_s28 + $0xf60] sm:$0xff]  ;;  %v673_v55 = vld [vmem:[%s5150_s28 + $0xf68] sm:$0xff] }
  0x8b   : > { %v675_v56 = vld [vmem:[%s5150_s28 + $0xf80] sm:$0xff]  ;;  %672 = vst [vmem:[%s5158_s29 + $0x7b0] sm:$0xff] %v671_v54  ;;  %674 = vst [vmem:[%s5158_s29 + $0x7b8] sm:$0xff] %v673_v55  ;;  %v677_v57 = vld [vmem:[%s5150_s28 + $0xf88] sm:$0xff] }
  0x8c   : > { %676 = vst [vmem:[%s5158_s29 + $0x7c0] sm:$0xff] %v675_v56  ;;  %v679_v58 = vld [vmem:[%s5150_s28 + $0xfa0] sm:$0xff]  ;;  %v681_v59 = vld [vmem:[%s5150_s28 + $0xfa8] sm:$0xff]  ;;  %678 = vst [vmem:[%s5158_s29 + $0x7c8] sm:$0xff] %v677_v57 }
  0x8d   : > { %680 = vst [vmem:[%s5158_s29 + $0x7d0] sm:$0xff] %v679_v58  ;;  %682 = vst [vmem:[%s5158_s29 + $0x7d8] sm:$0xff] %v681_v59  ;;  %v683_v60 = vld [vmem:[%s5150_s28 + $0xfc0] sm:$0xff]  ;;  %v685_v61 = vld [vmem:[%s5150_s28 + $0xfc8] sm:$0xff] }
  0x8e   : > { %v687_v62 = vld [vmem:[%s5150_s28 + $0xfe0] sm:$0xff]  ;;  %684 = vst [vmem:[%s5158_s29 + $0x7e0] sm:$0xff] %v683_v60  ;;  %686 = vst [vmem:[%s5158_s29 + $0x7e8] sm:$0xff] %v685_v61  ;;  %v689_v63 = vld [vmem:[%s5150_s28 + $0xfe8] sm:$0xff] }
  0x8f   : > { %688 = vst [vmem:[%s5158_s29 + $0x7f0] sm:$0xff] %v687_v62  ;;  %v691_v0 = vld [vmem:[%s5150_s28 + $0x1000] sm:$0xff]  ;;  %v693_v1 = vld [vmem:[%s5150_s28 + $0x1008] sm:$0xff]  ;;  %690 = vst [vmem:[%s5158_s29 + $0x7f8] sm:$0xff] %v689_v63 }
  0x90   : > { %692 = vst [vmem:[%s5158_s29 + $0x800] sm:$0xff] %v691_v0  ;;  %694 = vst [vmem:[%s5158_s29 + $0x808] sm:$0xff] %v693_v1  ;;  %v695_v2 = vld [vmem:[%s5150_s28 + $0x1020] sm:$0xff]  ;;  %v697_v3 = vld [vmem:[%s5150_s28 + $0x1028] sm:$0xff] }
  0x91   : > { %v699_v4 = vld [vmem:[%s5150_s28 + $0x1040] sm:$0xff]  ;;  %696 = vst [vmem:[%s5158_s29 + $0x810] sm:$0xff] %v695_v2  ;;  %698 = vst [vmem:[%s5158_s29 + $0x818] sm:$0xff] %v697_v3  ;;  %v701_v5 = vld [vmem:[%s5150_s28 + $0x1048] sm:$0xff] }
  0x92   : > { %700 = vst [vmem:[%s5158_s29 + $0x820] sm:$0xff] %v699_v4  ;;  %v703_v6 = vld [vmem:[%s5150_s28 + $0x1060] sm:$0xff]  ;;  %v705_v7 = vld [vmem:[%s5150_s28 + $0x1068] sm:$0xff]  ;;  %702 = vst [vmem:[%s5158_s29 + $0x828] sm:$0xff] %v701_v5 }
  0x93   : > { %704 = vst [vmem:[%s5158_s29 + $0x830] sm:$0xff] %v703_v6  ;;  %706 = vst [vmem:[%s5158_s29 + $0x838] sm:$0xff] %v705_v7  ;;  %v707_v8 = vld [vmem:[%s5150_s28 + $0x1080] sm:$0xff]  ;;  %v709_v9 = vld [vmem:[%s5150_s28 + $0x1088] sm:$0xff] }
  0x94   : > { %v711_v10 = vld [vmem:[%s5150_s28 + $0x10a0] sm:$0xff]  ;;  %708 = vst [vmem:[%s5158_s29 + $0x840] sm:$0xff] %v707_v8  ;;  %710 = vst [vmem:[%s5158_s29 + $0x848] sm:$0xff] %v709_v9  ;;  %v713_v11 = vld [vmem:[%s5150_s28 + $0x10a8] sm:$0xff] }
  0x95   : > { %712 = vst [vmem:[%s5158_s29 + $0x850] sm:$0xff] %v711_v10  ;;  %v715_v12 = vld [vmem:[%s5150_s28 + $0x10c0] sm:$0xff]  ;;  %v717_v13 = vld [vmem:[%s5150_s28 + $0x10c8] sm:$0xff]  ;;  %714 = vst [vmem:[%s5158_s29 + $0x858] sm:$0xff] %v713_v11 }
  0x96   : > { %716 = vst [vmem:[%s5158_s29 + $0x860] sm:$0xff] %v715_v12  ;;  %718 = vst [vmem:[%s5158_s29 + $0x868] sm:$0xff] %v717_v13  ;;  %v719_v14 = vld [vmem:[%s5150_s28 + $0x10e0] sm:$0xff]  ;;  %v721_v15 = vld [vmem:[%s5150_s28 + $0x10e8] sm:$0xff] }
  0x97   : > { %v723_v16 = vld [vmem:[%s5150_s28 + $0x1100] sm:$0xff]  ;;  %720 = vst [vmem:[%s5158_s29 + $0x870] sm:$0xff] %v719_v14  ;;  %722 = vst [vmem:[%s5158_s29 + $0x878] sm:$0xff] %v721_v15  ;;  %v725_v17 = vld [vmem:[%s5150_s28 + $0x1108] sm:$0xff] }
  0x98   : > { %724 = vst [vmem:[%s5158_s29 + $0x880] sm:$0xff] %v723_v16  ;;  %v727_v18 = vld [vmem:[%s5150_s28 + $0x1120] sm:$0xff]  ;;  %v729_v19 = vld [vmem:[%s5150_s28 + $0x1128] sm:$0xff]  ;;  %726 = vst [vmem:[%s5158_s29 + $0x888] sm:$0xff] %v725_v17 }
  0x99   : > { %728 = vst [vmem:[%s5158_s29 + $0x890] sm:$0xff] %v727_v18  ;;  %730 = vst [vmem:[%s5158_s29 + $0x898] sm:$0xff] %v729_v19  ;;  %v731_v20 = vld [vmem:[%s5150_s28 + $0x1140] sm:$0xff]  ;;  %v733_v21 = vld [vmem:[%s5150_s28 + $0x1148] sm:$0xff] }
  0x9a   : > { %v735_v22 = vld [vmem:[%s5150_s28 + $0x1160] sm:$0xff]  ;;  %732 = vst [vmem:[%s5158_s29 + $0x8a0] sm:$0xff] %v731_v20  ;;  %734 = vst [vmem:[%s5158_s29 + $0x8a8] sm:$0xff] %v733_v21  ;;  %v737_v23 = vld [vmem:[%s5150_s28 + $0x1168] sm:$0xff] }
  0x9b   : > { %736 = vst [vmem:[%s5158_s29 + $0x8b0] sm:$0xff] %v735_v22  ;;  %v739_v24 = vld [vmem:[%s5150_s28 + $0x1180] sm:$0xff]  ;;  %v741_v25 = vld [vmem:[%s5150_s28 + $0x1188] sm:$0xff]  ;;  %738 = vst [vmem:[%s5158_s29 + $0x8b8] sm:$0xff] %v737_v23 }
  0x9c   : > { %740 = vst [vmem:[%s5158_s29 + $0x8c0] sm:$0xff] %v739_v24  ;;  %742 = vst [vmem:[%s5158_s29 + $0x8c8] sm:$0xff] %v741_v25  ;;  %v743_v26 = vld [vmem:[%s5150_s28 + $0x11a0] sm:$0xff]  ;;  %v745_v27 = vld [vmem:[%s5150_s28 + $0x11a8] sm:$0xff] }
  0x9d   : > { %v747_v28 = vld [vmem:[%s5150_s28 + $0x11c0] sm:$0xff]  ;;  %744 = vst [vmem:[%s5158_s29 + $0x8d0] sm:$0xff] %v743_v26  ;;  %746 = vst [vmem:[%s5158_s29 + $0x8d8] sm:$0xff] %v745_v27  ;;  %v749_v29 = vld [vmem:[%s5150_s28 + $0x11c8] sm:$0xff] }
  0x9e   : > { %748 = vst [vmem:[%s5158_s29 + $0x8e0] sm:$0xff] %v747_v28  ;;  %v751_v30 = vld [vmem:[%s5150_s28 + $0x11e0] sm:$0xff]  ;;  %v753_v31 = vld [vmem:[%s5150_s28 + $0x11e8] sm:$0xff]  ;;  %750 = vst [vmem:[%s5158_s29 + $0x8e8] sm:$0xff] %v749_v29 }
  0x9f   : > { %752 = vst [vmem:[%s5158_s29 + $0x8f0] sm:$0xff] %v751_v30  ;;  %754 = vst [vmem:[%s5158_s29 + $0x8f8] sm:$0xff] %v753_v31  ;;  %v755_v32 = vld [vmem:[%s5150_s28 + $0x1200] sm:$0xff]  ;;  %v757_v33 = vld [vmem:[%s5150_s28 + $0x1208] sm:$0xff] }
  0xa0   : > { %v759_v34 = vld [vmem:[%s5150_s28 + $0x1220] sm:$0xff]  ;;  %756 = vst [vmem:[%s5158_s29 + $0x900] sm:$0xff] %v755_v32  ;;  %758 = vst [vmem:[%s5158_s29 + $0x908] sm:$0xff] %v757_v33  ;;  %v761_v35 = vld [vmem:[%s5150_s28 + $0x1228] sm:$0xff] }
  0xa1   : > { %760 = vst [vmem:[%s5158_s29 + $0x910] sm:$0xff] %v759_v34  ;;  %v763_v36 = vld [vmem:[%s5150_s28 + $0x1240] sm:$0xff]  ;;  %v765_v37 = vld [vmem:[%s5150_s28 + $0x1248] sm:$0xff]  ;;  %762 = vst [vmem:[%s5158_s29 + $0x918] sm:$0xff] %v761_v35 }
  0xa2   : > { %764 = vst [vmem:[%s5158_s29 + $0x920] sm:$0xff] %v763_v36  ;;  %766 = vst [vmem:[%s5158_s29 + $0x928] sm:$0xff] %v765_v37  ;;  %v767_v38 = vld [vmem:[%s5150_s28 + $0x1260] sm:$0xff]  ;;  %v769_v39 = vld [vmem:[%s5150_s28 + $0x1268] sm:$0xff] }
  0xa3   : > { %v771_v40 = vld [vmem:[%s5150_s28 + $0x1280] sm:$0xff]  ;;  %768 = vst [vmem:[%s5158_s29 + $0x930] sm:$0xff] %v767_v38  ;;  %770 = vst [vmem:[%s5158_s29 + $0x938] sm:$0xff] %v769_v39  ;;  %v773_v41 = vld [vmem:[%s5150_s28 + $0x1288] sm:$0xff] }
  0xa4   : > { %772 = vst [vmem:[%s5158_s29 + $0x940] sm:$0xff] %v771_v40  ;;  %v775_v42 = vld [vmem:[%s5150_s28 + $0x12a0] sm:$0xff]  ;;  %v777_v43 = vld [vmem:[%s5150_s28 + $0x12a8] sm:$0xff]  ;;  %774 = vst [vmem:[%s5158_s29 + $0x948] sm:$0xff] %v773_v41 }
  0xa5   : > { %776 = vst [vmem:[%s5158_s29 + $0x950] sm:$0xff] %v775_v42  ;;  %778 = vst [vmem:[%s5158_s29 + $0x958] sm:$0xff] %v777_v43  ;;  %v779_v44 = vld [vmem:[%s5150_s28 + $0x12c0] sm:$0xff]  ;;  %v781_v45 = vld [vmem:[%s5150_s28 + $0x12c8] sm:$0xff] }
  0xa6   : > { %v783_v46 = vld [vmem:[%s5150_s28 + $0x12e0] sm:$0xff]  ;;  %780 = vst [vmem:[%s5158_s29 + $0x960] sm:$0xff] %v779_v44  ;;  %782 = vst [vmem:[%s5158_s29 + $0x968] sm:$0xff] %v781_v45  ;;  %v785_v47 = vld [vmem:[%s5150_s28 + $0x12e8] sm:$0xff] }
  0xa7   : > { %784 = vst [vmem:[%s5158_s29 + $0x970] sm:$0xff] %v783_v46  ;;  %v787_v48 = vld [vmem:[%s5150_s28 + $0x1300] sm:$0xff]  ;;  %v789_v49 = vld [vmem:[%s5150_s28 + $0x1308] sm:$0xff]  ;;  %786 = vst [vmem:[%s5158_s29 + $0x978] sm:$0xff] %v785_v47 }
  0xa8   : > { %788 = vst [vmem:[%s5158_s29 + $0x980] sm:$0xff] %v787_v48  ;;  %790 = vst [vmem:[%s5158_s29 + $0x988] sm:$0xff] %v789_v49  ;;  %v791_v50 = vld [vmem:[%s5150_s28 + $0x1320] sm:$0xff]  ;;  %v793_v51 = vld [vmem:[%s5150_s28 + $0x1328] sm:$0xff] }
  0xa9   : > { %v795_v52 = vld [vmem:[%s5150_s28 + $0x1340] sm:$0xff]  ;;  %792 = vst [vmem:[%s5158_s29 + $0x990] sm:$0xff] %v791_v50  ;;  %794 = vst [vmem:[%s5158_s29 + $0x998] sm:$0xff] %v793_v51  ;;  %v797_v53 = vld [vmem:[%s5150_s28 + $0x1348] sm:$0xff] }
  0xaa   : > { %796 = vst [vmem:[%s5158_s29 + $0x9a0] sm:$0xff] %v795_v52  ;;  %v799_v54 = vld [vmem:[%s5150_s28 + $0x1360] sm:$0xff]  ;;  %v801_v55 = vld [vmem:[%s5150_s28 + $0x1368] sm:$0xff]  ;;  %798 = vst [vmem:[%s5158_s29 + $0x9a8] sm:$0xff] %v797_v53 }
  0xab   : > { %800 = vst [vmem:[%s5158_s29 + $0x9b0] sm:$0xff] %v799_v54  ;;  %802 = vst [vmem:[%s5158_s29 + $0x9b8] sm:$0xff] %v801_v55  ;;  %v803_v56 = vld [vmem:[%s5150_s28 + $0x1380] sm:$0xff]  ;;  %v805_v57 = vld [vmem:[%s5150_s28 + $0x1388] sm:$0xff] }
  0xac   : > { %v807_v58 = vld [vmem:[%s5150_s28 + $0x13a0] sm:$0xff]  ;;  %804 = vst [vmem:[%s5158_s29 + $0x9c0] sm:$0xff] %v803_v56  ;;  %806 = vst [vmem:[%s5158_s29 + $0x9c8] sm:$0xff] %v805_v57  ;;  %v809_v59 = vld [vmem:[%s5150_s28 + $0x13a8] sm:$0xff] }
  0xad   : > { %808 = vst [vmem:[%s5158_s29 + $0x9d0] sm:$0xff] %v807_v58  ;;  %v811_v60 = vld [vmem:[%s5150_s28 + $0x13c0] sm:$0xff]  ;;  %v813_v61 = vld [vmem:[%s5150_s28 + $0x13c8] sm:$0xff]  ;;  %810 = vst [vmem:[%s5158_s29 + $0x9d8] sm:$0xff] %v809_v59 }
  0xae   : > { %812 = vst [vmem:[%s5158_s29 + $0x9e0] sm:$0xff] %v811_v60  ;;  %814 = vst [vmem:[%s5158_s29 + $0x9e8] sm:$0xff] %v813_v61  ;;  %v815_v62 = vld [vmem:[%s5150_s28 + $0x13e0] sm:$0xff]  ;;  %v817_v63 = vld [vmem:[%s5150_s28 + $0x13e8] sm:$0xff] }
  0xaf   : > { %v819_v0 = vld [vmem:[%s5150_s28 + $0x1400] sm:$0xff]  ;;  %816 = vst [vmem:[%s5158_s29 + $0x9f0] sm:$0xff] %v815_v62  ;;  %818 = vst [vmem:[%s5158_s29 + $0x9f8] sm:$0xff] %v817_v63  ;;  %v821_v1 = vld [vmem:[%s5150_s28 + $0x1408] sm:$0xff] }
  0xb0   : > { %820 = vst [vmem:[%s5158_s29 + $0xa00] sm:$0xff] %v819_v0  ;;  %v823_v2 = vld [vmem:[%s5150_s28 + $0x1420] sm:$0xff]  ;;  %v825_v3 = vld [vmem:[%s5150_s28 + $0x1428] sm:$0xff]  ;;  %822 = vst [vmem:[%s5158_s29 + $0xa08] sm:$0xff] %v821_v1 }
  0xb1   : > { %824 = vst [vmem:[%s5158_s29 + $0xa10] sm:$0xff] %v823_v2  ;;  %826 = vst [vmem:[%s5158_s29 + $0xa18] sm:$0xff] %v825_v3  ;;  %v827_v4 = vld [vmem:[%s5150_s28 + $0x1440] sm:$0xff]  ;;  %v829_v5 = vld [vmem:[%s5150_s28 + $0x1448] sm:$0xff] }
  0xb2   : > { %v831_v6 = vld [vmem:[%s5150_s28 + $0x1460] sm:$0xff]  ;;  %828 = vst [vmem:[%s5158_s29 + $0xa20] sm:$0xff] %v827_v4  ;;  %830 = vst [vmem:[%s5158_s29 + $0xa28] sm:$0xff] %v829_v5  ;;  %v833_v7 = vld [vmem:[%s5150_s28 + $0x1468] sm:$0xff] }
  0xb3   : > { %832 = vst [vmem:[%s5158_s29 + $0xa30] sm:$0xff] %v831_v6  ;;  %v835_v8 = vld [vmem:[%s5150_s28 + $0x1480] sm:$0xff]  ;;  %v837_v9 = vld [vmem:[%s5150_s28 + $0x1488] sm:$0xff]  ;;  %834 = vst [vmem:[%s5158_s29 + $0xa38] sm:$0xff] %v833_v7 }
  0xb4   : > { %836 = vst [vmem:[%s5158_s29 + $0xa40] sm:$0xff] %v835_v8  ;;  %838 = vst [vmem:[%s5158_s29 + $0xa48] sm:$0xff] %v837_v9  ;;  %v839_v10 = vld [vmem:[%s5150_s28 + $0x14a0] sm:$0xff]  ;;  %v841_v11 = vld [vmem:[%s5150_s28 + $0x14a8] sm:$0xff] }
  0xb5   : > { %v843_v12 = vld [vmem:[%s5150_s28 + $0x14c0] sm:$0xff]  ;;  %840 = vst [vmem:[%s5158_s29 + $0xa50] sm:$0xff] %v839_v10  ;;  %842 = vst [vmem:[%s5158_s29 + $0xa58] sm:$0xff] %v841_v11  ;;  %v845_v13 = vld [vmem:[%s5150_s28 + $0x14c8] sm:$0xff] }
  0xb6   : > { %844 = vst [vmem:[%s5158_s29 + $0xa60] sm:$0xff] %v843_v12  ;;  %v847_v14 = vld [vmem:[%s5150_s28 + $0x14e0] sm:$0xff]  ;;  %v849_v15 = vld [vmem:[%s5150_s28 + $0x14e8] sm:$0xff]  ;;  %846 = vst [vmem:[%s5158_s29 + $0xa68] sm:$0xff] %v845_v13 }
  0xb7   : > { %848 = vst [vmem:[%s5158_s29 + $0xa70] sm:$0xff] %v847_v14  ;;  %850 = vst [vmem:[%s5158_s29 + $0xa78] sm:$0xff] %v849_v15  ;;  %v851_v16 = vld [vmem:[%s5150_s28 + $0x1500] sm:$0xff]  ;;  %v853_v17 = vld [vmem:[%s5150_s28 + $0x1508] sm:$0xff] }
  0xb8   : > { %v855_v18 = vld [vmem:[%s5150_s28 + $0x1520] sm:$0xff]  ;;  %852 = vst [vmem:[%s5158_s29 + $0xa80] sm:$0xff] %v851_v16  ;;  %854 = vst [vmem:[%s5158_s29 + $0xa88] sm:$0xff] %v853_v17  ;;  %v857_v19 = vld [vmem:[%s5150_s28 + $0x1528] sm:$0xff] }
  0xb9   : > { %856 = vst [vmem:[%s5158_s29 + $0xa90] sm:$0xff] %v855_v18  ;;  %v859_v20 = vld [vmem:[%s5150_s28 + $0x1540] sm:$0xff]  ;;  %v861_v21 = vld [vmem:[%s5150_s28 + $0x1548] sm:$0xff]  ;;  %858 = vst [vmem:[%s5158_s29 + $0xa98] sm:$0xff] %v857_v19 }
  0xba   : > { %860 = vst [vmem:[%s5158_s29 + $0xaa0] sm:$0xff] %v859_v20  ;;  %862 = vst [vmem:[%s5158_s29 + $0xaa8] sm:$0xff] %v861_v21  ;;  %v863_v22 = vld [vmem:[%s5150_s28 + $0x1560] sm:$0xff]  ;;  %v865_v23 = vld [vmem:[%s5150_s28 + $0x1568] sm:$0xff] }
  0xbb   : > { %v867_v24 = vld [vmem:[%s5150_s28 + $0x1580] sm:$0xff]  ;;  %864 = vst [vmem:[%s5158_s29 + $0xab0] sm:$0xff] %v863_v22  ;;  %866 = vst [vmem:[%s5158_s29 + $0xab8] sm:$0xff] %v865_v23  ;;  %v869_v25 = vld [vmem:[%s5150_s28 + $0x1588] sm:$0xff] }
  0xbc   : > { %868 = vst [vmem:[%s5158_s29 + $0xac0] sm:$0xff] %v867_v24  ;;  %v871_v26 = vld [vmem:[%s5150_s28 + $0x15a0] sm:$0xff]  ;;  %v873_v27 = vld [vmem:[%s5150_s28 + $0x15a8] sm:$0xff]  ;;  %870 = vst [vmem:[%s5158_s29 + $0xac8] sm:$0xff] %v869_v25 }
  0xbd   : > { %872 = vst [vmem:[%s5158_s29 + $0xad0] sm:$0xff] %v871_v26  ;;  %874 = vst [vmem:[%s5158_s29 + $0xad8] sm:$0xff] %v873_v27  ;;  %v875_v28 = vld [vmem:[%s5150_s28 + $0x15c0] sm:$0xff]  ;;  %v877_v29 = vld [vmem:[%s5150_s28 + $0x15c8] sm:$0xff] }
  0xbe   : > { %v879_v30 = vld [vmem:[%s5150_s28 + $0x15e0] sm:$0xff]  ;;  %876 = vst [vmem:[%s5158_s29 + $0xae0] sm:$0xff] %v875_v28  ;;  %878 = vst [vmem:[%s5158_s29 + $0xae8] sm:$0xff] %v877_v29  ;;  %v881_v31 = vld [vmem:[%s5150_s28 + $0x15e8] sm:$0xff] }
  0xbf   : > { %880 = vst [vmem:[%s5158_s29 + $0xaf0] sm:$0xff] %v879_v30  ;;  %v883_v32 = vld [vmem:[%s5150_s28 + $0x1600] sm:$0xff]  ;;  %v885_v33 = vld [vmem:[%s5150_s28 + $0x1608] sm:$0xff]  ;;  %882 = vst [vmem:[%s5158_s29 + $0xaf8] sm:$0xff] %v881_v31 }
  0xc0   : > { %884 = vst [vmem:[%s5158_s29 + $0xb00] sm:$0xff] %v883_v32  ;;  %886 = vst [vmem:[%s5158_s29 + $0xb08] sm:$0xff] %v885_v33  ;;  %v887_v34 = vld [vmem:[%s5150_s28 + $0x1620] sm:$0xff]  ;;  %v889_v35 = vld [vmem:[%s5150_s28 + $0x1628] sm:$0xff] }
  0xc1   : > { %v891_v36 = vld [vmem:[%s5150_s28 + $0x1640] sm:$0xff]  ;;  %888 = vst [vmem:[%s5158_s29 + $0xb10] sm:$0xff] %v887_v34  ;;  %890 = vst [vmem:[%s5158_s29 + $0xb18] sm:$0xff] %v889_v35  ;;  %v893_v37 = vld [vmem:[%s5150_s28 + $0x1648] sm:$0xff] }
  0xc2   : > { %892 = vst [vmem:[%s5158_s29 + $0xb20] sm:$0xff] %v891_v36  ;;  %v895_v38 = vld [vmem:[%s5150_s28 + $0x1660] sm:$0xff]  ;;  %v897_v39 = vld [vmem:[%s5150_s28 + $0x1668] sm:$0xff]  ;;  %894 = vst [vmem:[%s5158_s29 + $0xb28] sm:$0xff] %v893_v37 }
  0xc3   : > { %896 = vst [vmem:[%s5158_s29 + $0xb30] sm:$0xff] %v895_v38  ;;  %898 = vst [vmem:[%s5158_s29 + $0xb38] sm:$0xff] %v897_v39  ;;  %v899_v40 = vld [vmem:[%s5150_s28 + $0x1680] sm:$0xff]  ;;  %v901_v41 = vld [vmem:[%s5150_s28 + $0x1688] sm:$0xff] }
  0xc4   : > { %v903_v42 = vld [vmem:[%s5150_s28 + $0x16a0] sm:$0xff]  ;;  %900 = vst [vmem:[%s5158_s29 + $0xb40] sm:$0xff] %v899_v40  ;;  %902 = vst [vmem:[%s5158_s29 + $0xb48] sm:$0xff] %v901_v41  ;;  %v905_v43 = vld [vmem:[%s5150_s28 + $0x16a8] sm:$0xff] }
  0xc5   : > { %904 = vst [vmem:[%s5158_s29 + $0xb50] sm:$0xff] %v903_v42  ;;  %v907_v44 = vld [vmem:[%s5150_s28 + $0x16c0] sm:$0xff]  ;;  %v909_v45 = vld [vmem:[%s5150_s28 + $0x16c8] sm:$0xff]  ;;  %906 = vst [vmem:[%s5158_s29 + $0xb58] sm:$0xff] %v905_v43 }
  0xc6   : > { %908 = vst [vmem:[%s5158_s29 + $0xb60] sm:$0xff] %v907_v44  ;;  %910 = vst [vmem:[%s5158_s29 + $0xb68] sm:$0xff] %v909_v45  ;;  %v911_v46 = vld [vmem:[%s5150_s28 + $0x16e0] sm:$0xff]  ;;  %v913_v47 = vld [vmem:[%s5150_s28 + $0x16e8] sm:$0xff] }
  0xc7   : > { %v915_v48 = vld [vmem:[%s5150_s28 + $0x1700] sm:$0xff]  ;;  %912 = vst [vmem:[%s5158_s29 + $0xb70] sm:$0xff] %v911_v46  ;;  %914 = vst [vmem:[%s5158_s29 + $0xb78] sm:$0xff] %v913_v47  ;;  %v917_v49 = vld [vmem:[%s5150_s28 + $0x1708] sm:$0xff] }
  0xc8   : > { %916 = vst [vmem:[%s5158_s29 + $0xb80] sm:$0xff] %v915_v48  ;;  %v919_v50 = vld [vmem:[%s5150_s28 + $0x1720] sm:$0xff]  ;;  %v921_v51 = vld [vmem:[%s5150_s28 + $0x1728] sm:$0xff]  ;;  %918 = vst [vmem:[%s5158_s29 + $0xb88] sm:$0xff] %v917_v49 }
  0xc9   : > { %920 = vst [vmem:[%s5158_s29 + $0xb90] sm:$0xff] %v919_v50  ;;  %922 = vst [vmem:[%s5158_s29 + $0xb98] sm:$0xff] %v921_v51  ;;  %v923_v52 = vld [vmem:[%s5150_s28 + $0x1740] sm:$0xff]  ;;  %v925_v53 = vld [vmem:[%s5150_s28 + $0x1748] sm:$0xff] }
  0xca   : > { %v927_v54 = vld [vmem:[%s5150_s28 + $0x1760] sm:$0xff]  ;;  %924 = vst [vmem:[%s5158_s29 + $0xba0] sm:$0xff] %v923_v52  ;;  %926 = vst [vmem:[%s5158_s29 + $0xba8] sm:$0xff] %v925_v53  ;;  %v929_v55 = vld [vmem:[%s5150_s28 + $0x1768] sm:$0xff] }
  0xcb   : > { %928 = vst [vmem:[%s5158_s29 + $0xbb0] sm:$0xff] %v927_v54  ;;  %v931_v56 = vld [vmem:[%s5150_s28 + $0x1780] sm:$0xff]  ;;  %v933_v57 = vld [vmem:[%s5150_s28 + $0x1788] sm:$0xff]  ;;  %930 = vst [vmem:[%s5158_s29 + $0xbb8] sm:$0xff] %v929_v55 }
  0xcc   : > { %932 = vst [vmem:[%s5158_s29 + $0xbc0] sm:$0xff] %v931_v56  ;;  %934 = vst [vmem:[%s5158_s29 + $0xbc8] sm:$0xff] %v933_v57  ;;  %v935_v58 = vld [vmem:[%s5150_s28 + $0x17a0] sm:$0xff]  ;;  %v937_v59 = vld [vmem:[%s5150_s28 + $0x17a8] sm:$0xff] }
  0xcd   : > { %v939_v60 = vld [vmem:[%s5150_s28 + $0x17c0] sm:$0xff]  ;;  %936 = vst [vmem:[%s5158_s29 + $0xbd0] sm:$0xff] %v935_v58  ;;  %938 = vst [vmem:[%s5158_s29 + $0xbd8] sm:$0xff] %v937_v59  ;;  %v941_v61 = vld [vmem:[%s5150_s28 + $0x17c8] sm:$0xff] }
  0xce   : > { %940 = vst [vmem:[%s5158_s29 + $0xbe0] sm:$0xff] %v939_v60  ;;  %v943_v62 = vld [vmem:[%s5150_s28 + $0x17e0] sm:$0xff]  ;;  %v945_v63 = vld [vmem:[%s5150_s28 + $0x17e8] sm:$0xff]  ;;  %942 = vst [vmem:[%s5158_s29 + $0xbe8] sm:$0xff] %v941_v61 }
  0xcf   : > { %944 = vst [vmem:[%s5158_s29 + $0xbf0] sm:$0xff] %v943_v62  ;;  %946 = vst [vmem:[%s5158_s29 + $0xbf8] sm:$0xff] %v945_v63  ;;  %v947_v0 = vld [vmem:[%s5150_s28 + $0x1800] sm:$0xff]  ;;  %v949_v1 = vld [vmem:[%s5150_s28 + $0x1808] sm:$0xff] }
  0xd0   : > { %v951_v2 = vld [vmem:[%s5150_s28 + $0x1820] sm:$0xff]  ;;  %948 = vst [vmem:[%s5158_s29 + $0xc00] sm:$0xff] %v947_v0  ;;  %950 = vst [vmem:[%s5158_s29 + $0xc08] sm:$0xff] %v949_v1  ;;  %v953_v3 = vld [vmem:[%s5150_s28 + $0x1828] sm:$0xff] }
  0xd1   : > { %952 = vst [vmem:[%s5158_s29 + $0xc10] sm:$0xff] %v951_v2  ;;  %v955_v4 = vld [vmem:[%s5150_s28 + $0x1840] sm:$0xff]  ;;  %v957_v5 = vld [vmem:[%s5150_s28 + $0x1848] sm:$0xff]  ;;  %954 = vst [vmem:[%s5158_s29 + $0xc18] sm:$0xff] %v953_v3 }
  0xd2   : > { %956 = vst [vmem:[%s5158_s29 + $0xc20] sm:$0xff] %v955_v4  ;;  %958 = vst [vmem:[%s5158_s29 + $0xc28] sm:$0xff] %v957_v5  ;;  %v959_v6 = vld [vmem:[%s5150_s28 + $0x1860] sm:$0xff]  ;;  %v961_v7 = vld [vmem:[%s5150_s28 + $0x1868] sm:$0xff] }
  0xd3   : > { %v963_v8 = vld [vmem:[%s5150_s28 + $0x1880] sm:$0xff]  ;;  %960 = vst [vmem:[%s5158_s29 + $0xc30] sm:$0xff] %v959_v6  ;;  %962 = vst [vmem:[%s5158_s29 + $0xc38] sm:$0xff] %v961_v7  ;;  %v965_v9 = vld [vmem:[%s5150_s28 + $0x1888] sm:$0xff] }
  0xd4   : > { %964 = vst [vmem:[%s5158_s29 + $0xc40] sm:$0xff] %v963_v8  ;;  %v967_v10 = vld [vmem:[%s5150_s28 + $0x18a0] sm:$0xff]  ;;  %v969_v11 = vld [vmem:[%s5150_s28 + $0x18a8] sm:$0xff]  ;;  %966 = vst [vmem:[%s5158_s29 + $0xc48] sm:$0xff] %v965_v9 }
  0xd5   : > { %968 = vst [vmem:[%s5158_s29 + $0xc50] sm:$0xff] %v967_v10  ;;  %970 = vst [vmem:[%s5158_s29 + $0xc58] sm:$0xff] %v969_v11  ;;  %v971_v12 = vld [vmem:[%s5150_s28 + $0x18c0] sm:$0xff]  ;;  %v973_v13 = vld [vmem:[%s5150_s28 + $0x18c8] sm:$0xff] }
  0xd6   : > { %v975_v14 = vld [vmem:[%s5150_s28 + $0x18e0] sm:$0xff]  ;;  %972 = vst [vmem:[%s5158_s29 + $0xc60] sm:$0xff] %v971_v12  ;;  %974 = vst [vmem:[%s5158_s29 + $0xc68] sm:$0xff] %v973_v13  ;;  %v977_v15 = vld [vmem:[%s5150_s28 + $0x18e8] sm:$0xff] }
  0xd7   : > { %976 = vst [vmem:[%s5158_s29 + $0xc70] sm:$0xff] %v975_v14  ;;  %v979_v16 = vld [vmem:[%s5150_s28 + $0x1900] sm:$0xff]  ;;  %v981_v17 = vld [vmem:[%s5150_s28 + $0x1908] sm:$0xff]  ;;  %978 = vst [vmem:[%s5158_s29 + $0xc78] sm:$0xff] %v977_v15 }
  0xd8   : > { %980 = vst [vmem:[%s5158_s29 + $0xc80] sm:$0xff] %v979_v16  ;;  %982 = vst [vmem:[%s5158_s29 + $0xc88] sm:$0xff] %v981_v17  ;;  %v983_v18 = vld [vmem:[%s5150_s28 + $0x1920] sm:$0xff]  ;;  %v985_v19 = vld [vmem:[%s5150_s28 + $0x1928] sm:$0xff] }
  0xd9   : > { %v987_v20 = vld [vmem:[%s5150_s28 + $0x1940] sm:$0xff]  ;;  %984 = vst [vmem:[%s5158_s29 + $0xc90] sm:$0xff] %v983_v18  ;;  %986 = vst [vmem:[%s5158_s29 + $0xc98] sm:$0xff] %v985_v19  ;;  %v989_v21 = vld [vmem:[%s5150_s28 + $0x1948] sm:$0xff] }
  0xda   : > { %988 = vst [vmem:[%s5158_s29 + $0xca0] sm:$0xff] %v987_v20  ;;  %v991_v22 = vld [vmem:[%s5150_s28 + $0x1960] sm:$0xff]  ;;  %v993_v23 = vld [vmem:[%s5150_s28 + $0x1968] sm:$0xff]  ;;  %990 = vst [vmem:[%s5158_s29 + $0xca8] sm:$0xff] %v989_v21 }
  0xdb   : > { %992 = vst [vmem:[%s5158_s29 + $0xcb0] sm:$0xff] %v991_v22  ;;  %994 = vst [vmem:[%s5158_s29 + $0xcb8] sm:$0xff] %v993_v23  ;;  %v995_v24 = vld [vmem:[%s5150_s28 + $0x1980] sm:$0xff]  ;;  %v997_v25 = vld [vmem:[%s5150_s28 + $0x1988] sm:$0xff] }
  0xdc   : > { %v999_v26 = vld [vmem:[%s5150_s28 + $0x19a0] sm:$0xff]  ;;  %996 = vst [vmem:[%s5158_s29 + $0xcc0] sm:$0xff] %v995_v24  ;;  %998 = vst [vmem:[%s5158_s29 + $0xcc8] sm:$0xff] %v997_v25  ;;  %v1001_v27 = vld [vmem:[%s5150_s28 + $0x19a8] sm:$0xff] }
  0xdd   : > { %1000 = vst [vmem:[%s5158_s29 + $0xcd0] sm:$0xff] %v999_v26  ;;  %v1003_v28 = vld [vmem:[%s5150_s28 + $0x19c0] sm:$0xff]  ;;  %v1005_v29 = vld [vmem:[%s5150_s28 + $0x19c8] sm:$0xff]  ;;  %1002 = vst [vmem:[%s5158_s29 + $0xcd8] sm:$0xff] %v1001_v27 }
  0xde   : > { %1004 = vst [vmem:[%s5158_s29 + $0xce0] sm:$0xff] %v1003_v28  ;;  %1006 = vst [vmem:[%s5158_s29 + $0xce8] sm:$0xff] %v1005_v29  ;;  %v1007_v30 = vld [vmem:[%s5150_s28 + $0x19e0] sm:$0xff]  ;;  %v1009_v31 = vld [vmem:[%s5150_s28 + $0x19e8] sm:$0xff] }
  0xdf   : > { %v1011_v32 = vld [vmem:[%s5150_s28 + $0x1a00] sm:$0xff]  ;;  %1008 = vst [vmem:[%s5158_s29 + $0xcf0] sm:$0xff] %v1007_v30  ;;  %1010 = vst [vmem:[%s5158_s29 + $0xcf8] sm:$0xff] %v1009_v31  ;;  %v1013_v33 = vld [vmem:[%s5150_s28 + $0x1a08] sm:$0xff] }
  0xe0   : > { %1012 = vst [vmem:[%s5158_s29 + $0xd00] sm:$0xff] %v1011_v32  ;;  %v1015_v34 = vld [vmem:[%s5150_s28 + $0x1a20] sm:$0xff]  ;;  %v1017_v35 = vld [vmem:[%s5150_s28 + $0x1a28] sm:$0xff]  ;;  %1014 = vst [vmem:[%s5158_s29 + $0xd08] sm:$0xff] %v1013_v33 }
  0xe1   : > { %1016 = vst [vmem:[%s5158_s29 + $0xd10] sm:$0xff] %v1015_v34  ;;  %1018 = vst [vmem:[%s5158_s29 + $0xd18] sm:$0xff] %v1017_v35  ;;  %v1019_v36 = vld [vmem:[%s5150_s28 + $0x1a40] sm:$0xff]  ;;  %v1021_v37 = vld [vmem:[%s5150_s28 + $0x1a48] sm:$0xff] }
  0xe2   : > { %v1023_v38 = vld [vmem:[%s5150_s28 + $0x1a60] sm:$0xff]  ;;  %1020 = vst [vmem:[%s5158_s29 + $0xd20] sm:$0xff] %v1019_v36  ;;  %1022 = vst [vmem:[%s5158_s29 + $0xd28] sm:$0xff] %v1021_v37  ;;  %v1025_v39 = vld [vmem:[%s5150_s28 + $0x1a68] sm:$0xff] }
  0xe3   : > { %1024 = vst [vmem:[%s5158_s29 + $0xd30] sm:$0xff] %v1023_v38  ;;  %v1027_v40 = vld [vmem:[%s5150_s28 + $0x1a80] sm:$0xff]  ;;  %v1029_v41 = vld [vmem:[%s5150_s28 + $0x1a88] sm:$0xff]  ;;  %1026 = vst [vmem:[%s5158_s29 + $0xd38] sm:$0xff] %v1025_v39 }
  0xe4   : > { %1028 = vst [vmem:[%s5158_s29 + $0xd40] sm:$0xff] %v1027_v40  ;;  %1030 = vst [vmem:[%s5158_s29 + $0xd48] sm:$0xff] %v1029_v41  ;;  %v1031_v42 = vld [vmem:[%s5150_s28 + $0x1aa0] sm:$0xff]  ;;  %v1033_v43 = vld [vmem:[%s5150_s28 + $0x1aa8] sm:$0xff] }
  0xe5   : > { %v1035_v44 = vld [vmem:[%s5150_s28 + $0x1ac0] sm:$0xff]  ;;  %1032 = vst [vmem:[%s5158_s29 + $0xd50] sm:$0xff] %v1031_v42  ;;  %1034 = vst [vmem:[%s5158_s29 + $0xd58] sm:$0xff] %v1033_v43  ;;  %v1037_v45 = vld [vmem:[%s5150_s28 + $0x1ac8] sm:$0xff] }
  0xe6   : > { %1036 = vst [vmem:[%s5158_s29 + $0xd60] sm:$0xff] %v1035_v44  ;;  %v1039_v46 = vld [vmem:[%s5150_s28 + $0x1ae0] sm:$0xff]  ;;  %v1041_v47 = vld [vmem:[%s5150_s28 + $0x1ae8] sm:$0xff]  ;;  %1038 = vst [vmem:[%s5158_s29 + $0xd68] sm:$0xff] %v1037_v45 }
  0xe7   : > { %1040 = vst [vmem:[%s5158_s29 + $0xd70] sm:$0xff] %v1039_v46  ;;  %1042 = vst [vmem:[%s5158_s29 + $0xd78] sm:$0xff] %v1041_v47  ;;  %v1043_v48 = vld [vmem:[%s5150_s28 + $0x1b00] sm:$0xff]  ;;  %v1045_v49 = vld [vmem:[%s5150_s28 + $0x1b08] sm:$0xff] }
  0xe8   : > { %v1047_v50 = vld [vmem:[%s5150_s28 + $0x1b20] sm:$0xff]  ;;  %1044 = vst [vmem:[%s5158_s29 + $0xd80] sm:$0xff] %v1043_v48  ;;  %1046 = vst [vmem:[%s5158_s29 + $0xd88] sm:$0xff] %v1045_v49  ;;  %v1049_v51 = vld [vmem:[%s5150_s28 + $0x1b28] sm:$0xff] }
  0xe9   : > { %1048 = vst [vmem:[%s5158_s29 + $0xd90] sm:$0xff] %v1047_v50  ;;  %v1051_v52 = vld [vmem:[%s5150_s28 + $0x1b40] sm:$0xff]  ;;  %v1053_v53 = vld [vmem:[%s5150_s28 + $0x1b48] sm:$0xff]  ;;  %1050 = vst [vmem:[%s5158_s29 + $0xd98] sm:$0xff] %v1049_v51 }
  0xea   : > { %1052 = vst [vmem:[%s5158_s29 + $0xda0] sm:$0xff] %v1051_v52  ;;  %1054 = vst [vmem:[%s5158_s29 + $0xda8] sm:$0xff] %v1053_v53  ;;  %v1055_v54 = vld [vmem:[%s5150_s28 + $0x1b60] sm:$0xff]  ;;  %v1057_v55 = vld [vmem:[%s5150_s28 + $0x1b68] sm:$0xff] }
  0xeb   : > { %v1059_v56 = vld [vmem:[%s5150_s28 + $0x1b80] sm:$0xff]  ;;  %1056 = vst [vmem:[%s5158_s29 + $0xdb0] sm:$0xff] %v1055_v54  ;;  %1058 = vst [vmem:[%s5158_s29 + $0xdb8] sm:$0xff] %v1057_v55  ;;  %v1061_v57 = vld [vmem:[%s5150_s28 + $0x1b88] sm:$0xff] }
  0xec   : > { %1060 = vst [vmem:[%s5158_s29 + $0xdc0] sm:$0xff] %v1059_v56  ;;  %v1063_v58 = vld [vmem:[%s5150_s28 + $0x1ba0] sm:$0xff]  ;;  %v1065_v59 = vld [vmem:[%s5150_s28 + $0x1ba8] sm:$0xff]  ;;  %1062 = vst [vmem:[%s5158_s29 + $0xdc8] sm:$0xff] %v1061_v57 }
  0xed   : > { %1064 = vst [vmem:[%s5158_s29 + $0xdd0] sm:$0xff] %v1063_v58  ;;  %1066 = vst [vmem:[%s5158_s29 + $0xdd8] sm:$0xff] %v1065_v59  ;;  %v1067_v60 = vld [vmem:[%s5150_s28 + $0x1bc0] sm:$0xff]  ;;  %v1069_v61 = vld [vmem:[%s5150_s28 + $0x1bc8] sm:$0xff] }
  0xee   : > { %v1071_v62 = vld [vmem:[%s5150_s28 + $0x1be0] sm:$0xff]  ;;  %1068 = vst [vmem:[%s5158_s29 + $0xde0] sm:$0xff] %v1067_v60  ;;  %1070 = vst [vmem:[%s5158_s29 + $0xde8] sm:$0xff] %v1069_v61  ;;  %v1073_v63 = vld [vmem:[%s5150_s28 + $0x1be8] sm:$0xff] }
  0xef   : > { %1072 = vst [vmem:[%s5158_s29 + $0xdf0] sm:$0xff] %v1071_v62  ;;  %v1075_v0 = vld [vmem:[%s5150_s28 + $0x1c00] sm:$0xff]  ;;  %v1077_v1 = vld [vmem:[%s5150_s28 + $0x1c08] sm:$0xff]  ;;  %1074 = vst [vmem:[%s5158_s29 + $0xdf8] sm:$0xff] %v1073_v63 }
  0xf0   : > { %1076 = vst [vmem:[%s5158_s29 + $0xe00] sm:$0xff] %v1075_v0  ;;  %1078 = vst [vmem:[%s5158_s29 + $0xe08] sm:$0xff] %v1077_v1  ;;  %v1079_v2 = vld [vmem:[%s5150_s28 + $0x1c20] sm:$0xff]  ;;  %v1081_v3 = vld [vmem:[%s5150_s28 + $0x1c28] sm:$0xff] }
  0xf1   : > { %v1083_v4 = vld [vmem:[%s5150_s28 + $0x1c40] sm:$0xff]  ;;  %1080 = vst [vmem:[%s5158_s29 + $0xe10] sm:$0xff] %v1079_v2  ;;  %1082 = vst [vmem:[%s5158_s29 + $0xe18] sm:$0xff] %v1081_v3  ;;  %v1085_v5 = vld [vmem:[%s5150_s28 + $0x1c48] sm:$0xff] }
  0xf2   : > { %1084 = vst [vmem:[%s5158_s29 + $0xe20] sm:$0xff] %v1083_v4  ;;  %v1087_v6 = vld [vmem:[%s5150_s28 + $0x1c60] sm:$0xff]  ;;  %v1089_v7 = vld [vmem:[%s5150_s28 + $0x1c68] sm:$0xff]  ;;  %1086 = vst [vmem:[%s5158_s29 + $0xe28] sm:$0xff] %v1085_v5 }
  0xf3   : > { %1088 = vst [vmem:[%s5158_s29 + $0xe30] sm:$0xff] %v1087_v6  ;;  %1090 = vst [vmem:[%s5158_s29 + $0xe38] sm:$0xff] %v1089_v7  ;;  %v1091_v8 = vld [vmem:[%s5150_s28 + $0x1c80] sm:$0xff]  ;;  %v1093_v9 = vld [vmem:[%s5150_s28 + $0x1c88] sm:$0xff] }
  0xf4   : > { %v1095_v10 = vld [vmem:[%s5150_s28 + $0x1ca0] sm:$0xff]  ;;  %1092 = vst [vmem:[%s5158_s29 + $0xe40] sm:$0xff] %v1091_v8  ;;  %1094 = vst [vmem:[%s5158_s29 + $0xe48] sm:$0xff] %v1093_v9  ;;  %v1097_v11 = vld [vmem:[%s5150_s28 + $0x1ca8] sm:$0xff] }
  0xf5   : > { %1096 = vst [vmem:[%s5158_s29 + $0xe50] sm:$0xff] %v1095_v10  ;;  %v1099_v12 = vld [vmem:[%s5150_s28 + $0x1cc0] sm:$0xff]  ;;  %v1101_v13 = vld [vmem:[%s5150_s28 + $0x1cc8] sm:$0xff]  ;;  %1098 = vst [vmem:[%s5158_s29 + $0xe58] sm:$0xff] %v1097_v11 }
  0xf6   : > { %1100 = vst [vmem:[%s5158_s29 + $0xe60] sm:$0xff] %v1099_v12  ;;  %1102 = vst [vmem:[%s5158_s29 + $0xe68] sm:$0xff] %v1101_v13  ;;  %v1103_v14 = vld [vmem:[%s5150_s28 + $0x1ce0] sm:$0xff]  ;;  %v1105_v15 = vld [vmem:[%s5150_s28 + $0x1ce8] sm:$0xff] }
  0xf7   : > { %v1107_v16 = vld [vmem:[%s5150_s28 + $0x1d00] sm:$0xff]  ;;  %1104 = vst [vmem:[%s5158_s29 + $0xe70] sm:$0xff] %v1103_v14  ;;  %1106 = vst [vmem:[%s5158_s29 + $0xe78] sm:$0xff] %v1105_v15  ;;  %v1109_v17 = vld [vmem:[%s5150_s28 + $0x1d08] sm:$0xff] }
  0xf8   : > { %1108 = vst [vmem:[%s5158_s29 + $0xe80] sm:$0xff] %v1107_v16  ;;  %v1111_v18 = vld [vmem:[%s5150_s28 + $0x1d20] sm:$0xff]  ;;  %v1113_v19 = vld [vmem:[%s5150_s28 + $0x1d28] sm:$0xff]  ;;  %1110 = vst [vmem:[%s5158_s29 + $0xe88] sm:$0xff] %v1109_v17 }
  0xf9   : > { %1112 = vst [vmem:[%s5158_s29 + $0xe90] sm:$0xff] %v1111_v18  ;;  %1114 = vst [vmem:[%s5158_s29 + $0xe98] sm:$0xff] %v1113_v19  ;;  %v1115_v20 = vld [vmem:[%s5150_s28 + $0x1d40] sm:$0xff]  ;;  %v1117_v21 = vld [vmem:[%s5150_s28 + $0x1d48] sm:$0xff] }
  0xfa   : > { %v1119_v22 = vld [vmem:[%s5150_s28 + $0x1d60] sm:$0xff]  ;;  %1116 = vst [vmem:[%s5158_s29 + $0xea0] sm:$0xff] %v1115_v20  ;;  %1118 = vst [vmem:[%s5158_s29 + $0xea8] sm:$0xff] %v1117_v21  ;;  %v1121_v23 = vld [vmem:[%s5150_s28 + $0x1d68] sm:$0xff] }
  0xfb   : > { %1120 = vst [vmem:[%s5158_s29 + $0xeb0] sm:$0xff] %v1119_v22  ;;  %v1123_v24 = vld [vmem:[%s5150_s28 + $0x1d80] sm:$0xff]  ;;  %v1125_v25 = vld [vmem:[%s5150_s28 + $0x1d88] sm:$0xff]  ;;  %1122 = vst [vmem:[%s5158_s29 + $0xeb8] sm:$0xff] %v1121_v23 }
  0xfc   : > { %1124 = vst [vmem:[%s5158_s29 + $0xec0] sm:$0xff] %v1123_v24  ;;  %1126 = vst [vmem:[%s5158_s29 + $0xec8] sm:$0xff] %v1125_v25  ;;  %v1127_v26 = vld [vmem:[%s5150_s28 + $0x1da0] sm:$0xff]  ;;  %v1129_v27 = vld [vmem:[%s5150_s28 + $0x1da8] sm:$0xff] }
  0xfd   : > { %v1131_v28 = vld [vmem:[%s5150_s28 + $0x1dc0] sm:$0xff]  ;;  %1128 = vst [vmem:[%s5158_s29 + $0xed0] sm:$0xff] %v1127_v26  ;;  %1130 = vst [vmem:[%s5158_s29 + $0xed8] sm:$0xff] %v1129_v27  ;;  %v1133_v29 = vld [vmem:[%s5150_s28 + $0x1dc8] sm:$0xff] }
  0xfe   : > { %1132 = vst [vmem:[%s5158_s29 + $0xee0] sm:$0xff] %v1131_v28  ;;  %v1135_v30 = vld [vmem:[%s5150_s28 + $0x1de0] sm:$0xff]  ;;  %v1137_v31 = vld [vmem:[%s5150_s28 + $0x1de8] sm:$0xff]  ;;  %1134 = vst [vmem:[%s5158_s29 + $0xee8] sm:$0xff] %v1133_v29 }
  0xff   : > { %1136 = vst [vmem:[%s5158_s29 + $0xef0] sm:$0xff] %v1135_v30  ;;  %1138 = vst [vmem:[%s5158_s29 + $0xef8] sm:$0xff] %v1137_v31  ;;  %v1139_v32 = vld [vmem:[%s5150_s28 + $0x1e00] sm:$0xff]  ;;  %v1141_v33 = vld [vmem:[%s5150_s28 + $0x1e08] sm:$0xff] }
 0x100   : > { %v1143_v34 = vld [vmem:[%s5150_s28 + $0x1e20] sm:$0xff]  ;;  %1140 = vst [vmem:[%s5158_s29 + $0xf00] sm:$0xff] %v1139_v32  ;;  %1142 = vst [vmem:[%s5158_s29 + $0xf08] sm:$0xff] %v1141_v33  ;;  %v1145_v35 = vld [vmem:[%s5150_s28 + $0x1e28] sm:$0xff] }
 0x101   : > { %1144 = vst [vmem:[%s5158_s29 + $0xf10] sm:$0xff] %v1143_v34  ;;  %v1147_v36 = vld [vmem:[%s5150_s28 + $0x1e40] sm:$0xff]  ;;  %v1149_v37 = vld [vmem:[%s5150_s28 + $0x1e48] sm:$0xff]  ;;  %1146 = vst [vmem:[%s5158_s29 + $0xf18] sm:$0xff] %v1145_v35 }
 0x102   : > { %1148 = vst [vmem:[%s5158_s29 + $0xf20] sm:$0xff] %v1147_v36  ;;  %1150 = vst [vmem:[%s5158_s29 + $0xf28] sm:$0xff] %v1149_v37  ;;  %v1151_v38 = vld [vmem:[%s5150_s28 + $0x1e60] sm:$0xff]  ;;  %v1153_v39 = vld [vmem:[%s5150_s28 + $0x1e68] sm:$0xff] }
 0x103   : > { %v1155_v40 = vld [vmem:[%s5150_s28 + $0x1e80] sm:$0xff]  ;;  %1152 = vst [vmem:[%s5158_s29 + $0xf30] sm:$0xff] %v1151_v38  ;;  %1154 = vst [vmem:[%s5158_s29 + $0xf38] sm:$0xff] %v1153_v39  ;;  %v1157_v41 = vld [vmem:[%s5150_s28 + $0x1e88] sm:$0xff] }
 0x104   : > { %1156 = vst [vmem:[%s5158_s29 + $0xf40] sm:$0xff] %v1155_v40  ;;  %v1159_v42 = vld [vmem:[%s5150_s28 + $0x1ea0] sm:$0xff]  ;;  %v1161_v43 = vld [vmem:[%s5150_s28 + $0x1ea8] sm:$0xff]  ;;  %1158 = vst [vmem:[%s5158_s29 + $0xf48] sm:$0xff] %v1157_v41 }
 0x105   : > { %1160 = vst [vmem:[%s5158_s29 + $0xf50] sm:$0xff] %v1159_v42  ;;  %1162 = vst [vmem:[%s5158_s29 + $0xf58] sm:$0xff] %v1161_v43  ;;  %v1163_v44 = vld [vmem:[%s5150_s28 + $0x1ec0] sm:$0xff]  ;;  %v1165_v45 = vld [vmem:[%s5150_s28 + $0x1ec8] sm:$0xff] }
 0x106   : > { %v1167_v46 = vld [vmem:[%s5150_s28 + $0x1ee0] sm:$0xff]  ;;  %1164 = vst [vmem:[%s5158_s29 + $0xf60] sm:$0xff] %v1163_v44  ;;  %1166 = vst [vmem:[%s5158_s29 + $0xf68] sm:$0xff] %v1165_v45  ;;  %v1169_v47 = vld [vmem:[%s5150_s28 + $0x1ee8] sm:$0xff] }
 0x107   : > { %1168 = vst [vmem:[%s5158_s29 + $0xf70] sm:$0xff] %v1167_v46  ;;  %v1171_v48 = vld [vmem:[%s5150_s28 + $0x1f00] sm:$0xff]  ;;  %v1173_v49 = vld [vmem:[%s5150_s28 + $0x1f08] sm:$0xff]  ;;  %1170 = vst [vmem:[%s5158_s29 + $0xf78] sm:$0xff] %v1169_v47 }
 0x108   : > { %1172 = vst [vmem:[%s5158_s29 + $0xf80] sm:$0xff] %v1171_v48  ;;  %1174 = vst [vmem:[%s5158_s29 + $0xf88] sm:$0xff] %v1173_v49  ;;  %v1175_v50 = vld [vmem:[%s5150_s28 + $0x1f20] sm:$0xff]  ;;  %v1177_v51 = vld [vmem:[%s5150_s28 + $0x1f28] sm:$0xff] }
 0x109   : > { %v1179_v52 = vld [vmem:[%s5150_s28 + $0x1f40] sm:$0xff]  ;;  %1176 = vst [vmem:[%s5158_s29 + $0xf90] sm:$0xff] %v1175_v50  ;;  %1178 = vst [vmem:[%s5158_s29 + $0xf98] sm:$0xff] %v1177_v51  ;;  %v1181_v53 = vld [vmem:[%s5150_s28 + $0x1f48] sm:$0xff] }
 0x10a   : > { %1180 = vst [vmem:[%s5158_s29 + $0xfa0] sm:$0xff] %v1179_v52  ;;  %v1183_v54 = vld [vmem:[%s5150_s28 + $0x1f60] sm:$0xff]  ;;  %v1185_v55 = vld [vmem:[%s5150_s28 + $0x1f68] sm:$0xff]  ;;  %1182 = vst [vmem:[%s5158_s29 + $0xfa8] sm:$0xff] %v1181_v53 }
 0x10b   : > { %1184 = vst [vmem:[%s5158_s29 + $0xfb0] sm:$0xff] %v1183_v54  ;;  %1186 = vst [vmem:[%s5158_s29 + $0xfb8] sm:$0xff] %v1185_v55  ;;  %v1187_v56 = vld [vmem:[%s5150_s28 + $0x1f80] sm:$0xff]  ;;  %v1189_v57 = vld [vmem:[%s5150_s28 + $0x1f88] sm:$0xff] }
 0x10c   : > { %v1191_v58 = vld [vmem:[%s5150_s28 + $0x1fa0] sm:$0xff]  ;;  %1188 = vst [vmem:[%s5158_s29 + $0xfc0] sm:$0xff] %v1187_v56  ;;  %1190 = vst [vmem:[%s5158_s29 + $0xfc8] sm:$0xff] %v1189_v57  ;;  %v1193_v59 = vld [vmem:[%s5150_s28 + $0x1fa8] sm:$0xff] }
 0x10d   : > { %1192 = vst [vmem:[%s5158_s29 + $0xfd0] sm:$0xff] %v1191_v58  ;;  %v1195_v60 = vld [vmem:[%s5150_s28 + $0x1fc0] sm:$0xff]  ;;  %v1197_v61 = vld [vmem:[%s5150_s28 + $0x1fc8] sm:$0xff]  ;;  %1194 = vst [vmem:[%s5158_s29 + $0xfd8] sm:$0xff] %v1193_v59 }
 0x10e   : > { %1196 = vst [vmem:[%s5158_s29 + $0xfe0] sm:$0xff] %v1195_v60  ;;  %1198 = vst [vmem:[%s5158_s29 + $0xfe8] sm:$0xff] %v1197_v61  ;;  %v1199_v62 = vld [vmem:[%s5150_s28 + $0x1fe0] sm:$0xff]  ;;  %v1201_v63 = vld [vmem:[%s5150_s28 + $0x1fe8] sm:$0xff] }
 0x10f   : > { %v1203_v0 = vld [vmem:[%s5150_s28 + $0x2000] sm:$0xff]  ;;  %1200 = vst [vmem:[%s5158_s29 + $0xff0] sm:$0xff] %v1199_v62  ;;  %1202 = vst [vmem:[%s5158_s29 + $0xff8] sm:$0xff] %v1201_v63  ;;  %v1205_v1 = vld [vmem:[%s5150_s28 + $0x2008] sm:$0xff] }
 0x110   : > { %1204 = vst [vmem:[%s5158_s29 + $0x1000] sm:$0xff] %v1203_v0  ;;  %v1207_v2 = vld [vmem:[%s5150_s28 + $0x2020] sm:$0xff]  ;;  %v1209_v3 = vld [vmem:[%s5150_s28 + $0x2028] sm:$0xff]  ;;  %1206 = vst [vmem:[%s5158_s29 + $0x1008] sm:$0xff] %v1205_v1 }
 0x111   : > { %1208 = vst [vmem:[%s5158_s29 + $0x1010] sm:$0xff] %v1207_v2  ;;  %1210 = vst [vmem:[%s5158_s29 + $0x1018] sm:$0xff] %v1209_v3  ;;  %v1211_v4 = vld [vmem:[%s5150_s28 + $0x2040] sm:$0xff]  ;;  %v1213_v5 = vld [vmem:[%s5150_s28 + $0x2048] sm:$0xff] }
 0x112   : > { %v1215_v6 = vld [vmem:[%s5150_s28 + $0x2060] sm:$0xff]  ;;  %1212 = vst [vmem:[%s5158_s29 + $0x1020] sm:$0xff] %v1211_v4  ;;  %1214 = vst [vmem:[%s5158_s29 + $0x1028] sm:$0xff] %v1213_v5  ;;  %v1217_v7 = vld [vmem:[%s5150_s28 + $0x2068] sm:$0xff] }
 0x113   : > { %1216 = vst [vmem:[%s5158_s29 + $0x1030] sm:$0xff] %v1215_v6  ;;  %v1219_v8 = vld [vmem:[%s5150_s28 + $0x2080] sm:$0xff]  ;;  %v1221_v9 = vld [vmem:[%s5150_s28 + $0x2088] sm:$0xff]  ;;  %1218 = vst [vmem:[%s5158_s29 + $0x1038] sm:$0xff] %v1217_v7 }
 0x114   : > { %1220 = vst [vmem:[%s5158_s29 + $0x1040] sm:$0xff] %v1219_v8  ;;  %1222 = vst [vmem:[%s5158_s29 + $0x1048] sm:$0xff] %v1221_v9  ;;  %v1223_v10 = vld [vmem:[%s5150_s28 + $0x20a0] sm:$0xff]  ;;  %v1225_v11 = vld [vmem:[%s5150_s28 + $0x20a8] sm:$0xff] }
 0x115   : > { %v1227_v12 = vld [vmem:[%s5150_s28 + $0x20c0] sm:$0xff]  ;;  %1224 = vst [vmem:[%s5158_s29 + $0x1050] sm:$0xff] %v1223_v10  ;;  %1226 = vst [vmem:[%s5158_s29 + $0x1058] sm:$0xff] %v1225_v11  ;;  %v1229_v13 = vld [vmem:[%s5150_s28 + $0x20c8] sm:$0xff] }
 0x116   : > { %1228 = vst [vmem:[%s5158_s29 + $0x1060] sm:$0xff] %v1227_v12  ;;  %v1231_v14 = vld [vmem:[%s5150_s28 + $0x20e0] sm:$0xff]  ;;  %v1233_v15 = vld [vmem:[%s5150_s28 + $0x20e8] sm:$0xff]  ;;  %1230 = vst [vmem:[%s5158_s29 + $0x1068] sm:$0xff] %v1229_v13 }
 0x117   : > { %1232 = vst [vmem:[%s5158_s29 + $0x1070] sm:$0xff] %v1231_v14  ;;  %1234 = vst [vmem:[%s5158_s29 + $0x1078] sm:$0xff] %v1233_v15  ;;  %v1235_v16 = vld [vmem:[%s5150_s28 + $0x2100] sm:$0xff]  ;;  %v1237_v17 = vld [vmem:[%s5150_s28 + $0x2108] sm:$0xff] }
 0x118   : > { %v1239_v18 = vld [vmem:[%s5150_s28 + $0x2120] sm:$0xff]  ;;  %1236 = vst [vmem:[%s5158_s29 + $0x1080] sm:$0xff] %v1235_v16  ;;  %1238 = vst [vmem:[%s5158_s29 + $0x1088] sm:$0xff] %v1237_v17  ;;  %v1241_v19 = vld [vmem:[%s5150_s28 + $0x2128] sm:$0xff] }
 0x119   : > { %1240 = vst [vmem:[%s5158_s29 + $0x1090] sm:$0xff] %v1239_v18  ;;  %v1243_v20 = vld [vmem:[%s5150_s28 + $0x2140] sm:$0xff]  ;;  %v1245_v21 = vld [vmem:[%s5150_s28 + $0x2148] sm:$0xff]  ;;  %1242 = vst [vmem:[%s5158_s29 + $0x1098] sm:$0xff] %v1241_v19 }
 0x11a   : > { %1244 = vst [vmem:[%s5158_s29 + $0x10a0] sm:$0xff] %v1243_v20  ;;  %1246 = vst [vmem:[%s5158_s29 + $0x10a8] sm:$0xff] %v1245_v21  ;;  %v1247_v22 = vld [vmem:[%s5150_s28 + $0x2160] sm:$0xff]  ;;  %v1249_v23 = vld [vmem:[%s5150_s28 + $0x2168] sm:$0xff] }
 0x11b   : > { %v1251_v24 = vld [vmem:[%s5150_s28 + $0x2180] sm:$0xff]  ;;  %1248 = vst [vmem:[%s5158_s29 + $0x10b0] sm:$0xff] %v1247_v22  ;;  %1250 = vst [vmem:[%s5158_s29 + $0x10b8] sm:$0xff] %v1249_v23  ;;  %v1253_v25 = vld [vmem:[%s5150_s28 + $0x2188] sm:$0xff] }
 0x11c   : > { %1252 = vst [vmem:[%s5158_s29 + $0x10c0] sm:$0xff] %v1251_v24  ;;  %v1255_v26 = vld [vmem:[%s5150_s28 + $0x21a0] sm:$0xff]  ;;  %v1257_v27 = vld [vmem:[%s5150_s28 + $0x21a8] sm:$0xff]  ;;  %1254 = vst [vmem:[%s5158_s29 + $0x10c8] sm:$0xff] %v1253_v25 }
 0x11d   : > { %1256 = vst [vmem:[%s5158_s29 + $0x10d0] sm:$0xff] %v1255_v26  ;;  %1258 = vst [vmem:[%s5158_s29 + $0x10d8] sm:$0xff] %v1257_v27  ;;  %v1259_v28 = vld [vmem:[%s5150_s28 + $0x21c0] sm:$0xff]  ;;  %v1261_v29 = vld [vmem:[%s5150_s28 + $0x21c8] sm:$0xff] }
 0x11e   : > { %v1263_v30 = vld [vmem:[%s5150_s28 + $0x21e0] sm:$0xff]  ;;  %1260 = vst [vmem:[%s5158_s29 + $0x10e0] sm:$0xff] %v1259_v28  ;;  %1262 = vst [vmem:[%s5158_s29 + $0x10e8] sm:$0xff] %v1261_v29  ;;  %v1265_v31 = vld [vmem:[%s5150_s28 + $0x21e8] sm:$0xff] }
 0x11f   : > { %1264 = vst [vmem:[%s5158_s29 + $0x10f0] sm:$0xff] %v1263_v30  ;;  %v1267_v32 = vld [vmem:[%s5150_s28 + $0x2200] sm:$0xff]  ;;  %v1269_v33 = vld [vmem:[%s5150_s28 + $0x2208] sm:$0xff]  ;;  %1266 = vst [vmem:[%s5158_s29 + $0x10f8] sm:$0xff] %v1265_v31 }
 0x120   : > { %1268 = vst [vmem:[%s5158_s29 + $0x1100] sm:$0xff] %v1267_v32  ;;  %1270 = vst [vmem:[%s5158_s29 + $0x1108] sm:$0xff] %v1269_v33  ;;  %v1271_v34 = vld [vmem:[%s5150_s28 + $0x2220] sm:$0xff]  ;;  %v1273_v35 = vld [vmem:[%s5150_s28 + $0x2228] sm:$0xff] }
 0x121   : > { %v1275_v36 = vld [vmem:[%s5150_s28 + $0x2240] sm:$0xff]  ;;  %1272 = vst [vmem:[%s5158_s29 + $0x1110] sm:$0xff] %v1271_v34  ;;  %1274 = vst [vmem:[%s5158_s29 + $0x1118] sm:$0xff] %v1273_v35  ;;  %v1277_v37 = vld [vmem:[%s5150_s28 + $0x2248] sm:$0xff] }
 0x122   : > { %1276 = vst [vmem:[%s5158_s29 + $0x1120] sm:$0xff] %v1275_v36  ;;  %v1279_v38 = vld [vmem:[%s5150_s28 + $0x2260] sm:$0xff]  ;;  %v1281_v39 = vld [vmem:[%s5150_s28 + $0x2268] sm:$0xff]  ;;  %1278 = vst [vmem:[%s5158_s29 + $0x1128] sm:$0xff] %v1277_v37 }
 0x123   : > { %1280 = vst [vmem:[%s5158_s29 + $0x1130] sm:$0xff] %v1279_v38  ;;  %1282 = vst [vmem:[%s5158_s29 + $0x1138] sm:$0xff] %v1281_v39  ;;  %v1283_v40 = vld [vmem:[%s5150_s28 + $0x2280] sm:$0xff]  ;;  %v1285_v41 = vld [vmem:[%s5150_s28 + $0x2288] sm:$0xff] }
 0x124   : > { %v1287_v42 = vld [vmem:[%s5150_s28 + $0x22a0] sm:$0xff]  ;;  %1284 = vst [vmem:[%s5158_s29 + $0x1140] sm:$0xff] %v1283_v40  ;;  %1286 = vst [vmem:[%s5158_s29 + $0x1148] sm:$0xff] %v1285_v41  ;;  %v1289_v43 = vld [vmem:[%s5150_s28 + $0x22a8] sm:$0xff] }
 0x125   : > { %1288 = vst [vmem:[%s5158_s29 + $0x1150] sm:$0xff] %v1287_v42  ;;  %v1291_v44 = vld [vmem:[%s5150_s28 + $0x22c0] sm:$0xff]  ;;  %v1293_v45 = vld [vmem:[%s5150_s28 + $0x22c8] sm:$0xff]  ;;  %1290 = vst [vmem:[%s5158_s29 + $0x1158] sm:$0xff] %v1289_v43 }
 0x126   : > { %1292 = vst [vmem:[%s5158_s29 + $0x1160] sm:$0xff] %v1291_v44  ;;  %1294 = vst [vmem:[%s5158_s29 + $0x1168] sm:$0xff] %v1293_v45  ;;  %v1295_v46 = vld [vmem:[%s5150_s28 + $0x22e0] sm:$0xff]  ;;  %v1297_v47 = vld [vmem:[%s5150_s28 + $0x22e8] sm:$0xff] }
 0x127   : > { %1296 = vst [vmem:[%s5158_s29 + $0x1170] sm:$0xff] %v1295_v46  ;;  %1298 = vst [vmem:[%s5158_s29 + $0x1178] sm:$0xff] %v1297_v47 }
 0x128 PF: > { %p4893_p5 = scmp.ge.s32.totalorder %s5089_s17, 1  ;;  %p1319_p6 = scmp.lt.s32.totalorder %s5089_s17, 3 }
 0x12a   : > { %p1320_p7 = pnand %p4893_p5, %p1319_p6 }
 0x12b   : > { %s1326_s30 = sand.u32 (!%p1320_p7), 1, %s5081_s15  }
 0x12c   : > { %1323 = sbr.rel (%p1320_p7) target bundleno = 1666 (0x682), region = 55 }
 0x12d   : > { %s4972_s9 = smul.u32 (!%p1320_p7), 4480, %s1326_s30 }
 0x12f   : > { %s6291_s10 = scalar_lea.vmem (!%p1320_p7), [#allocation2], %s4972_s9 }
 0x131   : > { %v6280_v48 = vld [vmem:[%s7259_s0] sm:$0xff]  ;;  %v6285_v49 = vld [vmem:[%s7259_s0 + $0x8] sm:$0xff]  ;;  %v1383_v52 = vld [vmem:[%s6291_s10 + $0x38] sm:$0xff] }
 0x132   : > { %v4899_v50 = vcombine.high %v6280_v48, %v6280_v48  ;;  %v4901_v51 = vcombine.high %v6285_v49, %v6285_v49  ;;  %v1399_v53 = vld [vmem:[%s6291_s10 + $0xb8] sm:$0xff]  ;;  %v1382_v54 = vld [vmem:[%s6291_s10 + $0x30] sm:$0xff]  ;;  %v1949_v55 = vunpack.c.l.s8.bf16 %v1383_v52  ;;  %v1951_v56 = vunpack.c.h.s8.bf16 %v1383_v52  ;;  %v1381_v62 = vld [vmem:[%s6291_s10 + $0x28] sm:$0xff] }
 0x133   : > { %v1981_v57 = vunpack.c.l.s8.bf16 %v1399_v53  ;;  %v1983_v58 = vunpack.c.h.s8.bf16 %v1399_v53  ;;  %v1398_v59 = vld [vmem:[%s6291_s10 + $0xb0] sm:$0xff]  ;;  %v1950_v60 = vunpack.c.h.s8.bf16 %v1382_v54  ;;  %v1397_v63 = vld [vmem:[%s6291_s10 + $0xa8] sm:$0xff]  ;;  %v1948_v0 = vunpack.c.l.s8.bf16 %v1382_v54  ;;  %v1380_v4 = vld [vmem:[%s6291_s10 + $0x20] sm:$0xff] }
 0x134   : > { %3368 = vmatprep.mubr.bf16.mxu0 %v4899_v50  ;;  %3409 = vmatprep.mubr.bf16.mxu1 %v4901_v51  ;;  %v1982_v61 = vunpack.c.h.s8.bf16 %v1398_v59  ;;  %v1980_v1 = vunpack.c.l.s8.bf16 %v1398_v59  ;;  %v1947_v2 = vunpack.c.h.s8.bf16 %v1381_v62  ;;  %v1979_v3 = vunpack.c.h.s8.bf16 %v1397_v63  ;;  %v1396_v5 = vld [vmem:[%s6291_s10 + $0xa0] sm:$0xff]  ;;  %v1379_v10 = vld [vmem:[%s6291_s10 + $0x18] sm:$0xff]  ;;  %v1378_v16 = vld [vmem:[%s6291_s10 + $0x10] sm:$0xff] }
 0x135   : > { %3336 = vmatprep.subr.bf16.mxu0 %v1951_v56  ;;  %3377 = vmatprep.subr.bf16.mxu1 %v1983_v58  ;;  %v1946_v6 = vunpack.c.h.s8.bf16 %v1380_v4  ;;  %v1978_v7 = vunpack.c.h.s8.bf16 %v1396_v5  ;;  %v1945_v8 = vunpack.c.l.s8.bf16 %v1381_v62  ;;  %v1977_v9 = vunpack.c.l.s8.bf16 %v1397_v63  ;;  %v1395_v11 = vld [vmem:[%s6291_s10 + $0x98] sm:$0xff]  ;;  %v1394_v17 = vld [vmem:[%s6291_s10 + $0x90] sm:$0xff]  ;;  %v1377_v22 = vld [vmem:[%s6291_s10 + $0x8] sm:$0xff] }
 0x136   : > { %3337 = vmatpush1.bf16.msra.mxu0 %v1950_v60  ;;  %3378 = vmatpush1.bf16.msra.mxu1 %v1982_v61  ;;  %v1944_v12 = vunpack.c.l.s8.bf16 %v1380_v4  ;;  %v1976_v13 = vunpack.c.l.s8.bf16 %v1396_v5  ;;  %v1943_v14 = vunpack.c.h.s8.bf16 %v1379_v10  ;;  %v1975_v15 = vunpack.c.h.s8.bf16 %v1395_v11  ;;  %v1393_v23 = vld [vmem:[%s6291_s10 + $0x88] sm:$0xff]  ;;  %v1376_v28 = vld [vmem:[%s6291_s10] sm:$0xff]  ;;  %v1391_v34 = vld [vmem:[%s6291_s10 + $0x78] sm:$0xff] }
 0x137   : > { %3338 = vmatprep.subr.bf16.mxu0 %v1949_v55  ;;  %3379 = vmatprep.subr.bf16.mxu1 %v1981_v57  ;;  %v1942_v18 = vunpack.c.h.s8.bf16 %v1378_v16  ;;  %v1974_v19 = vunpack.c.h.s8.bf16 %v1394_v17  ;;  %v1941_v20 = vunpack.c.l.s8.bf16 %v1379_v10  ;;  %v1973_v21 = vunpack.c.l.s8.bf16 %v1395_v11  ;;  %v1392_v29 = vld [vmem:[%s6291_s10 + $0x80] sm:$0xff]  ;;  %v1407_v35 = vld [vmem:[%s6291_s10 + $0xf8] sm:$0xff]  ;;  %v1390_v40 = vld [vmem:[%s6291_s10 + $0x70] sm:$0xff] }
 0x138   : > { %v1940_v24 = vunpack.c.l.s8.bf16 %v1378_v16  ;;  %v1972_v25 = vunpack.c.l.s8.bf16 %v1394_v17  ;;  %v1939_v26 = vunpack.c.h.s8.bf16 %v1377_v22  ;;  %v1971_v27 = vunpack.c.h.s8.bf16 %v1393_v23  ;;  %v1406_v41 = vld [vmem:[%s6291_s10 + $0xf0] sm:$0xff]  ;;  %v1389_v46 = vld [vmem:[%s6291_s10 + $0x68] sm:$0xff]  ;;  %v1388_v54 = vld [vmem:[%s6291_s10 + $0x60] sm:$0xff] }
 0x139   : > { %v1938_v30 = vunpack.c.h.s8.bf16 %v1376_v28  ;;  %v1970_v31 = vunpack.c.h.s8.bf16 %v1392_v29  ;;  %v1937_v32 = vunpack.c.l.s8.bf16 %v1377_v22  ;;  %v1969_v33 = vunpack.c.l.s8.bf16 %v1393_v23  ;;  %v1405_v47 = vld [vmem:[%s6291_s10 + $0xe8] sm:$0xff]  ;;  %v1404_v55 = vld [vmem:[%s6291_s10 + $0xe0] sm:$0xff]  ;;  %v1387_v60 = vld [vmem:[%s6291_s10 + $0x58] sm:$0xff] }
 0x13a   : > { %3339 = vmatpush1.bf16.msra.mxu0 %v1948_v0  ;;  %3380 = vmatpush1.bf16.msra.mxu1 %v1980_v1  ;;  %v1936_v36 = vunpack.c.l.s8.bf16 %v1376_v28  ;;  %v1968_v37 = vunpack.c.l.s8.bf16 %v1392_v29  ;;  %v1967_v38 = vunpack.c.h.s8.bf16 %v1391_v34  ;;  %v1999_v39 = vunpack.c.h.s8.bf16 %v1407_v35  ;;  %v1403_v61 = vld [vmem:[%s6291_s10 + $0xd8] sm:$0xff] }
 0x13b   : > { %3340 = vmatprep.subr.bf16.mxu0 %v1947_v2  ;;  %3381 = vmatprep.subr.bf16.mxu1 %v1979_v3  ;;  %v1966_v42 = vunpack.c.h.s8.bf16 %v1390_v40  ;;  %v1998_v43 = vunpack.c.h.s8.bf16 %v1406_v41  ;;  %v1965_v44 = vunpack.c.l.s8.bf16 %v1391_v34  ;;  %v1997_v45 = vunpack.c.l.s8.bf16 %v1407_v35  ;;  %v1386_v2 = vld [vmem:[%s6291_s10 + $0x50] sm:$0xff]  ;;  %v1429_v35 = vld [vmem:[%s6291_s10 + $0x1a8] sm:$0xff] }
 0x13c   : > { %v1964_v50 = vunpack.c.l.s8.bf16 %v1390_v40  ;;  %v1996_v51 = vunpack.c.l.s8.bf16 %v1406_v41  ;;  %v1963_v52 = vunpack.c.h.s8.bf16 %v1389_v46  ;;  %v1995_v53 = vunpack.c.h.s8.bf16 %v1405_v47  ;;  %v1402_v3 = vld [vmem:[%s6291_s10 + $0xd0] sm:$0xff]  ;;  %v1412_v41 = vld [vmem:[%s6291_s10 + $0x120] sm:$0xff] }
 0x13d   : > { %v1962_v56 = vunpack.c.h.s8.bf16 %v1388_v54  ;;  %v1994_v57 = vunpack.c.h.s8.bf16 %v1404_v55  ;;  %v1961_v58 = vunpack.c.l.s8.bf16 %v1389_v46  ;;  %v1993_v59 = vunpack.c.l.s8.bf16 %v1405_v47 }
 0x13e   : > { %3341 = vmatpush1.bf16.msra.mxu0 %v1946_v6  ;;  %3382 = vmatpush1.bf16.msra.mxu1 %v1978_v7  ;;  %v1960_v62 = vunpack.c.l.s8.bf16 %v1388_v54  ;;  %v1992_v63 = vunpack.c.l.s8.bf16 %v1404_v55  ;;  %v1959_v0 = vunpack.c.h.s8.bf16 %v1387_v60  ;;  %v1991_v1 = vunpack.c.h.s8.bf16 %v1403_v61  ;;  %v1410_v55 = vld [vmem:[%s6291_s10 + $0x110] sm:$0xff] }
 0x13f   : > { %3342 = vmatprep.subr.bf16.mxu0 %v1945_v8  ;;  %3383 = vmatprep.subr.bf16.mxu1 %v1977_v9  ;;  %v1958_v4 = vunpack.c.h.s8.bf16 %v1386_v2  ;;  %v1990_v5 = vunpack.c.h.s8.bf16 %v1402_v3  ;;  %v1957_v6 = vunpack.c.l.s8.bf16 %v1387_v60  ;;  %v1989_v7 = vunpack.c.l.s8.bf16 %v1403_v61  ;;  %v1385_v8 = vld [vmem:[%s6291_s10 + $0x48] sm:$0xff] }
 0x140   : > { %v1401_v9 = vld [vmem:[%s6291_s10 + $0xc8] sm:$0xff]  ;;  %v1956_v10 = vunpack.c.l.s8.bf16 %v1386_v2  ;;  %v1988_v11 = vunpack.c.l.s8.bf16 %v1402_v3  ;;  %v4898_v28 = vcombine.low %v6280_v48, %v6280_v48  ;;  %v4900_v29 = vcombine.low %v6285_v49, %v6285_v49  ;;  %v1408_v3 = vld [vmem:[%s6291_s10 + $0x100] sm:$0xff] }
 0x141   : > { %v1413_v49 = vld [vmem:[%s6291_s10 + $0x128] sm:$0xff]  ;;  %v2041_v47 = vunpack.c.l.s8.bf16 %v1429_v35 }
 0x142   : > { %3343 = vmatpush1.bf16.msra.mxu0 %v1944_v12  ;;  %3384 = vmatpush1.bf16.msra.mxu1 %v1976_v13  ;;  %v1955_v12 = vunpack.c.h.s8.bf16 %v1385_v8  ;;  %v1987_v13 = vunpack.c.h.s8.bf16 %v1401_v9  ;;  %v2011_v40 = vunpack.c.h.s8.bf16 %v1413_v49  ;;  %v2009_v46 = vunpack.c.l.s8.bf16 %v1413_v49  ;;  %v1419_v49 = vld [vmem:[%s6291_s10 + $0x158] sm:$0xff] }
 0x143   : > { %3344 = vmatprep.subr.bf16.mxu0 %v1943_v14  ;;  %3385 = vmatprep.subr.bf16.mxu1 %v1975_v15  ;;  %v1384_v14 = vld [vmem:[%s6291_s10 + $0x40] sm:$0xff] }
 0x144   : > { %v1400_v15 = vld [vmem:[%s6291_s10 + $0xc0] sm:$0xff]  ;;  %v1954_v16 = vunpack.c.h.s8.bf16 %v1384_v14  ;;  %v1952_v22 = vunpack.c.l.s8.bf16 %v1384_v14 }
 0x145   : > { %v1986_v17 = vunpack.c.h.s8.bf16 %v1400_v15  ;;  %v1984_v23 = vunpack.c.l.s8.bf16 %v1400_v15  ;;  %v1422_v15 = vld [vmem:[%s6291_s10 + $0x170] sm:$0xff] }
 0x146   : > { %3345 = vmatpush1.bf16.msra.mxu0 %v1942_v18  ;;  %3386 = vmatpush1.bf16.msra.mxu1 %v1974_v19  ;;  %v1953_v18 = vunpack.c.l.s8.bf16 %v1385_v8  ;;  %v1985_v19 = vunpack.c.l.s8.bf16 %v1401_v9 }
 0x147   : > { %3346 = vmatprep.subr.bf16.mxu0 %v1941_v20  ;;  %3387 = vmatprep.subr.bf16.mxu1 %v1973_v21  ;;  %v1415_v20 = vld [vmem:[%s6291_s10 + $0x138] sm:$0xff] }
 0x148   : > { %v1431_v21 = vld [vmem:[%s6291_s10 + $0x1b8] sm:$0xff]  ;;  %v2013_v48 = vunpack.c.l.s8.bf16 %v1415_v20 }
 0x149   : > { %v2045_v34 = vunpack.c.l.s8.bf16 %v1431_v21 }
 0x14a   : > { %3347 = vmatpush1.bf16.msra.mxu0 %v1940_v24  ;;  %3388 = vmatpush1.bf16.msra.mxu1 %v1972_v25  ;;  %v2015_v24 = vunpack.c.h.s8.bf16 %v1415_v20  ;;  %v1414_v25 = vld [vmem:[%s6291_s10 + $0x130] sm:$0xff] }
 0x14b   : > { %3348 = vmatprep.subr.bf16.mxu0 %v1939_v26  ;;  %3389 = vmatprep.subr.bf16.mxu1 %v1971_v27  ;;  %v2047_v26 = vunpack.c.h.s8.bf16 %v1431_v21  ;;  %v1430_v27 = vld [vmem:[%s6291_s10 + $0x1b0] sm:$0xff] }
 0x14e   : > { %3349 = vmatpush1.bf16.msra.mxu0 %v1938_v30  ;;  %3390 = vmatpush1.bf16.msra.mxu1 %v1970_v31  ;;  %v6336_v30 = vld [vmem:[%s7259_s0 + $0x10] sm:$0xff]  ;;  %v6341_v31 = vld [vmem:[%s7259_s0 + $0x18] sm:$0xff] }
 0x14f   : > { %3350 = vmatprep.subr.bf16.mxu0 %v1937_v32  ;;  %3391 = vmatprep.subr.bf16.mxu1 %v1969_v33  ;;  %v2014_v32 = vunpack.c.h.s8.bf16 %v1414_v25  ;;  %v2046_v33 = vunpack.c.h.s8.bf16 %v1430_v27 }
 0x152   : > { %3351 = vmatpush1.bf16.msra.mxu0 %v1936_v36  ;;  %3392 = vmatpush1.bf16.msra.mxu1 %v1968_v37  ;;  %v4903_v36 = vcombine.high %v6336_v30, %v6336_v30  ;;  %v4905_v37 = vcombine.high %v6341_v31, %v6341_v31 }
 0x153   : > { %3352 = vmatprep.subr.bf16.mxu0 %v1967_v38  ;;  %3393 = vmatprep.subr.bf16.mxu1 %v1999_v39  ;;  %v2012_v38 = vunpack.c.l.s8.bf16 %v1414_v25  ;;  %v2044_v39 = vunpack.c.l.s8.bf16 %v1430_v27  ;;  %v1420_v27 = vld [vmem:[%s6291_s10 + $0x160] sm:$0xff] }
 0x156   : > { %3353 = vmatpush2.bf16.msra.mxu0 %v1966_v42  ;;  %3394 = vmatpush2.bf16.msra.mxu1 %v1998_v43  ;;  %v2043_v42 = vunpack.c.h.s8.bf16 %v1429_v35  ;;  %v1428_v43 = vld [vmem:[%s6291_s10 + $0x1a0] sm:$0xff]  ;;  %v1435_v35 = vld [vmem:[%s6291_s10 + $0x1d8] sm:$0xff] }
 0x157   : > { %3354 = vmatprep.subr.bf16.mxu0 %v1965_v44  ;;  %3395 = vmatprep.subr.bf16.mxu1 %v1997_v45  ;;  %v2010_v44 = vunpack.c.h.s8.bf16 %v1412_v41  ;;  %v2042_v45 = vunpack.c.h.s8.bf16 %v1428_v43 }
 0x15a   : > { %3355 = vmatpush2.bf16.msra.mxu0 %v1964_v50  ;;  %3396 = vmatpush2.bf16.msra.mxu1 %v1996_v51  ;;  %v1411_v50 = vld [vmem:[%s6291_s10 + $0x118] sm:$0xff] }
 0x15b   : > { %3356 = vmatprep.subr.bf16.mxu0 %v1963_v52  ;;  %3397 = vmatprep.subr.bf16.mxu1 %v1995_v53  ;;  %v1427_v51 = vld [vmem:[%s6291_s10 + $0x198] sm:$0xff]  ;;  %v2008_v52 = vunpack.c.l.s8.bf16 %v1412_v41  ;;  %v2040_v53 = vunpack.c.l.s8.bf16 %v1428_v43  ;;  %v2007_v54 = vunpack.c.h.s8.bf16 %v1411_v50  ;;  %v2005_v60 = vunpack.c.l.s8.bf16 %v1411_v50  ;;  %v1434_v41 = vld [vmem:[%s6291_s10 + $0x1d0] sm:$0xff] }
 0x15c   : > { %v2037_v61 = vunpack.c.l.s8.bf16 %v1427_v51  ;;  %v2054_v43 = vunpack.c.h.s8.bf16 %v1434_v41 }
 0x15e   : > { %3357 = vmatpush2.bf16.msra.mxu0 %v1962_v56  ;;  %3398 = vmatpush2.bf16.msra.mxu1 %v1994_v57  ;;  %v2039_v56 = vunpack.c.h.s8.bf16 %v1427_v51  ;;  %v1426_v57 = vld [vmem:[%s6291_s10 + $0x190] sm:$0xff]  ;;  %v2052_v51 = vunpack.c.l.s8.bf16 %v1434_v41  ;;  %v1440_v41 = vld [vmem:[%s6291_s10 + $0x200] sm:$0xff] }
 0x15f   : > { %3358 = vmatprep.subr.bf16.mxu0 %v1961_v58  ;;  %3399 = vmatprep.subr.bf16.mxu1 %v1993_v59  ;;  %v2006_v58 = vunpack.c.h.s8.bf16 %v1410_v55  ;;  %v2038_v59 = vunpack.c.h.s8.bf16 %v1426_v57 }
 0x162   : > { %3359 = vmatpush2.bf16.msra.mxu0 %v1960_v62  ;;  %3400 = vmatpush2.bf16.msra.mxu1 %v1992_v63  ;;  %v1409_v62 = vld [vmem:[%s6291_s10 + $0x108] sm:$0xff] }
 0x163   : > { %3360 = vmatprep.subr.bf16.mxu0 %v1959_v0  ;;  %3401 = vmatprep.subr.bf16.mxu1 %v1991_v1  ;;  %v1425_v63 = vld [vmem:[%s6291_s10 + $0x188] sm:$0xff]  ;;  %v2004_v0 = vunpack.c.l.s8.bf16 %v1410_v55  ;;  %v2036_v1 = vunpack.c.l.s8.bf16 %v1426_v57  ;;  %v2003_v2 = vunpack.c.h.s8.bf16 %v1409_v62  ;;  %v2001_v8 = vunpack.c.l.s8.bf16 %v1409_v62  ;;  %v1432_v55 = vld [vmem:[%s6291_s10 + $0x1c0] sm:$0xff] }
 0x164   : > { %v2033_v9 = vunpack.c.l.s8.bf16 %v1425_v63  ;;  %v2050_v57 = vunpack.c.h.s8.bf16 %v1432_v55 }
 0x166   : > { %3361 = vmatpush2.bf16.msra.mxu0 %v1958_v4  ;;  %3402 = vmatpush2.bf16.msra.mxu1 %v1990_v5  ;;  %v2035_v4 = vunpack.c.h.s8.bf16 %v1425_v63  ;;  %v1424_v5 = vld [vmem:[%s6291_s10 + $0x180] sm:$0xff]  ;;  %v2048_v63 = vunpack.c.l.s8.bf16 %v1432_v55  ;;  %v1454_v55 = vld [vmem:[%s6291_s10 + $0x270] sm:$0xff] }
 0x167   : > { %3362 = vmatprep.subr.bf16.mxu0 %v1957_v6  ;;  %3403 = vmatprep.subr.bf16.mxu1 %v1989_v7  ;;  %v2002_v6 = vunpack.c.h.s8.bf16 %v1408_v3  ;;  %v2034_v7 = vunpack.c.h.s8.bf16 %v1424_v5 }
 0x16a   : > { %3363 = vmatpush2.bf16.msra.mxu0 %v1956_v10  ;;  %3404 = vmatpush2.bf16.msra.mxu1 %v1988_v11  ;;  %v1423_v10 = vld [vmem:[%s6291_s10 + $0x178] sm:$0xff] }
 0x16b   : > { %3364 = vmatprep.subr.bf16.mxu0 %v1955_v12  ;;  %3405 = vmatprep.subr.bf16.mxu1 %v1987_v13  ;;  %v1439_v11 = vld [vmem:[%s6291_s10 + $0x1f8] sm:$0xff]  ;;  %v2000_v12 = vunpack.c.l.s8.bf16 %v1408_v3  ;;  %v2032_v13 = vunpack.c.l.s8.bf16 %v1424_v5  ;;  %v2031_v14 = vunpack.c.h.s8.bf16 %v1423_v10  ;;  %v2029_v20 = vunpack.c.l.s8.bf16 %v1423_v10  ;;  %v1462_v3 = vld [vmem:[%s6291_s10 + $0x2b0] sm:$0xff] }
 0x16c   : > { %v2061_v21 = vunpack.c.l.s8.bf16 %v1439_v11  ;;  %v4904_v5 = vcombine.low %v6341_v31, %v6341_v31  ;;  %v1445_v31 = vld [vmem:[%s6291_s10 + $0x228] sm:$0xff] }
 0x16e   : > { %3365 = vmatpush2.bf16.msra.mxu0 %v1954_v16  ;;  %3406 = vmatpush2.bf16.msra.mxu1 %v1986_v17  ;;  %v2063_v16 = vunpack.c.h.s8.bf16 %v1439_v11  ;;  %v1438_v17 = vld [vmem:[%s6291_s10 + $0x1f0] sm:$0xff]  ;;  %v1461_v11 = vld [vmem:[%s6291_s10 + $0x2a8] sm:$0xff] }
 0x16f   : > { %3366 = vmatprep.subr.bf16.mxu0 %v1953_v18  ;;  %3407 = vmatprep.subr.bf16.mxu1 %v1985_v19  ;;  %v2030_v18 = vunpack.c.h.s8.bf16 %v1422_v15  ;;  %v2062_v19 = vunpack.c.h.s8.bf16 %v1438_v17  ;;  %v2060_v25 = vunpack.c.l.s8.bf16 %v1438_v17  ;;  %v1444_v17 = vld [vmem:[%s6291_s10 + $0x220] sm:$0xff] }
 0x172   : > { %3367 = vmatpush2.bf16.msra.mxu0 %v1952_v22  ;;  %3408 = vmatpush2.bf16.msra.mxu1 %v1984_v23  ;;  %v1421_v22 = vld [vmem:[%s6291_s10 + $0x168] sm:$0xff] }
 0x173   : > { %3418 = vmatprep.subr.bf16.mxu0 %v2015_v24  ;;  %3459 = vmatprep.subr.bf16.mxu1 %v2047_v26  ;;  %v1437_v23 = vld [vmem:[%s6291_s10 + $0x1e8] sm:$0xff]  ;;  %v2028_v24 = vunpack.c.l.s8.bf16 %v1422_v15  ;;  %v2027_v26 = vunpack.c.h.s8.bf16 %v1421_v22  ;;  %v2108_v15 = vunpack.c.l.s8.bf16 %v1462_v3 }
 0x175   : > { %3369 = vmatmul.mubr.bf16.vlgmr.msra.gmra.mxu0 %v4898_v28  ;;  %3410 = vmatmul.mubr.bf16.vlgmr.msra.gmra.mxu1 %v4900_v29  ;;  %v2059_v28 = vunpack.c.h.s8.bf16 %v1437_v23  ;;  %v1436_v29 = vld [vmem:[%s6291_s10 + $0x1e0] sm:$0xff] }
 0x176   : > { %3419 = vmatpush1.bf16.msra.mxu0 %v2014_v32  ;;  %3460 = vmatpush1.bf16.msra.mxu1 %v2046_v33  ;;  %v2026_v32 = vunpack.c.h.s8.bf16 %v1420_v27  ;;  %v2058_v33 = vunpack.c.h.s8.bf16 %v1436_v29 }
 0x177   : > { %3420 = vmatprep.subr.bf16.mxu0 %v2013_v48  ;;  %3461 = vmatprep.subr.bf16.mxu1 %v2045_v34  ;;  %v2025_v48 = vunpack.c.l.s8.bf16 %v1421_v22  ;;  %v2057_v34 = vunpack.c.l.s8.bf16 %v1437_v23  ;;  %v2073_v22 = vunpack.c.l.s8.bf16 %v1445_v31  ;;  %v2105_v23 = vunpack.c.l.s8.bf16 %v1461_v11 }
 0x178   : > { %3450 = vmatprep.mubr.bf16.mxu0 %v4903_v36  ;;  %3491 = vmatprep.mubr.bf16.mxu1 %v4905_v37  ;;  %v2024_v36 = vunpack.c.l.s8.bf16 %v1420_v27  ;;  %v2056_v37 = vunpack.c.l.s8.bf16 %v1436_v29  ;;  %v1442_v29 = vld [vmem:[%s6291_s10 + $0x210] sm:$0xff] }
 0x17a   : > { %3421 = vmatpush1.bf16.msra.mxu0 %v2012_v38  ;;  %3462 = vmatpush1.bf16.msra.mxu1 %v2044_v39  ;;  %v2023_v38 = vunpack.c.h.s8.bf16 %v1419_v49  ;;  %v1418_v39 = vld [vmem:[%s6291_s10 + $0x150] sm:$0xff] }
 0x17b   : > { %3422 = vmatprep.subr.bf16.mxu0 %v2011_v40  ;;  %3463 = vmatprep.subr.bf16.mxu1 %v2043_v42  ;;  %v2055_v40 = vunpack.c.h.s8.bf16 %v1435_v35  ;;  %v2022_v42 = vunpack.c.h.s8.bf16 %v1418_v39  ;;  %v2020_v50 = vunpack.c.l.s8.bf16 %v1418_v39 }
 0x17e   : > { %3423 = vmatpush1.bf16.msra.mxu0 %v2010_v44  ;;  %3464 = vmatpush1.bf16.msra.mxu1 %v2042_v45  ;;  %v2021_v44 = vunpack.c.l.s8.bf16 %v1419_v49  ;;  %v2053_v45 = vunpack.c.l.s8.bf16 %v1435_v35 }
 0x17f   : > { %3424 = vmatprep.subr.bf16.mxu0 %v2009_v46  ;;  %3465 = vmatprep.subr.bf16.mxu1 %v2041_v47  ;;  %v1417_v46 = vld [vmem:[%s6291_s10 + $0x148] sm:$0xff] }
 0x180   : > { %v1433_v47 = vld [vmem:[%s6291_s10 + $0x1c8] sm:$0xff] }
 0x182   : > { %3425 = vmatpush1.bf16.msra.mxu0 %v2008_v52  ;;  %3466 = vmatpush1.bf16.msra.mxu1 %v2040_v53  ;;  %v2019_v52 = vunpack.c.h.s8.bf16 %v1417_v46  ;;  %v1416_v53 = vld [vmem:[%s6291_s10 + $0x140] sm:$0xff] }
 0x183   : > { %3426 = vmatprep.subr.bf16.mxu0 %v2007_v54  ;;  %3467 = vmatprep.subr.bf16.mxu1 %v2039_v56  ;;  %v2051_v54 = vunpack.c.h.s8.bf16 %v1433_v47  ;;  %v2018_v56 = vunpack.c.h.s8.bf16 %v1416_v53  ;;  %v2016_v62 = vunpack.c.l.s8.bf16 %v1416_v53 }
 0x186   : > { %3427 = vmatpush1.bf16.msra.mxu0 %v2006_v58  ;;  %3468 = vmatpush1.bf16.msra.mxu1 %v2038_v59  ;;  %v2017_v58 = vunpack.c.l.s8.bf16 %v1417_v46  ;;  %v2049_v59 = vunpack.c.l.s8.bf16 %v1433_v47 }
 0x187   : > { %3428 = vmatprep.subr.bf16.mxu0 %v2005_v60  ;;  %3469 = vmatprep.subr.bf16.mxu1 %v2037_v61  ;;  %v1447_v60 = vld [vmem:[%s6291_s10 + $0x238] sm:$0xff] }
 0x188   : > { %v1463_v61 = vld [vmem:[%s6291_s10 + $0x2b8] sm:$0xff] }
 0x189   : > { %v2109_v10 = vunpack.c.l.s8.bf16 %v1463_v61 }
 0x18a   : > { %3429 = vmatpush1.bf16.msra.mxu0 %v2004_v0  ;;  %3470 = vmatpush1.bf16.msra.mxu1 %v2036_v1  ;;  %v2079_v0 = vunpack.c.h.s8.bf16 %v1447_v60  ;;  %v1446_v1 = vld [vmem:[%s6291_s10 + $0x230] sm:$0xff] }
 0x18b   : > { %3430 = vmatprep.subr.bf16.mxu0 %v2003_v2  ;;  %3471 = vmatprep.subr.bf16.mxu1 %v2035_v4  ;;  %v2111_v2 = vunpack.c.h.s8.bf16 %v1463_v61  ;;  %v4902_v4 = vcombine.low %v6336_v30, %v6336_v30  ;;  %v2077_v30 = vunpack.c.l.s8.bf16 %v1447_v60 }
 0x18e   : > { %3431 = vmatpush1.bf16.msra.mxu0 %v2002_v6  ;;  %3472 = vmatpush1.bf16.msra.mxu1 %v2034_v7  ;;  %v6386_v6 = vld [vmem:[%s7259_s0 + $0x20] sm:$0xff]  ;;  %v6391_v7 = vld [vmem:[%s7259_s0 + $0x28] sm:$0xff] }
 0x18f   : > { %3432 = vmatprep.subr.bf16.mxu0 %v2001_v8  ;;  %3473 = vmatprep.subr.bf16.mxu1 %v2033_v9  ;;  %v2078_v8 = vunpack.c.h.s8.bf16 %v1446_v1  ;;  %v2110_v9 = vunpack.c.h.s8.bf16 %v1462_v3  ;;  %v1452_v3 = vld [vmem:[%s6291_s10 + $0x260] sm:$0xff] }
 0x192   : > { %3433 = vmatpush1.bf16.msra.mxu0 %v2000_v12  ;;  %3474 = vmatpush1.bf16.msra.mxu1 %v2032_v13  ;;  %v4907_v12 = vcombine.high %v6386_v6, %v6386_v6  ;;  %v4909_v13 = vcombine.high %v6391_v7, %v6391_v7 }
 0x193   : > { %3434 = vmatprep.subr.bf16.mxu0 %v2031_v14  ;;  %3475 = vmatprep.subr.bf16.mxu1 %v2063_v16  ;;  %v2076_v14 = vunpack.c.l.s8.bf16 %v1446_v1  ;;  %v2075_v16 = vunpack.c.h.s8.bf16 %v1445_v31  ;;  %v1451_v31 = vld [vmem:[%s6291_s10 + $0x258] sm:$0xff] }
 0x196   : > { %3435 = vmatpush2.bf16.msra.mxu0 %v2030_v18  ;;  %3476 = vmatpush2.bf16.msra.mxu1 %v2062_v19  ;;  %v2107_v18 = vunpack.c.h.s8.bf16 %v1461_v11  ;;  %v1460_v19 = vld [vmem:[%s6291_s10 + $0x2a0] sm:$0xff]  ;;  %v1467_v11 = vld [vmem:[%s6291_s10 + $0x2d8] sm:$0xff] }
 0x197   : > { %3436 = vmatprep.subr.bf16.mxu0 %v2029_v20  ;;  %3477 = vmatprep.subr.bf16.mxu1 %v2061_v21  ;;  %v2074_v20 = vunpack.c.h.s8.bf16 %v1444_v17  ;;  %v2106_v21 = vunpack.c.h.s8.bf16 %v1460_v19  ;;  %v2104_v27 = vunpack.c.l.s8.bf16 %v1460_v19 }
 0x19a   : > { %3437 = vmatpush2.bf16.msra.mxu0 %v2028_v24  ;;  %3478 = vmatpush2.bf16.msra.mxu1 %v2060_v25  ;;  %v1443_v24 = vld [vmem:[%s6291_s10 + $0x218] sm:$0xff] }
 0x19b   : > { %3438 = vmatprep.subr.bf16.mxu0 %v2027_v26  ;;  %3479 = vmatprep.subr.bf16.mxu1 %v2059_v28  ;;  %v1459_v25 = vld [vmem:[%s6291_s10 + $0x298] sm:$0xff]  ;;  %v2072_v26 = vunpack.c.l.s8.bf16 %v1444_v17  ;;  %v2071_v28 = vunpack.c.h.s8.bf16 %v1443_v24  ;;  %v2069_v49 = vunpack.c.l.s8.bf16 %v1443_v24  ;;  %v1466_v17 = vld [vmem:[%s6291_s10 + $0x2d0] sm:$0xff] }
 0x19c   : > { %v2101_v35 = vunpack.c.l.s8.bf16 %v1459_v25  ;;  %v2118_v19 = vunpack.c.h.s8.bf16 %v1466_v17 }
 0x19e   : > { %3439 = vmatpush2.bf16.msra.mxu0 %v2026_v32  ;;  %3480 = vmatpush2.bf16.msra.mxu1 %v2058_v33  ;;  %v2103_v32 = vunpack.c.h.s8.bf16 %v1459_v25  ;;  %v1458_v33 = vld [vmem:[%s6291_s10 + $0x290] sm:$0xff]  ;;  %v2116_v25 = vunpack.c.l.s8.bf16 %v1466_v17  ;;  %v1472_v17 = vld [vmem:[%s6291_s10 + $0x300] sm:$0xff] }
 0x19f   : > { %3440 = vmatprep.subr.bf16.mxu0 %v2025_v48  ;;  %3481 = vmatprep.subr.bf16.mxu1 %v2057_v34  ;;  %v2070_v48 = vunpack.c.h.s8.bf16 %v1442_v29  ;;  %v2102_v34 = vunpack.c.h.s8.bf16 %v1458_v33  ;;  %v2100_v39 = vunpack.c.l.s8.bf16 %v1458_v33 }
 0x1a2   : > { %3441 = vmatpush2.bf16.msra.mxu0 %v2024_v36  ;;  %3482 = vmatpush2.bf16.msra.mxu1 %v2056_v37  ;;  %v1441_v36 = vld [vmem:[%s6291_s10 + $0x208] sm:$0xff] }
 0x1a3   : > { %3442 = vmatprep.subr.bf16.mxu0 %v2023_v38  ;;  %3483 = vmatprep.subr.bf16.mxu1 %v2055_v40  ;;  %v1457_v37 = vld [vmem:[%s6291_s10 + $0x288] sm:$0xff]  ;;  %v2068_v38 = vunpack.c.l.s8.bf16 %v1442_v29  ;;  %v2067_v40 = vunpack.c.h.s8.bf16 %v1441_v36  ;;  %v2065_v46 = vunpack.c.l.s8.bf16 %v1441_v36  ;;  %v1464_v29 = vld [vmem:[%s6291_s10 + $0x2c0] sm:$0xff] }
 0x1a4   : > { %v2097_v47 = vunpack.c.l.s8.bf16 %v1457_v37  ;;  %v2114_v33 = vunpack.c.h.s8.bf16 %v1464_v29 }
 0x1a6   : > { %3443 = vmatpush2.bf16.msra.mxu0 %v2022_v42  ;;  %3484 = vmatpush2.bf16.msra.mxu1 %v2054_v43  ;;  %v2099_v42 = vunpack.c.h.s8.bf16 %v1457_v37  ;;  %v1456_v43 = vld [vmem:[%s6291_s10 + $0x280] sm:$0xff]  ;;  %v2112_v37 = vunpack.c.l.s8.bf16 %v1464_v29  ;;  %v1486_v29 = vld [vmem:[%s6291_s10 + $0x370] sm:$0xff] }
 0x1a7   : > { %3444 = vmatprep.subr.bf16.mxu0 %v2021_v44  ;;  %3485 = vmatprep.subr.bf16.mxu1 %v2053_v45  ;;  %v2066_v44 = vunpack.c.h.s8.bf16 %v1440_v41  ;;  %v2098_v45 = vunpack.c.h.s8.bf16 %v1456_v43  ;;  %v2096_v53 = vunpack.c.l.s8.bf16 %v1456_v43  ;;  %v4908_v43 = vcombine.low %v6391_v7, %v6391_v7  ;;  %v1477_v7 = vld [vmem:[%s6291_s10 + $0x328] sm:$0xff] }
 0x1aa   : > { %3445 = vmatpush2.bf16.msra.mxu0 %v2020_v50  ;;  %3486 = vmatpush2.bf16.msra.mxu1 %v2052_v51  ;;  %v1455_v50 = vld [vmem:[%s6291_s10 + $0x278] sm:$0xff] }
 0x1ab   : > { %3446 = vmatprep.subr.bf16.mxu0 %v2019_v52  ;;  %3487 = vmatprep.subr.bf16.mxu1 %v2051_v54  ;;  %v1471_v51 = vld [vmem:[%s6291_s10 + $0x2f8] sm:$0xff]  ;;  %v2064_v52 = vunpack.c.l.s8.bf16 %v1440_v41  ;;  %v2095_v54 = vunpack.c.h.s8.bf16 %v1455_v50  ;;  %v2093_v60 = vunpack.c.l.s8.bf16 %v1455_v50  ;;  %v1494_v41 = vld [vmem:[%s6291_s10 + $0x3b0] sm:$0xff] }
 0x1ac   : > { %v2125_v61 = vunpack.c.l.s8.bf16 %v1471_v51 }
 0x1ae   : > { %3447 = vmatpush2.bf16.msra.mxu0 %v2018_v56  ;;  %3488 = vmatpush2.bf16.msra.mxu1 %v2050_v57  ;;  %v2127_v56 = vunpack.c.h.s8.bf16 %v1471_v51  ;;  %v1470_v57 = vld [vmem:[%s6291_s10 + $0x2f0] sm:$0xff]  ;;  %v1493_v51 = vld [vmem:[%s6291_s10 + $0x3a8] sm:$0xff] }
 0x1af   : > { %3448 = vmatprep.subr.bf16.mxu0 %v2017_v58  ;;  %3489 = vmatprep.subr.bf16.mxu1 %v2049_v59  ;;  %v2094_v58 = vunpack.c.h.s8.bf16 %v1454_v55  ;;  %v2126_v59 = vunpack.c.h.s8.bf16 %v1470_v57  ;;  %v2124_v1 = vunpack.c.l.s8.bf16 %v1470_v57  ;;  %v1476_v57 = vld [vmem:[%s6291_s10 + $0x320] sm:$0xff] }
 0x1b2   : > { %3449 = vmatpush2.bf16.msra.mxu0 %v2016_v62  ;;  %3490 = vmatpush2.bf16.msra.mxu1 %v2048_v63  ;;  %v1453_v62 = vld [vmem:[%s6291_s10 + $0x268] sm:$0xff] }
 0x1b3   : > { %3500 = vmatprep.subr.bf16.mxu0 %v2079_v0  ;;  %3541 = vmatprep.subr.bf16.mxu1 %v2111_v2  ;;  %v1469_v63 = vld [vmem:[%s6291_s10 + $0x2e8] sm:$0xff]  ;;  %v2092_v0 = vunpack.c.l.s8.bf16 %v1454_v55  ;;  %v2091_v2 = vunpack.c.h.s8.bf16 %v1453_v62  ;;  %v2172_v55 = vunpack.c.l.s8.bf16 %v1494_v41 }
 0x1b5   : > { %3451 = vmatmul.mubr.bf16.vlgmr.msra.gmra.mxu0 %v4902_v4  ;;  %3492 = vmatmul.mubr.bf16.vlgmr.msra.gmra.mxu1 %v4904_v5  ;;  %v2123_v4 = vunpack.c.h.s8.bf16 %v1469_v63  ;;  %v1468_v5 = vld [vmem:[%s6291_s10 + $0x2e0] sm:$0xff] }
 0x1b6   : > { %3501 = vmatpush1.bf16.msra.mxu0 %v2078_v8  ;;  %3542 = vmatpush1.bf16.msra.mxu1 %v2110_v9  ;;  %v2090_v8 = vunpack.c.h.s8.bf16 %v1452_v3  ;;  %v2122_v9 = vunpack.c.h.s8.bf16 %v1468_v5 }
 0x1b7   : > { %3502 = vmatprep.subr.bf16.mxu0 %v2077_v30  ;;  %3543 = vmatprep.subr.bf16.mxu1 %v2109_v10  ;;  %v2089_v30 = vunpack.c.l.s8.bf16 %v1453_v62  ;;  %v2121_v10 = vunpack.c.l.s8.bf16 %v1469_v63  ;;  %v2137_v62 = vunpack.c.l.s8.bf16 %v1477_v7  ;;  %v2169_v63 = vunpack.c.l.s8.bf16 %v1493_v51 }
 0x1b8   : > { %3532 = vmatprep.mubr.bf16.mxu0 %v4907_v12  ;;  %3573 = vmatprep.mubr.bf16.mxu1 %v4909_v13  ;;  %v2088_v12 = vunpack.c.l.s8.bf16 %v1452_v3  ;;  %v2120_v13 = vunpack.c.l.s8.bf16 %v1468_v5  ;;  %v1474_v5 = vld [vmem:[%s6291_s10 + $0x310] sm:$0xff] }
 0x1ba   : > { %3503 = vmatpush1.bf16.msra.mxu0 %v2076_v14  ;;  %3544 = vmatpush1.bf16.msra.mxu1 %v2108_v15  ;;  %v2087_v14 = vunpack.c.h.s8.bf16 %v1451_v31  ;;  %v1450_v15 = vld [vmem:[%s6291_s10 + $0x250] sm:$0xff] }
 0x1bb   : > { %3504 = vmatprep.subr.bf16.mxu0 %v2075_v16  ;;  %3545 = vmatprep.subr.bf16.mxu1 %v2107_v18  ;;  %v2119_v16 = vunpack.c.h.s8.bf16 %v1467_v11  ;;  %v2086_v18 = vunpack.c.h.s8.bf16 %v1450_v15  ;;  %v2084_v24 = vunpack.c.l.s8.bf16 %v1450_v15 }
 0x1be   : > { %3505 = vmatpush1.bf16.msra.mxu0 %v2074_v20  ;;  %3546 = vmatpush1.bf16.msra.mxu1 %v2106_v21  ;;  %v2085_v20 = vunpack.c.l.s8.bf16 %v1451_v31  ;;  %v2117_v21 = vunpack.c.l.s8.bf16 %v1467_v11 }
 0x1bf   : > { %3506 = vmatprep.subr.bf16.mxu0 %v2073_v22  ;;  %3547 = vmatprep.subr.bf16.mxu1 %v2105_v23  ;;  %v1449_v22 = vld [vmem:[%s6291_s10 + $0x248] sm:$0xff] }
 0x1c0   : > { %v1465_v23 = vld [vmem:[%s6291_s10 + $0x2c8] sm:$0xff] }
 0x1c2   : > { %3507 = vmatpush1.bf16.msra.mxu0 %v2072_v26  ;;  %3548 = vmatpush1.bf16.msra.mxu1 %v2104_v27  ;;  %v2083_v26 = vunpack.c.h.s8.bf16 %v1449_v22  ;;  %v1448_v27 = vld [vmem:[%s6291_s10 + $0x240] sm:$0xff] }
 0x1c3   : > { %3508 = vmatprep.subr.bf16.mxu0 %v2071_v28  ;;  %3549 = vmatprep.subr.bf16.mxu1 %v2103_v32  ;;  %v2115_v28 = vunpack.c.h.s8.bf16 %v1465_v23  ;;  %v2082_v32 = vunpack.c.h.s8.bf16 %v1448_v27  ;;  %v2080_v36 = vunpack.c.l.s8.bf16 %v1448_v27 }
 0x1c6   : > { %3509 = vmatpush1.bf16.msra.mxu0 %v2070_v48  ;;  %3550 = vmatpush1.bf16.msra.mxu1 %v2102_v34  ;;  %v2081_v48 = vunpack.c.l.s8.bf16 %v1449_v22  ;;  %v2113_v34 = vunpack.c.l.s8.bf16 %v1465_v23 }
 0x1c7   : > { %3510 = vmatprep.subr.bf16.mxu0 %v2069_v49  ;;  %3551 = vmatprep.subr.bf16.mxu1 %v2101_v35  ;;  %v1479_v49 = vld [vmem:[%s6291_s10 + $0x338] sm:$0xff] }
 0x1c8   : > { %v1495_v35 = vld [vmem:[%s6291_s10 + $0x3b8] sm:$0xff] }
 0x1c9   : > { %v2173_v50 = vunpack.c.l.s8.bf16 %v1495_v35 }
 0x1ca   : > { %3511 = vmatpush1.bf16.msra.mxu0 %v2068_v38  ;;  %3552 = vmatpush1.bf16.msra.mxu1 %v2100_v39  ;;  %v2143_v38 = vunpack.c.h.s8.bf16 %v1479_v49  ;;  %v1478_v39 = vld [vmem:[%s6291_s10 + $0x330] sm:$0xff] }
 0x1cb   : > { %3512 = vmatprep.subr.bf16.mxu0 %v2067_v40  ;;  %3553 = vmatprep.subr.bf16.mxu1 %v2099_v42  ;;  %v2175_v40 = vunpack.c.h.s8.bf16 %v1495_v35  ;;  %v4906_v42 = vcombine.low %v6386_v6, %v6386_v6  ;;  %v2141_v6 = vunpack.c.l.s8.bf16 %v1479_v49 }
 0x1ce   : > { %3513 = vmatpush1.bf16.msra.mxu0 %v2066_v44  ;;  %3554 = vmatpush1.bf16.msra.mxu1 %v2098_v45  ;;  %v6436_v44 = vld [vmem:[%s7259_s0 + $0x30] sm:$0xff]  ;;  %v6441_v45 = vld [vmem:[%s7259_s0 + $0x38] sm:$0xff] }
 0x1cf   : > { %3514 = vmatprep.subr.bf16.mxu0 %v2065_v46  ;;  %3555 = vmatprep.subr.bf16.mxu1 %v2097_v47  ;;  %v2142_v46 = vunpack.c.h.s8.bf16 %v1478_v39  ;;  %v2174_v47 = vunpack.c.h.s8.bf16 %v1494_v41  ;;  %v1484_v41 = vld [vmem:[%s6291_s10 + $0x360] sm:$0xff] }
 0x1d2   : > { %3515 = vmatpush1.bf16.msra.mxu0 %v2064_v52  ;;  %3556 = vmatpush1.bf16.msra.mxu1 %v2096_v53  ;;  %v4911_v52 = vcombine.high %v6436_v44, %v6436_v44  ;;  %v4913_v53 = vcombine.high %v6441_v45, %v6441_v45 }
 0x1d3   : > { %3516 = vmatprep.subr.bf16.mxu0 %v2095_v54  ;;  %3557 = vmatprep.subr.bf16.mxu1 %v2127_v56  ;;  %v2140_v54 = vunpack.c.l.s8.bf16 %v1478_v39  ;;  %v2139_v56 = vunpack.c.h.s8.bf16 %v1477_v7  ;;  %v1483_v7 = vld [vmem:[%s6291_s10 + $0x358] sm:$0xff] }
 0x1d6   : > { %3517 = vmatpush2.bf16.msra.mxu0 %v2094_v58  ;;  %3558 = vmatpush2.bf16.msra.mxu1 %v2126_v59  ;;  %v2171_v58 = vunpack.c.h.s8.bf16 %v1493_v51  ;;  %v1492_v59 = vld [vmem:[%s6291_s10 + $0x3a0] sm:$0xff]  ;;  %v1499_v51 = vld [vmem:[%s6291_s10 + $0x3d8] sm:$0xff] }
 0x1d7   : > { %3518 = vmatprep.subr.bf16.mxu0 %v2093_v60  ;;  %3559 = vmatprep.subr.bf16.mxu1 %v2125_v61  ;;  %v2138_v60 = vunpack.c.h.s8.bf16 %v1476_v57  ;;  %v2170_v61 = vunpack.c.h.s8.bf16 %v1492_v59  ;;  %v2168_v3 = vunpack.c.l.s8.bf16 %v1492_v59 }
 0x1da   : > { %3519 = vmatpush2.bf16.msra.mxu0 %v2092_v0  ;;  %3560 = vmatpush2.bf16.msra.mxu1 %v2124_v1  ;;  %v1475_v0 = vld [vmem:[%s6291_s10 + $0x318] sm:$0xff] }
 0x1db   : > { %3520 = vmatprep.subr.bf16.mxu0 %v2091_v2  ;;  %3561 = vmatprep.subr.bf16.mxu1 %v2123_v4  ;;  %v1491_v1 = vld [vmem:[%s6291_s10 + $0x398] sm:$0xff]  ;;  %v2136_v2 = vunpack.c.l.s8.bf16 %v1476_v57  ;;  %v2135_v4 = vunpack.c.h.s8.bf16 %v1475_v0  ;;  %v2133_v31 = vunpack.c.l.s8.bf16 %v1475_v0  ;;  %v1498_v57 = vld [vmem:[%s6291_s10 + $0x3d0] sm:$0xff] }
 0x1dc   : > { %v2165_v11 = vunpack.c.l.s8.bf16 %v1491_v1  ;;  %v2182_v59 = vunpack.c.h.s8.bf16 %v1498_v57 }
 0x1de   : > { %3521 = vmatpush2.bf16.msra.mxu0 %v2090_v8  ;;  %3562 = vmatpush2.bf16.msra.mxu1 %v2122_v9  ;;  %v2167_v8 = vunpack.c.h.s8.bf16 %v1491_v1  ;;  %v1490_v9 = vld [vmem:[%s6291_s10 + $0x390] sm:$0xff]  ;;  %v2180_v1 = vunpack.c.l.s8.bf16 %v1498_v57 }
 0x1df   : > { %3522 = vmatprep.subr.bf16.mxu0 %v2089_v30  ;;  %3563 = vmatprep.subr.bf16.mxu1 %v2121_v10  ;;  %v2134_v30 = vunpack.c.h.s8.bf16 %v1474_v5  ;;  %v2166_v10 = vunpack.c.h.s8.bf16 %v1490_v9  ;;  %v2164_v15 = vunpack.c.l.s8.bf16 %v1490_v9  ;;  %v1522_v57 = vld [vmem:[%s6291_s10 + $0x490] sm:$0xff] }
 0x1e2   : > { %3523 = vmatpush2.bf16.msra.mxu0 %v2088_v12  ;;  %3564 = vmatpush2.bf16.msra.mxu1 %v2120_v13  ;;  %v1473_v12 = vld [vmem:[%s6291_s10 + $0x308] sm:$0xff] }
 0x1e3   : > { %3524 = vmatprep.subr.bf16.mxu0 %v2087_v14  ;;  %3565 = vmatprep.subr.bf16.mxu1 %v2119_v16  ;;  %v1489_v13 = vld [vmem:[%s6291_s10 + $0x388] sm:$0xff]  ;;  %v2132_v14 = vunpack.c.l.s8.bf16 %v1474_v5  ;;  %v2131_v16 = vunpack.c.h.s8.bf16 %v1473_v12  ;;  %v2129_v22 = vunpack.c.l.s8.bf16 %v1473_v12  ;;  %v1496_v5 = vld [vmem:[%s6291_s10 + $0x3c0] sm:$0xff] }
 0x1e4   : > { %v2161_v23 = vunpack.c.l.s8.bf16 %v1489_v13  ;;  %v2178_v9 = vunpack.c.h.s8.bf16 %v1496_v5 }
 0x1e6   : > { %3525 = vmatpush2.bf16.msra.mxu0 %v2086_v18  ;;  %3566 = vmatpush2.bf16.msra.mxu1 %v2118_v19  ;;  %v2163_v18 = vunpack.c.h.s8.bf16 %v1489_v13  ;;  %v1488_v19 = vld [vmem:[%s6291_s10 + $0x380] sm:$0xff]  ;;  %v2176_v13 = vunpack.c.l.s8.bf16 %v1496_v5 }
 0x1e7   : > { %3526 = vmatprep.subr.bf16.mxu0 %v2085_v20  ;;  %3567 = vmatprep.subr.bf16.mxu1 %v2117_v21  ;;  %v2130_v20 = vunpack.c.h.s8.bf16 %v1472_v17  ;;  %v2162_v21 = vunpack.c.h.s8.bf16 %v1488_v19  ;;  %v2160_v27 = vunpack.c.l.s8.bf16 %v1488_v19  ;;  %v4912_v19 = vcombine.low %v6441_v45, %v6441_v45  ;;  %v1525_v45 = vld [vmem:[%s6291_s10 + $0x4a8] sm:$0xff]  ;;  %v1520_v5 = vld [vmem:[%s6291_s10 + $0x480] sm:$0xff] }
 0x1ea   : > { %3527 = vmatpush2.bf16.msra.mxu0 %v2084_v24  ;;  %3568 = vmatpush2.bf16.msra.mxu1 %v2116_v25  ;;  %v1487_v24 = vld [vmem:[%s6291_s10 + $0x378] sm:$0xff] }
 0x1eb   : > { %3528 = vmatprep.subr.bf16.mxu0 %v2083_v26  ;;  %3569 = vmatprep.subr.bf16.mxu1 %v2115_v28  ;;  %v1503_v25 = vld [vmem:[%s6291_s10 + $0x3f8] sm:$0xff]  ;;  %v2128_v26 = vunpack.c.l.s8.bf16 %v1472_v17  ;;  %v2159_v28 = vunpack.c.h.s8.bf16 %v1487_v24  ;;  %v2157_v49 = vunpack.c.l.s8.bf16 %v1487_v24  ;;  %v1526_v17 = vld [vmem:[%s6291_s10 + $0x4b0] sm:$0xff] }
 0x1ec   : > { %v2189_v35 = vunpack.c.l.s8.bf16 %v1503_v25 }
 0x1ee   : > { %3529 = vmatpush2.bf16.msra.mxu0 %v2082_v32  ;;  %3570 = vmatpush2.bf16.msra.mxu1 %v2114_v33  ;;  %v2191_v32 = vunpack.c.h.s8.bf16 %v1503_v25  ;;  %v1502_v33 = vld [vmem:[%s6291_s10 + $0x3f0] sm:$0xff]  ;;  %v1509_v25 = vld [vmem:[%s6291_s10 + $0x428] sm:$0xff] }
 0x1ef   : > { %3530 = vmatprep.subr.bf16.mxu0 %v2081_v48  ;;  %3571 = vmatprep.subr.bf16.mxu1 %v2113_v34  ;;  %v2158_v48 = vunpack.c.h.s8.bf16 %v1486_v29  ;;  %v2190_v34 = vunpack.c.h.s8.bf16 %v1502_v33  ;;  %v2188_v39 = vunpack.c.l.s8.bf16 %v1502_v33 }
 0x1f2   : > { %3531 = vmatpush2.bf16.msra.mxu0 %v2080_v36  ;;  %3572 = vmatpush2.bf16.msra.mxu1 %v2112_v37  ;;  %v1485_v36 = vld [vmem:[%s6291_s10 + $0x368] sm:$0xff] }
 0x1f3   : > { %3582 = vmatprep.subr.bf16.mxu0 %v2143_v38  ;;  %3623 = vmatprep.subr.bf16.mxu1 %v2175_v40  ;;  %v1501_v37 = vld [vmem:[%s6291_s10 + $0x3e8] sm:$0xff]  ;;  %v2156_v38 = vunpack.c.l.s8.bf16 %v1486_v29  ;;  %v2155_v40 = vunpack.c.h.s8.bf16 %v1485_v36 }
 0x1f5   : > { %3533 = vmatmul.mubr.bf16.vlgmr.msra.gmra.mxu0 %v4906_v42  ;;  %3574 = vmatmul.mubr.bf16.vlgmr.msra.gmra.mxu1 %v4908_v43  ;;  %v2187_v42 = vunpack.c.h.s8.bf16 %v1501_v37  ;;  %v1500_v43 = vld [vmem:[%s6291_s10 + $0x3e0] sm:$0xff] }
 0x1f6   : > { %3583 = vmatpush1.bf16.msra.mxu0 %v2142_v46  ;;  %3624 = vmatpush1.bf16.msra.mxu1 %v2174_v47  ;;  %v2154_v46 = vunpack.c.h.s8.bf16 %v1484_v41  ;;  %v2186_v47 = vunpack.c.h.s8.bf16 %v1500_v43 }
 0x1f7   : > { %3584 = vmatprep.subr.bf16.mxu0 %v2141_v6  ;;  %3625 = vmatprep.subr.bf16.mxu1 %v2173_v50  ;;  %v2153_v6 = vunpack.c.l.s8.bf16 %v1485_v36  ;;  %v2185_v50 = vunpack.c.l.s8.bf16 %v1501_v37  ;;  %v1508_v36 = vld [vmem:[%s6291_s10 + $0x420] sm:$0xff]  ;;  %v2235_v37 = vunpack.c.h.s8.bf16 %v1525_v45 }
 0x1f8   : > { %3614 = vmatprep.mubr.bf16.mxu0 %v4911_v52  ;;  %3655 = vmatprep.mubr.bf16.mxu1 %v4913_v53  ;;  %v2152_v52 = vunpack.c.l.s8.bf16 %v1484_v41  ;;  %v2184_v53 = vunpack.c.l.s8.bf16 %v1500_v43 }
 0x1fa   : > { %3585 = vmatpush1.bf16.msra.mxu0 %v2140_v54  ;;  %3626 = vmatpush1.bf16.msra.mxu1 %v2172_v55  ;;  %v2151_v54 = vunpack.c.h.s8.bf16 %v1483_v7  ;;  %v1482_v55 = vld [vmem:[%s6291_s10 + $0x350] sm:$0xff] }
 0x1fb   : > { %3586 = vmatprep.subr.bf16.mxu0 %v2139_v56  ;;  %3627 = vmatprep.subr.bf16.mxu1 %v2171_v58  ;;  %v2183_v56 = vunpack.c.h.s8.bf16 %v1499_v51  ;;  %v2150_v58 = vunpack.c.h.s8.bf16 %v1482_v55  ;;  %v2148_v0 = vunpack.c.l.s8.bf16 %v1482_v55  ;;  %v1506_v55 = vld [vmem:[%s6291_s10 + $0x410] sm:$0xff] }
 0x1fe   : > { %3587 = vmatpush1.bf16.msra.mxu0 %v2138_v60  ;;  %3628 = vmatpush1.bf16.msra.mxu1 %v2170_v61  ;;  %v2149_v60 = vunpack.c.l.s8.bf16 %v1483_v7  ;;  %v2181_v61 = vunpack.c.l.s8.bf16 %v1499_v51  ;;  %v1507_v7 = vld [vmem:[%s6291_s10 + $0x418] sm:$0xff] }
 0x1ff   : > { %3588 = vmatprep.subr.bf16.mxu0 %v2137_v62  ;;  %3629 = vmatprep.subr.bf16.mxu1 %v2169_v63  ;;  %v1481_v62 = vld [vmem:[%s6291_s10 + $0x348] sm:$0xff]  ;;  %v1523_v51 = vld [vmem:[%s6291_s10 + $0x498] sm:$0xff] }
 0x200   : > { %v1497_v63 = vld [vmem:[%s6291_s10 + $0x3c8] sm:$0xff] }
 0x202   : > { %3589 = vmatpush1.bf16.msra.mxu0 %v2136_v2  ;;  %3630 = vmatpush1.bf16.msra.mxu1 %v2168_v3  ;;  %v2147_v2 = vunpack.c.h.s8.bf16 %v1481_v62  ;;  %v1480_v3 = vld [vmem:[%s6291_s10 + $0x340] sm:$0xff] }
 0x203   : > { %3590 = vmatprep.subr.bf16.mxu0 %v2135_v4  ;;  %3631 = vmatprep.subr.bf16.mxu1 %v2167_v8  ;;  %v2179_v4 = vunpack.c.h.s8.bf16 %v1497_v63  ;;  %v2146_v8 = vunpack.c.h.s8.bf16 %v1480_v3  ;;  %v2144_v12 = vunpack.c.l.s8.bf16 %v1480_v3  ;;  %v1504_v3 = vld [vmem:[%s6291_s10 + $0x400] sm:$0xff] }
 0x206   : > { %3591 = vmatpush1.bf16.msra.mxu0 %v2134_v30  ;;  %3632 = vmatpush1.bf16.msra.mxu1 %v2166_v10  ;;  %v2145_v30 = vunpack.c.l.s8.bf16 %v1481_v62  ;;  %v2177_v10 = vunpack.c.l.s8.bf16 %v1497_v63  ;;  %v1505_v62 = vld [vmem:[%s6291_s10 + $0x408] sm:$0xff] }
 0x207   : > { %3592 = vmatprep.subr.bf16.mxu0 %v2133_v31  ;;  %3633 = vmatprep.subr.bf16.mxu1 %v2165_v11  ;;  %v1511_v31 = vld [vmem:[%s6291_s10 + $0x438] sm:$0xff]  ;;  %v1521_v63 = vld [vmem:[%s6291_s10 + $0x488] sm:$0xff] }
 0x208   : > { %v1527_v11 = vld [vmem:[%s6291_s10 + $0x4b8] sm:$0xff] }
 0x209   : > { %v2237_v24 = vunpack.c.l.s8.bf16 %v1527_v11 }
 0x20a   : > { %3593 = vmatpush1.bf16.msra.mxu0 %v2132_v14  ;;  %3634 = vmatpush1.bf16.msra.mxu1 %v2164_v15  ;;  %v2207_v14 = vunpack.c.h.s8.bf16 %v1511_v31  ;;  %v1510_v15 = vld [vmem:[%s6291_s10 + $0x430] sm:$0xff] }
 0x20b   : > { %3594 = vmatprep.subr.bf16.mxu0 %v2131_v16  ;;  %3635 = vmatprep.subr.bf16.mxu1 %v2163_v18  ;;  %v2239_v16 = vunpack.c.h.s8.bf16 %v1527_v11  ;;  %v4910_v18 = vcombine.low %v6436_v44, %v6436_v44  ;;  %v2205_v44 = vunpack.c.l.s8.bf16 %v1511_v31  ;;  %v2204_v33 = vunpack.c.l.s8.bf16 %v1510_v15  ;;  %v1519_v31 = vld [vmem:[%s6291_s10 + $0x478] sm:$0xff] }
 0x20c   : > { %v1535_v11 = vld [vmem:[%s6291_s10 + $0x4f8] sm:$0xff] }
 0x20e   : > { %3595 = vmatpush1.bf16.msra.mxu0 %v2130_v20  ;;  %3636 = vmatpush1.bf16.msra.mxu1 %v2162_v21  ;;  %v6486_v20 = vld [vmem:[%s7259_s0 + $0x40] sm:$0xff]  ;;  %v6491_v21 = vld [vmem:[%s7259_s0 + $0x48] sm:$0xff] }
 0x20f   : > { %3596 = vmatprep.subr.bf16.mxu0 %v2129_v22  ;;  %3637 = vmatprep.subr.bf16.mxu1 %v2161_v23  ;;  %v2206_v22 = vunpack.c.h.s8.bf16 %v1510_v15  ;;  %v2238_v23 = vunpack.c.h.s8.bf16 %v1526_v17  ;;  %v1518_v15 = vld [vmem:[%s6291_s10 + $0x470] sm:$0xff] }
 0x212   : > { %3597 = vmatpush1.bf16.msra.mxu0 %v2128_v26  ;;  %3638 = vmatpush1.bf16.msra.mxu1 %v2160_v27  ;;  %v4915_v26 = vcombine.high %v6486_v20, %v6486_v20  ;;  %v4917_v27 = vcombine.high %v6491_v21, %v6491_v21 }
 0x213   : > { %3598 = vmatprep.subr.bf16.mxu0 %v2159_v28  ;;  %3639 = vmatprep.subr.bf16.mxu1 %v2191_v32 }
 0x216   : > { %3599 = vmatpush2.bf16.msra.mxu0 %v2158_v48  ;;  %3640 = vmatpush2.bf16.msra.mxu1 %v2190_v34  ;;  %v2236_v48 = vunpack.c.l.s8.bf16 %v1526_v17  ;;  %v1534_v17 = vld [vmem:[%s6291_s10 + $0x4f0] sm:$0xff] }
 0x217   : > { %3600 = vmatprep.subr.bf16.mxu0 %v2157_v49  ;;  %3641 = vmatprep.subr.bf16.mxu1 %v2189_v35  ;;  %v2203_v35 = vunpack.c.h.s8.bf16 %v1509_v25 }
 0x21a   : > { %3601 = vmatpush2.bf16.msra.mxu0 %v2156_v38  ;;  %3642 = vmatpush2.bf16.msra.mxu1 %v2188_v39  ;;  %v1524_v38 = vld [vmem:[%s6291_s10 + $0x4a0] sm:$0xff] }
 0x21b   : > { %3602 = vmatprep.subr.bf16.mxu0 %v2155_v40  ;;  %3643 = vmatprep.subr.bf16.mxu1 %v2187_v42  ;;  %v2202_v42 = vunpack.c.h.s8.bf16 %v1508_v36  ;;  %v2234_v43 = vunpack.c.h.s8.bf16 %v1524_v38 }
 0x21e   : > { %3603 = vmatpush2.bf16.msra.mxu0 %v2154_v46  ;;  %3644 = vmatpush2.bf16.msra.mxu1 %v2186_v47  ;;  %v2201_v47 = vunpack.c.l.s8.bf16 %v1509_v25  ;;  %v2220_v25 = vunpack.c.l.s8.bf16 %v1518_v15 }
 0x21f   : > { %3604 = vmatprep.subr.bf16.mxu0 %v2153_v6  ;;  %3645 = vmatprep.subr.bf16.mxu1 %v2185_v50  ;;  %v2233_v6 = vunpack.c.l.s8.bf16 %v1525_v45  ;;  %v2252_v45 = vunpack.c.l.s8.bf16 %v1534_v17 }
 0x222   : > { %3605 = vmatpush2.bf16.msra.mxu0 %v2152_v52  ;;  %3646 = vmatpush2.bf16.msra.mxu1 %v2184_v53  ;;  %v2200_v52 = vunpack.c.l.s8.bf16 %v1508_v36  ;;  %v2232_v53 = vunpack.c.l.s8.bf16 %v1524_v38  ;;  %v1531_v36 = vld [vmem:[%s6291_s10 + $0x4d8] sm:$0xff] }
 0x223   : > { %3606 = vmatprep.subr.bf16.mxu0 %v2151_v54  ;;  %3647 = vmatprep.subr.bf16.mxu1 %v2183_v56  ;;  %v2199_v54 = vunpack.c.h.s8.bf16 %v1507_v7  ;;  %v2231_v56 = vunpack.c.h.s8.bf16 %v1523_v51 }
 0x226   : > { %3607 = vmatpush2.bf16.msra.mxu0 %v2150_v58  ;;  %3648 = vmatpush2.bf16.msra.mxu1 %v2182_v59  ;;  %v2198_v58 = vunpack.c.h.s8.bf16 %v1506_v55  ;;  %v2230_v59 = vunpack.c.h.s8.bf16 %v1522_v57 }
 0x227   : > { %3608 = vmatprep.subr.bf16.mxu0 %v2149_v60  ;;  %3649 = vmatprep.subr.bf16.mxu1 %v2181_v61  ;;  %v2197_v60 = vunpack.c.l.s8.bf16 %v1507_v7  ;;  %v2229_v61 = vunpack.c.l.s8.bf16 %v1523_v51  ;;  %v1513_v7 = vld [vmem:[%s6291_s10 + $0x448] sm:$0xff] }
 0x228   : > { %v1529_v51 = vld [vmem:[%s6291_s10 + $0x4c8] sm:$0xff] }
 0x22a   : > { %3609 = vmatpush2.bf16.msra.mxu0 %v2148_v0  ;;  %3650 = vmatpush2.bf16.msra.mxu1 %v2180_v1  ;;  %v2196_v0 = vunpack.c.l.s8.bf16 %v1506_v55  ;;  %v2228_v1 = vunpack.c.l.s8.bf16 %v1522_v57  ;;  %v1512_v55 = vld [vmem:[%s6291_s10 + $0x440] sm:$0xff] }
 0x22b   : > { %3610 = vmatprep.subr.bf16.mxu0 %v2147_v2  ;;  %3651 = vmatprep.subr.bf16.mxu1 %v2179_v4  ;;  %v2195_v2 = vunpack.c.h.s8.bf16 %v1505_v62  ;;  %v2227_v4 = vunpack.c.h.s8.bf16 %v1521_v63  ;;  %v1528_v57 = vld [vmem:[%s6291_s10 + $0x4c0] sm:$0xff] }
 0x22e   : > { %3611 = vmatpush2.bf16.msra.mxu0 %v2146_v8  ;;  %3652 = vmatpush2.bf16.msra.mxu1 %v2178_v9  ;;  %v2194_v8 = vunpack.c.h.s8.bf16 %v1504_v3  ;;  %v2226_v9 = vunpack.c.h.s8.bf16 %v1520_v5 }
 0x22f   : > { %3612 = vmatprep.subr.bf16.mxu0 %v2145_v30  ;;  %3653 = vmatprep.subr.bf16.mxu1 %v2177_v10  ;;  %v2193_v30 = vunpack.c.l.s8.bf16 %v1505_v62  ;;  %v2225_v10 = vunpack.c.l.s8.bf16 %v1521_v63  ;;  %v1543_v62 = vld [vmem:[%s6291_s10 + $0x538] sm:$0xff] }
 0x230   : > { %v1559_v63 = vld [vmem:[%s6291_s10 + $0x5b8] sm:$0xff] }
 0x232   : > { %3613 = vmatpush2.bf16.msra.mxu0 %v2144_v12  ;;  %3654 = vmatpush2.bf16.msra.mxu1 %v2176_v13  ;;  %v2192_v12 = vunpack.c.l.s8.bf16 %v1504_v3  ;;  %v2224_v13 = vunpack.c.l.s8.bf16 %v1520_v5  ;;  %v1542_v3 = vld [vmem:[%s6291_s10 + $0x530] sm:$0xff] }
 0x233   : > { %3664 = vmatprep.subr.bf16.mxu0 %v2207_v14  ;;  %3705 = vmatprep.subr.bf16.mxu1 %v2239_v16  ;;  %v2223_v14 = vunpack.c.h.s8.bf16 %v1519_v31  ;;  %v2255_v16 = vunpack.c.h.s8.bf16 %v1535_v11  ;;  %v1558_v5 = vld [vmem:[%s6291_s10 + $0x5b0] sm:$0xff] }
 0x235   : > { %v3370_v28 = vpop.f32.mrf.mxu0  ;;  %v3411_v29 = vpop.f32.mrf.mxu1  ;;  %3615 = vmatmul.mubr.bf16.vlgmr.msra.gmra.mxu0 %v4910_v18  ;;  %3656 = vmatmul.mubr.bf16.vlgmr.msra.gmra.mxu1 %v4912_v19  ;;  %v2222_v18 = vunpack.c.h.s8.bf16 %v1518_v15  ;;  %v2254_v19 = vunpack.c.h.s8.bf16 %v1534_v17 }
 0x236   : > { %v6499_v32 = vadd.f32 %v3411_v29, %v3370_v28  ;;  %3665 = vmatpush1.bf16.msra.mxu0 %v2206_v22  ;;  %3706 = vmatpush1.bf16.msra.mxu1 %v2238_v23  ;;  %v2221_v22 = vunpack.c.l.s8.bf16 %v1519_v31  ;;  %v2253_v23 = vunpack.c.l.s8.bf16 %v1535_v11  ;;  %v1532_v29 = vld [vmem:[%s6291_s10 + $0x4e0] sm:$0xff]  ;;  %v2270_v31 = vunpack.c.h.s8.bf16 %v1542_v3 }
 0x237   : > { %v3372_v34 = vpop.f32.mrf.mxu0  ;;  %v3413_v49 = vpop.f32.mrf.mxu1  ;;  %3666 = vmatprep.subr.bf16.mxu0 %v2205_v44  ;;  %3707 = vmatprep.subr.bf16.mxu1 %v2237_v24  ;;  %v1517_v44 = vld [vmem:[%s6291_s10 + $0x468] sm:$0xff]  ;;  %v2248_v38 = vunpack.c.l.s8.bf16 %v1532_v29  ;;  %v2302_v11 = vunpack.c.h.s8.bf16 %v1558_v5 }
 0x238   : > { %v6503_v39 = vadd.f32 %v3413_v49, %v3372_v34  ;;  %3696 = vmatprep.mubr.bf16.mxu0 %v4915_v26  ;;  %3737 = vmatprep.mubr.bf16.mxu1 %v4917_v27  ;;  %v1533_v24 = vld [vmem:[%s6291_s10 + $0x4e8] sm:$0xff]  ;;  %v2219_v26 = vunpack.c.h.s8.bf16 %v1517_v44  ;;  %v1516_v27 = vld [vmem:[%s6291_s10 + $0x460] sm:$0xff]  ;;  %v2217_v34 = vunpack.c.l.s8.bf16 %v1517_v44 }
 0x239   : > { %v3374_v40 = vpop.f32.mrf.mxu0  ;;  %v3415_v41 = vpop.f32.mrf.mxu1  ;;  %v2251_v28 = vunpack.c.h.s8.bf16 %v1533_v24  ;;  %v2249_v49 = vunpack.c.l.s8.bf16 %v1533_v24 }
 0x23a   : > { %3667 = vmatpush1.bf16.msra.mxu0 %v2204_v33  ;;  %3708 = vmatpush1.bf16.msra.mxu1 %v2236_v48  ;;  %v2218_v33 = vunpack.c.h.s8.bf16 %v1516_v27  ;;  %v2250_v48 = vunpack.c.h.s8.bf16 %v1532_v29  ;;  %v1514_v41 = vld [vmem:[%s6291_s10 + $0x450] sm:$0xff] }
 0x23b   : > { %v3375_v46 = vpop.f32.mrf.mxu0  ;;  %3668 = vmatprep.subr.bf16.mxu0 %v2203_v35  ;;  %3709 = vmatprep.subr.bf16.mxu1 %v2235_v37  ;;  %v3416_v50 = vpop.f32.mrf.mxu1  ;;  %v1515_v35 = vld [vmem:[%s6291_s10 + $0x458] sm:$0xff]  ;;  %v2216_v37 = vunpack.c.l.s8.bf16 %v1516_v27 }
 0x23c   : > { %v2215_v40 = vunpack.c.h.s8.bf16 %v1515_v35  ;;  %v2214_v46 = vunpack.c.h.s8.bf16 %v1514_v41  ;;  %v2245_v50 = vunpack.c.l.s8.bf16 %v1531_v36 }
 0x23e   : > { %3669 = vmatpush1.bf16.msra.mxu0 %v2202_v42  ;;  %3710 = vmatpush1.bf16.msra.mxu1 %v2234_v43  ;;  %v2247_v42 = vunpack.c.h.s8.bf16 %v1531_v36  ;;  %v1530_v43 = vld [vmem:[%s6291_s10 + $0x4d0] sm:$0xff] }
 0x23f   : > { %3670 = vmatprep.subr.bf16.mxu0 %v2201_v47  ;;  %3711 = vmatprep.subr.bf16.mxu1 %v2233_v6  ;;  %v2246_v47 = vunpack.c.h.s8.bf16 %v1530_v43  ;;  %v2213_v6 = vunpack.c.l.s8.bf16 %v1515_v35 }
 0x242   : > { %3671 = vmatpush1.bf16.msra.mxu0 %v2200_v52  ;;  %3712 = vmatpush1.bf16.msra.mxu1 %v2232_v53  ;;  %v2212_v52 = vunpack.c.l.s8.bf16 %v1514_v41  ;;  %v2244_v53 = vunpack.c.l.s8.bf16 %v1530_v43  ;;  %v1538_v43 = vld [vmem:[%s6291_s10 + $0x510] sm:$0xff] }
 0x243   : > { %3672 = vmatprep.subr.bf16.mxu0 %v2199_v54  ;;  %3713 = vmatprep.subr.bf16.mxu1 %v2231_v56  ;;  %v2211_v54 = vunpack.c.h.s8.bf16 %v1513_v7  ;;  %v2243_v56 = vunpack.c.h.s8.bf16 %v1529_v51 }
 0x246   : > { %3673 = vmatpush1.bf16.msra.mxu0 %v2198_v58  ;;  %3714 = vmatpush1.bf16.msra.mxu1 %v2230_v59  ;;  %v2210_v58 = vunpack.c.h.s8.bf16 %v1512_v55  ;;  %v2242_v59 = vunpack.c.h.s8.bf16 %v1528_v57 }
 0x247   : > { %3674 = vmatprep.subr.bf16.mxu0 %v2197_v60  ;;  %3715 = vmatprep.subr.bf16.mxu1 %v2229_v61  ;;  %v2209_v60 = vunpack.c.l.s8.bf16 %v1513_v7  ;;  %v2241_v61 = vunpack.c.l.s8.bf16 %v1529_v51 }
 0x24a   : > { %3675 = vmatpush1.bf16.msra.mxu0 %v2196_v0  ;;  %3716 = vmatpush1.bf16.msra.mxu1 %v2228_v1  ;;  %v2208_v0 = vunpack.c.l.s8.bf16 %v1512_v55  ;;  %v2240_v1 = vunpack.c.l.s8.bf16 %v1528_v57  ;;  %v1536_v57 = vld [vmem:[%s6291_s10 + $0x500] sm:$0xff] }
 0x24b   : > { %3676 = vmatprep.subr.bf16.mxu0 %v2195_v2  ;;  %3717 = vmatprep.subr.bf16.mxu1 %v2227_v4  ;;  %v2271_v2 = vunpack.c.h.s8.bf16 %v1543_v62  ;;  %v2303_v4 = vunpack.c.h.s8.bf16 %v1559_v63 }
 0x24e   : > { %3677 = vmatpush1.bf16.msra.mxu0 %v2194_v8  ;;  %3718 = vmatpush1.bf16.msra.mxu1 %v2226_v9  ;;  %v4914_v8 = vcombine.low %v6486_v20, %v6486_v20  ;;  %v4916_v9 = vcombine.low %v6491_v21, %v6491_v21  ;;  %v2269_v20 = vunpack.c.l.s8.bf16 %v1543_v62  ;;  %v1557_v21 = vld [vmem:[%s6291_s10 + $0x5a8] sm:$0xff] }
 0x24f   : > { %3678 = vmatprep.subr.bf16.mxu0 %v2193_v30  ;;  %3719 = vmatprep.subr.bf16.mxu1 %v2225_v10  ;;  %v6540_v30 = vld [vmem:[%s7259_s0 + $0x50] sm:$0xff]  ;;  %v6545_v10 = vld [vmem:[%s7259_s0 + $0x58] sm:$0xff]  ;;  %v2297_v35 = vunpack.c.l.s8.bf16 %v1557_v21 }
 0x250   : > { %v4921_v15 = vcombine.high %v6545_v10, %v6545_v10 }
 0x252   : > { %3679 = vmatpush1.bf16.msra.mxu0 %v2192_v12  ;;  %3720 = vmatpush1.bf16.msra.mxu1 %v2224_v13  ;;  %v2301_v12 = vunpack.c.l.s8.bf16 %v1559_v63  ;;  %v1541_v13 = vld [vmem:[%s6291_s10 + $0x528] sm:$0xff] }
 0x253   : > { %3680 = vmatprep.subr.bf16.mxu0 %v2223_v14  ;;  %3721 = vmatprep.subr.bf16.mxu1 %v2255_v16  ;;  %v4919_v14 = vcombine.high %v6540_v30, %v6540_v30  ;;  %v2267_v24 = vunpack.c.h.s8.bf16 %v1541_v13 }
 0x256   : > { %3681 = vmatpush2.bf16.msra.mxu0 %v2222_v18  ;;  %3722 = vmatpush2.bf16.msra.mxu1 %v2254_v19  ;;  %v2268_v19 = vunpack.c.l.s8.bf16 %v1542_v3 }
 0x257   : > { %3682 = vmatprep.subr.bf16.mxu0 %v2221_v22  ;;  %3723 = vmatprep.subr.bf16.mxu1 %v2253_v23  ;;  %v2300_v22 = vunpack.c.l.s8.bf16 %v1558_v5  ;;  %v1550_v5 = vld [vmem:[%s6291_s10 + $0x570] sm:$0xff] }
 0x25a   : > { %3683 = vmatpush2.bf16.msra.mxu0 %v2220_v25  ;;  %3724 = vmatpush2.bf16.msra.mxu1 %v2252_v45  ;;  %v1540_v25 = vld [vmem:[%s6291_s10 + $0x520] sm:$0xff]  ;;  %v2299_v45 = vunpack.c.h.s8.bf16 %v1557_v21  ;;  %v1565_v21 = vld [vmem:[%s6291_s10 + $0x5e8] sm:$0xff] }
 0x25b   : > { %3684 = vmatprep.subr.bf16.mxu0 %v2219_v26  ;;  %3725 = vmatprep.subr.bf16.mxu1 %v2251_v28  ;;  %v1556_v26 = vld [vmem:[%s6291_s10 + $0x5a0] sm:$0xff] }
 0x25c   : > { %v2296_v41 = vunpack.c.l.s8.bf16 %v1556_v26 }
 0x25e   : > { %3685 = vmatpush2.bf16.msra.mxu0 %v2218_v33  ;;  %3726 = vmatpush2.bf16.msra.mxu1 %v2250_v48  ;;  %v2266_v48 = vunpack.c.h.s8.bf16 %v1540_v25 }
 0x25f   : > { %3686 = vmatprep.subr.bf16.mxu0 %v2217_v34  ;;  %3727 = vmatprep.subr.bf16.mxu1 %v2249_v49  ;;  %v2298_v34 = vunpack.c.h.s8.bf16 %v1556_v26 }
 0x262   : > { %3687 = vmatpush2.bf16.msra.mxu0 %v2216_v37  ;;  %3728 = vmatpush2.bf16.msra.mxu1 %v2248_v38  ;;  %v1539_v37 = vld [vmem:[%s6291_s10 + $0x518] sm:$0xff] }
 0x263   : > { %3688 = vmatprep.subr.bf16.mxu0 %v2215_v40  ;;  %3729 = vmatprep.subr.bf16.mxu1 %v2247_v42  ;;  %v1555_v38 = vld [vmem:[%s6291_s10 + $0x598] sm:$0xff]  ;;  %v2264_v40 = vunpack.c.l.s8.bf16 %v1540_v25  ;;  %v2263_v42 = vunpack.c.h.s8.bf16 %v1539_v37  ;;  %v2261_v7 = vunpack.c.l.s8.bf16 %v1539_v37  ;;  %v1545_v37 = vld [vmem:[%s6291_s10 + $0x548] sm:$0xff] }
 0x264   : > { %v2293_v51 = vunpack.c.l.s8.bf16 %v1555_v38  ;;  %v1547_v25 = vld [vmem:[%s6291_s10 + $0x558] sm:$0xff] }
 0x266   : > { %3689 = vmatpush2.bf16.msra.mxu0 %v2214_v46  ;;  %3730 = vmatpush2.bf16.msra.mxu1 %v2246_v47  ;;  %v2295_v46 = vunpack.c.h.s8.bf16 %v1555_v38  ;;  %v1554_v47 = vld [vmem:[%s6291_s10 + $0x590] sm:$0xff]  ;;  %v1561_v38 = vld [vmem:[%s6291_s10 + $0x5c8] sm:$0xff] }
 0x267   : > { %3690 = vmatprep.subr.bf16.mxu0 %v2213_v6  ;;  %3731 = vmatprep.subr.bf16.mxu1 %v2245_v50  ;;  %v2262_v6 = vunpack.c.h.s8.bf16 %v1538_v43  ;;  %v2294_v50 = vunpack.c.h.s8.bf16 %v1554_v47  ;;  %v2292_v55 = vunpack.c.l.s8.bf16 %v1554_v47  ;;  %v1560_v47 = vld [vmem:[%s6291_s10 + $0x5c0] sm:$0xff] }
 0x26a   : > { %3691 = vmatpush2.bf16.msra.mxu0 %v2212_v52  ;;  %3732 = vmatpush2.bf16.msra.mxu1 %v2244_v53  ;;  %v1537_v52 = vld [vmem:[%s6291_s10 + $0x508] sm:$0xff] }
 0x26b   : > { %3692 = vmatprep.subr.bf16.mxu0 %v2211_v54  ;;  %3733 = vmatprep.subr.bf16.mxu1 %v2243_v56  ;;  %v1553_v53 = vld [vmem:[%s6291_s10 + $0x588] sm:$0xff]  ;;  %v2260_v54 = vunpack.c.l.s8.bf16 %v1538_v43  ;;  %v2259_v56 = vunpack.c.h.s8.bf16 %v1537_v52  ;;  %v2257_v62 = vunpack.c.l.s8.bf16 %v1537_v52  ;;  %v1544_v43 = vld [vmem:[%s6291_s10 + $0x540] sm:$0xff]  ;;  %v1575_v52 = vld [vmem:[%s6291_s10 + $0x638] sm:$0xff] }
 0x26c   : > { %v2289_v63 = vunpack.c.l.s8.bf16 %v1553_v53 }
 0x26e   : > { %3693 = vmatpush2.bf16.msra.mxu0 %v2210_v58  ;;  %3734 = vmatpush2.bf16.msra.mxu1 %v2242_v59  ;;  %v2291_v58 = vunpack.c.h.s8.bf16 %v1553_v53  ;;  %v1552_v59 = vld [vmem:[%s6291_s10 + $0x580] sm:$0xff]  ;;  %v1591_v53 = vld [vmem:[%s6291_s10 + $0x6b8] sm:$0xff] }
 0x26f   : > { %3694 = vmatprep.subr.bf16.mxu0 %v2209_v60  ;;  %3735 = vmatprep.subr.bf16.mxu1 %v2241_v61  ;;  %v2258_v60 = vunpack.c.h.s8.bf16 %v1536_v57  ;;  %v2290_v61 = vunpack.c.h.s8.bf16 %v1552_v59  ;;  %v2288_v3 = vunpack.c.l.s8.bf16 %v1552_v59  ;;  %v1590_v59 = vld [vmem:[%s6291_s10 + $0x6b0] sm:$0xff] }
 0x272   : > { %3695 = vmatpush2.bf16.msra.mxu0 %v2208_v0  ;;  %3736 = vmatpush2.bf16.msra.mxu1 %v2240_v1  ;;  %v1551_v0 = vld [vmem:[%s6291_s10 + $0x578] sm:$0xff] }
 0x273   : > { %3746 = vmatprep.subr.bf16.mxu0 %v2271_v2  ;;  %3787 = vmatprep.subr.bf16.mxu1 %v2303_v4  ;;  %v1567_v1 = vld [vmem:[%s6291_s10 + $0x5f8] sm:$0xff]  ;;  %v2256_v2 = vunpack.c.l.s8.bf16 %v1536_v57  ;;  %v2287_v4 = vunpack.c.h.s8.bf16 %v1551_v0  ;;  %v1574_v57 = vld [vmem:[%s6291_s10 + $0x630] sm:$0xff] }
 0x275   : > { %v3452_v16 = vpop.f32.mrf.mxu0  ;;  %3697 = vmatmul.mubr.bf16.vlgmr.msra.gmra.mxu0 %v4914_v8  ;;  %v3493_v17 = vpop.f32.mrf.mxu1  ;;  %3738 = vmatmul.mubr.bf16.vlgmr.msra.gmra.mxu1 %v4916_v9  ;;  %v2319_v8 = vunpack.c.h.s8.bf16 %v1567_v1  ;;  %v1566_v9 = vld [vmem:[%s6291_s10 + $0x5f0] sm:$0xff] }
 0x276   : > { %v3453_v18 = vadd.f32 %v3452_v16, %v6499_v32  ;;  %3747 = vmatpush1.bf16.msra.mxu0 %v2270_v31  ;;  %3788 = vmatpush1.bf16.msra.mxu1 %v2302_v11  ;;  %v2286_v31 = vunpack.c.h.s8.bf16 %v1550_v5  ;;  %v2318_v11 = vunpack.c.h.s8.bf16 %v1566_v9 }
 0x277   : > { %v3454_v23 = vpop.f32.mrf.mxu0  ;;  %v3495_v44 = vpop.f32.mrf.mxu1  ;;  %3748 = vmatprep.subr.bf16.mxu0 %v2269_v20  ;;  %3789 = vmatprep.subr.bf16.mxu1 %v2301_v12  ;;  %v2285_v20 = vunpack.c.l.s8.bf16 %v1551_v0  ;;  %v2317_v12 = vunpack.c.l.s8.bf16 %v1567_v1  ;;  %v2334_v0 = vunpack.c.h.s8.bf16 %v1574_v57  ;;  %v2366_v1 = vunpack.c.h.s8.bf16 %v1590_v59 }
 0x278   : > { %v3455_v27 = vadd.f32 %v3454_v23, %v6503_v39  ;;  %v6557_v28 = vadd.f32 %v3493_v17, %v3453_v18  ;;  %3778 = vmatprep.mubr.bf16.mxu0 %v4919_v14  ;;  %3819 = vmatprep.mubr.bf16.mxu1 %v4921_v15  ;;  %v2265_v39 = vunpack.c.l.s8.bf16 %v1541_v13  ;;  %v1549_v13 = vld [vmem:[%s6291_s10 + $0x568] sm:$0xff]  ;;  %v2284_v14 = vunpack.c.l.s8.bf16 %v1550_v5  ;;  %v1548_v17 = vld [vmem:[%s6291_s10 + $0x560] sm:$0xff] }
 0x279   : > { %v3456_v32 = vpop.f32.mrf.mxu0  ;;  %v3497_v29 = vpop.f32.mrf.mxu1  ;;  %v2316_v15 = vunpack.c.l.s8.bf16 %v1566_v9  ;;  %v2283_v16 = vunpack.c.h.s8.bf16 %v1549_v13  ;;  %v2315_v18 = vunpack.c.h.s8.bf16 %v1565_v21  ;;  %v2280_v26 = vunpack.c.l.s8.bf16 %v1548_v17 }
 0x27a   : > { %v6559_v33 = vadd.f32 %v3495_v44, %v3455_v27  ;;  %3749 = vmatpush1.bf16.msra.mxu0 %v2268_v19  ;;  %3790 = vmatpush1.bf16.msra.mxu1 %v2300_v22  ;;  %v1564_v19 = vld [vmem:[%s6291_s10 + $0x5e0] sm:$0xff]  ;;  %v2282_v22 = vunpack.c.h.s8.bf16 %v1548_v17  ;;  %v2281_v44 = vunpack.c.l.s8.bf16 %v1549_v13  ;;  %v2279_v32 = vunpack.c.h.s8.bf16 %v1547_v25  ;;  %v1546_v29 = vld [vmem:[%s6291_s10 + $0x550] sm:$0xff] }
 0x27b   : > { %v3457_v49 = vpop.f32.mrf.mxu0  ;;  %3750 = vmatprep.subr.bf16.mxu0 %v2267_v24  ;;  %3791 = vmatprep.subr.bf16.mxu1 %v2299_v45  ;;  %v3498_v36 = vpop.f32.mrf.mxu1  ;;  %v2314_v23 = vunpack.c.h.s8.bf16 %v1564_v19  ;;  %v2313_v24 = vunpack.c.l.s8.bf16 %v1565_v21  ;;  %v1563_v45 = vld [vmem:[%s6291_s10 + $0x5d8] sm:$0xff]  ;;  %v2312_v27 = vunpack.c.l.s8.bf16 %v1564_v19 }
 0x27c   : > { %v2278_v49 = vunpack.c.h.s8.bf16 %v1546_v29  ;;  %v2309_v36 = vunpack.c.l.s8.bf16 %v1563_v45 }
 0x27e   : > { %3751 = vmatpush1.bf16.msra.mxu0 %v2266_v48  ;;  %3792 = vmatpush1.bf16.msra.mxu1 %v2298_v34  ;;  %v2311_v48 = vunpack.c.h.s8.bf16 %v1563_v45  ;;  %v1562_v34 = vld [vmem:[%s6291_s10 + $0x5d0] sm:$0xff] }
 0x27f   : > { %3752 = vmatprep.subr.bf16.mxu0 %v2265_v39  ;;  %3793 = vmatprep.subr.bf16.mxu1 %v2297_v35  ;;  %v2310_v39 = vunpack.c.h.s8.bf16 %v1562_v34  ;;  %v2277_v35 = vunpack.c.l.s8.bf16 %v1547_v25 }
 0x282   : > { %3753 = vmatpush1.bf16.msra.mxu0 %v2264_v40  ;;  %3794 = vmatpush1.bf16.msra.mxu1 %v2296_v41  ;;  %v2276_v40 = vunpack.c.l.s8.bf16 %v1546_v29  ;;  %v2308_v41 = vunpack.c.l.s8.bf16 %v1562_v34  ;;  %v1570_v34 = vld [vmem:[%s6291_s10 + $0x610] sm:$0xff] }
 0x283   : > { %3754 = vmatprep.subr.bf16.mxu0 %v2263_v42  ;;  %3795 = vmatprep.subr.bf16.mxu1 %v2295_v46  ;;  %v2275_v42 = vunpack.c.h.s8.bf16 %v1545_v37  ;;  %v2307_v46 = vunpack.c.h.s8.bf16 %v1561_v38 }
 0x286   : > { %3755 = vmatpush1.bf16.msra.mxu0 %v2262_v6  ;;  %3796 = vmatpush1.bf16.msra.mxu1 %v2294_v50  ;;  %v2274_v6 = vunpack.c.h.s8.bf16 %v1544_v43  ;;  %v2306_v50 = vunpack.c.h.s8.bf16 %v1560_v47 }
 0x287   : > { %3756 = vmatprep.subr.bf16.mxu0 %v2261_v7  ;;  %3797 = vmatprep.subr.bf16.mxu1 %v2293_v51  ;;  %v2273_v7 = vunpack.c.l.s8.bf16 %v1545_v37  ;;  %v2305_v51 = vunpack.c.l.s8.bf16 %v1561_v38 }
 0x28a   : > { %3757 = vmatpush1.bf16.msra.mxu0 %v2260_v54  ;;  %3798 = vmatpush1.bf16.msra.mxu1 %v2292_v55  ;;  %v2272_v54 = vunpack.c.l.s8.bf16 %v1544_v43  ;;  %v2304_v55 = vunpack.c.l.s8.bf16 %v1560_v47  ;;  %v1568_v47 = vld [vmem:[%s6291_s10 + $0x600] sm:$0xff] }
 0x28b   : > { %3758 = vmatprep.subr.bf16.mxu0 %v2259_v56  ;;  %3799 = vmatprep.subr.bf16.mxu1 %v2291_v58  ;;  %v2335_v56 = vunpack.c.h.s8.bf16 %v1575_v52  ;;  %v2367_v58 = vunpack.c.h.s8.bf16 %v1591_v53 }
 0x28e   : > { %3759 = vmatpush1.bf16.msra.mxu0 %v2258_v60  ;;  %3800 = vmatpush1.bf16.msra.mxu1 %v2290_v61  ;;  %v4918_v60 = vcombine.low %v6540_v30, %v6540_v30  ;;  %v4920_v61 = vcombine.low %v6545_v10, %v6545_v10  ;;  %v2333_v30 = vunpack.c.l.s8.bf16 %v1575_v52  ;;  %v1589_v10 = vld [vmem:[%s6291_s10 + $0x6a8] sm:$0xff] }
 0x28f   : > { %3760 = vmatprep.subr.bf16.mxu0 %v2257_v62  ;;  %3801 = vmatprep.subr.bf16.mxu1 %v2289_v63  ;;  %v6596_v62 = vld [vmem:[%s7259_s0 + $0x60] sm:$0xff]  ;;  %v6601_v63 = vld [vmem:[%s7259_s0 + $0x68] sm:$0xff]  ;;  %v2361_v25 = vunpack.c.l.s8.bf16 %v1589_v10 }
 0x290   : > { %v4925_v5 = vcombine.high %v6601_v63, %v6601_v63 }
 0x292   : > { %3761 = vmatpush1.bf16.msra.mxu0 %v2256_v2  ;;  %3802 = vmatpush1.bf16.msra.mxu1 %v2288_v3  ;;  %v2365_v2 = vunpack.c.l.s8.bf16 %v1591_v53  ;;  %v1573_v3 = vld [vmem:[%s6291_s10 + $0x628] sm:$0xff] }
 0x293   : > { %3762 = vmatprep.subr.bf16.mxu0 %v2287_v4  ;;  %3803 = vmatprep.subr.bf16.mxu1 %v2319_v8  ;;  %v4923_v4 = vcombine.high %v6596_v62, %v6596_v62  ;;  %v2331_v21 = vunpack.c.h.s8.bf16 %v1573_v3 }
 0x296   : > { %3763 = vmatpush2.bf16.msra.mxu0 %v2286_v31  ;;  %3804 = vmatpush2.bf16.msra.mxu1 %v2318_v11  ;;  %v2332_v11 = vunpack.c.l.s8.bf16 %v1574_v57 }
 0x297   : > { %3764 = vmatprep.subr.bf16.mxu0 %v2285_v20  ;;  %3805 = vmatprep.subr.bf16.mxu1 %v2317_v12  ;;  %v2364_v20 = vunpack.c.l.s8.bf16 %v1590_v59  ;;  %v1582_v59 = vld [vmem:[%s6291_s10 + $0x670] sm:$0xff] }
 0x29a   : > { %3765 = vmatpush2.bf16.msra.mxu0 %v2284_v14  ;;  %3806 = vmatpush2.bf16.msra.mxu1 %v2316_v15  ;;  %v1572_v14 = vld [vmem:[%s6291_s10 + $0x620] sm:$0xff]  ;;  %v2363_v15 = vunpack.c.h.s8.bf16 %v1589_v10  ;;  %v1597_v10 = vld [vmem:[%s6291_s10 + $0x6e8] sm:$0xff] }
 0x29b   : > { %3766 = vmatprep.subr.bf16.mxu0 %v2283_v16  ;;  %3807 = vmatprep.subr.bf16.mxu1 %v2315_v18  ;;  %v1588_v16 = vld [vmem:[%s6291_s10 + $0x6a0] sm:$0xff] }
 0x29c   : > { %v2360_v29 = vunpack.c.l.s8.bf16 %v1588_v16 }
 0x29e   : > { %3767 = vmatpush2.bf16.msra.mxu0 %v2282_v22  ;;  %3808 = vmatpush2.bf16.msra.mxu1 %v2314_v23  ;;  %v2330_v23 = vunpack.c.h.s8.bf16 %v1572_v14 }
 0x29f   : > { %3768 = vmatprep.subr.bf16.mxu0 %v2281_v44  ;;  %3809 = vmatprep.subr.bf16.mxu1 %v2313_v24  ;;  %v2362_v44 = vunpack.c.h.s8.bf16 %v1588_v16 }
 0x2a2   : > { %3769 = vmatpush2.bf16.msra.mxu0 %v2280_v26  ;;  %3810 = vmatpush2.bf16.msra.mxu1 %v2312_v27  ;;  %v1571_v26 = vld [vmem:[%s6291_s10 + $0x618] sm:$0xff] }
 0x2a3   : > { %3770 = vmatprep.subr.bf16.mxu0 %v2279_v32  ;;  %3811 = vmatprep.subr.bf16.mxu1 %v2311_v48  ;;  %v1587_v27 = vld [vmem:[%s6291_s10 + $0x698] sm:$0xff]  ;;  %v2328_v32 = vunpack.c.l.s8.bf16 %v1572_v14  ;;  %v2327_v48 = vunpack.c.h.s8.bf16 %v1571_v26  ;;  %v2325_v37 = vunpack.c.l.s8.bf16 %v1571_v26  ;;  %v1577_v26 = vld [vmem:[%s6291_s10 + $0x648] sm:$0xff] }
 0x2a4   : > { %v2357_v38 = vunpack.c.l.s8.bf16 %v1587_v27  ;;  %v1579_v14 = vld [vmem:[%s6291_s10 + $0x658] sm:$0xff] }
 0x2a6   : > { %3771 = vmatpush2.bf16.msra.mxu0 %v2278_v49  ;;  %3812 = vmatpush2.bf16.msra.mxu1 %v2310_v39  ;;  %v2359_v49 = vunpack.c.h.s8.bf16 %v1587_v27  ;;  %v1586_v39 = vld [vmem:[%s6291_s10 + $0x690] sm:$0xff]  ;;  %v1593_v27 = vld [vmem:[%s6291_s10 + $0x6c8] sm:$0xff] }
 0x2a7   : > { %3772 = vmatprep.subr.bf16.mxu0 %v2277_v35  ;;  %3813 = vmatprep.subr.bf16.mxu1 %v2309_v36  ;;  %v2326_v35 = vunpack.c.h.s8.bf16 %v1570_v34  ;;  %v2358_v36 = vunpack.c.h.s8.bf16 %v1586_v39  ;;  %v2356_v43 = vunpack.c.l.s8.bf16 %v1586_v39  ;;  %v1592_v39 = vld [vmem:[%s6291_s10 + $0x6c0] sm:$0xff] }
 0x2aa   : > { %3773 = vmatpush2.bf16.msra.mxu0 %v2276_v40  ;;  %3814 = vmatpush2.bf16.msra.mxu1 %v2308_v41  ;;  %v1569_v40 = vld [vmem:[%s6291_s10 + $0x608] sm:$0xff] }
 0x2ab   : > { %3774 = vmatprep.subr.bf16.mxu0 %v2275_v42  ;;  %3815 = vmatprep.subr.bf16.mxu1 %v2307_v46  ;;  %v1585_v41 = vld [vmem:[%s6291_s10 + $0x688] sm:$0xff]  ;;  %v2324_v42 = vunpack.c.l.s8.bf16 %v1570_v34  ;;  %v2323_v46 = vunpack.c.h.s8.bf16 %v1569_v40  ;;  %v2321_v52 = vunpack.c.l.s8.bf16 %v1569_v40  ;;  %v1576_v34 = vld [vmem:[%s6291_s10 + $0x640] sm:$0xff]  ;;  %v1607_v40 = vld [vmem:[%s6291_s10 + $0x738] sm:$0xff] }
 0x2ac   : > { %v2353_v53 = vunpack.c.l.s8.bf16 %v1585_v41 }
 0x2ae   : > { %3775 = vmatpush2.bf16.msra.mxu0 %v2274_v6  ;;  %3816 = vmatpush2.bf16.msra.mxu1 %v2306_v50  ;;  %v2355_v6 = vunpack.c.h.s8.bf16 %v1585_v41  ;;  %v1584_v50 = vld [vmem:[%s6291_s10 + $0x680] sm:$0xff]  ;;  %v1623_v41 = vld [vmem:[%s6291_s10 + $0x7b8] sm:$0xff] }
 0x2af   : > { %3776 = vmatprep.subr.bf16.mxu0 %v2273_v7  ;;  %3817 = vmatprep.subr.bf16.mxu1 %v2305_v51  ;;  %v2322_v7 = vunpack.c.h.s8.bf16 %v1568_v47  ;;  %v2354_v51 = vunpack.c.h.s8.bf16 %v1584_v50  ;;  %v2352_v57 = vunpack.c.l.s8.bf16 %v1584_v50  ;;  %v1622_v50 = vld [vmem:[%s6291_s10 + $0x7b0] sm:$0xff] }
 0x2b2   : > { %3777 = vmatpush2.bf16.msra.mxu0 %v2272_v54  ;;  %3818 = vmatpush2.bf16.msra.mxu1 %v2304_v55  ;;  %v1583_v54 = vld [vmem:[%s6291_s10 + $0x678] sm:$0xff] }
 0x2b3   : > { %3828 = vmatprep.subr.bf16.mxu0 %v2335_v56  ;;  %3869 = vmatprep.subr.bf16.mxu1 %v2367_v58  ;;  %v1599_v55 = vld [vmem:[%s6291_s10 + $0x6f8] sm:$0xff]  ;;  %v2320_v56 = vunpack.c.l.s8.bf16 %v1568_v47  ;;  %v2351_v58 = vunpack.c.h.s8.bf16 %v1583_v54  ;;  %v1606_v47 = vld [vmem:[%s6291_s10 + $0x730] sm:$0xff] }
 0x2b5   : > { %v3534_v8 = vpop.f32.mrf.mxu0  ;;  %3779 = vmatmul.mubr.bf16.vlgmr.msra.gmra.mxu0 %v4918_v60  ;;  %v3575_v9 = vpop.f32.mrf.mxu1  ;;  %3820 = vmatmul.mubr.bf16.vlgmr.msra.gmra.mxu1 %v4920_v61  ;;  %v2383_v60 = vunpack.c.h.s8.bf16 %v1599_v55  ;;  %v1598_v61 = vld [vmem:[%s6291_s10 + $0x6f0] sm:$0xff] }
 0x2b6   : > { %v3535_v31 = vadd.f32 %v3534_v8, %v6557_v28  ;;  %3829 = vmatpush1.bf16.msra.mxu0 %v2334_v0  ;;  %3870 = vmatpush1.bf16.msra.mxu1 %v2366_v1  ;;  %v2350_v0 = vunpack.c.h.s8.bf16 %v1582_v59  ;;  %v2382_v1 = vunpack.c.h.s8.bf16 %v1598_v61 }
 0x2b7   : > { %v3536_v12 = vpop.f32.mrf.mxu0  ;;  %v3577_v13 = vpop.f32.mrf.mxu1  ;;  %3830 = vmatprep.subr.bf16.mxu0 %v2333_v30  ;;  %3871 = vmatprep.subr.bf16.mxu1 %v2365_v2  ;;  %v2349_v30 = vunpack.c.l.s8.bf16 %v1583_v54  ;;  %v2381_v2 = vunpack.c.l.s8.bf16 %v1599_v55  ;;  %v2398_v54 = vunpack.c.h.s8.bf16 %v1606_v47  ;;  %v2430_v55 = vunpack.c.h.s8.bf16 %v1622_v50 }
 0x2b8   : > { %v3537_v17 = vadd.f32 %v3536_v12, %v6559_v33  ;;  %v6613_v18 = vadd.f32 %v3575_v9, %v3535_v31  ;;  %3860 = vmatprep.mubr.bf16.mxu0 %v4923_v4  ;;  %3901 = vmatprep.mubr.bf16.mxu1 %v4925_v5  ;;  %v2329_v33 = vunpack.c.l.s8.bf16 %v1573_v3  ;;  %v1581_v3 = vld [vmem:[%s6291_s10 + $0x668] sm:$0xff]  ;;  %v2348_v4 = vunpack.c.l.s8.bf16 %v1582_v59  ;;  %v1580_v9 = vld [vmem:[%s6291_s10 + $0x660] sm:$0xff] }
 0x2b9   : > { %v3538_v28 = vpop.f32.mrf.mxu0  ;;  %v3579_v19 = vpop.f32.mrf.mxu1  ;;  %v2380_v5 = vunpack.c.l.s8.bf16 %v1598_v61  ;;  %v2347_v8 = vunpack.c.h.s8.bf16 %v1581_v3  ;;  %v2379_v31 = vunpack.c.h.s8.bf16 %v1597_v10  ;;  %v2344_v16 = vunpack.c.l.s8.bf16 %v1580_v9 }
 0x2ba   : > { %v6615_v22 = vadd.f32 %v3577_v13, %v3537_v17  ;;  %3831 = vmatpush1.bf16.msra.mxu0 %v2332_v11  ;;  %3872 = vmatpush1.bf16.msra.mxu1 %v2364_v20  ;;  %v1596_v11 = vld [vmem:[%s6291_s10 + $0x6e0] sm:$0xff]  ;;  %v2346_v20 = vunpack.c.h.s8.bf16 %v1580_v9  ;;  %v2345_v13 = vunpack.c.l.s8.bf16 %v1581_v3  ;;  %v2343_v28 = vunpack.c.h.s8.bf16 %v1579_v14  ;;  %v1578_v19 = vld [vmem:[%s6291_s10 + $0x650] sm:$0xff] }
 0x2bb   : > { %v3539_v24 = vpop.f32.mrf.mxu0  ;;  %3832 = vmatprep.subr.bf16.mxu0 %v2331_v21  ;;  %3873 = vmatprep.subr.bf16.mxu1 %v2363_v15  ;;  %v3580_v45 = vpop.f32.mrf.mxu1  ;;  %v2378_v12 = vunpack.c.h.s8.bf16 %v1596_v11  ;;  %v2377_v21 = vunpack.c.l.s8.bf16 %v1597_v10  ;;  %v1595_v15 = vld [vmem:[%s6291_s10 + $0x6d8] sm:$0xff]  ;;  %v2376_v17 = vunpack.c.l.s8.bf16 %v1596_v11 }
 0x2bc   : > { %v2342_v24 = vunpack.c.h.s8.bf16 %v1578_v19  ;;  %v2373_v45 = vunpack.c.l.s8.bf16 %v1595_v15 }
 0x2be   : > { %3833 = vmatpush1.bf16.msra.mxu0 %v2330_v23  ;;  %3874 = vmatpush1.bf16.msra.mxu1 %v2362_v44  ;;  %v2375_v23 = vunpack.c.h.s8.bf16 %v1595_v15  ;;  %v1594_v44 = vld [vmem:[%s6291_s10 + $0x6d0] sm:$0xff] }
 0x2bf   : > { %3834 = vmatprep.subr.bf16.mxu0 %v2329_v33  ;;  %3875 = vmatprep.subr.bf16.mxu1 %v2361_v25  ;;  %v2374_v33 = vunpack.c.h.s8.bf16 %v1594_v44  ;;  %v2341_v25 = vunpack.c.l.s8.bf16 %v1579_v14 }
 0x2c2   : > { %3835 = vmatpush1.bf16.msra.mxu0 %v2328_v32  ;;  %3876 = vmatpush1.bf16.msra.mxu1 %v2360_v29  ;;  %v2340_v32 = vunpack.c.l.s8.bf16 %v1578_v19  ;;  %v2372_v29 = vunpack.c.l.s8.bf16 %v1594_v44  ;;  %v1602_v44 = vld [vmem:[%s6291_s10 + $0x710] sm:$0xff] }
 0x2c3   : > { %3836 = vmatprep.subr.bf16.mxu0 %v2327_v48  ;;  %3877 = vmatprep.subr.bf16.mxu1 %v2359_v49  ;;  %v2339_v48 = vunpack.c.h.s8.bf16 %v1577_v26  ;;  %v2371_v49 = vunpack.c.h.s8.bf16 %v1593_v27 }
 0x2c6   : > { %3837 = vmatpush1.bf16.msra.mxu0 %v2326_v35  ;;  %3878 = vmatpush1.bf16.msra.mxu1 %v2358_v36  ;;  %v2338_v35 = vunpack.c.h.s8.bf16 %v1576_v34  ;;  %v2370_v36 = vunpack.c.h.s8.bf16 %v1592_v39 }
 0x2c7   : > { %3838 = vmatprep.subr.bf16.mxu0 %v2325_v37  ;;  %3879 = vmatprep.subr.bf16.mxu1 %v2357_v38  ;;  %v2337_v37 = vunpack.c.l.s8.bf16 %v1577_v26  ;;  %v2369_v38 = vunpack.c.l.s8.bf16 %v1593_v27 }
 0x2ca   : > { %3839 = vmatpush1.bf16.msra.mxu0 %v2324_v42  ;;  %3880 = vmatpush1.bf16.msra.mxu1 %v2356_v43  ;;  %v2336_v42 = vunpack.c.l.s8.bf16 %v1576_v34  ;;  %v2368_v43 = vunpack.c.l.s8.bf16 %v1592_v39  ;;  %v1600_v39 = vld [vmem:[%s6291_s10 + $0x700] sm:$0xff] }
 0x2cb   : > { %3840 = vmatprep.subr.bf16.mxu0 %v2323_v46  ;;  %3881 = vmatprep.subr.bf16.mxu1 %v2355_v6  ;;  %v2399_v46 = vunpack.c.h.s8.bf16 %v1607_v40  ;;  %v2431_v6 = vunpack.c.h.s8.bf16 %v1623_v41 }
 0x2ce   : > { %3841 = vmatpush1.bf16.msra.mxu0 %v2322_v7  ;;  %3882 = vmatpush1.bf16.msra.mxu1 %v2354_v51  ;;  %v4922_v7 = vcombine.low %v6596_v62, %v6596_v62  ;;  %v4924_v51 = vcombine.low %v6601_v63, %v6601_v63  ;;  %v2397_v62 = vunpack.c.l.s8.bf16 %v1607_v40  ;;  %v1621_v63 = vld [vmem:[%s6291_s10 + $0x7a8] sm:$0xff] }
 0x2cf   : > { %3842 = vmatprep.subr.bf16.mxu0 %v2321_v52  ;;  %3883 = vmatprep.subr.bf16.mxu1 %v2353_v53  ;;  %v6652_v52 = vld [vmem:[%s7259_s0 + $0x70] sm:$0xff]  ;;  %v6657_v53 = vld [vmem:[%s7259_s0 + $0x78] sm:$0xff]  ;;  %v2425_v14 = vunpack.c.l.s8.bf16 %v1621_v63 }
 0x2d0   : > { %v4929_v59 = vcombine.high %v6657_v53, %v6657_v53 }
 0x2d2   : > { %3843 = vmatpush1.bf16.msra.mxu0 %v2320_v56  ;;  %3884 = vmatpush1.bf16.msra.mxu1 %v2352_v57  ;;  %v2429_v56 = vunpack.c.l.s8.bf16 %v1623_v41  ;;  %v1605_v57 = vld [vmem:[%s6291_s10 + $0x728] sm:$0xff] }
 0x2d3   : > { %3844 = vmatprep.subr.bf16.mxu0 %v2351_v58  ;;  %3885 = vmatprep.subr.bf16.mxu1 %v2383_v60  ;;  %v4927_v58 = vcombine.high %v6652_v52, %v6652_v52  ;;  %v2395_v10 = vunpack.c.h.s8.bf16 %v1605_v57 }
 0x2d6   : > { %3845 = vmatpush2.bf16.msra.mxu0 %v2350_v0  ;;  %3886 = vmatpush2.bf16.msra.mxu1 %v2382_v1  ;;  %v2396_v1 = vunpack.c.l.s8.bf16 %v1606_v47 }
 0x2d7   : > { %3846 = vmatprep.subr.bf16.mxu0 %v2349_v30  ;;  %3887 = vmatprep.subr.bf16.mxu1 %v2381_v2  ;;  %v2428_v30 = vunpack.c.l.s8.bf16 %v1622_v50  ;;  %v1614_v50 = vld [vmem:[%s6291_s10 + $0x770] sm:$0xff] }
 0x2da   : > { %3847 = vmatpush2.bf16.msra.mxu0 %v2348_v4  ;;  %3888 = vmatpush2.bf16.msra.mxu1 %v2380_v5  ;;  %v1604_v4 = vld [vmem:[%s6291_s10 + $0x720] sm:$0xff]  ;;  %v2427_v5 = vunpack.c.h.s8.bf16 %v1621_v63  ;;  %v1629_v63 = vld [vmem:[%s6291_s10 + $0x7e8] sm:$0xff] }
 0x2db   : > { %3848 = vmatprep.subr.bf16.mxu0 %v2347_v8  ;;  %3889 = vmatprep.subr.bf16.mxu1 %v2379_v31  ;;  %v1620_v8 = vld [vmem:[%s6291_s10 + $0x7a0] sm:$0xff] }
 0x2dc   : > { %v2424_v19 = vunpack.c.l.s8.bf16 %v1620_v8 }
 0x2de   : > { %3849 = vmatpush2.bf16.msra.mxu0 %v2346_v20  ;;  %3890 = vmatpush2.bf16.msra.mxu1 %v2378_v12  ;;  %v2394_v12 = vunpack.c.h.s8.bf16 %v1604_v4 }
 0x2df   : > { %3850 = vmatprep.subr.bf16.mxu0 %v2345_v13  ;;  %3891 = vmatprep.subr.bf16.mxu1 %v2377_v21  ;;  %v2426_v13 = vunpack.c.h.s8.bf16 %v1620_v8 }
 0x2e2   : > { %3851 = vmatpush2.bf16.msra.mxu0 %v2344_v16  ;;  %3892 = vmatpush2.bf16.msra.mxu1 %v2376_v17  ;;  %v1603_v16 = vld [vmem:[%s6291_s10 + $0x718] sm:$0xff] }
 0x2e3   : > { %3852 = vmatprep.subr.bf16.mxu0 %v2343_v28  ;;  %3893 = vmatprep.subr.bf16.mxu1 %v2375_v23  ;;  %v1619_v17 = vld [vmem:[%s6291_s10 + $0x798] sm:$0xff]  ;;  %v2392_v28 = vunpack.c.l.s8.bf16 %v1604_v4  ;;  %v2391_v23 = vunpack.c.h.s8.bf16 %v1603_v16  ;;  %v2389_v26 = vunpack.c.l.s8.bf16 %v1603_v16  ;;  %v1609_v16 = vld [vmem:[%s6291_s10 + $0x748] sm:$0xff] }
 0x2e4   : > { %v2421_v27 = vunpack.c.l.s8.bf16 %v1619_v17  ;;  %v1611_v4 = vld [vmem:[%s6291_s10 + $0x758] sm:$0xff] }
 0x2e6   : > { %3853 = vmatpush2.bf16.msra.mxu0 %v2342_v24  ;;  %3894 = vmatpush2.bf16.msra.mxu1 %v2374_v33  ;;  %v2423_v24 = vunpack.c.h.s8.bf16 %v1619_v17  ;;  %v1618_v33 = vld [vmem:[%s6291_s10 + $0x790] sm:$0xff]  ;;  %v1625_v17 = vld [vmem:[%s6291_s10 + $0x7c8] sm:$0xff] }
 0x2e7   : > { %3854 = vmatprep.subr.bf16.mxu0 %v2341_v25  ;;  %3895 = vmatprep.subr.bf16.mxu1 %v2373_v45  ;;  %v2390_v25 = vunpack.c.h.s8.bf16 %v1602_v44  ;;  %v2422_v45 = vunpack.c.h.s8.bf16 %v1618_v33  ;;  %v2420_v34 = vunpack.c.l.s8.bf16 %v1618_v33  ;;  %v1624_v33 = vld [vmem:[%s6291_s10 + $0x7c0] sm:$0xff] }
 0x2ea   : > { %3855 = vmatpush2.bf16.msra.mxu0 %v2340_v32  ;;  %3896 = vmatpush2.bf16.msra.mxu1 %v2372_v29  ;;  %v1601_v32 = vld [vmem:[%s6291_s10 + $0x708] sm:$0xff] }
 0x2eb   : > { %3856 = vmatprep.subr.bf16.mxu0 %v2339_v48  ;;  %3897 = vmatprep.subr.bf16.mxu1 %v2371_v49  ;;  %v1617_v29 = vld [vmem:[%s6291_s10 + $0x788] sm:$0xff]  ;;  %v2388_v48 = vunpack.c.l.s8.bf16 %v1602_v44  ;;  %v2387_v49 = vunpack.c.h.s8.bf16 %v1601_v32  ;;  %v2385_v40 = vunpack.c.l.s8.bf16 %v1601_v32  ;;  %v1608_v44 = vld [vmem:[%s6291_s10 + $0x740] sm:$0xff]  ;;  %v1639_v32 = vld [vmem:[%s6291_s10 + $0x838] sm:$0xff] }
 0x2ec   : > { %v2417_v41 = vunpack.c.l.s8.bf16 %v1617_v29 }
 0x2ee   : > { %3857 = vmatpush2.bf16.msra.mxu0 %v2338_v35  ;;  %3898 = vmatpush2.bf16.msra.mxu1 %v2370_v36  ;;  %v2419_v35 = vunpack.c.h.s8.bf16 %v1617_v29  ;;  %v1616_v36 = vld [vmem:[%s6291_s10 + $0x780] sm:$0xff]  ;;  %v1655_v29 = vld [vmem:[%s6291_s10 + $0x8b8] sm:$0xff] }
 0x2ef   : > { %3858 = vmatprep.subr.bf16.mxu0 %v2337_v37  ;;  %3899 = vmatprep.subr.bf16.mxu1 %v2369_v38  ;;  %v2386_v37 = vunpack.c.h.s8.bf16 %v1600_v39  ;;  %v2418_v38 = vunpack.c.h.s8.bf16 %v1616_v36  ;;  %v2416_v47 = vunpack.c.l.s8.bf16 %v1616_v36  ;;  %v1654_v36 = vld [vmem:[%s6291_s10 + $0x8b0] sm:$0xff] }
 0x2f2   : > { %3859 = vmatpush2.bf16.msra.mxu0 %v2336_v42  ;;  %3900 = vmatpush2.bf16.msra.mxu1 %v2368_v43  ;;  %v1615_v42 = vld [vmem:[%s6291_s10 + $0x778] sm:$0xff] }
 0x2f3   : > { %3910 = vmatprep.subr.bf16.mxu0 %v2399_v46  ;;  %3951 = vmatprep.subr.bf16.mxu1 %v2431_v6  ;;  %v1631_v43 = vld [vmem:[%s6291_s10 + $0x7f8] sm:$0xff]  ;;  %v2384_v46 = vunpack.c.l.s8.bf16 %v1600_v39  ;;  %v2415_v6 = vunpack.c.h.s8.bf16 %v1615_v42  ;;  %v1638_v39 = vld [vmem:[%s6291_s10 + $0x830] sm:$0xff] }
 0x2f5   : > { %v3616_v60 = vpop.f32.mrf.mxu0  ;;  %3861 = vmatmul.mubr.bf16.vlgmr.msra.gmra.mxu0 %v4922_v7  ;;  %v3657_v61 = vpop.f32.mrf.mxu1  ;;  %3902 = vmatmul.mubr.bf16.vlgmr.msra.gmra.mxu1 %v4924_v51  ;;  %v2447_v7 = vunpack.c.h.s8.bf16 %v1631_v43  ;;  %v1630_v51 = vld [vmem:[%s6291_s10 + $0x7f0] sm:$0xff] }
 0x2f6   : > { %v3617_v0 = vadd.f32 %v3616_v60, %v6613_v18  ;;  %3911 = vmatpush1.bf16.msra.mxu0 %v2398_v54  ;;  %3952 = vmatpush1.bf16.msra.mxu1 %v2430_v55  ;;  %v2414_v54 = vunpack.c.h.s8.bf16 %v1614_v50  ;;  %v2446_v55 = vunpack.c.h.s8.bf16 %v1630_v51 }
 0x2f7   : > { %v3618_v2 = vpop.f32.mrf.mxu0  ;;  %v3659_v3 = vpop.f32.mrf.mxu1  ;;  %3912 = vmatprep.subr.bf16.mxu0 %v2397_v62  ;;  %3953 = vmatprep.subr.bf16.mxu1 %v2429_v56  ;;  %v2413_v62 = vunpack.c.l.s8.bf16 %v1615_v42  ;;  %v2445_v56 = vunpack.c.l.s8.bf16 %v1631_v43  ;;  %v2462_v42 = vunpack.c.h.s8.bf16 %v1638_v39  ;;  %v2494_v43 = vunpack.c.h.s8.bf16 %v1654_v36 }
 0x2f8   : > { %v3619_v9 = vadd.f32 %v3618_v2, %v6615_v22  ;;  %v6669_v31 = vadd.f32 %v3657_v61, %v3617_v0  ;;  %3942 = vmatprep.mubr.bf16.mxu0 %v4927_v58  ;;  %3983 = vmatprep.mubr.bf16.mxu1 %v4929_v59  ;;  %v2393_v22 = vunpack.c.l.s8.bf16 %v1605_v57  ;;  %v1613_v57 = vld [vmem:[%s6291_s10 + $0x768] sm:$0xff]  ;;  %v2412_v58 = vunpack.c.l.s8.bf16 %v1614_v50  ;;  %v1612_v61 = vld [vmem:[%s6291_s10 + $0x760] sm:$0xff] }
 0x2f9   : > { %v3620_v18 = vpop.f32.mrf.mxu0  ;;  %v3661_v11 = vpop.f32.mrf.mxu1  ;;  %v2444_v59 = vunpack.c.l.s8.bf16 %v1630_v51  ;;  %v2411_v60 = vunpack.c.h.s8.bf16 %v1613_v57  ;;  %v2443_v0 = vunpack.c.h.s8.bf16 %v1629_v63  ;;  %v2408_v8 = vunpack.c.l.s8.bf16 %v1612_v61 }
 0x2fa   : > { %v6671_v20 = vadd.f32 %v3659_v3, %v3619_v9  ;;  %3913 = vmatpush1.bf16.msra.mxu0 %v2396_v1  ;;  %3954 = vmatpush1.bf16.msra.mxu1 %v2428_v30  ;;  %v1628_v1 = vld [vmem:[%s6291_s10 + $0x7e0] sm:$0xff]  ;;  %v2410_v30 = vunpack.c.h.s8.bf16 %v1612_v61  ;;  %v2409_v3 = vunpack.c.l.s8.bf16 %v1613_v57  ;;  %v2407_v18 = vunpack.c.h.s8.bf16 %v1611_v4  ;;  %v1610_v11 = vld [vmem:[%s6291_s10 + $0x750] sm:$0xff] }
 0x2fb   : > { %v3621_v21 = vpop.f32.mrf.mxu0  ;;  %3914 = vmatprep.subr.bf16.mxu0 %v2395_v10  ;;  %3955 = vmatprep.subr.bf16.mxu1 %v2427_v5  ;;  %v3662_v15 = vpop.f32.mrf.mxu1  ;;  %v2442_v2 = vunpack.c.h.s8.bf16 %v1628_v1  ;;  %v2441_v10 = vunpack.c.l.s8.bf16 %v1629_v63  ;;  %v1627_v5 = vld [vmem:[%s6291_s10 + $0x7d8] sm:$0xff]  ;;  %v2440_v9 = vunpack.c.l.s8.bf16 %v1628_v1 }
 0x2fc   : > { %v2406_v21 = vunpack.c.h.s8.bf16 %v1610_v11  ;;  %v2437_v15 = vunpack.c.l.s8.bf16 %v1627_v5 }
 0x2fe   : > { %3915 = vmatpush1.bf16.msra.mxu0 %v2394_v12  ;;  %3956 = vmatpush1.bf16.msra.mxu1 %v2426_v13  ;;  %v2439_v12 = vunpack.c.h.s8.bf16 %v1627_v5  ;;  %v1626_v13 = vld [vmem:[%s6291_s10 + $0x7d0] sm:$0xff] }
 0x2ff   : > { %3916 = vmatprep.subr.bf16.mxu0 %v2393_v22  ;;  %3957 = vmatprep.subr.bf16.mxu1 %v2425_v14  ;;  %v2438_v22 = vunpack.c.h.s8.bf16 %v1626_v13  ;;  %v2405_v14 = vunpack.c.l.s8.bf16 %v1611_v4 }
 0x302   : > { %3917 = vmatpush1.bf16.msra.mxu0 %v2392_v28  ;;  %3958 = vmatpush1.bf16.msra.mxu1 %v2424_v19  ;;  %v2404_v28 = vunpack.c.l.s8.bf16 %v1610_v11  ;;  %v2436_v19 = vunpack.c.l.s8.bf16 %v1626_v13  ;;  %v1634_v13 = vld [vmem:[%s6291_s10 + $0x810] sm:$0xff] }
 0x303   : > { %3918 = vmatprep.subr.bf16.mxu0 %v2391_v23  ;;  %3959 = vmatprep.subr.bf16.mxu1 %v2423_v24  ;;  %v2403_v23 = vunpack.c.h.s8.bf16 %v1609_v16  ;;  %v2435_v24 = vunpack.c.h.s8.bf16 %v1625_v17 }
 0x306   : > { %3919 = vmatpush1.bf16.msra.mxu0 %v2390_v25  ;;  %3960 = vmatpush1.bf16.msra.mxu1 %v2422_v45  ;;  %v2402_v25 = vunpack.c.h.s8.bf16 %v1608_v44  ;;  %v2434_v45 = vunpack.c.h.s8.bf16 %v1624_v33 }
 0x307   : > { %3920 = vmatprep.subr.bf16.mxu0 %v2389_v26  ;;  %3961 = vmatprep.subr.bf16.mxu1 %v2421_v27  ;;  %v2401_v26 = vunpack.c.l.s8.bf16 %v1609_v16  ;;  %v2433_v27 = vunpack.c.l.s8.bf16 %v1625_v17 }
 0x30a   : > { %3921 = vmatpush1.bf16.msra.mxu0 %v2388_v48  ;;  %3962 = vmatpush1.bf16.msra.mxu1 %v2420_v34  ;;  %v2400_v48 = vunpack.c.l.s8.bf16 %v1608_v44  ;;  %v2432_v34 = vunpack.c.l.s8.bf16 %v1624_v33  ;;  %v1632_v33 = vld [vmem:[%s6291_s10 + $0x800] sm:$0xff] }
 0x30b   : > { %3922 = vmatprep.subr.bf16.mxu0 %v2387_v49  ;;  %3963 = vmatprep.subr.bf16.mxu1 %v2419_v35  ;;  %v2463_v49 = vunpack.c.h.s8.bf16 %v1639_v32  ;;  %v2495_v35 = vunpack.c.h.s8.bf16 %v1655_v29 }
 0x30e   : > { %3923 = vmatpush1.bf16.msra.mxu0 %v2386_v37  ;;  %3964 = vmatpush1.bf16.msra.mxu1 %v2418_v38  ;;  %v4926_v37 = vcombine.low %v6652_v52, %v6652_v52  ;;  %v4928_v38 = vcombine.low %v6657_v53, %v6657_v53  ;;  %v2461_v52 = vunpack.c.l.s8.bf16 %v1639_v32  ;;  %v1653_v53 = vld [vmem:[%s6291_s10 + $0x8a8] sm:$0xff] }
 0x30f   : > { %3924 = vmatprep.subr.bf16.mxu0 %v2385_v40  ;;  %3965 = vmatprep.subr.bf16.mxu1 %v2417_v41  ;;  %v6708_v40 = vld [vmem:[%s7259_s0 + $0x80] sm:$0xff]  ;;  %v6713_v41 = vld [vmem:[%s7259_s0 + $0x88] sm:$0xff]  ;;  %v2489_v4 = vunpack.c.l.s8.bf16 %v1653_v53 }
 0x310   : > { %v4933_v50 = vcombine.high %v6713_v41, %v6713_v41 }
 0x312   : > { %3925 = vmatpush1.bf16.msra.mxu0 %v2384_v46  ;;  %3966 = vmatpush1.bf16.msra.mxu1 %v2416_v47  ;;  %v2493_v46 = vunpack.c.l.s8.bf16 %v1655_v29  ;;  %v1637_v47 = vld [vmem:[%s6291_s10 + $0x828] sm:$0xff] }
 0x313   : > { %3926 = vmatprep.subr.bf16.mxu0 %v2415_v6  ;;  %3967 = vmatprep.subr.bf16.mxu1 %v2447_v7  ;;  %v4931_v6 = vcombine.high %v6708_v40, %v6708_v40  ;;  %v2459_v63 = vunpack.c.h.s8.bf16 %v1637_v47 }
 0x316   : > { %3927 = vmatpush2.bf16.msra.mxu0 %v2414_v54  ;;  %3968 = vmatpush2.bf16.msra.mxu1 %v2446_v55  ;;  %v2460_v55 = vunpack.c.l.s8.bf16 %v1638_v39 }
 0x317   : > { %3928 = vmatprep.subr.bf16.mxu0 %v2413_v62  ;;  %3969 = vmatprep.subr.bf16.mxu1 %v2445_v56  ;;  %v2492_v62 = vunpack.c.l.s8.bf16 %v1654_v36  ;;  %v1646_v36 = vld [vmem:[%s6291_s10 + $0x870] sm:$0xff] }
 0x31a   : > { %3929 = vmatpush2.bf16.msra.mxu0 %v2412_v58  ;;  %3970 = vmatpush2.bf16.msra.mxu1 %v2444_v59  ;;  %v1636_v58 = vld [vmem:[%s6291_s10 + $0x820] sm:$0xff]  ;;  %v2491_v59 = vunpack.c.h.s8.bf16 %v1653_v53  ;;  %v1661_v53 = vld [vmem:[%s6291_s10 + $0x8e8] sm:$0xff] }
 0x31b   : > { %3930 = vmatprep.subr.bf16.mxu0 %v2411_v60  ;;  %3971 = vmatprep.subr.bf16.mxu1 %v2443_v0  ;;  %v1652_v60 = vld [vmem:[%s6291_s10 + $0x8a0] sm:$0xff] }
 0x31c   : > { %v2488_v11 = vunpack.c.l.s8.bf16 %v1652_v60 }
 0x31e   : > { %3931 = vmatpush2.bf16.msra.mxu0 %v2410_v30  ;;  %3972 = vmatpush2.bf16.msra.mxu1 %v2442_v2  ;;  %v2458_v2 = vunpack.c.h.s8.bf16 %v1636_v58 }
 0x31f   : > { %3932 = vmatprep.subr.bf16.mxu0 %v2409_v3  ;;  %3973 = vmatprep.subr.bf16.mxu1 %v2441_v10  ;;  %v2490_v3 = vunpack.c.h.s8.bf16 %v1652_v60 }
 0x322   : > { %3933 = vmatpush2.bf16.msra.mxu0 %v2408_v8  ;;  %3974 = vmatpush2.bf16.msra.mxu1 %v2440_v9  ;;  %v1635_v8 = vld [vmem:[%s6291_s10 + $0x818] sm:$0xff] }
 0x323   : > { %3934 = vmatprep.subr.bf16.mxu0 %v2407_v18  ;;  %3975 = vmatprep.subr.bf16.mxu1 %v2439_v12  ;;  %v1651_v9 = vld [vmem:[%s6291_s10 + $0x898] sm:$0xff]  ;;  %v2456_v18 = vunpack.c.l.s8.bf16 %v1636_v58  ;;  %v2455_v12 = vunpack.c.h.s8.bf16 %v1635_v8  ;;  %v2453_v16 = vunpack.c.l.s8.bf16 %v1635_v8  ;;  %v1641_v8 = vld [vmem:[%s6291_s10 + $0x848] sm:$0xff] }
 0x324   : > { %v2485_v17 = vunpack.c.l.s8.bf16 %v1651_v9  ;;  %v1643_v58 = vld [vmem:[%s6291_s10 + $0x858] sm:$0xff] }
 0x326   : > { %3935 = vmatpush2.bf16.msra.mxu0 %v2406_v21  ;;  %3976 = vmatpush2.bf16.msra.mxu1 %v2438_v22  ;;  %v2487_v21 = vunpack.c.h.s8.bf16 %v1651_v9  ;;  %v1650_v22 = vld [vmem:[%s6291_s10 + $0x890] sm:$0xff]  ;;  %v1657_v9 = vld [vmem:[%s6291_s10 + $0x8c8] sm:$0xff] }
 0x327   : > { %3936 = vmatprep.subr.bf16.mxu0 %v2405_v14  ;;  %3977 = vmatprep.subr.bf16.mxu1 %v2437_v15  ;;  %v2454_v14 = vunpack.c.h.s8.bf16 %v1634_v13  ;;  %v2486_v15 = vunpack.c.h.s8.bf16 %v1650_v22  ;;  %v2484_v44 = vunpack.c.l.s8.bf16 %v1650_v22  ;;  %v1656_v22 = vld [vmem:[%s6291_s10 + $0x8c0] sm:$0xff] }
 0x32a   : > { %3937 = vmatpush2.bf16.msra.mxu0 %v2404_v28  ;;  %3978 = vmatpush2.bf16.msra.mxu1 %v2436_v19  ;;  %v1633_v28 = vld [vmem:[%s6291_s10 + $0x808] sm:$0xff] }
 0x32b   : > { %3938 = vmatprep.subr.bf16.mxu0 %v2403_v23  ;;  %3979 = vmatprep.subr.bf16.mxu1 %v2435_v24  ;;  %v1649_v19 = vld [vmem:[%s6291_s10 + $0x888] sm:$0xff]  ;;  %v2452_v23 = vunpack.c.l.s8.bf16 %v1634_v13  ;;  %v2451_v24 = vunpack.c.h.s8.bf16 %v1633_v28  ;;  %v2449_v32 = vunpack.c.l.s8.bf16 %v1633_v28  ;;  %v1640_v13 = vld [vmem:[%s6291_s10 + $0x840] sm:$0xff]  ;;  %v1671_v28 = vld [vmem:[%s6291_s10 + $0x938] sm:$0xff] }
 0x32c   : > { %v2481_v29 = vunpack.c.l.s8.bf16 %v1649_v19 }
 0x32e   : > { %3939 = vmatpush2.bf16.msra.mxu0 %v2402_v25  ;;  %3980 = vmatpush2.bf16.msra.mxu1 %v2434_v45  ;;  %v2483_v25 = vunpack.c.h.s8.bf16 %v1649_v19  ;;  %v1648_v45 = vld [vmem:[%s6291_s10 + $0x880] sm:$0xff]  ;;  %v1687_v19 = vld [vmem:[%s6291_s10 + $0x9b8] sm:$0xff] }
 0x32f   : > { %3940 = vmatprep.subr.bf16.mxu0 %v2401_v26  ;;  %3981 = vmatprep.subr.bf16.mxu1 %v2433_v27  ;;  %v2450_v26 = vunpack.c.h.s8.bf16 %v1632_v33  ;;  %v2482_v27 = vunpack.c.h.s8.bf16 %v1648_v45  ;;  %v2480_v39 = vunpack.c.l.s8.bf16 %v1648_v45  ;;  %v1686_v45 = vld [vmem:[%s6291_s10 + $0x9b0] sm:$0xff] }
 0x332   : > { %3941 = vmatpush2.bf16.msra.mxu0 %v2400_v48  ;;  %3982 = vmatpush2.bf16.msra.mxu1 %v2432_v34  ;;  %v1647_v48 = vld [vmem:[%s6291_s10 + $0x878] sm:$0xff] }
 0x333   : > { %3992 = vmatprep.subr.bf16.mxu0 %v2463_v49  ;;  %4033 = vmatprep.subr.bf16.mxu1 %v2495_v35  ;;  %v1663_v34 = vld [vmem:[%s6291_s10 + $0x8f8] sm:$0xff]  ;;  %v2448_v49 = vunpack.c.l.s8.bf16 %v1632_v33  ;;  %v2479_v35 = vunpack.c.h.s8.bf16 %v1647_v48  ;;  %v1670_v33 = vld [vmem:[%s6291_s10 + $0x930] sm:$0xff] }
 0x335   : > { %v3698_v7 = vpop.f32.mrf.mxu0  ;;  %3943 = vmatmul.mubr.bf16.vlgmr.msra.gmra.mxu0 %v4926_v37  ;;  %v3739_v51 = vpop.f32.mrf.mxu1  ;;  %3984 = vmatmul.mubr.bf16.vlgmr.msra.gmra.mxu1 %v4928_v38  ;;  %v2511_v37 = vunpack.c.h.s8.bf16 %v1663_v34  ;;  %v1662_v38 = vld [vmem:[%s6291_s10 + $0x8f0] sm:$0xff] }
 0x336   : > { %v3699_v54 = vadd.f32 %v3698_v7, %v6669_v31  ;;  %3993 = vmatpush1.bf16.msra.mxu0 %v2462_v42  ;;  %4034 = vmatpush1.bf16.msra.mxu1 %v2494_v43  ;;  %v2478_v42 = vunpack.c.h.s8.bf16 %v1646_v36  ;;  %v2510_v43 = vunpack.c.h.s8.bf16 %v1662_v38 }
 0x337   : > { %v3700_v56 = vpop.f32.mrf.mxu0  ;;  %v3741_v57 = vpop.f32.mrf.mxu1  ;;  %3994 = vmatprep.subr.bf16.mxu0 %v2461_v52  ;;  %4035 = vmatprep.subr.bf16.mxu1 %v2493_v46  ;;  %v2477_v52 = vunpack.c.l.s8.bf16 %v1647_v48  ;;  %v2509_v46 = vunpack.c.l.s8.bf16 %v1663_v34  ;;  %v2526_v48 = vunpack.c.h.s8.bf16 %v1670_v33  ;;  %v2558_v34 = vunpack.c.h.s8.bf16 %v1686_v45 }
 0x338   : > { %v3701_v61 = vadd.f32 %v3700_v56, %v6671_v20  ;;  %v6725_v0 = vadd.f32 %v3739_v51, %v3699_v54  ;;  %4024 = vmatprep.mubr.bf16.mxu0 %v4931_v6  ;;  %4065 = vmatprep.mubr.bf16.mxu1 %v4933_v50  ;;  %v2457_v20 = vunpack.c.l.s8.bf16 %v1637_v47  ;;  %v1645_v47 = vld [vmem:[%s6291_s10 + $0x868] sm:$0xff]  ;;  %v2476_v6 = vunpack.c.l.s8.bf16 %v1646_v36  ;;  %v1644_v51 = vld [vmem:[%s6291_s10 + $0x860] sm:$0xff] }
 0x339   : > { %v3702_v31 = vpop.f32.mrf.mxu0  ;;  %v3743_v1 = vpop.f32.mrf.mxu1  ;;  %v2508_v50 = vunpack.c.l.s8.bf16 %v1662_v38  ;;  %v2475_v7 = vunpack.c.h.s8.bf16 %v1645_v47  ;;  %v2507_v54 = vunpack.c.h.s8.bf16 %v1661_v53  ;;  %v2472_v60 = vunpack.c.l.s8.bf16 %v1644_v51 }
 0x33a   : > { %v6727_v30 = vadd.f32 %v3741_v57, %v3701_v61  ;;  %3995 = vmatpush1.bf16.msra.mxu0 %v2460_v55  ;;  %4036 = vmatpush1.bf16.msra.mxu1 %v2492_v62  ;;  %v1660_v55 = vld [vmem:[%s6291_s10 + $0x8e0] sm:$0xff]  ;;  %v2474_v62 = vunpack.c.h.s8.bf16 %v1644_v51  ;;  %v2473_v57 = vunpack.c.l.s8.bf16 %v1645_v47  ;;  %v2471_v31 = vunpack.c.h.s8.bf16 %v1643_v58  ;;  %v1642_v1 = vld [vmem:[%s6291_s10 + $0x850] sm:$0xff] }
 0x33b   : > { %v3703_v10 = vpop.f32.mrf.mxu0  ;;  %3996 = vmatprep.subr.bf16.mxu0 %v2459_v63  ;;  %4037 = vmatprep.subr.bf16.mxu1 %v2491_v59  ;;  %v3744_v5 = vpop.f32.mrf.mxu1  ;;  %v2506_v56 = vunpack.c.h.s8.bf16 %v1660_v55  ;;  %v2505_v63 = vunpack.c.l.s8.bf16 %v1661_v53  ;;  %v1659_v59 = vld [vmem:[%s6291_s10 + $0x8d8] sm:$0xff]  ;;  %v2504_v61 = vunpack.c.l.s8.bf16 %v1660_v55 }
 0x33c   : > { %v2470_v10 = vunpack.c.h.s8.bf16 %v1642_v1  ;;  %v2501_v5 = vunpack.c.l.s8.bf16 %v1659_v59 }
 0x33e   : > { %3997 = vmatpush1.bf16.msra.mxu0 %v2458_v2  ;;  %4038 = vmatpush1.bf16.msra.mxu1 %v2490_v3  ;;  %v2503_v2 = vunpack.c.h.s8.bf16 %v1659_v59  ;;  %v1658_v3 = vld [vmem:[%s6291_s10 + $0x8d0] sm:$0xff] }
 0x33f   : > { %3998 = vmatprep.subr.bf16.mxu0 %v2457_v20  ;;  %4039 = vmatprep.subr.bf16.mxu1 %v2489_v4  ;;  %v2502_v20 = vunpack.c.h.s8.bf16 %v1658_v3  ;;  %v2469_v4 = vunpack.c.l.s8.bf16 %v1643_v58 }
 0x342   : > { %3999 = vmatpush1.bf16.msra.mxu0 %v2456_v18  ;;  %4040 = vmatpush1.bf16.msra.mxu1 %v2488_v11  ;;  %v2468_v18 = vunpack.c.l.s8.bf16 %v1642_v1  ;;  %v2500_v11 = vunpack.c.l.s8.bf16 %v1658_v3  ;;  %v1666_v3 = vld [vmem:[%s6291_s10 + $0x910] sm:$0xff] }
 0x343   : > { %4000 = vmatprep.subr.bf16.mxu0 %v2455_v12  ;;  %4041 = vmatprep.subr.bf16.mxu1 %v2487_v21  ;;  %v2467_v12 = vunpack.c.h.s8.bf16 %v1641_v8  ;;  %v2499_v21 = vunpack.c.h.s8.bf16 %v1657_v9 }
 0x346   : > { %4001 = vmatpush1.bf16.msra.mxu0 %v2454_v14  ;;  %4042 = vmatpush1.bf16.msra.mxu1 %v2486_v15  ;;  %v2466_v14 = vunpack.c.h.s8.bf16 %v1640_v13  ;;  %v2498_v15 = vunpack.c.h.s8.bf16 %v1656_v22 }
 0x347   : > { %4002 = vmatprep.subr.bf16.mxu0 %v2453_v16  ;;  %4043 = vmatprep.subr.bf16.mxu1 %v2485_v17  ;;  %v2465_v16 = vunpack.c.l.s8.bf16 %v1641_v8  ;;  %v2497_v17 = vunpack.c.l.s8.bf16 %v1657_v9 }
 0x34a   : > { %4003 = vmatpush1.bf16.msra.mxu0 %v2452_v23  ;;  %4044 = vmatpush1.bf16.msra.mxu1 %v2484_v44  ;;  %v2464_v23 = vunpack.c.l.s8.bf16 %v1640_v13  ;;  %v2496_v44 = vunpack.c.l.s8.bf16 %v1656_v22  ;;  %v1664_v22 = vld [vmem:[%s6291_s10 + $0x900] sm:$0xff] }
 0x34b   : > { %4004 = vmatprep.subr.bf16.mxu0 %v2451_v24  ;;  %4045 = vmatprep.subr.bf16.mxu1 %v2483_v25  ;;  %v2527_v24 = vunpack.c.h.s8.bf16 %v1671_v28  ;;  %v2559_v25 = vunpack.c.h.s8.bf16 %v1687_v19 }
 0x34e   : > { %4005 = vmatpush1.bf16.msra.mxu0 %v2450_v26  ;;  %4046 = vmatpush1.bf16.msra.mxu1 %v2482_v27  ;;  %v4930_v26 = vcombine.low %v6708_v40, %v6708_v40  ;;  %v4932_v27 = vcombine.low %v6713_v41, %v6713_v41  ;;  %v2525_v40 = vunpack.c.l.s8.bf16 %v1671_v28  ;;  %v1685_v41 = vld [vmem:[%s6291_s10 + $0x9a8] sm:$0xff] }
 0x34f   : > { %4006 = vmatprep.subr.bf16.mxu0 %v2449_v32  ;;  %4047 = vmatprep.subr.bf16.mxu1 %v2481_v29  ;;  %v6764_v32 = vld [vmem:[%s7259_s0 + $0x90] sm:$0xff]  ;;  %v6769_v29 = vld [vmem:[%s7259_s0 + $0x98] sm:$0xff]  ;;  %v2553_v58 = vunpack.c.l.s8.bf16 %v1685_v41 }
 0x350   : > { %v4937_v36 = vcombine.high %v6769_v29, %v6769_v29 }
 0x352   : > { %4007 = vmatpush1.bf16.msra.mxu0 %v2448_v49  ;;  %4048 = vmatpush1.bf16.msra.mxu1 %v2480_v39  ;;  %v2557_v49 = vunpack.c.l.s8.bf16 %v1687_v19  ;;  %v1669_v39 = vld [vmem:[%s6291_s10 + $0x928] sm:$0xff] }
 0x353   : > { %4008 = vmatprep.subr.bf16.mxu0 %v2479_v35  ;;  %4049 = vmatprep.subr.bf16.mxu1 %v2511_v37  ;;  %v4935_v35 = vcombine.high %v6764_v32, %v6764_v32  ;;  %v2523_v53 = vunpack.c.h.s8.bf16 %v1669_v39 }
 0x356   : > { %4009 = vmatpush2.bf16.msra.mxu0 %v2478_v42  ;;  %4050 = vmatpush2.bf16.msra.mxu1 %v2510_v43  ;;  %v2524_v43 = vunpack.c.l.s8.bf16 %v1670_v33 }
 0x357   : > { %4010 = vmatprep.subr.bf16.mxu0 %v2477_v52  ;;  %4051 = vmatprep.subr.bf16.mxu1 %v2509_v46  ;;  %v2556_v52 = vunpack.c.l.s8.bf16 %v1686_v45  ;;  %v1678_v45 = vld [vmem:[%s6291_s10 + $0x970] sm:$0xff] }
 0x35a   : > { %4011 = vmatpush2.bf16.msra.mxu0 %v2476_v6  ;;  %4052 = vmatpush2.bf16.msra.mxu1 %v2508_v50  ;;  %v1668_v6 = vld [vmem:[%s6291_s10 + $0x920] sm:$0xff]  ;;  %v2555_v50 = vunpack.c.h.s8.bf16 %v1685_v41  ;;  %v1693_v41 = vld [vmem:[%s6291_s10 + $0x9e8] sm:$0xff] }
 0x35b   : > { %4012 = vmatprep.subr.bf16.mxu0 %v2475_v7  ;;  %4053 = vmatprep.subr.bf16.mxu1 %v2507_v54  ;;  %v1684_v7 = vld [vmem:[%s6291_s10 + $0x9a0] sm:$0xff] }
 0x35c   : > { %v2552_v1 = vunpack.c.l.s8.bf16 %v1684_v7 }
 0x35e   : > { %4013 = vmatpush2.bf16.msra.mxu0 %v2474_v62  ;;  %4054 = vmatpush2.bf16.msra.mxu1 %v2506_v56  ;;  %v2522_v56 = vunpack.c.h.s8.bf16 %v1668_v6 }
 0x35f   : > { %4014 = vmatprep.subr.bf16.mxu0 %v2473_v57  ;;  %4055 = vmatprep.subr.bf16.mxu1 %v2505_v63  ;;  %v2554_v57 = vunpack.c.h.s8.bf16 %v1684_v7 }
 0x362   : > { %4015 = vmatpush2.bf16.msra.mxu0 %v2472_v60  ;;  %4056 = vmatpush2.bf16.msra.mxu1 %v2504_v61  ;;  %v1667_v60 = vld [vmem:[%s6291_s10 + $0x918] sm:$0xff] }
 0x363   : > { %4016 = vmatprep.subr.bf16.mxu0 %v2471_v31  ;;  %4057 = vmatprep.subr.bf16.mxu1 %v2503_v2  ;;  %v1683_v61 = vld [vmem:[%s6291_s10 + $0x998] sm:$0xff]  ;;  %v2520_v31 = vunpack.c.l.s8.bf16 %v1668_v6  ;;  %v2519_v2 = vunpack.c.h.s8.bf16 %v1667_v60  ;;  %v2517_v8 = vunpack.c.l.s8.bf16 %v1667_v60  ;;  %v1673_v60 = vld [vmem:[%s6291_s10 + $0x948] sm:$0xff] }
 0x364   : > { %v2549_v9 = vunpack.c.l.s8.bf16 %v1683_v61  ;;  %v1675_v6 = vld [vmem:[%s6291_s10 + $0x958] sm:$0xff] }
 0x366   : > { %4017 = vmatpush2.bf16.msra.mxu0 %v2470_v10  ;;  %4058 = vmatpush2.bf16.msra.mxu1 %v2502_v20  ;;  %v2551_v10 = vunpack.c.h.s8.bf16 %v1683_v61  ;;  %v1682_v20 = vld [vmem:[%s6291_s10 + $0x990] sm:$0xff]  ;;  %v1689_v61 = vld [vmem:[%s6291_s10 + $0x9c8] sm:$0xff] }
 0x367   : > { %4018 = vmatprep.subr.bf16.mxu0 %v2469_v4  ;;  %4059 = vmatprep.subr.bf16.mxu1 %v2501_v5  ;;  %v2518_v4 = vunpack.c.h.s8.bf16 %v1666_v3  ;;  %v2550_v5 = vunpack.c.h.s8.bf16 %v1682_v20  ;;  %v2548_v13 = vunpack.c.l.s8.bf16 %v1682_v20  ;;  %v1688_v20 = vld [vmem:[%s6291_s10 + $0x9c0] sm:$0xff] }
 0x36a   : > { %4019 = vmatpush2.bf16.msra.mxu0 %v2468_v18  ;;  %4060 = vmatpush2.bf16.msra.mxu1 %v2500_v11  ;;  %v1665_v18 = vld [vmem:[%s6291_s10 + $0x908] sm:$0xff] }
 0x36b   : > { %4020 = vmatprep.subr.bf16.mxu0 %v2467_v12  ;;  %4061 = vmatprep.subr.bf16.mxu1 %v2499_v21  ;;  %v1681_v11 = vld [vmem:[%s6291_s10 + $0x988] sm:$0xff]  ;;  %v2516_v12 = vunpack.c.l.s8.bf16 %v1666_v3  ;;  %v2515_v21 = vunpack.c.h.s8.bf16 %v1665_v18  ;;  %v2513_v28 = vunpack.c.l.s8.bf16 %v1665_v18  ;;  %v1672_v3 = vld [vmem:[%s6291_s10 + $0x940] sm:$0xff]  ;;  %v1703_v18 = vld [vmem:[%s6291_s10 + $0xa38] sm:$0xff] }
 0x36c   : > { %v2545_v19 = vunpack.c.l.s8.bf16 %v1681_v11 }
 0x36e   : > { %4021 = vmatpush2.bf16.msra.mxu0 %v2466_v14  ;;  %4062 = vmatpush2.bf16.msra.mxu1 %v2498_v15  ;;  %v2547_v14 = vunpack.c.h.s8.bf16 %v1681_v11  ;;  %v1680_v15 = vld [vmem:[%s6291_s10 + $0x980] sm:$0xff]  ;;  %v1719_v11 = vld [vmem:[%s6291_s10 + $0xab8] sm:$0xff] }
 0x36f   : > { %4022 = vmatprep.subr.bf16.mxu0 %v2465_v16  ;;  %4063 = vmatprep.subr.bf16.mxu1 %v2497_v17  ;;  %v2514_v16 = vunpack.c.h.s8.bf16 %v1664_v22  ;;  %v2546_v17 = vunpack.c.h.s8.bf16 %v1680_v15  ;;  %v2544_v33 = vunpack.c.l.s8.bf16 %v1680_v15  ;;  %v1718_v15 = vld [vmem:[%s6291_s10 + $0xab0] sm:$0xff] }
 0x372   : > { %4023 = vmatpush2.bf16.msra.mxu0 %v2464_v23  ;;  %4064 = vmatpush2.bf16.msra.mxu1 %v2496_v44  ;;  %v1679_v23 = vld [vmem:[%s6291_s10 + $0x978] sm:$0xff] }
 0x373   : > { %4074 = vmatprep.subr.bf16.mxu0 %v2527_v24  ;;  %4115 = vmatprep.subr.bf16.mxu1 %v2559_v25  ;;  %v1695_v44 = vld [vmem:[%s6291_s10 + $0x9f8] sm:$0xff]  ;;  %v2512_v24 = vunpack.c.l.s8.bf16 %v1664_v22  ;;  %v2543_v25 = vunpack.c.h.s8.bf16 %v1679_v23  ;;  %v1702_v22 = vld [vmem:[%s6291_s10 + $0xa30] sm:$0xff] }
 0x375   : > { %v3780_v37 = vpop.f32.mrf.mxu0  ;;  %4025 = vmatmul.mubr.bf16.vlgmr.msra.gmra.mxu0 %v4930_v26  ;;  %v3821_v38 = vpop.f32.mrf.mxu1  ;;  %4066 = vmatmul.mubr.bf16.vlgmr.msra.gmra.mxu1 %v4932_v27  ;;  %v2575_v26 = vunpack.c.h.s8.bf16 %v1695_v44  ;;  %v1694_v27 = vld [vmem:[%s6291_s10 + $0x9f0] sm:$0xff] }
 0x376   : > { %v3781_v42 = vadd.f32 %v3780_v37, %v6725_v0  ;;  %4075 = vmatpush1.bf16.msra.mxu0 %v2526_v48  ;;  %4116 = vmatpush1.bf16.msra.mxu1 %v2558_v34  ;;  %v2542_v48 = vunpack.c.h.s8.bf16 %v1678_v45  ;;  %v2574_v34 = vunpack.c.h.s8.bf16 %v1694_v27 }
 0x377   : > { %v3782_v46 = vpop.f32.mrf.mxu0  ;;  %v3823_v47 = vpop.f32.mrf.mxu1  ;;  %4076 = vmatprep.subr.bf16.mxu0 %v2525_v40  ;;  %4117 = vmatprep.subr.bf16.mxu1 %v2557_v49  ;;  %v2541_v40 = vunpack.c.l.s8.bf16 %v1679_v23  ;;  %v2573_v49 = vunpack.c.l.s8.bf16 %v1695_v44  ;;  %v2590_v23 = vunpack.c.h.s8.bf16 %v1702_v22  ;;  %v2622_v44 = vunpack.c.h.s8.bf16 %v1718_v15 }
 0x378   : > { %v3783_v51 = vadd.f32 %v3782_v46, %v6727_v30  ;;  %v6781_v54 = vadd.f32 %v3821_v38, %v3781_v42  ;;  %4106 = vmatprep.mubr.bf16.mxu0 %v4935_v35  ;;  %4147 = vmatprep.mubr.bf16.mxu1 %v4937_v36  ;;  %v2521_v30 = vunpack.c.l.s8.bf16 %v1669_v39  ;;  %v1677_v39 = vld [vmem:[%s6291_s10 + $0x968] sm:$0xff]  ;;  %v2540_v35 = vunpack.c.l.s8.bf16 %v1678_v45  ;;  %v1676_v38 = vld [vmem:[%s6291_s10 + $0x960] sm:$0xff] }
 0x379   : > { %v3784_v0 = vpop.f32.mrf.mxu0  ;;  %v3825_v55 = vpop.f32.mrf.mxu1  ;;  %v2572_v36 = vunpack.c.l.s8.bf16 %v1694_v27  ;;  %v2539_v37 = vunpack.c.h.s8.bf16 %v1677_v39  ;;  %v2571_v42 = vunpack.c.h.s8.bf16 %v1693_v41  ;;  %v2536_v7 = vunpack.c.l.s8.bf16 %v1676_v38 }
 0x37a   : > { %v6783_v62 = vadd.f32 %v3823_v47, %v3783_v51  ;;  %4077 = vmatpush1.bf16.msra.mxu0 %v2524_v43  ;;  %4118 = vmatpush1.bf16.msra.mxu1 %v2556_v52  ;;  %v1692_v43 = vld [vmem:[%s6291_s10 + $0x9e0] sm:$0xff]  ;;  %v2538_v52 = vunpack.c.h.s8.bf16 %v1676_v38  ;;  %v2537_v47 = vunpack.c.l.s8.bf16 %v1677_v39  ;;  %v2535_v0 = vunpack.c.h.s8.bf16 %v1675_v6  ;;  %v1674_v55 = vld [vmem:[%s6291_s10 + $0x950] sm:$0xff] }
 0x37b   : > { %v3785_v63 = vpop.f32.mrf.mxu0  ;;  %4078 = vmatprep.subr.bf16.mxu0 %v2523_v53  ;;  %4119 = vmatprep.subr.bf16.mxu1 %v2555_v50  ;;  %v3826_v59 = vpop.f32.mrf.mxu1  ;;  %v2570_v46 = vunpack.c.h.s8.bf16 %v1692_v43  ;;  %v2569_v53 = vunpack.c.l.s8.bf16 %v1693_v41  ;;  %v1691_v50 = vld [vmem:[%s6291_s10 + $0x9d8] sm:$0xff]  ;;  %v2568_v51 = vunpack.c.l.s8.bf16 %v1692_v43 }
 0x37c   : > { %v2534_v63 = vunpack.c.h.s8.bf16 %v1674_v55  ;;  %v2565_v59 = vunpack.c.l.s8.bf16 %v1691_v50 }
 0x37e   : > { %4079 = vmatpush1.bf16.msra.mxu0 %v2522_v56  ;;  %4120 = vmatpush1.bf16.msra.mxu1 %v2554_v57  ;;  %v2567_v56 = vunpack.c.h.s8.bf16 %v1691_v50  ;;  %v1690_v57 = vld [vmem:[%s6291_s10 + $0x9d0] sm:$0xff] }
 0x37f   : > { %4080 = vmatprep.subr.bf16.mxu0 %v2521_v30  ;;  %4121 = vmatprep.subr.bf16.mxu1 %v2553_v58  ;;  %v2566_v30 = vunpack.c.h.s8.bf16 %v1690_v57  ;;  %v2533_v58 = vunpack.c.l.s8.bf16 %v1675_v6 }
 0x382   : > { %4081 = vmatpush1.bf16.msra.mxu0 %v2520_v31  ;;  %4122 = vmatpush1.bf16.msra.mxu1 %v2552_v1  ;;  %v2532_v31 = vunpack.c.l.s8.bf16 %v1674_v55  ;;  %v2564_v1 = vunpack.c.l.s8.bf16 %v1690_v57  ;;  %v1698_v57 = vld [vmem:[%s6291_s10 + $0xa10] sm:$0xff] }
 0x383   : > { %4082 = vmatprep.subr.bf16.mxu0 %v2519_v2  ;;  %4123 = vmatprep.subr.bf16.mxu1 %v2551_v10  ;;  %v2531_v2 = vunpack.c.h.s8.bf16 %v1673_v60  ;;  %v2563_v10 = vunpack.c.h.s8.bf16 %v1689_v61 }
 0x386   : > { %4083 = vmatpush1.bf16.msra.mxu0 %v2518_v4  ;;  %4124 = vmatpush1.bf16.msra.mxu1 %v2550_v5  ;;  %v2530_v4 = vunpack.c.h.s8.bf16 %v1672_v3  ;;  %v2562_v5 = vunpack.c.h.s8.bf16 %v1688_v20 }
 0x387   : > { %4084 = vmatprep.subr.bf16.mxu0 %v2517_v8  ;;  %4125 = vmatprep.subr.bf16.mxu1 %v2549_v9  ;;  %v2529_v8 = vunpack.c.l.s8.bf16 %v1673_v60  ;;  %v2561_v9 = vunpack.c.l.s8.bf16 %v1689_v61 }
 0x38a   : > { %4085 = vmatpush1.bf16.msra.mxu0 %v2516_v12  ;;  %4126 = vmatpush1.bf16.msra.mxu1 %v2548_v13  ;;  %v2528_v12 = vunpack.c.l.s8.bf16 %v1672_v3  ;;  %v2560_v13 = vunpack.c.l.s8.bf16 %v1688_v20  ;;  %v1696_v20 = vld [vmem:[%s6291_s10 + $0xa00] sm:$0xff] }
 0x38b   : > { %4086 = vmatprep.subr.bf16.mxu0 %v2515_v21  ;;  %4127 = vmatprep.subr.bf16.mxu1 %v2547_v14  ;;  %v2591_v21 = vunpack.c.h.s8.bf16 %v1703_v18  ;;  %v2623_v14 = vunpack.c.h.s8.bf16 %v1719_v11 }
 0x38e   : > { %4087 = vmatpush1.bf16.msra.mxu0 %v2514_v16  ;;  %4128 = vmatpush1.bf16.msra.mxu1 %v2546_v17  ;;  %v4934_v16 = vcombine.low %v6764_v32, %v6764_v32  ;;  %v4936_v17 = vcombine.low %v6769_v29, %v6769_v29  ;;  %v2589_v32 = vunpack.c.l.s8.bf16 %v1703_v18  ;;  %v1717_v29 = vld [vmem:[%s6291_s10 + $0xaa8] sm:$0xff] }
 0x38f   : > { %4088 = vmatprep.subr.bf16.mxu0 %v2513_v28  ;;  %4129 = vmatprep.subr.bf16.mxu1 %v2545_v19  ;;  %v6820_v28 = vld [vmem:[%s7259_s0 + $0xa0] sm:$0xff]  ;;  %v6825_v19 = vld [vmem:[%s7259_s0 + $0xa8] sm:$0xff]  ;;  %v2617_v6 = vunpack.c.l.s8.bf16 %v1717_v29 }
 0x390   : > { %v4941_v45 = vcombine.high %v6825_v19, %v6825_v19 }
 0x392   : > { %4089 = vmatpush1.bf16.msra.mxu0 %v2512_v24  ;;  %4130 = vmatpush1.bf16.msra.mxu1 %v2544_v33  ;;  %v2621_v24 = vunpack.c.l.s8.bf16 %v1719_v11  ;;  %v1701_v33 = vld [vmem:[%s6291_s10 + $0xa28] sm:$0xff] }
 0x393   : > { %4090 = vmatprep.subr.bf16.mxu0 %v2543_v25  ;;  %4131 = vmatprep.subr.bf16.mxu1 %v2575_v26  ;;  %v4939_v25 = vcombine.high %v6820_v28, %v6820_v28  ;;  %v2587_v41 = vunpack.c.h.s8.bf16 %v1701_v33 }
 0x396   : > { %4091 = vmatpush2.bf16.msra.mxu0 %v2542_v48  ;;  %4132 = vmatpush2.bf16.msra.mxu1 %v2574_v34  ;;  %v2588_v34 = vunpack.c.l.s8.bf16 %v1702_v22 }
 0x397   : > { %4092 = vmatprep.subr.bf16.mxu0 %v2541_v40  ;;  %4133 = vmatprep.subr.bf16.mxu1 %v2573_v49  ;;  %v2620_v40 = vunpack.c.l.s8.bf16 %v1718_v15  ;;  %v1710_v15 = vld [vmem:[%s6291_s10 + $0xa70] sm:$0xff] }
 0x39a   : > { %4093 = vmatpush2.bf16.msra.mxu0 %v2540_v35  ;;  %4134 = vmatpush2.bf16.msra.mxu1 %v2572_v36  ;;  %v1700_v35 = vld [vmem:[%s6291_s10 + $0xa20] sm:$0xff]  ;;  %v2619_v36 = vunpack.c.h.s8.bf16 %v1717_v29  ;;  %v1725_v29 = vld [vmem:[%s6291_s10 + $0xae8] sm:$0xff] }
 0x39b   : > { %4094 = vmatprep.subr.bf16.mxu0 %v2539_v37  ;;  %4135 = vmatprep.subr.bf16.mxu1 %v2571_v42  ;;  %v1716_v37 = vld [vmem:[%s6291_s10 + $0xaa0] sm:$0xff] }
 0x39c   : > { %v2616_v55 = vunpack.c.l.s8.bf16 %v1716_v37 }
 0x39e   : > { %4095 = vmatpush2.bf16.msra.mxu0 %v2538_v52  ;;  %4136 = vmatpush2.bf16.msra.mxu1 %v2570_v46  ;;  %v2586_v46 = vunpack.c.h.s8.bf16 %v1700_v35 }
 0x39f   : > { %4096 = vmatprep.subr.bf16.mxu0 %v2537_v47  ;;  %4137 = vmatprep.subr.bf16.mxu1 %v2569_v53  ;;  %v2618_v47 = vunpack.c.h.s8.bf16 %v1716_v37 }
 0x3a2   : > { %4097 = vmatpush2.bf16.msra.mxu0 %v2536_v7  ;;  %4138 = vmatpush2.bf16.msra.mxu1 %v2568_v51  ;;  %v1699_v7 = vld [vmem:[%s6291_s10 + $0xa18] sm:$0xff] }
 0x3a3   : > { %4098 = vmatprep.subr.bf16.mxu0 %v2535_v0  ;;  %4139 = vmatprep.subr.bf16.mxu1 %v2567_v56  ;;  %v1715_v51 = vld [vmem:[%s6291_s10 + $0xa98] sm:$0xff]  ;;  %v2584_v0 = vunpack.c.l.s8.bf16 %v1700_v35  ;;  %v2583_v56 = vunpack.c.h.s8.bf16 %v1699_v7  ;;  %v2581_v60 = vunpack.c.l.s8.bf16 %v1699_v7  ;;  %v1705_v7 = vld [vmem:[%s6291_s10 + $0xa48] sm:$0xff] }
 0x3a4   : > { %v2613_v61 = vunpack.c.l.s8.bf16 %v1715_v51  ;;  %v1707_v35 = vld [vmem:[%s6291_s10 + $0xa58] sm:$0xff] }
 0x3a6   : > { %4099 = vmatpush2.bf16.msra.mxu0 %v2534_v63  ;;  %4140 = vmatpush2.bf16.msra.mxu1 %v2566_v30  ;;  %v2615_v63 = vunpack.c.h.s8.bf16 %v1715_v51  ;;  %v1714_v30 = vld [vmem:[%s6291_s10 + $0xa90] sm:$0xff]  ;;  %v1721_v51 = vld [vmem:[%s6291_s10 + $0xac8] sm:$0xff] }
 0x3a7   : > { %4100 = vmatprep.subr.bf16.mxu0 %v2533_v58  ;;  %4141 = vmatprep.subr.bf16.mxu1 %v2565_v59  ;;  %v2582_v58 = vunpack.c.h.s8.bf16 %v1698_v57  ;;  %v2614_v59 = vunpack.c.h.s8.bf16 %v1714_v30  ;;  %v2612_v3 = vunpack.c.l.s8.bf16 %v1714_v30  ;;  %v1720_v30 = vld [vmem:[%s6291_s10 + $0xac0] sm:$0xff] }
 0x3aa   : > { %4101 = vmatpush2.bf16.msra.mxu0 %v2532_v31  ;;  %4142 = vmatpush2.bf16.msra.mxu1 %v2564_v1  ;;  %v1697_v31 = vld [vmem:[%s6291_s10 + $0xa08] sm:$0xff] }
 0x3ab   : > { %4102 = vmatprep.subr.bf16.mxu0 %v2531_v2  ;;  %4143 = vmatprep.subr.bf16.mxu1 %v2563_v10  ;;  %v1713_v1 = vld [vmem:[%s6291_s10 + $0xa88] sm:$0xff]  ;;  %v2580_v2 = vunpack.c.l.s8.bf16 %v1698_v57  ;;  %v2579_v10 = vunpack.c.h.s8.bf16 %v1697_v31  ;;  %v2577_v18 = vunpack.c.l.s8.bf16 %v1697_v31  ;;  %v1704_v57 = vld [vmem:[%s6291_s10 + $0xa40] sm:$0xff]  ;;  %v1735_v31 = vld [vmem:[%s6291_s10 + $0xb38] sm:$0xff] }
 0x3ac   : > { %v2609_v11 = vunpack.c.l.s8.bf16 %v1713_v1 }
 0x3ae   : > { %4103 = vmatpush2.bf16.msra.mxu0 %v2530_v4  ;;  %4144 = vmatpush2.bf16.msra.mxu1 %v2562_v5  ;;  %v2611_v4 = vunpack.c.h.s8.bf16 %v1713_v1  ;;  %v1712_v5 = vld [vmem:[%s6291_s10 + $0xa80] sm:$0xff]  ;;  %v1751_v1 = vld [vmem:[%s6291_s10 + $0xbb8] sm:$0xff] }
 0x3af   : > { %4104 = vmatprep.subr.bf16.mxu0 %v2529_v8  ;;  %4145 = vmatprep.subr.bf16.mxu1 %v2561_v9  ;;  %v2578_v8 = vunpack.c.h.s8.bf16 %v1696_v20  ;;  %v2610_v9 = vunpack.c.h.s8.bf16 %v1712_v5  ;;  %v2608_v22 = vunpack.c.l.s8.bf16 %v1712_v5  ;;  %v1750_v5 = vld [vmem:[%s6291_s10 + $0xbb0] sm:$0xff] }
 0x3b2   : > { %4105 = vmatpush2.bf16.msra.mxu0 %v2528_v12  ;;  %4146 = vmatpush2.bf16.msra.mxu1 %v2560_v13  ;;  %v1711_v12 = vld [vmem:[%s6291_s10 + $0xa78] sm:$0xff] }
 0x3b3   : > { %4156 = vmatprep.subr.bf16.mxu0 %v2591_v21  ;;  %4197 = vmatprep.subr.bf16.mxu1 %v2623_v14  ;;  %v1727_v13 = vld [vmem:[%s6291_s10 + $0xaf8] sm:$0xff]  ;;  %v2576_v21 = vunpack.c.l.s8.bf16 %v1696_v20  ;;  %v2607_v14 = vunpack.c.h.s8.bf16 %v1711_v12  ;;  %v1734_v20 = vld [vmem:[%s6291_s10 + $0xb30] sm:$0xff] }
 0x3b5   : > { %v3862_v26 = vpop.f32.mrf.mxu0  ;;  %4107 = vmatmul.mubr.bf16.vlgmr.msra.gmra.mxu0 %v4934_v16  ;;  %v3903_v27 = vpop.f32.mrf.mxu1  ;;  %4148 = vmatmul.mubr.bf16.vlgmr.msra.gmra.mxu1 %v4936_v17  ;;  %v2639_v16 = vunpack.c.h.s8.bf16 %v1727_v13  ;;  %v1726_v17 = vld [vmem:[%s6291_s10 + $0xaf0] sm:$0xff] }
 0x3b6   : > { %v3863_v48 = vadd.f32 %v3862_v26, %v6781_v54  ;;  %4157 = vmatpush1.bf16.msra.mxu0 %v2590_v23  ;;  %4198 = vmatpush1.bf16.msra.mxu1 %v2622_v44  ;;  %v2606_v23 = vunpack.c.h.s8.bf16 %v1710_v15  ;;  %v2638_v44 = vunpack.c.h.s8.bf16 %v1726_v17 }
 0x3b7   : > { %v3864_v49 = vpop.f32.mrf.mxu0  ;;  %v3905_v39 = vpop.f32.mrf.mxu1  ;;  %4158 = vmatprep.subr.bf16.mxu0 %v2589_v32  ;;  %4199 = vmatprep.subr.bf16.mxu1 %v2621_v24  ;;  %v2605_v32 = vunpack.c.l.s8.bf16 %v1711_v12  ;;  %v2637_v24 = vunpack.c.l.s8.bf16 %v1727_v13  ;;  %v2654_v12 = vunpack.c.h.s8.bf16 %v1734_v20  ;;  %v2686_v13 = vunpack.c.h.s8.bf16 %v1750_v5 }
 0x3b8   : > { %v3865_v38 = vadd.f32 %v3864_v49, %v6783_v62  ;;  %v6837_v42 = vadd.f32 %v3903_v27, %v3863_v48  ;;  %4188 = vmatprep.mubr.bf16.mxu0 %v4939_v25  ;;  %4229 = vmatprep.mubr.bf16.mxu1 %v4941_v45  ;;  %v2585_v62 = vunpack.c.l.s8.bf16 %v1701_v33  ;;  %v1709_v33 = vld [vmem:[%s6291_s10 + $0xa68] sm:$0xff]  ;;  %v2604_v25 = vunpack.c.l.s8.bf16 %v1710_v15  ;;  %v1708_v27 = vld [vmem:[%s6291_s10 + $0xa60] sm:$0xff] }
 0x3b9   : > { %v3866_v54 = vpop.f32.mrf.mxu0  ;;  %v3907_v43 = vpop.f32.mrf.mxu1  ;;  %v2636_v45 = vunpack.c.l.s8.bf16 %v1726_v17  ;;  %v2603_v26 = vunpack.c.h.s8.bf16 %v1709_v33  ;;  %v2635_v48 = vunpack.c.h.s8.bf16 %v1725_v29  ;;  %v2600_v37 = vunpack.c.l.s8.bf16 %v1708_v27 }
 0x3ba   : > { %v6839_v52 = vadd.f32 %v3905_v39, %v3865_v38  ;;  %4159 = vmatpush1.bf16.msra.mxu0 %v2588_v34  ;;  %4200 = vmatpush1.bf16.msra.mxu1 %v2620_v40  ;;  %v1724_v34 = vld [vmem:[%s6291_s10 + $0xae0] sm:$0xff]  ;;  %v2602_v40 = vunpack.c.h.s8.bf16 %v1708_v27  ;;  %v2601_v39 = vunpack.c.l.s8.bf16 %v1709_v33  ;;  %v2599_v54 = vunpack.c.h.s8.bf16 %v1707_v35  ;;  %v1706_v43 = vld [vmem:[%s6291_s10 + $0xa50] sm:$0xff] }
 0x3bb   : > { %v3867_v53 = vpop.f32.mrf.mxu0  ;;  %4160 = vmatprep.subr.bf16.mxu0 %v2587_v41  ;;  %4201 = vmatprep.subr.bf16.mxu1 %v2619_v36  ;;  %v3908_v50 = vpop.f32.mrf.mxu1  ;;  %v2634_v49 = vunpack.c.h.s8.bf16 %v1724_v34  ;;  %v2633_v41 = vunpack.c.l.s8.bf16 %v1725_v29  ;;  %v1723_v36 = vld [vmem:[%s6291_s10 + $0xad8] sm:$0xff]  ;;  %v2632_v38 = vunpack.c.l.s8.bf16 %v1724_v34 }
 0x3bc   : > { %v2598_v53 = vunpack.c.h.s8.bf16 %v1706_v43  ;;  %v2629_v50 = vunpack.c.l.s8.bf16 %v1723_v36 }
 0x3be   : > { %4161 = vmatpush1.bf16.msra.mxu0 %v2586_v46  ;;  %4202 = vmatpush1.bf16.msra.mxu1 %v2618_v47  ;;  %v2631_v46 = vunpack.c.h.s8.bf16 %v1723_v36  ;;  %v1722_v47 = vld [vmem:[%s6291_s10 + $0xad0] sm:$0xff] }
 0x3bf   : > { %4162 = vmatprep.subr.bf16.mxu0 %v2585_v62  ;;  %4203 = vmatprep.subr.bf16.mxu1 %v2617_v6  ;;  %v2630_v62 = vunpack.c.h.s8.bf16 %v1722_v47  ;;  %v2597_v6 = vunpack.c.l.s8.bf16 %v1707_v35 }
 0x3c2   : > { %4163 = vmatpush1.bf16.msra.mxu0 %v2584_v0  ;;  %4204 = vmatpush1.bf16.msra.mxu1 %v2616_v55  ;;  %v2596_v0 = vunpack.c.l.s8.bf16 %v1706_v43  ;;  %v2628_v55 = vunpack.c.l.s8.bf16 %v1722_v47  ;;  %v1730_v47 = vld [vmem:[%s6291_s10 + $0xb10] sm:$0xff] }
 0x3c3   : > { %4164 = vmatprep.subr.bf16.mxu0 %v2583_v56  ;;  %4205 = vmatprep.subr.bf16.mxu1 %v2615_v63  ;;  %v2595_v56 = vunpack.c.h.s8.bf16 %v1705_v7  ;;  %v2627_v63 = vunpack.c.h.s8.bf16 %v1721_v51 }
 0x3c6   : > { %4165 = vmatpush1.bf16.msra.mxu0 %v2582_v58  ;;  %4206 = vmatpush1.bf16.msra.mxu1 %v2614_v59  ;;  %v2594_v58 = vunpack.c.h.s8.bf16 %v1704_v57  ;;  %v2626_v59 = vunpack.c.h.s8.bf16 %v1720_v30 }
 0x3c7   : > { %4166 = vmatprep.subr.bf16.mxu0 %v2581_v60  ;;  %4207 = vmatprep.subr.bf16.mxu1 %v2613_v61  ;;  %v2593_v60 = vunpack.c.l.s8.bf16 %v1705_v7  ;;  %v2625_v61 = vunpack.c.l.s8.bf16 %v1721_v51 }
 0x3ca   : > { %4167 = vmatpush1.bf16.msra.mxu0 %v2580_v2  ;;  %4208 = vmatpush1.bf16.msra.mxu1 %v2612_v3  ;;  %v2592_v2 = vunpack.c.l.s8.bf16 %v1704_v57  ;;  %v2624_v3 = vunpack.c.l.s8.bf16 %v1720_v30  ;;  %v1728_v30 = vld [vmem:[%s6291_s10 + $0xb00] sm:$0xff] }
 0x3cb   : > { %4168 = vmatprep.subr.bf16.mxu0 %v2579_v10  ;;  %4209 = vmatprep.subr.bf16.mxu1 %v2611_v4  ;;  %v2655_v10 = vunpack.c.h.s8.bf16 %v1735_v31  ;;  %v2687_v4 = vunpack.c.h.s8.bf16 %v1751_v1 }
 0x3ce   : > { %4169 = vmatpush1.bf16.msra.mxu0 %v2578_v8  ;;  %4210 = vmatpush1.bf16.msra.mxu1 %v2610_v9  ;;  %v4938_v8 = vcombine.low %v6820_v28, %v6820_v28  ;;  %v4940_v9 = vcombine.low %v6825_v19, %v6825_v19  ;;  %v2653_v28 = vunpack.c.l.s8.bf16 %v1735_v31  ;;  %v1749_v19 = vld [vmem:[%s6291_s10 + $0xba8] sm:$0xff] }
 0x3cf   : > { %4170 = vmatprep.subr.bf16.mxu0 %v2577_v18  ;;  %4211 = vmatprep.subr.bf16.mxu1 %v2609_v11  ;;  %v6876_v18 = vld [vmem:[%s7259_s0 + $0xb0] sm:$0xff]  ;;  %v6881_v11 = vld [vmem:[%s7259_s0 + $0xb8] sm:$0xff]  ;;  %v2681_v35 = vunpack.c.l.s8.bf16 %v1749_v19 }
 0x3d0   : > { %v4945_v15 = vcombine.high %v6881_v11, %v6881_v11 }
 0x3d2   : > { %4171 = vmatpush1.bf16.msra.mxu0 %v2576_v21  ;;  %4212 = vmatpush1.bf16.msra.mxu1 %v2608_v22  ;;  %v2685_v21 = vunpack.c.l.s8.bf16 %v1751_v1  ;;  %v1733_v22 = vld [vmem:[%s6291_s10 + $0xb28] sm:$0xff] }
 0x3d3   : > { %4172 = vmatprep.subr.bf16.mxu0 %v2607_v14  ;;  %4213 = vmatprep.subr.bf16.mxu1 %v2639_v16  ;;  %v4943_v14 = vcombine.high %v6876_v18, %v6876_v18  ;;  %v2651_v29 = vunpack.c.h.s8.bf16 %v1733_v22 }
 0x3d6   : > { %4173 = vmatpush2.bf16.msra.mxu0 %v2606_v23  ;;  %4214 = vmatpush2.bf16.msra.mxu1 %v2638_v44  ;;  %v2652_v44 = vunpack.c.l.s8.bf16 %v1734_v20 }
 0x3d7   : > { %4174 = vmatprep.subr.bf16.mxu0 %v2605_v32  ;;  %4215 = vmatprep.subr.bf16.mxu1 %v2637_v24  ;;  %v2684_v32 = vunpack.c.l.s8.bf16 %v1750_v5  ;;  %v1742_v5 = vld [vmem:[%s6291_s10 + $0xb70] sm:$0xff] }
 0x3da   : > { %4175 = vmatpush2.bf16.msra.mxu0 %v2604_v25  ;;  %4216 = vmatpush2.bf16.msra.mxu1 %v2636_v45  ;;  %v1732_v25 = vld [vmem:[%s6291_s10 + $0xb20] sm:$0xff]  ;;  %v2683_v45 = vunpack.c.h.s8.bf16 %v1749_v19  ;;  %v1757_v19 = vld [vmem:[%s6291_s10 + $0xbe8] sm:$0xff] }
 0x3db   : > { %4176 = vmatprep.subr.bf16.mxu0 %v2603_v26  ;;  %4217 = vmatprep.subr.bf16.mxu1 %v2635_v48  ;;  %v1748_v26 = vld [vmem:[%s6291_s10 + $0xba0] sm:$0xff] }
 0x3dc   : > { %v2680_v43 = vunpack.c.l.s8.bf16 %v1748_v26 }
 0x3de   : > { %4177 = vmatpush2.bf16.msra.mxu0 %v2602_v40  ;;  %4218 = vmatpush2.bf16.msra.mxu1 %v2634_v49  ;;  %v2650_v49 = vunpack.c.h.s8.bf16 %v1732_v25 }
 0x3df   : > { %4178 = vmatprep.subr.bf16.mxu0 %v2601_v39  ;;  %4219 = vmatprep.subr.bf16.mxu1 %v2633_v41  ;;  %v2682_v39 = vunpack.c.h.s8.bf16 %v1748_v26 }
 0x3e2   : > { %4179 = vmatpush2.bf16.msra.mxu0 %v2600_v37  ;;  %4220 = vmatpush2.bf16.msra.mxu1 %v2632_v38  ;;  %v1731_v37 = vld [vmem:[%s6291_s10 + $0xb18] sm:$0xff] }
 0x3e3   : > { %4180 = vmatprep.subr.bf16.mxu0 %v2599_v54  ;;  %4221 = vmatprep.subr.bf16.mxu1 %v2631_v46  ;;  %v1747_v38 = vld [vmem:[%s6291_s10 + $0xb98] sm:$0xff]  ;;  %v2648_v54 = vunpack.c.l.s8.bf16 %v1732_v25  ;;  %v2647_v46 = vunpack.c.h.s8.bf16 %v1731_v37  ;;  %v2645_v7 = vunpack.c.l.s8.bf16 %v1731_v37  ;;  %v1737_v37 = vld [vmem:[%s6291_s10 + $0xb48] sm:$0xff] }
 0x3e4   : > { %v2677_v51 = vunpack.c.l.s8.bf16 %v1747_v38  ;;  %v1739_v25 = vld [vmem:[%s6291_s10 + $0xb58] sm:$0xff] }
 0x3e6   : > { %4181 = vmatpush2.bf16.msra.mxu0 %v2598_v53  ;;  %4222 = vmatpush2.bf16.msra.mxu1 %v2630_v62  ;;  %v2679_v53 = vunpack.c.h.s8.bf16 %v1747_v38  ;;  %v1746_v62 = vld [vmem:[%s6291_s10 + $0xb90] sm:$0xff]  ;;  %v1753_v38 = vld [vmem:[%s6291_s10 + $0xbc8] sm:$0xff] }
 0x3e7   : > { %4182 = vmatprep.subr.bf16.mxu0 %v2597_v6  ;;  %4223 = vmatprep.subr.bf16.mxu1 %v2629_v50  ;;  %v2646_v6 = vunpack.c.h.s8.bf16 %v1730_v47  ;;  %v2678_v50 = vunpack.c.h.s8.bf16 %v1746_v62  ;;  %v2676_v57 = vunpack.c.l.s8.bf16 %v1746_v62  ;;  %v1752_v62 = vld [vmem:[%s6291_s10 + $0xbc0] sm:$0xff] }
 0x3ea   : > { %4183 = vmatpush2.bf16.msra.mxu0 %v2596_v0  ;;  %4224 = vmatpush2.bf16.msra.mxu1 %v2628_v55  ;;  %v1729_v0 = vld [vmem:[%s6291_s10 + $0xb08] sm:$0xff] }
 0x3eb   : > { %4184 = vmatprep.subr.bf16.mxu0 %v2595_v56  ;;  %4225 = vmatprep.subr.bf16.mxu1 %v2627_v63  ;;  %v1745_v55 = vld [vmem:[%s6291_s10 + $0xb88] sm:$0xff]  ;;  %v2644_v56 = vunpack.c.l.s8.bf16 %v1730_v47  ;;  %v2643_v63 = vunpack.c.h.s8.bf16 %v1729_v0  ;;  %v2641_v31 = vunpack.c.l.s8.bf16 %v1729_v0  ;;  %v1736_v47 = vld [vmem:[%s6291_s10 + $0xb40] sm:$0xff]  ;;  %v1767_v0 = vld [vmem:[%s6291_s10 + $0xc38] sm:$0xff] }
 0x3ec   : > { %v2673_v1 = vunpack.c.l.s8.bf16 %v1745_v55 }
 0x3ee   : > { %4185 = vmatpush2.bf16.msra.mxu0 %v2594_v58  ;;  %4226 = vmatpush2.bf16.msra.mxu1 %v2626_v59  ;;  %v2675_v58 = vunpack.c.h.s8.bf16 %v1745_v55  ;;  %v1744_v59 = vld [vmem:[%s6291_s10 + $0xb80] sm:$0xff]  ;;  %v1783_v55 = vld [vmem:[%s6291_s10 + $0xcb8] sm:$0xff] }
 0x3ef   : > { %4186 = vmatprep.subr.bf16.mxu0 %v2593_v60  ;;  %4227 = vmatprep.subr.bf16.mxu1 %v2625_v61  ;;  %v2642_v60 = vunpack.c.h.s8.bf16 %v1728_v30  ;;  %v2674_v61 = vunpack.c.h.s8.bf16 %v1744_v59  ;;  %v2672_v20 = vunpack.c.l.s8.bf16 %v1744_v59  ;;  %v1782_v59 = vld [vmem:[%s6291_s10 + $0xcb0] sm:$0xff] }
 0x3f2   : > { %4187 = vmatpush2.bf16.msra.mxu0 %v2592_v2  ;;  %4228 = vmatpush2.bf16.msra.mxu1 %v2624_v3  ;;  %v1743_v2 = vld [vmem:[%s6291_s10 + $0xb78] sm:$0xff] }
 0x3f3   : > { %4238 = vmatprep.subr.bf16.mxu0 %v2655_v10  ;;  %4279 = vmatprep.subr.bf16.mxu1 %v2687_v4  ;;  %v1759_v3 = vld [vmem:[%s6291_s10 + $0xbf8] sm:$0xff]  ;;  %v2640_v10 = vunpack.c.l.s8.bf16 %v1728_v30  ;;  %v2671_v4 = vunpack.c.h.s8.bf16 %v1743_v2  ;;  %v1766_v30 = vld [vmem:[%s6291_s10 + $0xc30] sm:$0xff] }
 0x3f5   : > { %v3944_v16 = vpop.f32.mrf.mxu0  ;;  %4189 = vmatmul.mubr.bf16.vlgmr.msra.gmra.mxu0 %v4938_v8  ;;  %v3985_v17 = vpop.f32.mrf.mxu1  ;;  %4230 = vmatmul.mubr.bf16.vlgmr.msra.gmra.mxu1 %v4940_v9  ;;  %v2703_v8 = vunpack.c.h.s8.bf16 %v1759_v3  ;;  %v1758_v9 = vld [vmem:[%s6291_s10 + $0xbf0] sm:$0xff] }
 0x3f6   : > { %v3945_v23 = vadd.f32 %v3944_v16, %v6837_v42  ;;  %4239 = vmatpush1.bf16.msra.mxu0 %v2654_v12  ;;  %4280 = vmatpush1.bf16.msra.mxu1 %v2686_v13  ;;  %v2670_v12 = vunpack.c.h.s8.bf16 %v1742_v5  ;;  %v2702_v13 = vunpack.c.h.s8.bf16 %v1758_v9 }
 0x3f7   : > { %v3946_v24 = vpop.f32.mrf.mxu0  ;;  %v3987_v33 = vpop.f32.mrf.mxu1  ;;  %4240 = vmatprep.subr.bf16.mxu0 %v2653_v28  ;;  %4281 = vmatprep.subr.bf16.mxu1 %v2685_v21  ;;  %v2669_v28 = vunpack.c.l.s8.bf16 %v1743_v2  ;;  %v2701_v21 = vunpack.c.l.s8.bf16 %v1759_v3  ;;  %v2718_v2 = vunpack.c.h.s8.bf16 %v1766_v30  ;;  %v2750_v3 = vunpack.c.h.s8.bf16 %v1782_v59 }
 0x3f8   : > { %v3947_v27 = vadd.f32 %v3946_v24, %v6839_v52  ;;  %v6893_v48 = vadd.f32 %v3985_v17, %v3945_v23  ;;  %4270 = vmatprep.mubr.bf16.mxu0 %v4943_v14  ;;  %4311 = vmatprep.mubr.bf16.mxu1 %v4945_v15  ;;  %v2649_v52 = vunpack.c.l.s8.bf16 %v1733_v22  ;;  %v1741_v22 = vld [vmem:[%s6291_s10 + $0xb68] sm:$0xff]  ;;  %v2668_v14 = vunpack.c.l.s8.bf16 %v1742_v5  ;;  %v1740_v17 = vld [vmem:[%s6291_s10 + $0xb60] sm:$0xff] }
 0x3f9   : > { %v3948_v42 = vpop.f32.mrf.mxu0  ;;  %v3989_v34 = vpop.f32.mrf.mxu1  ;;  %v2700_v15 = vunpack.c.l.s8.bf16 %v1758_v9  ;;  %v2667_v16 = vunpack.c.h.s8.bf16 %v1741_v22  ;;  %v2699_v23 = vunpack.c.h.s8.bf16 %v1757_v19  ;;  %v2664_v26 = vunpack.c.l.s8.bf16 %v1740_v17 }
 0x3fa   : > { %v6895_v40 = vadd.f32 %v3987_v33, %v3947_v27  ;;  %4241 = vmatpush1.bf16.msra.mxu0 %v2652_v44  ;;  %4282 = vmatpush1.bf16.msra.mxu1 %v2684_v32  ;;  %v1756_v44 = vld [vmem:[%s6291_s10 + $0xbe0] sm:$0xff]  ;;  %v2666_v32 = vunpack.c.h.s8.bf16 %v1740_v17  ;;  %v2665_v33 = vunpack.c.l.s8.bf16 %v1741_v22  ;;  %v2663_v42 = vunpack.c.h.s8.bf16 %v1739_v25  ;;  %v1738_v34 = vld [vmem:[%s6291_s10 + $0xb50] sm:$0xff] }
 0x3fb   : > { %v3949_v41 = vpop.f32.mrf.mxu0  ;;  %4242 = vmatprep.subr.bf16.mxu0 %v2651_v29  ;;  %4283 = vmatprep.subr.bf16.mxu1 %v2683_v45  ;;  %v3990_v36 = vpop.f32.mrf.mxu1  ;;  %v2698_v24 = vunpack.c.h.s8.bf16 %v1756_v44  ;;  %v2697_v29 = vunpack.c.l.s8.bf16 %v1757_v19  ;;  %v1755_v45 = vld [vmem:[%s6291_s10 + $0xbd8] sm:$0xff]  ;;  %v2696_v27 = vunpack.c.l.s8.bf16 %v1756_v44 }
 0x3fc   : > { %v2662_v41 = vunpack.c.h.s8.bf16 %v1738_v34  ;;  %v2693_v36 = vunpack.c.l.s8.bf16 %v1755_v45 }
 0x3fe   : > { %4243 = vmatpush1.bf16.msra.mxu0 %v2650_v49  ;;  %4284 = vmatpush1.bf16.msra.mxu1 %v2682_v39  ;;  %v2695_v49 = vunpack.c.h.s8.bf16 %v1755_v45  ;;  %v1754_v39 = vld [vmem:[%s6291_s10 + $0xbd0] sm:$0xff] }
 0x3ff   : > { %4244 = vmatprep.subr.bf16.mxu0 %v2649_v52  ;;  %4285 = vmatprep.subr.bf16.mxu1 %v2681_v35  ;;  %v2694_v52 = vunpack.c.h.s8.bf16 %v1754_v39  ;;  %v2661_v35 = vunpack.c.l.s8.bf16 %v1739_v25 }
 0x402   : > { %4245 = vmatpush1.bf16.msra.mxu0 %v2648_v54  ;;  %4286 = vmatpush1.bf16.msra.mxu1 %v2680_v43  ;;  %v2660_v54 = vunpack.c.l.s8.bf16 %v1738_v34  ;;  %v2692_v43 = vunpack.c.l.s8.bf16 %v1754_v39  ;;  %v1762_v39 = vld [vmem:[%s6291_s10 + $0xc10] sm:$0xff] }
 0x403   : > { %4246 = vmatprep.subr.bf16.mxu0 %v2647_v46  ;;  %4287 = vmatprep.subr.bf16.mxu1 %v2679_v53  ;;  %v2659_v46 = vunpack.c.h.s8.bf16 %v1737_v37  ;;  %v2691_v53 = vunpack.c.h.s8.bf16 %v1753_v38 }
 0x406   : > { %4247 = vmatpush1.bf16.msra.mxu0 %v2646_v6  ;;  %4288 = vmatpush1.bf16.msra.mxu1 %v2678_v50  ;;  %v2658_v6 = vunpack.c.h.s8.bf16 %v1736_v47  ;;  %v2690_v50 = vunpack.c.h.s8.bf16 %v1752_v62 }
 0x407   : > { %4248 = vmatprep.subr.bf16.mxu0 %v2645_v7  ;;  %4289 = vmatprep.subr.bf16.mxu1 %v2677_v51  ;;  %v2657_v7 = vunpack.c.l.s8.bf16 %v1737_v37  ;;  %v2689_v51 = vunpack.c.l.s8.bf16 %v1753_v38 }
 0x40a   : > { %4249 = vmatpush1.bf16.msra.mxu0 %v2644_v56  ;;  %4290 = vmatpush1.bf16.msra.mxu1 %v2676_v57  ;;  %v2656_v56 = vunpack.c.l.s8.bf16 %v1736_v47  ;;  %v2688_v57 = vunpack.c.l.s8.bf16 %v1752_v62  ;;  %v1760_v62 = vld [vmem:[%s6291_s10 + $0xc00] sm:$0xff] }
 0x40b   : > { %4250 = vmatprep.subr.bf16.mxu0 %v2643_v63  ;;  %4291 = vmatprep.subr.bf16.mxu1 %v2675_v58  ;;  %v2719_v63 = vunpack.c.h.s8.bf16 %v1767_v0  ;;  %v2751_v58 = vunpack.c.h.s8.bf16 %v1783_v55 }
 0x40e   : > { %4251 = vmatpush1.bf16.msra.mxu0 %v2642_v60  ;;  %4292 = vmatpush1.bf16.msra.mxu1 %v2674_v61  ;;  %v4942_v60 = vcombine.low %v6876_v18, %v6876_v18  ;;  %v4944_v61 = vcombine.low %v6881_v11, %v6881_v11  ;;  %v2717_v18 = vunpack.c.l.s8.bf16 %v1767_v0  ;;  %v1781_v11 = vld [vmem:[%s6291_s10 + $0xca8] sm:$0xff] }
 0x40f   : > { %4252 = vmatprep.subr.bf16.mxu0 %v2641_v31  ;;  %4293 = vmatprep.subr.bf16.mxu1 %v2673_v1  ;;  %v6932_v31 = vld [vmem:[%s7259_s0 + $0xc0] sm:$0xff]  ;;  %v6937_v1 = vld [vmem:[%s7259_s0 + $0xc8] sm:$0xff]  ;;  %v2745_v25 = vunpack.c.l.s8.bf16 %v1781_v11 }
 0x410   : > { %v4949_v5 = vcombine.high %v6937_v1, %v6937_v1 }
 0x412   : > { %4253 = vmatpush1.bf16.msra.mxu0 %v2640_v10  ;;  %4294 = vmatpush1.bf16.msra.mxu1 %v2672_v20  ;;  %v2749_v10 = vunpack.c.l.s8.bf16 %v1783_v55  ;;  %v1765_v20 = vld [vmem:[%s6291_s10 + $0xc28] sm:$0xff] }
 0x413   : > { %4254 = vmatprep.subr.bf16.mxu0 %v2671_v4  ;;  %4295 = vmatprep.subr.bf16.mxu1 %v2703_v8  ;;  %v4947_v4 = vcombine.high %v6932_v31, %v6932_v31  ;;  %v2715_v19 = vunpack.c.h.s8.bf16 %v1765_v20 }
 0x416   : > { %4255 = vmatpush2.bf16.msra.mxu0 %v2670_v12  ;;  %4296 = vmatpush2.bf16.msra.mxu1 %v2702_v13  ;;  %v2716_v13 = vunpack.c.l.s8.bf16 %v1766_v30 }
 0x417   : > { %4256 = vmatprep.subr.bf16.mxu0 %v2669_v28  ;;  %4297 = vmatprep.subr.bf16.mxu1 %v2701_v21  ;;  %v2748_v28 = vunpack.c.l.s8.bf16 %v1782_v59  ;;  %v1774_v59 = vld [vmem:[%s6291_s10 + $0xc70] sm:$0xff] }
 0x41a   : > { %4257 = vmatpush2.bf16.msra.mxu0 %v2668_v14  ;;  %4298 = vmatpush2.bf16.msra.mxu1 %v2700_v15  ;;  %v1764_v14 = vld [vmem:[%s6291_s10 + $0xc20] sm:$0xff]  ;;  %v2747_v15 = vunpack.c.h.s8.bf16 %v1781_v11  ;;  %v1789_v11 = vld [vmem:[%s6291_s10 + $0xce8] sm:$0xff] }
 0x41b   : > { %4258 = vmatprep.subr.bf16.mxu0 %v2667_v16  ;;  %4299 = vmatprep.subr.bf16.mxu1 %v2699_v23  ;;  %v1780_v16 = vld [vmem:[%s6291_s10 + $0xca0] sm:$0xff] }
 0x41c   : > { %v2744_v34 = vunpack.c.l.s8.bf16 %v1780_v16 }
 0x41e   : > { %4259 = vmatpush2.bf16.msra.mxu0 %v2666_v32  ;;  %4300 = vmatpush2.bf16.msra.mxu1 %v2698_v24  ;;  %v2714_v24 = vunpack.c.h.s8.bf16 %v1764_v14 }
 0x41f   : > { %4260 = vmatprep.subr.bf16.mxu0 %v2665_v33  ;;  %4301 = vmatprep.subr.bf16.mxu1 %v2697_v29  ;;  %v2746_v33 = vunpack.c.h.s8.bf16 %v1780_v16 }
 0x422   : > { %4261 = vmatpush2.bf16.msra.mxu0 %v2664_v26  ;;  %4302 = vmatpush2.bf16.msra.mxu1 %v2696_v27  ;;  %v1763_v26 = vld [vmem:[%s6291_s10 + $0xc18] sm:$0xff] }
 0x423   : > { %4262 = vmatprep.subr.bf16.mxu0 %v2663_v42  ;;  %4303 = vmatprep.subr.bf16.mxu1 %v2695_v49  ;;  %v1779_v27 = vld [vmem:[%s6291_s10 + $0xc98] sm:$0xff]  ;;  %v2712_v42 = vunpack.c.l.s8.bf16 %v1764_v14  ;;  %v2711_v49 = vunpack.c.h.s8.bf16 %v1763_v26  ;;  %v2709_v37 = vunpack.c.l.s8.bf16 %v1763_v26  ;;  %v1769_v26 = vld [vmem:[%s6291_s10 + $0xc48] sm:$0xff] }
 0x424   : > { %v2741_v38 = vunpack.c.l.s8.bf16 %v1779_v27  ;;  %v1771_v14 = vld [vmem:[%s6291_s10 + $0xc58] sm:$0xff] }
 0x426   : > { %4263 = vmatpush2.bf16.msra.mxu0 %v2662_v41  ;;  %4304 = vmatpush2.bf16.msra.mxu1 %v2694_v52  ;;  %v2743_v41 = vunpack.c.h.s8.bf16 %v1779_v27  ;;  %v1778_v52 = vld [vmem:[%s6291_s10 + $0xc90] sm:$0xff]  ;;  %v1785_v27 = vld [vmem:[%s6291_s10 + $0xcc8] sm:$0xff] }
 0x427   : > { %4264 = vmatprep.subr.bf16.mxu0 %v2661_v35  ;;  %4305 = vmatprep.subr.bf16.mxu1 %v2693_v36  ;;  %v2710_v35 = vunpack.c.h.s8.bf16 %v1762_v39  ;;  %v2742_v36 = vunpack.c.h.s8.bf16 %v1778_v52  ;;  %v2740_v47 = vunpack.c.l.s8.bf16 %v1778_v52  ;;  %v1784_v52 = vld [vmem:[%s6291_s10 + $0xcc0] sm:$0xff] }
 0x42a   : > { %4265 = vmatpush2.bf16.msra.mxu0 %v2660_v54  ;;  %4306 = vmatpush2.bf16.msra.mxu1 %v2692_v43  ;;  %v1761_v54 = vld [vmem:[%s6291_s10 + $0xc08] sm:$0xff] }
 0x42b   : > { %4266 = vmatprep.subr.bf16.mxu0 %v2659_v46  ;;  %4307 = vmatprep.subr.bf16.mxu1 %v2691_v53  ;;  %v1777_v43 = vld [vmem:[%s6291_s10 + $0xc88] sm:$0xff]  ;;  %v2708_v46 = vunpack.c.l.s8.bf16 %v1762_v39  ;;  %v2707_v53 = vunpack.c.h.s8.bf16 %v1761_v54  ;;  %v2705_v0 = vunpack.c.l.s8.bf16 %v1761_v54  ;;  %v1768_v39 = vld [vmem:[%s6291_s10 + $0xc40] sm:$0xff]  ;;  %v1799_v54 = vld [vmem:[%s6291_s10 + $0xd38] sm:$0xff] }
 0x42c   : > { %v2737_v55 = vunpack.c.l.s8.bf16 %v1777_v43 }
 0x42e   : > { %4267 = vmatpush2.bf16.msra.mxu0 %v2658_v6  ;;  %4308 = vmatpush2.bf16.msra.mxu1 %v2690_v50  ;;  %v2739_v6 = vunpack.c.h.s8.bf16 %v1777_v43  ;;  %v1776_v50 = vld [vmem:[%s6291_s10 + $0xc80] sm:$0xff]  ;;  %v1815_v43 = vld [vmem:[%s6291_s10 + $0xdb8] sm:$0xff] }
 0x42f   : > { %4268 = vmatprep.subr.bf16.mxu0 %v2657_v7  ;;  %4309 = vmatprep.subr.bf16.mxu1 %v2689_v51  ;;  %v2706_v7 = vunpack.c.h.s8.bf16 %v1760_v62  ;;  %v2738_v51 = vunpack.c.h.s8.bf16 %v1776_v50  ;;  %v2736_v30 = vunpack.c.l.s8.bf16 %v1776_v50  ;;  %v1814_v50 = vld [vmem:[%s6291_s10 + $0xdb0] sm:$0xff] }
 0x432   : > { %4269 = vmatpush2.bf16.msra.mxu0 %v2656_v56  ;;  %4310 = vmatpush2.bf16.msra.mxu1 %v2688_v57  ;;  %v1775_v56 = vld [vmem:[%s6291_s10 + $0xc78] sm:$0xff] }
 0x433   : > { %4320 = vmatprep.subr.bf16.mxu0 %v2719_v63  ;;  %4361 = vmatprep.subr.bf16.mxu1 %v2751_v58  ;;  %v1791_v57 = vld [vmem:[%s6291_s10 + $0xcf8] sm:$0xff]  ;;  %v2704_v63 = vunpack.c.l.s8.bf16 %v1760_v62  ;;  %v2735_v58 = vunpack.c.h.s8.bf16 %v1775_v56  ;;  %v1798_v62 = vld [vmem:[%s6291_s10 + $0xd30] sm:$0xff] }
 0x435   : > { %v4026_v8 = vpop.f32.mrf.mxu0  ;;  %4271 = vmatmul.mubr.bf16.vlgmr.msra.gmra.mxu0 %v4942_v60  ;;  %v4067_v9 = vpop.f32.mrf.mxu1  ;;  %4312 = vmatmul.mubr.bf16.vlgmr.msra.gmra.mxu1 %v4944_v61  ;;  %v2767_v60 = vunpack.c.h.s8.bf16 %v1791_v57  ;;  %v1790_v61 = vld [vmem:[%s6291_s10 + $0xcf0] sm:$0xff] }
 0x436   : > { %v4027_v12 = vadd.f32 %v4026_v8, %v6893_v48  ;;  %4321 = vmatpush1.bf16.msra.mxu0 %v2718_v2  ;;  %4362 = vmatpush1.bf16.msra.mxu1 %v2750_v3  ;;  %v2734_v2 = vunpack.c.h.s8.bf16 %v1774_v59  ;;  %v2766_v3 = vunpack.c.h.s8.bf16 %v1790_v61 }
 0x437   : > { %v4028_v21 = vpop.f32.mrf.mxu0  ;;  %v4069_v22 = vpop.f32.mrf.mxu1  ;;  %4322 = vmatprep.subr.bf16.mxu0 %v2717_v18  ;;  %4363 = vmatprep.subr.bf16.mxu1 %v2749_v10  ;;  %v2733_v18 = vunpack.c.l.s8.bf16 %v1775_v56  ;;  %v2765_v10 = vunpack.c.l.s8.bf16 %v1791_v57  ;;  %v2782_v56 = vunpack.c.h.s8.bf16 %v1798_v62  ;;  %v2814_v57 = vunpack.c.h.s8.bf16 %v1814_v50 }
 0x438   : > { %v4029_v17 = vadd.f32 %v4028_v21, %v6895_v40  ;;  %v6949_v23 = vadd.f32 %v4067_v9, %v4027_v12  ;;  %4352 = vmatprep.mubr.bf16.mxu0 %v4947_v4  ;;  %4393 = vmatprep.mubr.bf16.mxu1 %v4949_v5  ;;  %v2713_v40 = vunpack.c.l.s8.bf16 %v1765_v20  ;;  %v1773_v20 = vld [vmem:[%s6291_s10 + $0xc68] sm:$0xff]  ;;  %v2732_v4 = vunpack.c.l.s8.bf16 %v1774_v59  ;;  %v1772_v9 = vld [vmem:[%s6291_s10 + $0xc60] sm:$0xff] }
 0x439   : > { %v4030_v48 = vpop.f32.mrf.mxu0  ;;  %v4071_v44 = vpop.f32.mrf.mxu1  ;;  %v2764_v5 = vunpack.c.l.s8.bf16 %v1790_v61  ;;  %v2731_v8 = vunpack.c.h.s8.bf16 %v1773_v20  ;;  %v2763_v12 = vunpack.c.h.s8.bf16 %v1789_v11  ;;  %v2728_v16 = vunpack.c.l.s8.bf16 %v1772_v9 }
 0x43a   : > { %v6951_v32 = vadd.f32 %v4069_v22, %v4029_v17  ;;  %4323 = vmatpush1.bf16.msra.mxu0 %v2716_v13  ;;  %4364 = vmatpush1.bf16.msra.mxu1 %v2748_v28  ;;  %v1788_v13 = vld [vmem:[%s6291_s10 + $0xce0] sm:$0xff]  ;;  %v2730_v28 = vunpack.c.h.s8.bf16 %v1772_v9  ;;  %v2729_v22 = vunpack.c.l.s8.bf16 %v1773_v20  ;;  %v2727_v48 = vunpack.c.h.s8.bf16 %v1771_v14  ;;  %v1770_v44 = vld [vmem:[%s6291_s10 + $0xc50] sm:$0xff] }
 0x43b   : > { %v4031_v29 = vpop.f32.mrf.mxu0  ;;  %4324 = vmatprep.subr.bf16.mxu0 %v2715_v19  ;;  %4365 = vmatprep.subr.bf16.mxu1 %v2747_v15  ;;  %v4072_v45 = vpop.f32.mrf.mxu1  ;;  %v2762_v21 = vunpack.c.h.s8.bf16 %v1788_v13  ;;  %v2761_v19 = vunpack.c.l.s8.bf16 %v1789_v11  ;;  %v1787_v15 = vld [vmem:[%s6291_s10 + $0xcd8] sm:$0xff]  ;;  %v2760_v17 = vunpack.c.l.s8.bf16 %v1788_v13 }
 0x43c   : > { %v2726_v29 = vunpack.c.h.s8.bf16 %v1770_v44  ;;  %v2757_v45 = vunpack.c.l.s8.bf16 %v1787_v15 }
 0x43e   : > { %4325 = vmatpush1.bf16.msra.mxu0 %v2714_v24  ;;  %4366 = vmatpush1.bf16.msra.mxu1 %v2746_v33  ;;  %v2759_v24 = vunpack.c.h.s8.bf16 %v1787_v15  ;;  %v1786_v33 = vld [vmem:[%s6291_s10 + $0xcd0] sm:$0xff] }
 0x43f   : > { %4326 = vmatprep.subr.bf16.mxu0 %v2713_v40  ;;  %4367 = vmatprep.subr.bf16.mxu1 %v2745_v25  ;;  %v2758_v40 = vunpack.c.h.s8.bf16 %v1786_v33  ;;  %v2725_v25 = vunpack.c.l.s8.bf16 %v1771_v14 }
 0x442   : > { %4327 = vmatpush1.bf16.msra.mxu0 %v2712_v42  ;;  %4368 = vmatpush1.bf16.msra.mxu1 %v2744_v34  ;;  %v2724_v42 = vunpack.c.l.s8.bf16 %v1770_v44  ;;  %v2756_v34 = vunpack.c.l.s8.bf16 %v1786_v33  ;;  %v1794_v33 = vld [vmem:[%s6291_s10 + $0xd10] sm:$0xff] }
 0x443   : > { %4328 = vmatprep.subr.bf16.mxu0 %v2711_v49  ;;  %4369 = vmatprep.subr.bf16.mxu1 %v2743_v41  ;;  %v2723_v49 = vunpack.c.h.s8.bf16 %v1769_v26  ;;  %v2755_v41 = vunpack.c.h.s8.bf16 %v1785_v27 }
 0x446   : > { %4329 = vmatpush1.bf16.msra.mxu0 %v2710_v35  ;;  %4370 = vmatpush1.bf16.msra.mxu1 %v2742_v36  ;;  %v2722_v35 = vunpack.c.h.s8.bf16 %v1768_v39  ;;  %v2754_v36 = vunpack.c.h.s8.bf16 %v1784_v52 }
 0x447   : > { %4330 = vmatprep.subr.bf16.mxu0 %v2709_v37  ;;  %4371 = vmatprep.subr.bf16.mxu1 %v2741_v38  ;;  %v2721_v37 = vunpack.c.l.s8.bf16 %v1769_v26  ;;  %v2753_v38 = vunpack.c.l.s8.bf16 %v1785_v27 }
 0x44a   : > { %4331 = vmatpush1.bf16.msra.mxu0 %v2708_v46  ;;  %4372 = vmatpush1.bf16.msra.mxu1 %v2740_v47  ;;  %v2720_v46 = vunpack.c.l.s8.bf16 %v1768_v39  ;;  %v2752_v47 = vunpack.c.l.s8.bf16 %v1784_v52  ;;  %v1792_v52 = vld [vmem:[%s6291_s10 + $0xd00] sm:$0xff] }
 0x44b   : > { %4332 = vmatprep.subr.bf16.mxu0 %v2707_v53  ;;  %4373 = vmatprep.subr.bf16.mxu1 %v2739_v6  ;;  %v2783_v53 = vunpack.c.h.s8.bf16 %v1799_v54  ;;  %v2815_v6 = vunpack.c.h.s8.bf16 %v1815_v43 }
 0x44e   : > { %4333 = vmatpush1.bf16.msra.mxu0 %v2706_v7  ;;  %4374 = vmatpush1.bf16.msra.mxu1 %v2738_v51  ;;  %v4946_v7 = vcombine.low %v6932_v31, %v6932_v31  ;;  %v4948_v51 = vcombine.low %v6937_v1, %v6937_v1  ;;  %v2781_v31 = vunpack.c.l.s8.bf16 %v1799_v54  ;;  %v1813_v1 = vld [vmem:[%s6291_s10 + $0xda8] sm:$0xff] }
 0x44f   : > { %4334 = vmatprep.subr.bf16.mxu0 %v2705_v0  ;;  %4375 = vmatprep.subr.bf16.mxu1 %v2737_v55  ;;  %v6988_v0 = vld [vmem:[%s7259_s0 + $0xd0] sm:$0xff]  ;;  %v6993_v55 = vld [vmem:[%s7259_s0 + $0xd8] sm:$0xff]  ;;  %v2809_v14 = vunpack.c.l.s8.bf16 %v1813_v1 }
 0x450   : > { %v4953_v59 = vcombine.high %v6993_v55, %v6993_v55 }
 0x452   : > { %4335 = vmatpush1.bf16.msra.mxu0 %v2704_v63  ;;  %4376 = vmatpush1.bf16.msra.mxu1 %v2736_v30  ;;  %v2813_v63 = vunpack.c.l.s8.bf16 %v1815_v43  ;;  %v1797_v30 = vld [vmem:[%s6291_s10 + $0xd28] sm:$0xff] }
 0x453   : > { %4336 = vmatprep.subr.bf16.mxu0 %v2735_v58  ;;  %4377 = vmatprep.subr.bf16.mxu1 %v2767_v60  ;;  %v4951_v58 = vcombine.high %v6988_v0, %v6988_v0  ;;  %v2779_v11 = vunpack.c.h.s8.bf16 %v1797_v30 }
 0x456   : > { %4337 = vmatpush2.bf16.msra.mxu0 %v2734_v2  ;;  %4378 = vmatpush2.bf16.msra.mxu1 %v2766_v3  ;;  %v2780_v3 = vunpack.c.l.s8.bf16 %v1798_v62 }
 0x457   : > { %4338 = vmatprep.subr.bf16.mxu0 %v2733_v18  ;;  %4379 = vmatprep.subr.bf16.mxu1 %v2765_v10  ;;  %v2812_v18 = vunpack.c.l.s8.bf16 %v1814_v50  ;;  %v1806_v50 = vld [vmem:[%s6291_s10 + $0xd70] sm:$0xff] }
 0x45a   : > { %4339 = vmatpush2.bf16.msra.mxu0 %v2732_v4  ;;  %4380 = vmatpush2.bf16.msra.mxu1 %v2764_v5  ;;  %v1796_v4 = vld [vmem:[%s6291_s10 + $0xd20] sm:$0xff]  ;;  %v2811_v5 = vunpack.c.h.s8.bf16 %v1813_v1  ;;  %v1821_v1 = vld [vmem:[%s6291_s10 + $0xde8] sm:$0xff] }
 0x45b   : > { %4340 = vmatprep.subr.bf16.mxu0 %v2731_v8  ;;  %4381 = vmatprep.subr.bf16.mxu1 %v2763_v12  ;;  %v1812_v8 = vld [vmem:[%s6291_s10 + $0xda0] sm:$0xff] }
 0x45c   : > { %v2808_v44 = vunpack.c.l.s8.bf16 %v1812_v8 }
 0x45e   : > { %4341 = vmatpush2.bf16.msra.mxu0 %v2730_v28  ;;  %4382 = vmatpush2.bf16.msra.mxu1 %v2762_v21  ;;  %v2778_v21 = vunpack.c.h.s8.bf16 %v1796_v4 }
 0x45f   : > { %4342 = vmatprep.subr.bf16.mxu0 %v2729_v22  ;;  %4383 = vmatprep.subr.bf16.mxu1 %v2761_v19  ;;  %v2810_v22 = vunpack.c.h.s8.bf16 %v1812_v8 }
 0x462   : > { %4343 = vmatpush2.bf16.msra.mxu0 %v2728_v16  ;;  %4384 = vmatpush2.bf16.msra.mxu1 %v2760_v17  ;;  %v1795_v16 = vld [vmem:[%s6291_s10 + $0xd18] sm:$0xff] }
 0x463   : > { %4344 = vmatprep.subr.bf16.mxu0 %v2727_v48  ;;  %4385 = vmatprep.subr.bf16.mxu1 %v2759_v24  ;;  %v1811_v17 = vld [vmem:[%s6291_s10 + $0xd98] sm:$0xff]  ;;  %v2776_v48 = vunpack.c.l.s8.bf16 %v1796_v4  ;;  %v2775_v24 = vunpack.c.h.s8.bf16 %v1795_v16  ;;  %v2773_v26 = vunpack.c.l.s8.bf16 %v1795_v16  ;;  %v1801_v16 = vld [vmem:[%s6291_s10 + $0xd48] sm:$0xff] }
 0x464   : > { %v2805_v27 = vunpack.c.l.s8.bf16 %v1811_v17  ;;  %v1803_v4 = vld [vmem:[%s6291_s10 + $0xd58] sm:$0xff] }
 0x466   : > { %4345 = vmatpush2.bf16.msra.mxu0 %v2726_v29  ;;  %4386 = vmatpush2.bf16.msra.mxu1 %v2758_v40  ;;  %v2807_v29 = vunpack.c.h.s8.bf16 %v1811_v17  ;;  %v1810_v40 = vld [vmem:[%s6291_s10 + $0xd90] sm:$0xff]  ;;  %v1817_v17 = vld [vmem:[%s6291_s10 + $0xdc8] sm:$0xff] }
 0x467   : > { %4346 = vmatprep.subr.bf16.mxu0 %v2725_v25  ;;  %4387 = vmatprep.subr.bf16.mxu1 %v2757_v45  ;;  %v2774_v25 = vunpack.c.h.s8.bf16 %v1794_v33  ;;  %v2806_v45 = vunpack.c.h.s8.bf16 %v1810_v40  ;;  %v2804_v39 = vunpack.c.l.s8.bf16 %v1810_v40  ;;  %v1816_v40 = vld [vmem:[%s6291_s10 + $0xdc0] sm:$0xff] }
 0x46a   : > { %4347 = vmatpush2.bf16.msra.mxu0 %v2724_v42  ;;  %4388 = vmatpush2.bf16.msra.mxu1 %v2756_v34  ;;  %v1793_v42 = vld [vmem:[%s6291_s10 + $0xd08] sm:$0xff] }
 0x46b   : > { %4348 = vmatprep.subr.bf16.mxu0 %v2723_v49  ;;  %4389 = vmatprep.subr.bf16.mxu1 %v2755_v41  ;;  %v1809_v34 = vld [vmem:[%s6291_s10 + $0xd88] sm:$0xff]  ;;  %v2772_v49 = vunpack.c.l.s8.bf16 %v1794_v33  ;;  %v2771_v41 = vunpack.c.h.s8.bf16 %v1793_v42  ;;  %v2769_v54 = vunpack.c.l.s8.bf16 %v1793_v42  ;;  %v1800_v33 = vld [vmem:[%s6291_s10 + $0xd40] sm:$0xff]  ;;  %v1831_v42 = vld [vmem:[%s6291_s10 + $0xe38] sm:$0xff] }
 0x46c   : > { %v2801_v43 = vunpack.c.l.s8.bf16 %v1809_v34 }
 0x46e   : > { %4349 = vmatpush2.bf16.msra.mxu0 %v2722_v35  ;;  %4390 = vmatpush2.bf16.msra.mxu1 %v2754_v36  ;;  %v2803_v35 = vunpack.c.h.s8.bf16 %v1809_v34  ;;  %v1808_v36 = vld [vmem:[%s6291_s10 + $0xd80] sm:$0xff]  ;;  %v1847_v34 = vld [vmem:[%s6291_s10 + $0xeb8] sm:$0xff] }
 0x46f   : > { %4350 = vmatprep.subr.bf16.mxu0 %v2721_v37  ;;  %4391 = vmatprep.subr.bf16.mxu1 %v2753_v38  ;;  %v2770_v37 = vunpack.c.h.s8.bf16 %v1792_v52  ;;  %v2802_v38 = vunpack.c.h.s8.bf16 %v1808_v36  ;;  %v2800_v62 = vunpack.c.l.s8.bf16 %v1808_v36  ;;  %v1846_v36 = vld [vmem:[%s6291_s10 + $0xeb0] sm:$0xff] }
 0x472   : > { %4351 = vmatpush2.bf16.msra.mxu0 %v2720_v46  ;;  %4392 = vmatpush2.bf16.msra.mxu1 %v2752_v47  ;;  %v1807_v46 = vld [vmem:[%s6291_s10 + $0xd78] sm:$0xff] }
 0x473   : > { %4402 = vmatprep.subr.bf16.mxu0 %v2783_v53  ;;  %4443 = vmatprep.subr.bf16.mxu1 %v2815_v6  ;;  %v1823_v47 = vld [vmem:[%s6291_s10 + $0xdf8] sm:$0xff]  ;;  %v2768_v53 = vunpack.c.l.s8.bf16 %v1792_v52  ;;  %v2799_v6 = vunpack.c.h.s8.bf16 %v1807_v46  ;;  %v1830_v52 = vld [vmem:[%s6291_s10 + $0xe30] sm:$0xff] }
 0x475   : > { %v4108_v60 = vpop.f32.mrf.mxu0  ;;  %4353 = vmatmul.mubr.bf16.vlgmr.msra.gmra.mxu0 %v4946_v7  ;;  %v4149_v61 = vpop.f32.mrf.mxu1  ;;  %4394 = vmatmul.mubr.bf16.vlgmr.msra.gmra.mxu1 %v4948_v51  ;;  %v2831_v7 = vunpack.c.h.s8.bf16 %v1823_v47  ;;  %v1822_v51 = vld [vmem:[%s6291_s10 + $0xdf0] sm:$0xff] }
 0x476   : > { %v4109_v2 = vadd.f32 %v4108_v60, %v6949_v23  ;;  %4403 = vmatpush1.bf16.msra.mxu0 %v2782_v56  ;;  %4444 = vmatpush1.bf16.msra.mxu1 %v2814_v57  ;;  %v2798_v56 = vunpack.c.h.s8.bf16 %v1806_v50  ;;  %v2830_v57 = vunpack.c.h.s8.bf16 %v1822_v51 }
 0x477   : > { %v4110_v10 = vpop.f32.mrf.mxu0  ;;  %v4151_v20 = vpop.f32.mrf.mxu1  ;;  %4404 = vmatprep.subr.bf16.mxu0 %v2781_v31  ;;  %4445 = vmatprep.subr.bf16.mxu1 %v2813_v63  ;;  %v2797_v31 = vunpack.c.l.s8.bf16 %v1807_v46  ;;  %v2829_v63 = vunpack.c.l.s8.bf16 %v1823_v47  ;;  %v2846_v46 = vunpack.c.h.s8.bf16 %v1830_v52  ;;  %v2878_v47 = vunpack.c.h.s8.bf16 %v1846_v36 }
 0x478   : > { %v4111_v9 = vadd.f32 %v4110_v10, %v6951_v32  ;;  %v7005_v12 = vadd.f32 %v4149_v61, %v4109_v2  ;;  %4434 = vmatprep.mubr.bf16.mxu0 %v4951_v58  ;;  %4475 = vmatprep.mubr.bf16.mxu1 %v4953_v59  ;;  %v2777_v32 = vunpack.c.l.s8.bf16 %v1797_v30  ;;  %v1805_v30 = vld [vmem:[%s6291_s10 + $0xd68] sm:$0xff]  ;;  %v2796_v58 = vunpack.c.l.s8.bf16 %v1806_v50  ;;  %v1804_v61 = vld [vmem:[%s6291_s10 + $0xd60] sm:$0xff] }
 0x479   : > { %v4112_v23 = vpop.f32.mrf.mxu0  ;;  %v4153_v13 = vpop.f32.mrf.mxu1  ;;  %v2828_v59 = vunpack.c.l.s8.bf16 %v1822_v51  ;;  %v2795_v60 = vunpack.c.h.s8.bf16 %v1805_v30  ;;  %v2827_v2 = vunpack.c.h.s8.bf16 %v1821_v1  ;;  %v2792_v8 = vunpack.c.l.s8.bf16 %v1804_v61 }
 0x47a   : > { %v7007_v28 = vadd.f32 %v4151_v20, %v4111_v9  ;;  %4405 = vmatpush1.bf16.msra.mxu0 %v2780_v3  ;;  %4446 = vmatpush1.bf16.msra.mxu1 %v2812_v18  ;;  %v1820_v3 = vld [vmem:[%s6291_s10 + $0xde0] sm:$0xff]  ;;  %v2794_v18 = vunpack.c.h.s8.bf16 %v1804_v61  ;;  %v2793_v20 = vunpack.c.l.s8.bf16 %v1805_v30  ;;  %v2791_v23 = vunpack.c.h.s8.bf16 %v1803_v4  ;;  %v1802_v13 = vld [vmem:[%s6291_s10 + $0xd50] sm:$0xff] }
 0x47b   : > { %v4113_v19 = vpop.f32.mrf.mxu0  ;;  %4406 = vmatprep.subr.bf16.mxu0 %v2779_v11  ;;  %4447 = vmatprep.subr.bf16.mxu1 %v2811_v5  ;;  %v4154_v15 = vpop.f32.mrf.mxu1  ;;  %v2826_v10 = vunpack.c.h.s8.bf16 %v1820_v3  ;;  %v2825_v11 = vunpack.c.l.s8.bf16 %v1821_v1  ;;  %v1819_v5 = vld [vmem:[%s6291_s10 + $0xdd8] sm:$0xff]  ;;  %v2824_v9 = vunpack.c.l.s8.bf16 %v1820_v3 }
 0x47c   : > { %v2790_v19 = vunpack.c.h.s8.bf16 %v1802_v13  ;;  %v2821_v15 = vunpack.c.l.s8.bf16 %v1819_v5 }
 0x47e   : > { %4407 = vmatpush1.bf16.msra.mxu0 %v2778_v21  ;;  %4448 = vmatpush1.bf16.msra.mxu1 %v2810_v22  ;;  %v2823_v21 = vunpack.c.h.s8.bf16 %v1819_v5  ;;  %v1818_v22 = vld [vmem:[%s6291_s10 + $0xdd0] sm:$0xff] }
 0x47f   : > { %4408 = vmatprep.subr.bf16.mxu0 %v2777_v32  ;;  %4449 = vmatprep.subr.bf16.mxu1 %v2809_v14  ;;  %v2822_v32 = vunpack.c.h.s8.bf16 %v1818_v22  ;;  %v2789_v14 = vunpack.c.l.s8.bf16 %v1803_v4 }
 0x482   : > { %4409 = vmatpush1.bf16.msra.mxu0 %v2776_v48  ;;  %4450 = vmatpush1.bf16.msra.mxu1 %v2808_v44  ;;  %v2788_v48 = vunpack.c.l.s8.bf16 %v1802_v13  ;;  %v2820_v44 = vunpack.c.l.s8.bf16 %v1818_v22  ;;  %v1826_v22 = vld [vmem:[%s6291_s10 + $0xe10] sm:$0xff] }
 0x483   : > { %4410 = vmatprep.subr.bf16.mxu0 %v2775_v24  ;;  %4451 = vmatprep.subr.bf16.mxu1 %v2807_v29  ;;  %v2787_v24 = vunpack.c.h.s8.bf16 %v1801_v16  ;;  %v2819_v29 = vunpack.c.h.s8.bf16 %v1817_v17 }
 0x486   : > { %4411 = vmatpush1.bf16.msra.mxu0 %v2774_v25  ;;  %4452 = vmatpush1.bf16.msra.mxu1 %v2806_v45  ;;  %v2786_v25 = vunpack.c.h.s8.bf16 %v1800_v33  ;;  %v2818_v45 = vunpack.c.h.s8.bf16 %v1816_v40 }
 0x487   : > { %4412 = vmatprep.subr.bf16.mxu0 %v2773_v26  ;;  %4453 = vmatprep.subr.bf16.mxu1 %v2805_v27  ;;  %v2785_v26 = vunpack.c.l.s8.bf16 %v1801_v16  ;;  %v2817_v27 = vunpack.c.l.s8.bf16 %v1817_v17 }
 0x48a   : > { %4413 = vmatpush1.bf16.msra.mxu0 %v2772_v49  ;;  %4454 = vmatpush1.bf16.msra.mxu1 %v2804_v39  ;;  %v2784_v49 = vunpack.c.l.s8.bf16 %v1800_v33  ;;  %v2816_v39 = vunpack.c.l.s8.bf16 %v1816_v40  ;;  %v1824_v40 = vld [vmem:[%s6291_s10 + $0xe00] sm:$0xff] }
 0x48b   : > { %4414 = vmatprep.subr.bf16.mxu0 %v2771_v41  ;;  %4455 = vmatprep.subr.bf16.mxu1 %v2803_v35  ;;  %v2847_v41 = vunpack.c.h.s8.bf16 %v1831_v42  ;;  %v2879_v35 = vunpack.c.h.s8.bf16 %v1847_v34 }
 0x48e   : > { %4415 = vmatpush1.bf16.msra.mxu0 %v2770_v37  ;;  %4456 = vmatpush1.bf16.msra.mxu1 %v2802_v38  ;;  %v4950_v37 = vcombine.low %v6988_v0, %v6988_v0  ;;  %v4952_v38 = vcombine.low %v6993_v55, %v6993_v55  ;;  %v2845_v0 = vunpack.c.l.s8.bf16 %v1831_v42  ;;  %v1845_v55 = vld [vmem:[%s6291_s10 + $0xea8] sm:$0xff] }
 0x48f   : > { %4416 = vmatprep.subr.bf16.mxu0 %v2769_v54  ;;  %4457 = vmatprep.subr.bf16.mxu1 %v2801_v43  ;;  %v7044_v54 = vld [vmem:[%s7259_s0 + $0xe0] sm:$0xff]  ;;  %v7049_v43 = vld [vmem:[%s7259_s0 + $0xe8] sm:$0xff]  ;;  %v2873_v4 = vunpack.c.l.s8.bf16 %v1845_v55 }
 0x490   : > { %v4957_v50 = vcombine.high %v7049_v43, %v7049_v43 }
 0x492   : > { %4417 = vmatpush1.bf16.msra.mxu0 %v2768_v53  ;;  %4458 = vmatpush1.bf16.msra.mxu1 %v2800_v62  ;;  %v2877_v53 = vunpack.c.l.s8.bf16 %v1847_v34  ;;  %v1829_v62 = vld [vmem:[%s6291_s10 + $0xe28] sm:$0xff] }
 0x493   : > { %4418 = vmatprep.subr.bf16.mxu0 %v2799_v6  ;;  %4459 = vmatprep.subr.bf16.mxu1 %v2831_v7  ;;  %v4955_v6 = vcombine.high %v7044_v54, %v7044_v54  ;;  %v2843_v1 = vunpack.c.h.s8.bf16 %v1829_v62 }
 0x496   : > { %4419 = vmatpush2.bf16.msra.mxu0 %v2798_v56  ;;  %4460 = vmatpush2.bf16.msra.mxu1 %v2830_v57  ;;  %v2844_v57 = vunpack.c.l.s8.bf16 %v1830_v52 }
 0x497   : > { %4420 = vmatprep.subr.bf16.mxu0 %v2797_v31  ;;  %4461 = vmatprep.subr.bf16.mxu1 %v2829_v63  ;;  %v2876_v31 = vunpack.c.l.s8.bf16 %v1846_v36  ;;  %v1838_v36 = vld [vmem:[%s6291_s10 + $0xe70] sm:$0xff] }
 0x49a   : > { %4421 = vmatpush2.bf16.msra.mxu0 %v2796_v58  ;;  %4462 = vmatpush2.bf16.msra.mxu1 %v2828_v59  ;;  %v1828_v58 = vld [vmem:[%s6291_s10 + $0xe20] sm:$0xff]  ;;  %v2875_v59 = vunpack.c.h.s8.bf16 %v1845_v55  ;;  %v1853_v55 = vld [vmem:[%s6291_s10 + $0xee8] sm:$0xff] }
 0x49b   : > { %4422 = vmatprep.subr.bf16.mxu0 %v2795_v60  ;;  %4463 = vmatprep.subr.bf16.mxu1 %v2827_v2  ;;  %v1844_v60 = vld [vmem:[%s6291_s10 + $0xea0] sm:$0xff] }
 0x49c   : > { %v2872_v13 = vunpack.c.l.s8.bf16 %v1844_v60 }
 0x49e   : > { %4423 = vmatpush2.bf16.msra.mxu0 %v2794_v18  ;;  %4464 = vmatpush2.bf16.msra.mxu1 %v2826_v10  ;;  %v2842_v10 = vunpack.c.h.s8.bf16 %v1828_v58 }
 0x49f   : > { %4424 = vmatprep.subr.bf16.mxu0 %v2793_v20  ;;  %4465 = vmatprep.subr.bf16.mxu1 %v2825_v11  ;;  %v2874_v20 = vunpack.c.h.s8.bf16 %v1844_v60 }
 0x4a2   : > { %4425 = vmatpush2.bf16.msra.mxu0 %v2792_v8  ;;  %4466 = vmatpush2.bf16.msra.mxu1 %v2824_v9  ;;  %v1827_v8 = vld [vmem:[%s6291_s10 + $0xe18] sm:$0xff] }
 0x4a3   : > { %4426 = vmatprep.subr.bf16.mxu0 %v2791_v23  ;;  %4467 = vmatprep.subr.bf16.mxu1 %v2823_v21  ;;  %v1843_v9 = vld [vmem:[%s6291_s10 + $0xe98] sm:$0xff]  ;;  %v2840_v23 = vunpack.c.l.s8.bf16 %v1828_v58  ;;  %v2839_v21 = vunpack.c.h.s8.bf16 %v1827_v8  ;;  %v2837_v16 = vunpack.c.l.s8.bf16 %v1827_v8  ;;  %v1833_v8 = vld [vmem:[%s6291_s10 + $0xe48] sm:$0xff] }
 0x4a4   : > { %v2869_v17 = vunpack.c.l.s8.bf16 %v1843_v9  ;;  %v1835_v58 = vld [vmem:[%s6291_s10 + $0xe58] sm:$0xff] }
 0x4a6   : > { %4427 = vmatpush2.bf16.msra.mxu0 %v2790_v19  ;;  %4468 = vmatpush2.bf16.msra.mxu1 %v2822_v32  ;;  %v2871_v19 = vunpack.c.h.s8.bf16 %v1843_v9  ;;  %v1842_v32 = vld [vmem:[%s6291_s10 + $0xe90] sm:$0xff]  ;;  %v1849_v9 = vld [vmem:[%s6291_s10 + $0xec8] sm:$0xff] }
 0x4a7   : > { %4428 = vmatprep.subr.bf16.mxu0 %v2789_v14  ;;  %4469 = vmatprep.subr.bf16.mxu1 %v2821_v15  ;;  %v2838_v14 = vunpack.c.h.s8.bf16 %v1826_v22  ;;  %v2870_v15 = vunpack.c.h.s8.bf16 %v1842_v32  ;;  %v2868_v33 = vunpack.c.l.s8.bf16 %v1842_v32  ;;  %v1848_v32 = vld [vmem:[%s6291_s10 + $0xec0] sm:$0xff] }
 0x4aa   : > { %4429 = vmatpush2.bf16.msra.mxu0 %v2788_v48  ;;  %4470 = vmatpush2.bf16.msra.mxu1 %v2820_v44  ;;  %v1825_v48 = vld [vmem:[%s6291_s10 + $0xe08] sm:$0xff] }
 0x4ab   : > { %4430 = vmatprep.subr.bf16.mxu0 %v2787_v24  ;;  %4471 = vmatprep.subr.bf16.mxu1 %v2819_v29  ;;  %v1841_v44 = vld [vmem:[%s6291_s10 + $0xe88] sm:$0xff]  ;;  %v2836_v24 = vunpack.c.l.s8.bf16 %v1826_v22  ;;  %v2835_v29 = vunpack.c.h.s8.bf16 %v1825_v48  ;;  %v2833_v42 = vunpack.c.l.s8.bf16 %v1825_v48  ;;  %v1832_v22 = vld [vmem:[%s6291_s10 + $0xe40] sm:$0xff]  ;;  %v1863_v48 = vld [vmem:[%s6291_s10 + $0xf38] sm:$0xff] }
 0x4ac   : > { %v2865_v34 = vunpack.c.l.s8.bf16 %v1841_v44 }
 0x4ae   : > { %4431 = vmatpush2.bf16.msra.mxu0 %v2786_v25  ;;  %4472 = vmatpush2.bf16.msra.mxu1 %v2818_v45  ;;  %v2867_v25 = vunpack.c.h.s8.bf16 %v1841_v44  ;;  %v1840_v45 = vld [vmem:[%s6291_s10 + $0xe80] sm:$0xff]  ;;  %v1879_v44 = vld [vmem:[%s6291_s10 + $0xfb8] sm:$0xff] }
 0x4af   : > { %4432 = vmatprep.subr.bf16.mxu0 %v2785_v26  ;;  %4473 = vmatprep.subr.bf16.mxu1 %v2817_v27  ;;  %v2834_v26 = vunpack.c.h.s8.bf16 %v1824_v40  ;;  %v2866_v27 = vunpack.c.h.s8.bf16 %v1840_v45  ;;  %v2864_v52 = vunpack.c.l.s8.bf16 %v1840_v45  ;;  %v1878_v45 = vld [vmem:[%s6291_s10 + $0xfb0] sm:$0xff] }
 0x4b2   : > { %4433 = vmatpush2.bf16.msra.mxu0 %v2784_v49  ;;  %4474 = vmatpush2.bf16.msra.mxu1 %v2816_v39  ;;  %v1839_v49 = vld [vmem:[%s6291_s10 + $0xe78] sm:$0xff] }
 0x4b3   : > { %4484 = vmatprep.subr.bf16.mxu0 %v2847_v41  ;;  %4525 = vmatprep.subr.bf16.mxu1 %v2879_v35  ;;  %v1855_v39 = vld [vmem:[%s6291_s10 + $0xef8] sm:$0xff]  ;;  %v2832_v41 = vunpack.c.l.s8.bf16 %v1824_v40  ;;  %v2863_v35 = vunpack.c.h.s8.bf16 %v1839_v49  ;;  %v1862_v40 = vld [vmem:[%s6291_s10 + $0xf30] sm:$0xff] }
 0x4b5   : > { %v4190_v7 = vpop.f32.mrf.mxu0  ;;  %4435 = vmatmul.mubr.bf16.vlgmr.msra.gmra.mxu0 %v4950_v37  ;;  %v4231_v51 = vpop.f32.mrf.mxu1  ;;  %4476 = vmatmul.mubr.bf16.vlgmr.msra.gmra.mxu1 %v4952_v38  ;;  %v2895_v37 = vunpack.c.h.s8.bf16 %v1855_v39  ;;  %v1854_v38 = vld [vmem:[%s6291_s10 + $0xef0] sm:$0xff] }
 0x4b6   : > { %v4191_v56 = vadd.f32 %v4190_v7, %v7005_v12  ;;  %4485 = vmatpush1.bf16.msra.mxu0 %v2846_v46  ;;  %4526 = vmatpush1.bf16.msra.mxu1 %v2878_v47  ;;  %v2862_v46 = vunpack.c.h.s8.bf16 %v1838_v36  ;;  %v2894_v47 = vunpack.c.h.s8.bf16 %v1854_v38 }
 0x4b7   : > { %v4192_v63 = vpop.f32.mrf.mxu0  ;;  %v4233_v30 = vpop.f32.mrf.mxu1  ;;  %4486 = vmatprep.subr.bf16.mxu0 %v2845_v0  ;;  %4527 = vmatprep.subr.bf16.mxu1 %v2877_v53  ;;  %v2861_v0 = vunpack.c.l.s8.bf16 %v1839_v49  ;;  %v2893_v53 = vunpack.c.l.s8.bf16 %v1855_v39  ;;  %v2910_v49 = vunpack.c.h.s8.bf16 %v1862_v40  ;;  %v2942_v39 = vunpack.c.h.s8.bf16 %v1878_v45 }
 0x4b8   : > { %v4193_v61 = vadd.f32 %v4192_v63, %v7007_v28  ;;  %v7061_v2 = vadd.f32 %v4231_v51, %v4191_v56  ;;  %4516 = vmatprep.mubr.bf16.mxu0 %v4955_v6  ;;  %4557 = vmatprep.mubr.bf16.mxu1 %v4957_v50  ;;  %v2841_v28 = vunpack.c.l.s8.bf16 %v1829_v62  ;;  %v1837_v62 = vld [vmem:[%s6291_s10 + $0xe68] sm:$0xff]  ;;  %v2860_v6 = vunpack.c.l.s8.bf16 %v1838_v36  ;;  %v1836_v51 = vld [vmem:[%s6291_s10 + $0xe60] sm:$0xff] }
 0x4b9   : > { %v4194_v12 = vpop.f32.mrf.mxu0  ;;  %v4235_v3 = vpop.f32.mrf.mxu1  ;;  %v2892_v50 = vunpack.c.l.s8.bf16 %v1854_v38  ;;  %v2859_v7 = vunpack.c.h.s8.bf16 %v1837_v62  ;;  %v2891_v56 = vunpack.c.h.s8.bf16 %v1853_v55  ;;  %v2856_v60 = vunpack.c.l.s8.bf16 %v1836_v51 }
 0x4ba   : > { %v7063_v18 = vadd.f32 %v4233_v30, %v4193_v61  ;;  %4487 = vmatpush1.bf16.msra.mxu0 %v2844_v57  ;;  %4528 = vmatpush1.bf16.msra.mxu1 %v2876_v31  ;;  %v1852_v57 = vld [vmem:[%s6291_s10 + $0xee0] sm:$0xff]  ;;  %v2858_v31 = vunpack.c.h.s8.bf16 %v1836_v51  ;;  %v2857_v30 = vunpack.c.l.s8.bf16 %v1837_v62  ;;  %v2855_v12 = vunpack.c.h.s8.bf16 %v1835_v58  ;;  %v1834_v3 = vld [vmem:[%s6291_s10 + $0xe50] sm:$0xff] }
 0x4bb   : > { %v4195_v11 = vpop.f32.mrf.mxu0  ;;  %4488 = vmatprep.subr.bf16.mxu0 %v2843_v1  ;;  %4529 = vmatprep.subr.bf16.mxu1 %v2875_v59  ;;  %v4236_v5 = vpop.f32.mrf.mxu1  ;;  %v2890_v63 = vunpack.c.h.s8.bf16 %v1852_v57  ;;  %v2889_v1 = vunpack.c.l.s8.bf16 %v1853_v55  ;;  %v1851_v59 = vld [vmem:[%s6291_s10 + $0xed8] sm:$0xff]  ;;  %v2888_v61 = vunpack.c.l.s8.bf16 %v1852_v57 }
 0x4bc   : > { %v2854_v11 = vunpack.c.h.s8.bf16 %v1834_v3  ;;  %v2885_v5 = vunpack.c.l.s8.bf16 %v1851_v59 }
 0x4be   : > { %4489 = vmatpush1.bf16.msra.mxu0 %v2842_v10  ;;  %4530 = vmatpush1.bf16.msra.mxu1 %v2874_v20  ;;  %v2887_v10 = vunpack.c.h.s8.bf16 %v1851_v59  ;;  %v1850_v20 = vld [vmem:[%s6291_s10 + $0xed0] sm:$0xff] }
 0x4bf   : > { %4490 = vmatprep.subr.bf16.mxu0 %v2841_v28  ;;  %4531 = vmatprep.subr.bf16.mxu1 %v2873_v4  ;;  %v2886_v28 = vunpack.c.h.s8.bf16 %v1850_v20  ;;  %v2853_v4 = vunpack.c.l.s8.bf16 %v1835_v58 }
 0x4c2   : > { %4491 = vmatpush1.bf16.msra.mxu0 %v2840_v23  ;;  %4532 = vmatpush1.bf16.msra.mxu1 %v2872_v13  ;;  %v2852_v23 = vunpack.c.l.s8.bf16 %v1834_v3  ;;  %v2884_v13 = vunpack.c.l.s8.bf16 %v1850_v20  ;;  %v1858_v20 = vld [vmem:[%s6291_s10 + $0xf10] sm:$0xff] }
 0x4c3   : > { %4492 = vmatprep.subr.bf16.mxu0 %v2839_v21  ;;  %4533 = vmatprep.subr.bf16.mxu1 %v2871_v19  ;;  %v2851_v21 = vunpack.c.h.s8.bf16 %v1833_v8  ;;  %v2883_v19 = vunpack.c.h.s8.bf16 %v1849_v9 }
 0x4c6   : > { %4493 = vmatpush1.bf16.msra.mxu0 %v2838_v14  ;;  %4534 = vmatpush1.bf16.msra.mxu1 %v2870_v15  ;;  %v2850_v14 = vunpack.c.h.s8.bf16 %v1832_v22  ;;  %v2882_v15 = vunpack.c.h.s8.bf16 %v1848_v32 }
 0x4c7   : > { %4494 = vmatprep.subr.bf16.mxu0 %v2837_v16  ;;  %4535 = vmatprep.subr.bf16.mxu1 %v2869_v17  ;;  %v2849_v16 = vunpack.c.l.s8.bf16 %v1833_v8  ;;  %v2881_v17 = vunpack.c.l.s8.bf16 %v1849_v9 }
 0x4ca   : > { %4495 = vmatpush1.bf16.msra.mxu0 %v2836_v24  ;;  %4536 = vmatpush1.bf16.msra.mxu1 %v2868_v33  ;;  %v2848_v24 = vunpack.c.l.s8.bf16 %v1832_v22  ;;  %v2880_v33 = vunpack.c.l.s8.bf16 %v1848_v32  ;;  %v1856_v32 = vld [vmem:[%s6291_s10 + $0xf00] sm:$0xff] }
 0x4cb   : > { %4496 = vmatprep.subr.bf16.mxu0 %v2835_v29  ;;  %4537 = vmatprep.subr.bf16.mxu1 %v2867_v25  ;;  %v2911_v29 = vunpack.c.h.s8.bf16 %v1863_v48  ;;  %v2943_v25 = vunpack.c.h.s8.bf16 %v1879_v44 }
 0x4ce   : > { %4497 = vmatpush1.bf16.msra.mxu0 %v2834_v26  ;;  %4538 = vmatpush1.bf16.msra.mxu1 %v2866_v27  ;;  %v4954_v26 = vcombine.low %v7044_v54, %v7044_v54  ;;  %v4956_v27 = vcombine.low %v7049_v43, %v7049_v43  ;;  %v2909_v54 = vunpack.c.l.s8.bf16 %v1863_v48  ;;  %v1877_v43 = vld [vmem:[%s6291_s10 + $0xfa8] sm:$0xff] }
 0x4cf   : > { %4498 = vmatprep.subr.bf16.mxu0 %v2833_v42  ;;  %4539 = vmatprep.subr.bf16.mxu1 %v2865_v34  ;;  %v7100_v42 = vld [vmem:[%s7259_s0 + $0xf0] sm:$0xff]  ;;  %v7105_v34 = vld [vmem:[%s7259_s0 + $0xf8] sm:$0xff]  ;;  %v2937_v58 = vunpack.c.l.s8.bf16 %v1877_v43 }
 0x4d0   : > { %v4961_v36 = vcombine.high %v7105_v34, %v7105_v34 }
 0x4d2   : > { %4499 = vmatpush1.bf16.msra.mxu0 %v2832_v41  ;;  %4540 = vmatpush1.bf16.msra.mxu1 %v2864_v52  ;;  %v2941_v41 = vunpack.c.l.s8.bf16 %v1879_v44  ;;  %v1861_v52 = vld [vmem:[%s6291_s10 + $0xf28] sm:$0xff] }
 0x4d3   : > { %4500 = vmatprep.subr.bf16.mxu0 %v2863_v35  ;;  %4541 = vmatprep.subr.bf16.mxu1 %v2895_v37  ;;  %v4959_v35 = vcombine.high %v7100_v42, %v7100_v42  ;;  %v2907_v55 = vunpack.c.h.s8.bf16 %v1861_v52 }
 0x4d6   : > { %4501 = vmatpush2.bf16.msra.mxu0 %v2862_v46  ;;  %4542 = vmatpush2.bf16.msra.mxu1 %v2894_v47  ;;  %v2908_v47 = vunpack.c.l.s8.bf16 %v1862_v40 }
 0x4d7   : > { %4502 = vmatprep.subr.bf16.mxu0 %v2861_v0  ;;  %4543 = vmatprep.subr.bf16.mxu1 %v2893_v53  ;;  %v2940_v0 = vunpack.c.l.s8.bf16 %v1878_v45  ;;  %v1870_v45 = vld [vmem:[%s6291_s10 + $0xf70] sm:$0xff] }
 0x4da   : > { %4503 = vmatpush2.bf16.msra.mxu0 %v2860_v6  ;;  %4544 = vmatpush2.bf16.msra.mxu1 %v2892_v50  ;;  %v1860_v6 = vld [vmem:[%s6291_s10 + $0xf20] sm:$0xff]  ;;  %v2939_v50 = vunpack.c.h.s8.bf16 %v1877_v43  ;;  %v1885_v43 = vld [vmem:[%s6291_s10 + $0xfe8] sm:$0xff] }
 0x4db   : > { %4504 = vmatprep.subr.bf16.mxu0 %v2859_v7  ;;  %4545 = vmatprep.subr.bf16.mxu1 %v2891_v56  ;;  %v1876_v7 = vld [vmem:[%s6291_s10 + $0xfa0] sm:$0xff] }
 0x4dc   : > { %v2936_v3 = vunpack.c.l.s8.bf16 %v1876_v7 }
 0x4de   : > { %4505 = vmatpush2.bf16.msra.mxu0 %v2858_v31  ;;  %4546 = vmatpush2.bf16.msra.mxu1 %v2890_v63  ;;  %v2906_v63 = vunpack.c.h.s8.bf16 %v1860_v6 }
 0x4df   : > { %4506 = vmatprep.subr.bf16.mxu0 %v2857_v30  ;;  %4547 = vmatprep.subr.bf16.mxu1 %v2889_v1  ;;  %v2938_v30 = vunpack.c.h.s8.bf16 %v1876_v7 }
 0x4e2   : > { %4507 = vmatpush2.bf16.msra.mxu0 %v2856_v60  ;;  %4548 = vmatpush2.bf16.msra.mxu1 %v2888_v61  ;;  %v1859_v60 = vld [vmem:[%s6291_s10 + $0xf18] sm:$0xff] }
 0x4e3   : > { %4508 = vmatprep.subr.bf16.mxu0 %v2855_v12  ;;  %4549 = vmatprep.subr.bf16.mxu1 %v2887_v10  ;;  %v1875_v61 = vld [vmem:[%s6291_s10 + $0xf98] sm:$0xff]  ;;  %v2904_v12 = vunpack.c.l.s8.bf16 %v1860_v6  ;;  %v2903_v10 = vunpack.c.h.s8.bf16 %v1859_v60  ;;  %v2901_v8 = vunpack.c.l.s8.bf16 %v1859_v60  ;;  %v1865_v60 = vld [vmem:[%s6291_s10 + $0xf48] sm:$0xff] }
 0x4e4   : > { %v2933_v9 = vunpack.c.l.s8.bf16 %v1875_v61  ;;  %v1867_v6 = vld [vmem:[%s6291_s10 + $0xf58] sm:$0xff] }
 0x4e6   : > { %4509 = vmatpush2.bf16.msra.mxu0 %v2854_v11  ;;  %4550 = vmatpush2.bf16.msra.mxu1 %v2886_v28  ;;  %v2935_v11 = vunpack.c.h.s8.bf16 %v1875_v61  ;;  %v1874_v28 = vld [vmem:[%s6291_s10 + $0xf90] sm:$0xff]  ;;  %v1881_v61 = vld [vmem:[%s6291_s10 + $0xfc8] sm:$0xff] }
 0x4e7   : > { %4510 = vmatprep.subr.bf16.mxu0 %v2853_v4  ;;  %4551 = vmatprep.subr.bf16.mxu1 %v2885_v5  ;;  %v2902_v4 = vunpack.c.h.s8.bf16 %v1858_v20  ;;  %v2934_v5 = vunpack.c.h.s8.bf16 %v1874_v28  ;;  %v2932_v22 = vunpack.c.l.s8.bf16 %v1874_v28  ;;  %v1880_v28 = vld [vmem:[%s6291_s10 + $0xfc0] sm:$0xff] }
 0x4ea   : > { %4511 = vmatpush2.bf16.msra.mxu0 %v2852_v23  ;;  %4552 = vmatpush2.bf16.msra.mxu1 %v2884_v13  ;;  %v1857_v23 = vld [vmem:[%s6291_s10 + $0xf08] sm:$0xff] }
 0x4eb   : > { %4512 = vmatprep.subr.bf16.mxu0 %v2851_v21  ;;  %4553 = vmatprep.subr.bf16.mxu1 %v2883_v19  ;;  %v1873_v13 = vld [vmem:[%s6291_s10 + $0xf88] sm:$0xff]  ;;  %v2900_v21 = vunpack.c.l.s8.bf16 %v1858_v20  ;;  %v2899_v19 = vunpack.c.h.s8.bf16 %v1857_v23  ;;  %v2897_v48 = vunpack.c.l.s8.bf16 %v1857_v23  ;;  %v1864_v20 = vld [vmem:[%s6291_s10 + $0xf40] sm:$0xff]  ;;  %v1895_v23 = vld [vmem:[%s6291_s10 + $0x1038] sm:$0xff] }
 0x4ec   : > { %v2929_v44 = vunpack.c.l.s8.bf16 %v1873_v13 }
 0x4ee   : > { %4513 = vmatpush2.bf16.msra.mxu0 %v2850_v14  ;;  %4554 = vmatpush2.bf16.msra.mxu1 %v2882_v15  ;;  %v2931_v14 = vunpack.c.h.s8.bf16 %v1873_v13  ;;  %v1872_v15 = vld [vmem:[%s6291_s10 + $0xf80] sm:$0xff]  ;;  %v1911_v13 = vld [vmem:[%s6291_s10 + $0x10b8] sm:$0xff] }
 0x4ef   : > { %4514 = vmatprep.subr.bf16.mxu0 %v2849_v16  ;;  %4555 = vmatprep.subr.bf16.mxu1 %v2881_v17  ;;  %v2898_v16 = vunpack.c.h.s8.bf16 %v1856_v32  ;;  %v2930_v17 = vunpack.c.h.s8.bf16 %v1872_v15  ;;  %v2928_v40 = vunpack.c.l.s8.bf16 %v1872_v15  ;;  %v1910_v15 = vld [vmem:[%s6291_s10 + $0x10b0] sm:$0xff] }
 0x4f2   : > { %4515 = vmatpush2.bf16.msra.mxu0 %v2848_v24  ;;  %4556 = vmatpush2.bf16.msra.mxu1 %v2880_v33  ;;  %v1871_v24 = vld [vmem:[%s6291_s10 + $0xf78] sm:$0xff] }
 0x4f3   : > { %4566 = vmatprep.subr.bf16.mxu0 %v2911_v29  ;;  %4607 = vmatprep.subr.bf16.mxu1 %v2943_v25  ;;  %v1887_v33 = vld [vmem:[%s6291_s10 + $0xff8] sm:$0xff]  ;;  %v2896_v29 = vunpack.c.l.s8.bf16 %v1856_v32  ;;  %v2927_v25 = vunpack.c.h.s8.bf16 %v1871_v24  ;;  %v1894_v32 = vld [vmem:[%s6291_s10 + $0x1030] sm:$0xff] }
 0x4f5   : > { %v4272_v37 = vpop.f32.mrf.mxu0  ;;  %4517 = vmatmul.mubr.bf16.vlgmr.msra.gmra.mxu0 %v4954_v26  ;;  %v4313_v38 = vpop.f32.mrf.mxu1  ;;  %4558 = vmatmul.mubr.bf16.vlgmr.msra.gmra.mxu1 %v4956_v27  ;;  %v2959_v26 = vunpack.c.h.s8.bf16 %v1887_v33  ;;  %v1886_v27 = vld [vmem:[%s6291_s10 + $0xff0] sm:$0xff] }
 0x4f6   : > { %v4273_v46 = vadd.f32 %v4272_v37, %v7061_v2  ;;  %4567 = vmatpush1.bf16.msra.mxu0 %v2910_v49  ;;  %4608 = vmatpush1.bf16.msra.mxu1 %v2942_v39  ;;  %v2926_v49 = vunpack.c.h.s8.bf16 %v1870_v45  ;;  %v2958_v39 = vunpack.c.h.s8.bf16 %v1886_v27 }
 0x4f7   : > { %v4274_v53 = vpop.f32.mrf.mxu0  ;;  %v4315_v62 = vpop.f32.mrf.mxu1  ;;  %4568 = vmatprep.subr.bf16.mxu0 %v2909_v54  ;;  %4609 = vmatprep.subr.bf16.mxu1 %v2941_v41  ;;  %v2925_v54 = vunpack.c.l.s8.bf16 %v1871_v24  ;;  %v2957_v41 = vunpack.c.l.s8.bf16 %v1887_v33  ;;  %v2974_v24 = vunpack.c.h.s8.bf16 %v1894_v32  ;;  %v3006_v33 = vunpack.c.h.s8.bf16 %v1910_v15 }
 0x4f8   : > { %v4275_v51 = vadd.f32 %v4274_v53, %v7063_v18  ;;  %v7117_v56 = vadd.f32 %v4313_v38, %v4273_v46  ;;  %4598 = vmatprep.mubr.bf16.mxu0 %v4959_v35  ;;  %4639 = vmatprep.mubr.bf16.mxu1 %v4961_v36  ;;  %v2905_v18 = vunpack.c.l.s8.bf16 %v1861_v52  ;;  %v1869_v52 = vld [vmem:[%s6291_s10 + $0xf68] sm:$0xff]  ;;  %v2924_v35 = vunpack.c.l.s8.bf16 %v1870_v45  ;;  %v1868_v38 = vld [vmem:[%s6291_s10 + $0xf60] sm:$0xff] }
 0x4f9   : > { %v4276_v2 = vpop.f32.mrf.mxu0  ;;  %v4317_v57 = vpop.f32.mrf.mxu1  ;;  %v2956_v36 = vunpack.c.l.s8.bf16 %v1886_v27  ;;  %v2923_v37 = vunpack.c.h.s8.bf16 %v1869_v52  ;;  %v2955_v46 = vunpack.c.h.s8.bf16 %v1885_v43  ;;  %v2920_v7 = vunpack.c.l.s8.bf16 %v1868_v38 }
 0x4fa   : > { %v7119_v31 = vadd.f32 %v4315_v62, %v4275_v51  ;;  %4569 = vmatpush1.bf16.msra.mxu0 %v2908_v47  ;;  %4610 = vmatpush1.bf16.msra.mxu1 %v2940_v0  ;;  %v1884_v47 = vld [vmem:[%s6291_s10 + $0xfe0] sm:$0xff]  ;;  %v2922_v0 = vunpack.c.h.s8.bf16 %v1868_v38  ;;  %v2921_v62 = vunpack.c.l.s8.bf16 %v1869_v52  ;;  %v2919_v2 = vunpack.c.h.s8.bf16 %v1867_v6  ;;  %v1866_v57 = vld [vmem:[%s6291_s10 + $0xf50] sm:$0xff] }
 0x4fb   : > { %v4277_v1 = vpop.f32.mrf.mxu0  ;;  %4570 = vmatprep.subr.bf16.mxu0 %v2907_v55  ;;  %4611 = vmatprep.subr.bf16.mxu1 %v2939_v50  ;;  %v4318_v59 = vpop.f32.mrf.mxu1  ;;  %v2954_v53 = vunpack.c.h.s8.bf16 %v1884_v47  ;;  %v2953_v55 = vunpack.c.l.s8.bf16 %v1885_v43  ;;  %v1883_v50 = vld [vmem:[%s6291_s10 + $0xfd8] sm:$0xff]  ;;  %v2952_v51 = vunpack.c.l.s8.bf16 %v1884_v47 }
 0x4fc   : > { %v2918_v1 = vunpack.c.h.s8.bf16 %v1866_v57  ;;  %v2949_v59 = vunpack.c.l.s8.bf16 %v1883_v50 }
 0x4fe   : > { %4571 = vmatpush1.bf16.msra.mxu0 %v2906_v63  ;;  %4612 = vmatpush1.bf16.msra.mxu1 %v2938_v30  ;;  %v2951_v63 = vunpack.c.h.s8.bf16 %v1883_v50  ;;  %v1882_v30 = vld [vmem:[%s6291_s10 + $0xfd0] sm:$0xff] }
 0x4ff   : > { %4572 = vmatprep.subr.bf16.mxu0 %v2905_v18  ;;  %4613 = vmatprep.subr.bf16.mxu1 %v2937_v58  ;;  %v2950_v18 = vunpack.c.h.s8.bf16 %v1882_v30  ;;  %v2917_v58 = vunpack.c.l.s8.bf16 %v1867_v6 }
 0x502   : > { %4573 = vmatpush1.bf16.msra.mxu0 %v2904_v12  ;;  %4614 = vmatpush1.bf16.msra.mxu1 %v2936_v3  ;;  %v2916_v12 = vunpack.c.l.s8.bf16 %v1866_v57  ;;  %v2948_v3 = vunpack.c.l.s8.bf16 %v1882_v30  ;;  %v1890_v30 = vld [vmem:[%s6291_s10 + $0x1010] sm:$0xff] }
 0x503   : > { %4574 = vmatprep.subr.bf16.mxu0 %v2903_v10  ;;  %4615 = vmatprep.subr.bf16.mxu1 %v2935_v11  ;;  %v2915_v10 = vunpack.c.h.s8.bf16 %v1865_v60  ;;  %v2947_v11 = vunpack.c.h.s8.bf16 %v1881_v61 }
 0x506   : > { %4575 = vmatpush1.bf16.msra.mxu0 %v2902_v4  ;;  %4616 = vmatpush1.bf16.msra.mxu1 %v2934_v5  ;;  %v2914_v4 = vunpack.c.h.s8.bf16 %v1864_v20  ;;  %v2946_v5 = vunpack.c.h.s8.bf16 %v1880_v28 }
 0x507   : > { %4576 = vmatprep.subr.bf16.mxu0 %v2901_v8  ;;  %4617 = vmatprep.subr.bf16.mxu1 %v2933_v9  ;;  %v2913_v8 = vunpack.c.l.s8.bf16 %v1865_v60  ;;  %v2945_v9 = vunpack.c.l.s8.bf16 %v1881_v61 }
 0x50a   : > { %4577 = vmatpush1.bf16.msra.mxu0 %v2900_v21  ;;  %4618 = vmatpush1.bf16.msra.mxu1 %v2932_v22  ;;  %v2912_v21 = vunpack.c.l.s8.bf16 %v1864_v20  ;;  %v2944_v22 = vunpack.c.l.s8.bf16 %v1880_v28  ;;  %v1888_v28 = vld [vmem:[%s6291_s10 + $0x1000] sm:$0xff] }
 0x50b   : > { %4578 = vmatprep.subr.bf16.mxu0 %v2899_v19  ;;  %4619 = vmatprep.subr.bf16.mxu1 %v2931_v14  ;;  %v2975_v19 = vunpack.c.h.s8.bf16 %v1895_v23  ;;  %v3007_v14 = vunpack.c.h.s8.bf16 %v1911_v13 }
 0x50e   : > { %4579 = vmatpush1.bf16.msra.mxu0 %v2898_v16  ;;  %4620 = vmatpush1.bf16.msra.mxu1 %v2930_v17  ;;  %v4958_v16 = vcombine.low %v7100_v42, %v7100_v42  ;;  %v4960_v17 = vcombine.low %v7105_v34, %v7105_v34  ;;  %v2973_v42 = vunpack.c.l.s8.bf16 %v1895_v23  ;;  %v1909_v34 = vld [vmem:[%s6291_s10 + $0x10a8] sm:$0xff] }
 0x50f   : > { %4580 = vmatprep.subr.bf16.mxu0 %v2897_v48  ;;  %4621 = vmatprep.subr.bf16.mxu1 %v2929_v44  ;;  %v7156_v48 = vld [vmem:[%s7259_s0 + $0x100] sm:$0xff]  ;;  %v7161_v44 = vld [vmem:[%s7259_s0 + $0x108] sm:$0xff]  ;;  %v3001_v6 = vunpack.c.l.s8.bf16 %v1909_v34 }
 0x510   : > { %v4965_v45 = vcombine.high %v7161_v44, %v7161_v44 }
 0x512   : > { %4581 = vmatpush1.bf16.msra.mxu0 %v2896_v29  ;;  %4622 = vmatpush1.bf16.msra.mxu1 %v2928_v40  ;;  %v3005_v29 = vunpack.c.l.s8.bf16 %v1911_v13  ;;  %v1893_v40 = vld [vmem:[%s6291_s10 + $0x1028] sm:$0xff] }
 0x513   : > { %4582 = vmatprep.subr.bf16.mxu0 %v2927_v25  ;;  %4623 = vmatprep.subr.bf16.mxu1 %v2959_v26  ;;  %v4963_v25 = vcombine.high %v7156_v48, %v7156_v48  ;;  %v2971_v43 = vunpack.c.h.s8.bf16 %v1893_v40 }
 0x516   : > { %4583 = vmatpush2.bf16.msra.mxu0 %v2926_v49  ;;  %4624 = vmatpush2.bf16.msra.mxu1 %v2958_v39  ;;  %v2972_v39 = vunpack.c.l.s8.bf16 %v1894_v32 }
 0x517   : > { %4584 = vmatprep.subr.bf16.mxu0 %v2925_v54  ;;  %4625 = vmatprep.subr.bf16.mxu1 %v2957_v41  ;;  %v3004_v54 = vunpack.c.l.s8.bf16 %v1910_v15  ;;  %v1902_v15 = vld [vmem:[%s6291_s10 + $0x1070] sm:$0xff] }
 0x51a   : > { %4585 = vmatpush2.bf16.msra.mxu0 %v2924_v35  ;;  %4626 = vmatpush2.bf16.msra.mxu1 %v2956_v36  ;;  %v1892_v35 = vld [vmem:[%s6291_s10 + $0x1020] sm:$0xff]  ;;  %v3003_v36 = vunpack.c.h.s8.bf16 %v1909_v34  ;;  %v1917_v34 = vld [vmem:[%s6291_s10 + $0x10e8] sm:$0xff] }
 0x51b   : > { %4586 = vmatprep.subr.bf16.mxu0 %v2923_v37  ;;  %4627 = vmatprep.subr.bf16.mxu1 %v2955_v46  ;;  %v1908_v37 = vld [vmem:[%s6291_s10 + $0x10a0] sm:$0xff] }
 0x51c   : > { %v3000_v57 = vunpack.c.l.s8.bf16 %v1908_v37 }
 0x51e   : > { %4587 = vmatpush2.bf16.msra.mxu0 %v2922_v0  ;;  %4628 = vmatpush2.bf16.msra.mxu1 %v2954_v53  ;;  %v2970_v53 = vunpack.c.h.s8.bf16 %v1892_v35 }
 0x51f   : > { %4588 = vmatprep.subr.bf16.mxu0 %v2921_v62  ;;  %4629 = vmatprep.subr.bf16.mxu1 %v2953_v55  ;;  %v3002_v62 = vunpack.c.h.s8.bf16 %v1908_v37 }
 0x522   : > { %4589 = vmatpush2.bf16.msra.mxu0 %v2920_v7  ;;  %4630 = vmatpush2.bf16.msra.mxu1 %v2952_v51  ;;  %v1891_v7 = vld [vmem:[%s6291_s10 + $0x1018] sm:$0xff] }
 0x523   : > { %4590 = vmatprep.subr.bf16.mxu0 %v2919_v2  ;;  %4631 = vmatprep.subr.bf16.mxu1 %v2951_v63  ;;  %v1907_v51 = vld [vmem:[%s6291_s10 + $0x1098] sm:$0xff]  ;;  %v2968_v2 = vunpack.c.l.s8.bf16 %v1892_v35  ;;  %v2967_v63 = vunpack.c.h.s8.bf16 %v1891_v7  ;;  %v2965_v60 = vunpack.c.l.s8.bf16 %v1891_v7  ;;  %v1897_v7 = vld [vmem:[%s6291_s10 + $0x1048] sm:$0xff] }
 0x524   : > { %v2997_v61 = vunpack.c.l.s8.bf16 %v1907_v51  ;;  %v1899_v35 = vld [vmem:[%s6291_s10 + $0x1058] sm:$0xff] }
 0x526   : > { %4591 = vmatpush2.bf16.msra.mxu0 %v2918_v1  ;;  %4632 = vmatpush2.bf16.msra.mxu1 %v2950_v18  ;;  %v2999_v1 = vunpack.c.h.s8.bf16 %v1907_v51  ;;  %v1906_v18 = vld [vmem:[%s6291_s10 + $0x1090] sm:$0xff]  ;;  %v1913_v51 = vld [vmem:[%s6291_s10 + $0x10c8] sm:$0xff] }
 0x527   : > { %4592 = vmatprep.subr.bf16.mxu0 %v2917_v58  ;;  %4633 = vmatprep.subr.bf16.mxu1 %v2949_v59  ;;  %v2966_v58 = vunpack.c.h.s8.bf16 %v1890_v30  ;;  %v2998_v59 = vunpack.c.h.s8.bf16 %v1906_v18  ;;  %v2996_v20 = vunpack.c.l.s8.bf16 %v1906_v18  ;;  %v1912_v18 = vld [vmem:[%s6291_s10 + $0x10c0] sm:$0xff] }
 0x52a   : > { %4593 = vmatpush2.bf16.msra.mxu0 %v2916_v12  ;;  %4634 = vmatpush2.bf16.msra.mxu1 %v2948_v3  ;;  %v1889_v12 = vld [vmem:[%s6291_s10 + $0x1008] sm:$0xff] }
 0x52b   : > { %4594 = vmatprep.subr.bf16.mxu0 %v2915_v10  ;;  %4635 = vmatprep.subr.bf16.mxu1 %v2947_v11  ;;  %v1905_v3 = vld [vmem:[%s6291_s10 + $0x1088] sm:$0xff]  ;;  %v2964_v10 = vunpack.c.l.s8.bf16 %v1890_v30  ;;  %v2963_v11 = vunpack.c.h.s8.bf16 %v1889_v12  ;;  %v2961_v23 = vunpack.c.l.s8.bf16 %v1889_v12  ;;  %v1896_v30 = vld [vmem:[%s6291_s10 + $0x1040] sm:$0xff]  ;;  %v1927_v12 = vld [vmem:[%s6291_s10 + $0x1138] sm:$0xff] }
 0x52c   : > { %v2993_v13 = vunpack.c.l.s8.bf16 %v1905_v3 }
 0x52e   : > { %4595 = vmatpush2.bf16.msra.mxu0 %v2914_v4  ;;  %4636 = vmatpush2.bf16.msra.mxu1 %v2946_v5  ;;  %v2995_v4 = vunpack.c.h.s8.bf16 %v1905_v3  ;;  %v1904_v5 = vld [vmem:[%s6291_s10 + $0x1080] sm:$0xff]  ;;  %v2976_v3 = vunpack.c.l.s8.bf16 %v1896_v30 }
 0x52f   : > { %4596 = vmatprep.subr.bf16.mxu0 %v2913_v8  ;;  %4637 = vmatprep.subr.bf16.mxu1 %v2945_v9  ;;  %v2962_v8 = vunpack.c.h.s8.bf16 %v1888_v28  ;;  %v2994_v9 = vunpack.c.h.s8.bf16 %v1904_v5  ;;  %v2992_v32 = vunpack.c.l.s8.bf16 %v1904_v5  ;;  %v4964_v5 = vcombine.low %v7161_v44, %v7161_v44 }
 0x532   : > { %4597 = vmatpush2.bf16.msra.mxu0 %v2912_v21  ;;  %4638 = vmatpush2.bf16.msra.mxu1 %v2944_v22  ;;  %v1903_v21 = vld [vmem:[%s6291_s10 + $0x1078] sm:$0xff] }
 0x533   : > { %4648 = vmatprep.subr.bf16.mxu0 %v2975_v19  ;;  %4689 = vmatprep.subr.bf16.mxu1 %v3007_v14  ;;  %v1919_v22 = vld [vmem:[%s6291_s10 + $0x10f8] sm:$0xff]  ;;  %v2960_v19 = vunpack.c.l.s8.bf16 %v1888_v28  ;;  %v2991_v14 = vunpack.c.h.s8.bf16 %v1903_v21  ;;  %v7206_v28 = vld [vmem:[%s7259_s0 + $0x110] sm:$0xff] }
 0x535   : > { %v4354_v26 = vpop.f32.mrf.mxu0  ;;  %4599 = vmatmul.mubr.bf16.vlgmr.msra.gmra.mxu0 %v4958_v16  ;;  %v4395_v27 = vpop.f32.mrf.mxu1  ;;  %4640 = vmatmul.mubr.bf16.vlgmr.msra.gmra.mxu1 %v4960_v17  ;;  %v3023_v16 = vunpack.c.h.s8.bf16 %v1919_v22  ;;  %v1918_v17 = vld [vmem:[%s6291_s10 + $0x10f0] sm:$0xff] }
 0x536   : > { %v4355_v49 = vadd.f32 %v4354_v26, %v7117_v56  ;;  %4649 = vmatpush1.bf16.msra.mxu0 %v2974_v24  ;;  %4690 = vmatpush1.bf16.msra.mxu1 %v3006_v33  ;;  %v2990_v24 = vunpack.c.h.s8.bf16 %v1902_v15  ;;  %v3022_v33 = vunpack.c.h.s8.bf16 %v1918_v17 }
 0x537   : > { %v4356_v41 = vpop.f32.mrf.mxu0  ;;  %v4397_v52 = vpop.f32.mrf.mxu1  ;;  %4650 = vmatprep.subr.bf16.mxu0 %v2973_v42  ;;  %4691 = vmatprep.subr.bf16.mxu1 %v3005_v29  ;;  %v2989_v42 = vunpack.c.l.s8.bf16 %v1903_v21  ;;  %v3021_v29 = vunpack.c.l.s8.bf16 %v1919_v22 }
 0x538   : > { %v4357_v38 = vadd.f32 %v4356_v41, %v7119_v31  ;;  %v7173_v46 = vadd.f32 %v4395_v27, %v4355_v49  ;;  %4680 = vmatprep.mubr.bf16.mxu0 %v4963_v25  ;;  %4721 = vmatprep.mubr.bf16.mxu1 %v4965_v45  ;;  %v2969_v31 = vunpack.c.l.s8.bf16 %v1893_v40  ;;  %v1901_v40 = vld [vmem:[%s6291_s10 + $0x1068] sm:$0xff]  ;;  %v2988_v25 = vunpack.c.l.s8.bf16 %v1902_v15  ;;  %v1900_v27 = vld [vmem:[%s6291_s10 + $0x1060] sm:$0xff] }
 0x539   : > { %v4358_v56 = vpop.f32.mrf.mxu0  ;;  %v4399_v47 = vpop.f32.mrf.mxu1  ;;  %v3020_v45 = vunpack.c.l.s8.bf16 %v1918_v17  ;;  %v2987_v26 = vunpack.c.h.s8.bf16 %v1901_v40  ;;  %v3019_v49 = vunpack.c.h.s8.bf16 %v1917_v34  ;;  %v2984_v37 = vunpack.c.l.s8.bf16 %v1900_v27  ;;  %v1924_v15 = vld [vmem:[%s6291_s10 + $0x1120] sm:$0xff] }
 0x53a   : > { %v7175_v0 = vadd.f32 %v4397_v52, %v4357_v38  ;;  %4651 = vmatpush1.bf16.msra.mxu0 %v2972_v39  ;;  %4692 = vmatpush1.bf16.msra.mxu1 %v3004_v54  ;;  %v1916_v39 = vld [vmem:[%s6291_s10 + $0x10e0] sm:$0xff]  ;;  %v2986_v54 = vunpack.c.h.s8.bf16 %v1900_v27  ;;  %v2985_v52 = vunpack.c.l.s8.bf16 %v1901_v40  ;;  %v2983_v56 = vunpack.c.h.s8.bf16 %v1899_v35  ;;  %v1898_v47 = vld [vmem:[%s6291_s10 + $0x1050] sm:$0xff] }
 0x53b   : > { %v4359_v55 = vpop.f32.mrf.mxu0  ;;  %4652 = vmatprep.subr.bf16.mxu0 %v2971_v43  ;;  %4693 = vmatprep.subr.bf16.mxu1 %v3003_v36  ;;  %v4400_v50 = vpop.f32.mrf.mxu1  ;;  %v3018_v41 = vunpack.c.h.s8.bf16 %v1916_v39  ;;  %v3017_v43 = vunpack.c.l.s8.bf16 %v1917_v34  ;;  %v1915_v36 = vld [vmem:[%s6291_s10 + $0x10d8] sm:$0xff]  ;;  %v3016_v38 = vunpack.c.l.s8.bf16 %v1916_v39  ;;  %v1921_v39 = vld [vmem:[%s6291_s10 + $0x1108] sm:$0xff] }
 0x53c   : > { %v2982_v55 = vunpack.c.h.s8.bf16 %v1898_v47  ;;  %v3013_v50 = vunpack.c.l.s8.bf16 %v1915_v36 }
 0x53e   : > { %4653 = vmatpush1.bf16.msra.mxu0 %v2970_v53  ;;  %4694 = vmatpush1.bf16.msra.mxu1 %v3002_v62  ;;  %v3015_v53 = vunpack.c.h.s8.bf16 %v1915_v36  ;;  %v1914_v62 = vld [vmem:[%s6291_s10 + $0x10d0] sm:$0xff]  ;;  %v1935_v36 = vld [vmem:[%s6291_s10 + $0x1178] sm:$0xff] }
 0x53f   : > { %4654 = vmatprep.subr.bf16.mxu0 %v2969_v31  ;;  %4695 = vmatprep.subr.bf16.mxu1 %v3001_v6  ;;  %v3014_v31 = vunpack.c.h.s8.bf16 %v1914_v62  ;;  %v2981_v6 = vunpack.c.l.s8.bf16 %v1899_v35  ;;  %v3025_v35 = vunpack.c.l.s8.bf16 %v1921_v39 }
 0x542   : > { %4655 = vmatpush1.bf16.msra.mxu0 %v2968_v2  ;;  %4696 = vmatpush1.bf16.msra.mxu1 %v3000_v57  ;;  %v2980_v2 = vunpack.c.l.s8.bf16 %v1898_v47  ;;  %v3012_v57 = vunpack.c.l.s8.bf16 %v1914_v62  ;;  %v1933_v62 = vld [vmem:[%s6291_s10 + $0x1168] sm:$0xff] }
 0x543   : > { %4656 = vmatprep.subr.bf16.mxu0 %v2967_v63  ;;  %4697 = vmatprep.subr.bf16.mxu1 %v2999_v1  ;;  %v2979_v63 = vunpack.c.h.s8.bf16 %v1897_v7  ;;  %v3011_v1 = vunpack.c.h.s8.bf16 %v1913_v51 }
 0x546   : > { %4657 = vmatpush1.bf16.msra.mxu0 %v2966_v58  ;;  %4698 = vmatpush1.bf16.msra.mxu1 %v2998_v59  ;;  %v2978_v58 = vunpack.c.h.s8.bf16 %v1896_v30  ;;  %v3010_v59 = vunpack.c.h.s8.bf16 %v1912_v18 }
 0x547   : > { %4658 = vmatprep.subr.bf16.mxu0 %v2965_v60  ;;  %4699 = vmatprep.subr.bf16.mxu1 %v2997_v61  ;;  %v2977_v60 = vunpack.c.l.s8.bf16 %v1897_v7  ;;  %v3009_v61 = vunpack.c.l.s8.bf16 %v1913_v51  ;;  %v3049_v7 = vunpack.c.l.s8.bf16 %v1933_v62  ;;  %v1931_v51 = vld [vmem:[%s6291_s10 + $0x1158] sm:$0xff] }
 0x54a   : > { %4659 = vmatpush1.bf16.msra.mxu0 %v2964_v10  ;;  %4700 = vmatpush1.bf16.msra.mxu1 %v2996_v20  ;;  %v3008_v10 = vunpack.c.l.s8.bf16 %v1912_v18  ;;  %v3039_v20 = vunpack.c.h.s8.bf16 %v1927_v12  ;;  %v1929_v18 = vld [vmem:[%s6291_s10 + $0x1148] sm:$0xff] }
 0x54b   : > { %4660 = vmatprep.subr.bf16.mxu0 %v2963_v11  ;;  %4701 = vmatprep.subr.bf16.mxu1 %v2995_v4  ;;  %v1926_v11 = vld [vmem:[%s6291_s10 + $0x1130] sm:$0xff]  ;;  %v4962_v4 = vcombine.low %v7156_v48, %v7156_v48 }
 0x54c   : > { %v3036_v48 = vunpack.c.l.s8.bf16 %v1926_v11 }
 0x54e   : > { %4661 = vmatpush1.bf16.msra.mxu0 %v2962_v8  ;;  %4702 = vmatpush1.bf16.msra.mxu1 %v2994_v9  ;;  %v3038_v8 = vunpack.c.h.s8.bf16 %v1926_v11  ;;  %v4967_v9 = vcombine.high %v7206_v28, %v7206_v28 }
 0x54f   : > { %4662 = vmatprep.subr.bf16.mxu0 %v2961_v23  ;;  %4703 = vmatprep.subr.bf16.mxu1 %v2993_v13  ;;  %v3037_v23 = vunpack.c.l.s8.bf16 %v1927_v12  ;;  %v1925_v13 = vld [vmem:[%s6291_s10 + $0x1128] sm:$0xff]  ;;  %v3041_v12 = vunpack.c.l.s8.bf16 %v1929_v18 }
 0x550   : > { %v3033_v40 = vunpack.c.l.s8.bf16 %v1925_v13 }
 0x552   : > { %4663 = vmatpush1.bf16.msra.mxu0 %v2960_v19  ;;  %4704 = vmatpush1.bf16.msra.mxu1 %v2992_v32 }
 0x553   : > { %4664 = vmatprep.subr.bf16.mxu0 %v2991_v14  ;;  %4705 = vmatprep.subr.bf16.mxu1 %v3023_v16  ;;  %v3035_v14 = vunpack.c.h.s8.bf16 %v1925_v13 }
 0x556   : > { %4665 = vmatpush2.bf16.msra.mxu0 %v2990_v24  ;;  %4706 = vmatpush2.bf16.msra.mxu1 %v3022_v33 }
 0x557   : > { %4666 = vmatprep.subr.bf16.mxu0 %v2989_v42  ;;  %4707 = vmatprep.subr.bf16.mxu1 %v3021_v29 }
 0x55a   : > { %4667 = vmatpush2.bf16.msra.mxu0 %v2988_v25  ;;  %4708 = vmatpush2.bf16.msra.mxu1 %v3020_v45  ;;  %v1923_v25 = vld [vmem:[%s6291_s10 + $0x1118] sm:$0xff]  ;;  %v3032_v45 = vunpack.c.l.s8.bf16 %v1924_v15 }
 0x55b   : > { %4668 = vmatprep.subr.bf16.mxu0 %v2987_v26  ;;  %4709 = vmatprep.subr.bf16.mxu1 %v3019_v49  ;;  %v1922_v26 = vld [vmem:[%s6291_s10 + $0x1110] sm:$0xff]  ;;  %v3029_v49 = vunpack.c.l.s8.bf16 %v1923_v25 }
 0x55c   : > { %v3030_v27 = vunpack.c.h.s8.bf16 %v1922_v26 }
 0x55e   : > { %4669 = vmatpush2.bf16.msra.mxu0 %v2986_v54  ;;  %4710 = vmatpush2.bf16.msra.mxu1 %v3018_v41  ;;  %v3028_v54 = vunpack.c.l.s8.bf16 %v1922_v26  ;;  %v3027_v41 = vunpack.c.h.s8.bf16 %v1921_v39  ;;  %v4773_v39 = vlaneseq }
 0x55f   : > { %4670 = vmatprep.subr.bf16.mxu0 %v2985_v52  ;;  %4711 = vmatprep.subr.bf16.mxu1 %v3017_v43  ;;  %v1920_v52 = vld [vmem:[%s6291_s10 + $0x1100] sm:$0xff] }
 0x560   : > { %v3026_v43 = vunpack.c.h.s8.bf16 %v1920_v52 }
 0x562   : > { %4671 = vmatpush2.bf16.msra.mxu0 %v2984_v37  ;;  %4712 = vmatpush2.bf16.msra.mxu1 %v3016_v38  ;;  %v3024_v37 = vunpack.c.l.s8.bf16 %v1920_v52  ;;  %v3055_v38 = vunpack.c.h.s8.bf16 %v1935_v36 }
 0x563   : > { %4672 = vmatprep.subr.bf16.mxu0 %v2983_v56  ;;  %4713 = vmatprep.subr.bf16.mxu1 %v3015_v53  ;;  %v1934_v56 = vld [vmem:[%s6291_s10 + $0x1170] sm:$0xff]  ;;  %v3053_v53 = vunpack.c.l.s8.bf16 %v1935_v36 }
 0x564   : > { %v3054_v47 = vunpack.c.h.s8.bf16 %v1934_v56 }
 0x566   : > { %4673 = vmatpush2.bf16.msra.mxu0 %v2982_v55  ;;  %4714 = vmatpush2.bf16.msra.mxu1 %v3014_v31  ;;  %v3052_v55 = vunpack.c.l.s8.bf16 %v1934_v56  ;;  %v3051_v31 = vunpack.c.h.s8.bf16 %v1933_v62 }
 0x567   : > { %4674 = vmatprep.subr.bf16.mxu0 %v2981_v6  ;;  %4715 = vmatprep.subr.bf16.mxu1 %v3013_v50  ;;  %v1932_v6 = vld [vmem:[%s6291_s10 + $0x1160] sm:$0xff] }
 0x568   : > { %v3050_v50 = vunpack.c.h.s8.bf16 %v1932_v6 }
 0x56a   : > { %4675 = vmatpush2.bf16.msra.mxu0 %v2980_v2  ;;  %4716 = vmatpush2.bf16.msra.mxu1 %v3012_v57  ;;  %v3048_v2 = vunpack.c.l.s8.bf16 %v1932_v6  ;;  %v3047_v57 = vunpack.c.h.s8.bf16 %v1931_v51 }
 0x56b   : > { %4676 = vmatprep.subr.bf16.mxu0 %v2979_v63  ;;  %4717 = vmatprep.subr.bf16.mxu1 %v3011_v1  ;;  %v1930_v63 = vld [vmem:[%s6291_s10 + $0x1150] sm:$0xff]  ;;  %v3045_v1 = vunpack.c.l.s8.bf16 %v1931_v51 }
 0x56c   : > { %v3046_v30 = vunpack.c.h.s8.bf16 %v1930_v63 }
 0x56e   : > { %4677 = vmatpush2.bf16.msra.mxu0 %v2978_v58  ;;  %4718 = vmatpush2.bf16.msra.mxu1 %v3010_v59  ;;  %v3044_v58 = vunpack.c.l.s8.bf16 %v1930_v63  ;;  %v3043_v59 = vunpack.c.h.s8.bf16 %v1929_v18 }
 0x56f   : > { %4678 = vmatprep.subr.bf16.mxu0 %v2977_v60  ;;  %4719 = vmatprep.subr.bf16.mxu1 %v3009_v61  ;;  %v1928_v60 = vld [vmem:[%s6291_s10 + $0x1140] sm:$0xff]  ;;  %s4894_s10 = sshll.u32 %s4887_s18, 1 }
 0x570   : > { %v3042_v61 = vunpack.c.h.s8.bf16 %v1928_v60  ;;  %p1361_p8 = scmp.lt.s32.totalorder %s4894_s10, 3 }
 0x572   : > { %4679 = vmatpush2.bf16.msra.mxu0 %v2976_v3  ;;  %4720 = vmatpush2.bf16.msra.mxu1 %v3008_v10  ;;  %v3040_v3 = vunpack.c.l.s8.bf16 %v1928_v60  ;;  %v4966_v10 = vcombine.low %v7206_v28, %v7206_v28  ;;  %s7268_s10 = smov (!%p1361_p8, %s4894_s10), 3 }
 0x573   : > { %4730 = vmatprep.subr.bf16.mxu0 %v3039_v20  ;;  %s1363_s24 = scalar_lea.vmem %s7261_s2, %s7268_s10  ;;  %s1368_s27 = scalar_lea.vmem %s7262_s3, %s7268_s10 }
 0x574   : > { %s4897_s17 = sshll.u32 %s7268_s10, 3 }
 0x575   : > { %v4436_v21 = vpop.f32.mrf.mxu0  ;;  %4681 = vmatmul.mubr.bf16.vlgmr.msra.gmra.mxu0 %v4962_v4  ;;  %v4477_v22 = vpop.f32.mrf.mxu1  ;;  %4722 = vmatmul.mubr.bf16.vlgmr.msra.gmra.mxu1 %v4964_v5  ;;  %s1374_s29 = scalar_lea.vmem %s7263_s4, %s4897_s17 }
 0x576   : > { %v4437_v19 = vadd.f32 %v4436_v21, %v7173_v46  ;;  %4731 = vmatpush1.bf16.msra.mxu0 %v3038_v8  ;;  %4762 = vmatprep.mubr.bf16.mxu0 %v4967_v9  ;;  %v3034_v46 = vunpack.c.h.s8.bf16 %v1924_v15 }
 0x577   : > { %v4438_v44 = vpop.f32.mrf.mxu0  ;;  %v4479_v32 = vpop.f32.mrf.mxu1  ;;  %4732 = vmatprep.subr.bf16.mxu0 %v3037_v23 }
 0x578   : > { %v4439_v16 = vadd.f32 %v4438_v44, %v7175_v0  ;;  %v7218_v17 = vadd.f32 %v4477_v22, %v4437_v19  ;;  %v3031_v0 = vunpack.c.h.s8.bf16 %v1923_v25 }
 0x579   : > { %v4440_v24 = vpop.f32.mrf.mxu0  ;;  %v4481_v33 = vpop.f32.mrf.mxu1 }
 0x57a   : > { %v7220_v42 = vadd.f32 %v4479_v32, %v4439_v16  ;;  %4733 = vmatpush1.bf16.msra.mxu0 %v3036_v48 }
 0x57b   : > { %v4441_v29 = vpop.f32.mrf.mxu0  ;;  %4734 = vmatprep.subr.bf16.mxu0 %v3035_v14  ;;  %v4482_v34 = vpop.f32.mrf.mxu1 }
 0x57e   : > { %4735 = vmatpush1.bf16.msra.mxu0 %v3034_v46 }
 0x57f   : > { %4736 = vmatprep.subr.bf16.mxu0 %v3033_v40 }
 0x582   : > { %4737 = vmatpush1.bf16.msra.mxu0 %v3032_v45 }
 0x583   : > { %4738 = vmatprep.subr.bf16.mxu0 %v3031_v0 }
 0x586   : > { %4739 = vmatpush1.bf16.msra.mxu0 %v3030_v27 }
 0x587   : > { %4740 = vmatprep.subr.bf16.mxu0 %v3029_v49 }
 0x58a   : > { %4741 = vmatpush1.bf16.msra.mxu0 %v3028_v54  ;;  %v4774_v54 = vshrl.u32 %v4773_v39, 7 }
 0x58b   : > { %4742 = vmatprep.subr.bf16.mxu0 %v3027_v41 }
 0x58c   : > { %v4775_v52 = vsub.s32 0, %v4774_v54  ;;  %v4779_v36 = vsub.s32 1, %v4774_v54 }
 0x58e   : > { %4743 = vmatpush1.bf16.msra.mxu0 %v3026_v43  ;;  %v4771_v43 = vld [vmem:[%s1363_s24] sm:$0x3] }
 0x58f   : > { %4744 = vmatprep.subr.bf16.mxu0 %v3025_v35  ;;  %v4776_v56 = vrot.slane %v4771_v43, %v4775_v52 }
 0x592   : > { %4745 = vmatpush1.bf16.msra.mxu0 %v3024_v37  ;;  %v4785_v37 = vld [vmem:[%s1368_s27] sm:$0x3] }
 0x593   : > { %4746 = vmatprep.subr.bf16.mxu0 %v3055_v38  ;;  %v4794_v51 = vrot.slane %v4785_v37, %v4779_v36 }
 0x596   : > { %4747 = vmatpush2.bf16.msra.mxu0 %v3054_v47 }
 0x597   : > { %4748 = vmatprep.subr.bf16.mxu0 %v3053_v53 }
 0x59a   : > { %4749 = vmatpush2.bf16.msra.mxu0 %v3052_v55  ;;  %v4790_v55 = vrot.slane %v4785_v37, %v4775_v52 }
 0x59b   : > { %4750 = vmatprep.subr.bf16.mxu0 %v3051_v31  ;;  %v4780_v31 = vrot.slane %v4771_v43, %v4779_v36 }
 0x59e   : > { %4751 = vmatpush2.bf16.msra.mxu0 %v3050_v50 }
 0x59f   : > { %4752 = vmatprep.subr.bf16.mxu0 %v3049_v7 }
 0x5a2   : > { %4753 = vmatpush2.bf16.msra.mxu0 %v3048_v2 }
 0x5a3   : > { %4754 = vmatprep.subr.bf16.mxu0 %v3047_v57 }
 0x5a6   : > { %4755 = vmatpush2.bf16.msra.mxu0 %v3046_v30 }
 0x5a7   : > { %4756 = vmatprep.subr.bf16.mxu0 %v3045_v1 }
 0x5aa   : > { %4757 = vmatpush2.bf16.msra.mxu0 %v3044_v58 }
 0x5ab   : > { %4758 = vmatprep.subr.bf16.mxu0 %v3043_v59 }
 0x5ae   : > { %4759 = vmatpush2.bf16.msra.mxu0 %v3042_v61 }
 0x5af   : > { %4760 = vmatprep.subr.bf16.mxu0 %v3041_v12 }
 0x5b2   : > { %4761 = vmatpush2.bf16.msra.mxu0 %v3040_v3 }
 0x5b5   : > { %v4518_v20 = vpop.f32.mrf.mxu0  ;;  %4763 = vmatmul.mubr.bf16.vlgmr.msra.gmra.mxu0 %v4966_v10  ;;  %v4559_v11 = vpop.f32.mrf.mxu1 }
 0x5b6   : > { %v4519_v4 = vadd.f32 %v4518_v20, %v7218_v17 }
 0x5b7   : > { %v4520_v5 = vpop.f32.mrf.mxu0  ;;  %v4561_v8 = vpop.f32.mrf.mxu1 }
 0x5b8   : > { %v4521_v9 = vadd.f32 %v4520_v5, %v7220_v42  ;;  %v4560_v23 = vadd.f32 %v4559_v11, %v4519_v4 }
 0x5b9   : > { %v4522_v13 = vpop.f32.mrf.mxu0  ;;  %v4563_v21 = vpop.f32.mrf.mxu1 }
 0x5ba   : > { %v4562_v22 = vadd.f32 %v4561_v8, %v4521_v9 }
 0x5bb   : > { %v4523_v19 = vpop.f32.mrf.mxu0  ;;  %v4564_v48 = vpop.f32.mrf.mxu1 }
 0x5f5   : > { %v4600_v44 = vpop.f32.mrf.mxu0  ;;  %v4641_v32 = vpop.f32.mrf.mxu1 }
 0x5f6   : > { %v4601_v14 = vadd.f32 %v4600_v44, %v4560_v23 }
 0x5f7   : > { %v4602_v28 = vpop.f32.mrf.mxu0  ;;  %v4643_v15 = vpop.f32.mrf.mxu1 }
 0x5f8   : > { %v4603_v16 = vadd.f32 %v4602_v28, %v4562_v22  ;;  %v4642_v24 = vadd.f32 %v4641_v32, %v4601_v14 }
 0x5f9   : > { %v4604_v33 = vpop.f32.mrf.mxu0  ;;  %v4645_v17 = vpop.f32.mrf.mxu1 }
 0x5fa   : > { %v4644_v46 = vadd.f32 %v4643_v15, %v4603_v16 }
 0x5fb   : > { %v4605_v29 = vpop.f32.mrf.mxu0  ;;  %v4646_v40 = vpop.f32.mrf.mxu1 }
 0x635   : > { %v4682_v42 = vpop.f32.mrf.mxu0  ;;  %v4723_v34 = vpop.f32.mrf.mxu1 }
 0x636   : > { %v4683_v41 = vadd.f32 %v4682_v42, %v4642_v24 }
 0x637   : > { %v4684_v25 = vpop.f32.mrf.mxu0  ;;  %v4725_v45 = vpop.f32.mrf.mxu1 }
 0x638   : > { %v4685_v35 = vadd.f32 %v4684_v25, %v4644_v46  ;;  %v4724_v38 = vadd.f32 %v4723_v34, %v4683_v41 }
 0x639   : > { %v4686_v0 = vpop.f32.mrf.mxu0  ;;  %v4727_v26 = vpop.f32.mrf.mxu1 }
 0x63a   : > { %v4726_v53 = vadd.f32 %v4725_v45, %v4685_v35 }
 0x63b   : > { %v4687_v27 = vpop.f32.mrf.mxu0  ;;  %v4728_v49 = vpop.f32.mrf.mxu1 }
 0x675   : > { %v4764_v47 = vpop.f32.mrf.mxu0 }
 0x676   : > { %v4765_v62 = vadd.f32 %v4764_v47, %v4724_v38 }
 0x677   : > { %v4766_v6 = vpop.f32.mrf.mxu0 }
 0x678   : > { %v4783_v50 = vmul.f32 %v4776_v56, %v4765_v62  ;;  %v4767_v7 = vadd.f32 %v4766_v6, %v4726_v53 }
 0x679   : > { %v4768_v2 = vpop.f32.mrf.mxu0 }
 0x67a   : > { %v4797_v57 = vadd.f32 %v4790_v55, %v4783_v50  ;;  %v4784_v63 = vmul.f32 %v4780_v31, %v4767_v7 }
 0x67b   : > { %v4769_v30 = vpop.f32.mrf.mxu0 }
 0x67c   : > { %vm4799_vm0 = vcmp.ge.f32.partialorder %v4797_v57, 0.0  ;;  %v4801_v1 = vmul.f32 0.01, %v4797_v57  ;;  %v4798_v18 = vadd.f32 %v4794_v51, %v4784_v63 }
 0x67e   : > { %v4803_v58 = vsel %vm4799_vm0, %v4797_v57, %v4801_v1  ;;  %vm4800_vm1 = vcmp.ge.f32.partialorder %v4798_v18, 0.0  ;;  %v4802_v59 = vmul.f32 0.01, %v4798_v18 }
 0x67f   : > { %4805 = vst [vmem:[%s1374_s29] sm:$0xff] %v4803_v58 }
 0x680   : > { %v4804_v60 = vsel %vm4800_vm1, %v4798_v18, %v4802_v59 }
 0x681   : > { %4806 = vst [vmem:[%s1374_s29 + $0x8] sm:$0xff] %v4804_v60 }
 0x682 PF: > { %p11_p9 = scmp.ge.s32.totalorder %s5133_s19, 4   ;;  %s7264_s15 = smov %s5085_s16 }
 0x683   : > { %s7265_s16 = smov %s5142_s22  ;;  %s7266_s17 = smov %s5133_s19 }
 0x684   :  { %13 = sbr.rel (!%p11_p9) target bundleno = 2 (0x2), region = 100 }

</bundles_post_ra>
